<compile_context>
chip_gen: v5e
topology: v5e:2x2
jax: 0.10.0
libtpu: 0.0.40
codegen_flags: <defaults>
</compile_context>

<pallas_src>
import functools

import jax
import jax.numpy as jnp
import numpy as np
from jax.experimental import pallas as pl
from jax.experimental.pallas import tpu as pltpu

EPS = 1e-5
LANES = 128


# ------------------------------- kernel helpers ------------------------------
def _conv3x3_fused(a, w_ref, m_left, m_right):
    """Width-taps + ONE fused MXU matmul for a 3x3 'same' conv.

    a      : (R, W, Cin) f32 activation block.
    w_ref  : (3*Cin, 3*Cout) bf16; contraction axis is [kx, ci] (taps x-1,x,x+1
             kx-major), output axis is [ky, co] (kernel rows ky-major), so one
             matmul produces all three kernel-row partials at N = 3*Cout
             (fills the 256-wide MXU of v6e/v7x much better than N = Cout).
    Returns (r0, r1, r2), each (R, W, Cout) f32.  The caller combines them as
    out[y] = r0[y-1] + r1[y] + r2[y+1] via row-sliced adds.
    """
    rows, wdt, cin = a.shape
    cout = w_ref.shape[1] // 3
    m = rows * wdt
    a2 = a.reshape(m, cin)

    # Width taps via XLU sublane rotation + (hoisted) edge masks.  The f32
    # roll/mask path is kept (v5e-safe, proven lowering); cast to bf16 at the
    # lane-aligned concat.
    t_m1 = jnp.where(m_left, pltpu.roll(a2, 1, 0), 0.0)       # in[y, x-1]
    t_p1 = jnp.where(m_right, pltpu.roll(a2, m - 1, 0), 0.0)  # in[y, x+1]
    taps = jnp.concatenate(
        [t_m1.astype(jnp.bfloat16), a2.astype(jnp.bfloat16),
         t_p1.astype(jnp.bfloat16)], axis=-1)                 # (M, 3*Cin) bf16

    slab = jnp.dot(taps, w_ref[...], preferred_element_type=jnp.float32)
    slab = slab.reshape(rows, wdt, 3 * cout)
    return slab[:, :, :cout], slab[:, :, cout:2 * cout], slab[:, :, 2 * cout:]


def _bottleneck_kernel(xb_ref, xt_ref, w1_ref, s1_ref, b1_ref, sh2_ref,
                       w2_ref, sh3_ref, out_ref, *, h_img):
    """One (batch, row-tile) step.

    xb_ref : (th, W, Cp) bf16  rows [t*th, t*th+th) of the 2-row-padded frame.
    xt_ref : (4,  W, Cp) bf16  halo rows [t*th+th, t*th+th+4) of the frame.
    w*_ref : (3*Cin, 3*Cout) bf16 folded conv weights.
    s1/b1  : (1, 1, Cp)  folded BN1 scale / shift (f32).
    sh2    : (1, 1, Cmp) folded conv1-bias + BN2 shift (f32).
    sh3    : (1, 1, Cp)  folded conv2-bias + BN3 shift (f32).
    out_ref: (th, W, Cp) f32.
    """
    th, wdt, _ = xb_ref.shape
    blk = th + 4
    t = pl.program_id(1)

    # Width-edge masks: built once, reused by both convolutions.
    col = jax.lax.broadcasted_iota(jnp.int32, (blk * wdt, 1), 0) % wdt
    m_left = col >= 1            # x-1 tap valid
    m_right = col < wdt - 1      # x+1 tap valid
    m2 = (th + 2) * wdt          # conv2 works on th+2 rows (same periodic mask)

    # Block rows inside the padded frame; the image occupies rows [2, H+2).
    gr = t * th + jax.lax.broadcasted_iota(jnp.int32, (blk, 1, 1), 0)
    in_image = jnp.logical_and(gr >= 2, gr < h_img + 2)

    # ---- BN1 (folded) + ReLU; zero outside the image = conv1 zero padding ---
    s1 = s1_ref[...]
    b1 = b1_ref[...]
    a = jnp.concatenate(
        [jnp.maximum(xb_ref[...].astype(jnp.float32) * s1 + b1, 0.0),
         jnp.maximum(xt_ref[...].astype(jnp.float32) * s1 + b1, 0.0)], axis=0)
    a = jnp.where(in_image, a, 0.0)                        # (th+4, W, Cp) f32

    # ---- conv1 (BN2 scale folded into w1) + shift + ReLU ---------------------
    # Only rows 1..th+2 of conv1's output are needed by conv2.
    r0, r1, r2 = _conv3x3_fused(a, w1_ref, m_left, m_right)
    h = r0[0:th + 2] + r1[1:th + 3] + r2[2:th + 4]         # (th+2, W, Cmp)
    h = jnp.maximum(h + sh2_ref[...], 0.0)
    h = jnp.where(in_image[1:th + 3], h, 0.0)              # conv2 zero padding

    # ---- conv2 (BN3 scale folded into w2) + shift + ReLU ---------------------
    q0, q1, q2 = _conv3x3_fused(h, w2_ref, m_left[:m2], m_right[:m2])
    o = q0[0:th] + q1[1:th + 1] + q2[2:th + 2]             # (th, W, Cp)
    o = jnp.maximum(o + sh3_ref[...], 0.0)
    out_ref[...] = o.astype(out_ref.dtype)


# --------------------------------- wrapper -----------------------------------
def _fold_bn(bn):
    gamma, beta, mean, var = (t.astype(jnp.float32) for t in bn)
    scale = gamma / jnp.sqrt(var + EPS)
    return scale, beta - mean * scale


def _pad_vec(v, cpad):
    v = v.astype(jnp.float32)
    return jnp.pad(v, (0, cpad - v.shape[0])).reshape(1, 1, cpad)


def _prep_weight(w_oihw, cin_pad, cout_pad):
    """(O, I, 3, 3) OIHW -> (3*cin_pad, 3*cout_pad) bf16.

    Row index = kx*cin_pad + ci (matches the in-kernel tap order x-1, x, x+1);
    column index = ky*cout_pad + co (matches the slab split in _conv3x3_fused).
    """
    o, i, _, _ = w_oihw.shape
    w = jnp.transpose(w_oihw.astype(jnp.float32), (3, 1, 2, 0))  # (kx, I, ky, O)
    w = jnp.pad(w, ((0, 0), (0, cin_pad - i), (0, 0), (0, cout_pad - o)))
    return w.reshape(3 * cin_pad, 3 * cout_pad).astype(jnp.bfloat16)


def _round_up(v, m):
    return (v + m - 1) // m * m


def _vmem_budget():
    try:
        cap = int(pltpu.get_tpu_info().vmem_capacity_bytes)
    except Exception:
        cap = 64 << 20                 # conservative (v7x-sized) fallback
    return (cap * 3) // 4              # headroom for compiler-internal scratch


def _step_bytes(th, wdt, cp, cmp_):
    """Generous per-grid-step VMEM estimate: double-buffered blocks/weights +
    peak in-kernel temporaries (taps, slabs, activations)."""
    blocks = 2 * (th * wdt * cp * 2 + 4 * wdt * cp * 2 + th * wdt * cp * 4)
    weights = 2 * 2 * (3 * cp * 3 * cmp_ + 3 * cmp_ * 3 * cp) * 2
    tmp1 = (th + 4) * wdt * (12 * cp + 6 * cp + 12 * cmp_)
    tmp2 = (th + 2) * wdt * (8 * cmp_ + 6 * cmp_ + 12 * cp)
    tmp3 = th * wdt * cp * 8
    return blocks + weights + tmp1 + tmp2 + tmp3


def _pick_th(h_pad, wdt, cp, cmp_, budget):
    cands = [d for d in range(4, min(h_pad, 64) + 1, 4) if h_pad % d == 0]
    for th in sorted(cands, reverse=True):
        if _step_bytes(th, wdt, cp, cmp_) <= budget:
            return th
    return 4


def bottleneck(x_nchw, w1, cb1, w2, cb2, bn1, bn2, bn3, *, th=None):
    """x_nchw: (N, C, H, W) float32.  Conv weights in PyTorch OIHW layout."""
    N, C, H, W = x_nchw.shape
    Cm = w1.shape[0]
    Cp, Cmp = _round_up(C, LANES), _round_up(Cm, LANES)

    budget = _vmem_budget()
    H_pad = _round_up(H, 4)
    if th is None:
        th = _pick_th(H_pad, W, Cp, Cmp, budget)
    assert th % 4 == 0 and H_pad % th == 0, \
        "row tile must be a multiple of 4 dividing the padded H"
    T = H_pad // th
    th4 = th // 4

    # ---- fold conv biases and BN2/BN3 into the weights / shifts --------------
    s1, b1 = _fold_bn(bn1)
    s2, t2 = _fold_bn(bn2)
    s3, t3 = _fold_bn(bn3)
    w1f = w1.astype(jnp.float32) * s2[:, None, None, None]
    w2f = w2.astype(jnp.float32) * s3[:, None, None, None]
    shift2 = s2 * cb1.astype(jnp.float32) + t2
    shift3 = s3 * cb2.astype(jnp.float32) + t3

    w1k = _prep_weight(w1f, Cp, Cmp)
    w2k = _prep_weight(w2f, Cmp, Cp)
    s1p, b1p = _pad_vec(s1, Cp), _pad_vec(b1, Cp)
    sh2p, sh3p = _pad_vec(shift2, Cmp), _pad_vec(shift3, Cp)

    # ---- NHWC, bf16 DMA, lane-dense channels, 2-row frame padding ------------
    x = jnp.transpose(x_nchw, (0, 2, 3, 1)).astype(jnp.bfloat16)
    xp = jnp.pad(x, ((0, 0), (2, H_pad + 2 - H), (0, 0), (0, Cp - C)))
    # xp: (N, H_pad + 4, W, Cp); image rows live at [2, H+2).

    kernel = functools.partial(_bottleneck_kernel, h_img=H)
    out = pl.pallas_call(
        kernel,
        out_shape=jax.ShapeDtypeStruct((N, H_pad, W, Cp), jnp.float32),
        grid_spec=pltpu.PrefetchScalarGridSpec(
            num_scalar_prefetch=0,
            grid=(N, T),
            in_specs=[
                # Body rows [t*th, t*th+th) and the 4-row halo tail
                # [t*th+th, t*th+th+4) come straight from the same padded
                # frame (no HBM-side window duplication).
                pl.BlockSpec((None, th, W, Cp), lambda n, t: (n, t, 0, 0)),
                pl.BlockSpec((None, 4, W, Cp),
                             lambda n, t: (n, (t + 1) * th4, 0, 0)),
                pl.BlockSpec((3 * Cp, 3 * Cmp), lambda n, t: (0, 0)),    # w1
                pl.BlockSpec((1, 1, Cp), lambda n, t: (0, 0, 0)),        # BN1 s
                pl.BlockSpec((1, 1, Cp), lambda n, t: (0, 0, 0)),        # BN1 b
                pl.BlockSpec((1, 1, Cmp), lambda n, t: (0, 0, 0)),       # shift2
                pl.BlockSpec((3 * Cmp, 3 * Cp), lambda n, t: (0, 0)),    # w2
                pl.BlockSpec((1, 1, Cp), lambda n, t: (0, 0, 0)),        # shift3
            ],
            out_specs=pl.BlockSpec((None, th, W, Cp),
                                   lambda n, t: (n, t, 0, 0)),
        ),
        compiler_params=pltpu.CompilerParams(
            dimension_semantics=("parallel", "parallel"),
            vmem_limit_bytes=int(budget)),
    )(xp, xp, w1k, s1p, b1p, sh2p, w2k, sh3p)

    out = out[:, :H, :, :C]                               # strip padding
    return jnp.transpose(out, (0, 3, 1, 2))               # back to NCHW


# ---------------------------- pure-JAX reference -----------------------------
def reference(x, w1, cb1, w2, cb2, bn1, bn2, bn3):
    def bn(h, p):
        g, b, m, v = (t.reshape(1, -1, 1, 1) for t in p)
        return (h - m) / jnp.sqrt(v + EPS) * g + b

    def conv(h, w, b):
        y = jax.lax.conv_general_dilated(
            h, w, window_strides=(1, 1), padding=((1, 1), (1, 1)),
            dimension_numbers=("NCHW", "OIHW", "NCHW"))
        return y + b.reshape(1, -1, 1, 1)

    h = jax.nn.relu(bn(x, bn1))
    h = conv(h, w1, cb1)
    h = jax.nn.relu(bn(h, bn2))
    h = conv(h, w2, cb2)
    return jax.nn.relu(bn(h, bn3))


if __name__ == "__main__":
    N, C, H, W = 2, 4, 16, 16
    Cm = 2 * C

    keys = jax.random.split(jax.random.PRNGKey(0), 17)
    x = jax.random.normal(keys[0], (N, C, H, W), jnp.float32)

    w1 = jax.random.normal(keys[1], (Cm, C, 3, 3), jnp.float32) * 0.1
    cb1 = jax.random.normal(keys[2], (Cm,), jnp.float32) * 0.1
    w2 = jax.random.normal(keys[3], (C, Cm, 3, 3), jnp.float32) * 0.1
    cb2 = jax.random.normal(keys[4], (C,), jnp.float32) * 0.1

    def bn_params(kg, kb, km, kv, c):
        gamma = jax.random.uniform(kg, (c,), jnp.float32, 0.5, 1.5)
        beta = jax.random.normal(kb, (c,), jnp.float32) * 0.1
        mean = jax.random.normal(km, (c,), jnp.float32) * 0.1
        var = jax.random.uniform(kv, (c,), jnp.float32, 0.5, 1.5)
        return gamma, beta, mean, var

    bn1 = bn_params(keys[5], keys[6], keys[7], keys[8], C)
    bn2 = bn_params(keys[9], keys[10], keys[11], keys[12], Cm)
    bn3 = bn_params(keys[13], keys[14], keys[15], keys[16], C)

    out = bottleneck(x, w1, cb1, w2, cb2, bn1, bn2, bn3)
    out = jax.block_until_ready(out)

    ref = reference(x, w1, cb1, w2, cb2, bn1, bn2, bn3)
    # bf16 input DMA + bf16 MXU path -> loose tolerance.
    np.testing.assert_allclose(np.asarray(out), np.asarray(ref),
                               atol=3e-2, rtol=3e-2)
    print("KERNEL_OK")
</pallas_src>

<mosaic_0001>
module attributes {stable_mosaic.version = 11 : i64} {
  func.func @_bottleneck_kernel(%arg0: i32, %arg1: i32, %arg2: memref<1x16x16x128xbf16, #tpu.memory_space<vmem>>, %arg3: memref<1x4x16x128xbf16, #tpu.memory_space<vmem>>, %arg4: memref<384x384xbf16, #tpu.memory_space<vmem>>, %arg5: memref<1x1x128xf32, #tpu.memory_space<vmem>>, %arg6: memref<1x1x128xf32, #tpu.memory_space<vmem>>, %arg7: memref<1x1x128xf32, #tpu.memory_space<vmem>>, %arg8: memref<384x384xbf16, #tpu.memory_space<vmem>>, %arg9: memref<1x1x128xf32, #tpu.memory_space<vmem>>, %arg10: memref<1x16x16x128xf32, #tpu.memory_space<vmem>>) attributes {dimension_semantics = [#tpu.dimension_semantics<parallel>, #tpu.dimension_semantics<parallel>], iteration_bounds = array<i64: 2, 1>, scalar_prefetch = 0 : i64, scratch_operands = 0 : i64, tpu.core_type = #tpu.core_type<tc>, window_params = [{transform_indices = @transform_0, window_bounds = array<i64: 1, 16, 16, 128>}, {transform_indices = @transform_1, window_bounds = array<i64: 1, 4, 16, 128>}, {pipeline_mode = #tpu.pipeline_mode<synchronous>, transform_indices = @transform_2, window_bounds = array<i64: 384, 384>}, {pipeline_mode = #tpu.pipeline_mode<synchronous>, transform_indices = @transform_3, window_bounds = array<i64: 1, 1, 128>}, {pipeline_mode = #tpu.pipeline_mode<synchronous>, transform_indices = @transform_4, window_bounds = array<i64: 1, 1, 128>}, {pipeline_mode = #tpu.pipeline_mode<synchronous>, transform_indices = @transform_5, window_bounds = array<i64: 1, 1, 128>}, {pipeline_mode = #tpu.pipeline_mode<synchronous>, transform_indices = @transform_6, window_bounds = array<i64: 384, 384>}, {pipeline_mode = #tpu.pipeline_mode<synchronous>, transform_indices = @transform_7, window_bounds = array<i64: 1, 1, 128>}, {transform_indices = @transform_8, window_bounds = array<i64: 1, 16, 16, 128>}]} {
    %0 = tpu.iota {dimensions = array<i32: 0>} : vector<320x1xi32>
    %c16_i32 = arith.constant 16 : i32
    %c0_i32 = arith.constant 0 : i32
    %1 = arith.cmpi eq, %c16_i32, %c0_i32 : i32
    %c1_i32 = arith.constant 1 : i32
    %2 = arith.select %1, %c1_i32, %c16_i32 : i32
    %3 = vector.broadcast %2 : i32 to vector<320x1xi32>
    %4 = arith.remsi %0, %3 : vector<320x1xi32>
    %c0_i32_0 = arith.constant 0 : i32
    %5 = vector.broadcast %c0_i32_0 : i32 to vector<320x1xi32>
    %6 = arith.cmpi ne, %4, %5 : vector<320x1xi32>
    %c0_i32_1 = arith.constant 0 : i32
    %7 = vector.broadcast %c0_i32_1 : i32 to vector<320x1xi32>
    %8 = arith.cmpi slt, %4, %7 : vector<320x1xi32>
    %c0_i32_2 = arith.constant 0 : i32
    %9 = arith.cmpi slt, %2, %c0_i32_2 : i32
    %10 = vector.broadcast %9 : i1 to vector<320x1xi1>
    %11 = vector.broadcast %10 : vector<320x1xi1> to vector<320x1xi1>
    %12 = arith.xori %8, %11 : vector<320x1xi1>
    %13 = arith.andi %12, %6 : vector<320x1xi1>
    %14 = vector.broadcast %2 : i32 to vector<320x1xi32>
    %15 = arith.addi %4, %14 : vector<320x1xi32>
    %16 = arith.select %13, %15, %4 : vector<320x1xi1>, vector<320x1xi32>
    %c1_i32_3 = arith.constant 1 : i32
    %17 = vector.broadcast %c1_i32_3 : i32 to vector<320x1xi32>
    %18 = arith.cmpi sge, %16, %17 : vector<320x1xi32>
    %c15_i32 = arith.constant 15 : i32
    %19 = vector.broadcast %c15_i32 : i32 to vector<320x1xi32>
    %20 = arith.cmpi slt, %16, %19 : vector<320x1xi32>
    %c16_i32_4 = arith.constant 16 : i32
    %21 = arith.muli %arg1, %c16_i32_4 : i32
    %22 = tpu.iota {dimensions = array<i32: 0>} : vector<20x1x1xi32>
    %23 = vector.broadcast %21 : i32 to vector<20x1x1xi32>
    %24 = arith.addi %23, %22 : vector<20x1x1xi32>
    %c2_i32 = arith.constant 2 : i32
    %25 = vector.broadcast %c2_i32 : i32 to vector<20x1x1xi32>
    %26 = arith.cmpi sge, %24, %25 : vector<20x1x1xi32>
    %c18_i32 = arith.constant 18 : i32
    %27 = vector.broadcast %c18_i32 : i32 to vector<20x1x1xi32>
    %28 = arith.cmpi slt, %24, %27 : vector<20x1x1xi32>
    %29 = arith.andi %26, %28 : vector<20x1x1xi1>
    %c0 = arith.constant 0 : index
    %c0_5 = arith.constant 0 : index
    %c0_6 = arith.constant 0 : index
    %30 = vector.load %arg5[%c0, %c0_5, %c0_6] : memref<1x1x128xf32, #tpu.memory_space<vmem>>, vector<1x1x128xf32>
    %c0_7 = arith.constant 0 : index
    %c0_8 = arith.constant 0 : index
    %c0_9 = arith.constant 0 : index
    %31 = vector.load %arg6[%c0_7, %c0_8, %c0_9] : memref<1x1x128xf32, #tpu.memory_space<vmem>>, vector<1x1x128xf32>
    %c0_10 = arith.constant 0 : index
    %c0_11 = arith.constant 0 : index
    %c0_12 = arith.constant 0 : index
    %c0_13 = arith.constant 0 : index
    %32 = vector.load %arg2[%c0_10, %c0_11, %c0_12, %c0_13] : memref<1x16x16x128xbf16, #tpu.memory_space<vmem>>, vector<1x16x16x128xbf16>
    %33 = vector.shape_cast %32 : vector<1x16x16x128xbf16> to vector<16x16x128xbf16>
    %34 = arith.extf %33 : vector<16x16x128xbf16> to vector<16x16x128xf32>
    %35 = vector.broadcast %30 : vector<1x1x128xf32> to vector<16x16x128xf32>
    %36 = arith.mulf %34, %35 : vector<16x16x128xf32>
    %37 = vector.broadcast %31 : vector<1x1x128xf32> to vector<16x16x128xf32>
    %38 = arith.addf %36, %37 : vector<16x16x128xf32>
    %cst = arith.constant 0.000000e+00 : f32
    %39 = vector.broadcast %cst : f32 to vector<16x16x128xf32>
    %40 = arith.maximumf %38, %39 : vector<16x16x128xf32>
    %c0_14 = arith.constant 0 : index
    %c0_15 = arith.constant 0 : index
    %c0_16 = arith.constant 0 : index
    %c0_17 = arith.constant 0 : index
    %41 = vector.load %arg3[%c0_14, %c0_15, %c0_16, %c0_17] : memref<1x4x16x128xbf16, #tpu.memory_space<vmem>>, vector<1x4x16x128xbf16>
    %42 = vector.shape_cast %41 : vector<1x4x16x128xbf16> to vector<4x16x128xbf16>
    %43 = arith.extf %42 : vector<4x16x128xbf16> to vector<4x16x128xf32>
    %44 = vector.broadcast %30 : vector<1x1x128xf32> to vector<4x16x128xf32>
    %45 = arith.mulf %43, %44 : vector<4x16x128xf32>
    %46 = vector.broadcast %31 : vector<1x1x128xf32> to vector<4x16x128xf32>
    %47 = arith.addf %45, %46 : vector<4x16x128xf32>
    %cst_18 = arith.constant 0.000000e+00 : f32
    %48 = vector.broadcast %cst_18 : f32 to vector<4x16x128xf32>
    %49 = arith.maximumf %47, %48 : vector<4x16x128xf32>
    %50 = tpu.concatenate %40, %49 in 0 : vector<16x16x128xf32>, vector<4x16x128xf32> -> vector<20x16x128xf32>
    %cst_19 = arith.constant 0.000000e+00 : f32
    %51 = vector.shape_cast %29 : vector<20x1x1xi1> to vector<20x1x1xi1>
    %52 = vector.broadcast %51 : vector<20x1x1xi1> to vector<20x16x128xi1>
    %53 = vector.broadcast %cst_19 : f32 to vector<20x16x128xf32>
    %54 = arith.select %52, %50, %53 : vector<20x16x128xi1>, vector<20x16x128xf32>
    %55 = vector.shape_cast %54 : vector<20x16x128xf32> to vector<320x128xf32>
    %c1_i32_20 = arith.constant 1 : i32
    %56 = tpu.dynamic_rotate %55 by %c1_i32_20 dim 0 : vector<320x128xf32>, i32 -> vector<320x128xf32>
    %cst_21 = arith.constant 0.000000e+00 : f32
    %57 = vector.shape_cast %18 : vector<320x1xi1> to vector<320x1xi1>
    %58 = vector.broadcast %57 : vector<320x1xi1> to vector<320x128xi1>
    %59 = vector.broadcast %cst_21 : f32 to vector<320x128xf32>
    %60 = arith.select %58, %56, %59 : vector<320x128xi1>, vector<320x128xf32>
    %c319_i32 = arith.constant 319 : i32
    %61 = tpu.dynamic_rotate %55 by %c319_i32 dim 0 : vector<320x128xf32>, i32 -> vector<320x128xf32>
    %cst_22 = arith.constant 0.000000e+00 : f32
    %62 = vector.shape_cast %20 : vector<320x1xi1> to vector<320x1xi1>
    %63 = vector.broadcast %62 : vector<320x1xi1> to vector<320x128xi1>
    %64 = vector.broadcast %cst_22 : f32 to vector<320x128xf32>
    %65 = arith.select %63, %61, %64 : vector<320x128xi1>, vector<320x128xf32>
    %66 = arith.truncf %60 : vector<320x128xf32> to vector<320x128xbf16>
    %67 = arith.truncf %55 : vector<320x128xf32> to vector<320x128xbf16>
    %68 = arith.truncf %65 : vector<320x128xf32> to vector<320x128xbf16>
    %69 = tpu.concatenate %66, %67, %68 in 1 : vector<320x128xbf16>, vector<320x128xbf16>, vector<320x128xbf16> -> vector<320x384xbf16>
    %c0_23 = arith.constant 0 : index
    %c0_24 = arith.constant 0 : index
    %70 = vector.load %arg4[%c0_23, %c0_24] : memref<384x384xbf16, #tpu.memory_space<vmem>>, vector<384x384xbf16>
    %cst_25 = arith.constant dense<0.000000e+00> : vector<320x384xf32>
    %71 = tpu.matmul %69, %70, %cst_25 {dimension_numbers = #tpu.dot_dimension_numbers<[1], [0], [0], [1], [0, 0, 1, 1], [], []>} : vector<320x384xbf16>, vector<384x384xbf16>, vector<320x384xf32> -> vector<320x384xf32>
    %72 = vector.shape_cast %71 : vector<320x384xf32> to vector<20x16x384xf32>
    %73 = vector.extract_strided_slice %72 {offsets = [0, 0, 0], sizes = [20, 16, 128], strides = [1, 1, 1]} : vector<20x16x384xf32> to vector<20x16x128xf32>
    %74 = vector.extract_strided_slice %72 {offsets = [0, 0, 128], sizes = [20, 16, 128], strides = [1, 1, 1]} : vector<20x16x384xf32> to vector<20x16x128xf32>
    %75 = vector.extract_strided_slice %72 {offsets = [0, 0, 256], sizes = [20, 16, 128], strides = [1, 1, 1]} : vector<20x16x384xf32> to vector<20x16x128xf32>
    %76 = vector.extract_strided_slice %73 {offsets = [0, 0, 0], sizes = [18, 16, 128], strides = [1, 1, 1]} : vector<20x16x128xf32> to vector<18x16x128xf32>
    %77 = vector.extract_strided_slice %74 {offsets = [1, 0, 0], sizes = [18, 16, 128], strides = [1, 1, 1]} : vector<20x16x128xf32> to vector<18x16x128xf32>
    %78 = arith.addf %76, %77 : vector<18x16x128xf32>
    %79 = vector.extract_strided_slice %75 {offsets = [2, 0, 0], sizes = [18, 16, 128], strides = [1, 1, 1]} : vector<20x16x128xf32> to vector<18x16x128xf32>
    %80 = arith.addf %78, %79 : vector<18x16x128xf32>
    %c0_26 = arith.constant 0 : index
    %c0_27 = arith.constant 0 : index
    %c0_28 = arith.constant 0 : index
    %81 = vector.load %arg7[%c0_26, %c0_27, %c0_28] : memref<1x1x128xf32, #tpu.memory_space<vmem>>, vector<1x1x128xf32>
    %82 = vector.broadcast %81 : vector<1x1x128xf32> to vector<18x16x128xf32>
    %83 = arith.addf %80, %82 : vector<18x16x128xf32>
    %cst_29 = arith.constant 0.000000e+00 : f32
    %84 = vector.broadcast %cst_29 : f32 to vector<18x16x128xf32>
    %85 = arith.maximumf %83, %84 : vector<18x16x128xf32>
    %86 = vector.extract_strided_slice %29 {offsets = [1, 0, 0], sizes = [18, 1, 1], strides = [1, 1, 1]} : vector<20x1x1xi1> to vector<18x1x1xi1>
    %cst_30 = arith.constant 0.000000e+00 : f32
    %87 = vector.shape_cast %86 : vector<18x1x1xi1> to vector<18x1x1xi1>
    %88 = vector.broadcast %87 : vector<18x1x1xi1> to vector<18x16x128xi1>
    %89 = vector.broadcast %cst_30 : f32 to vector<18x16x128xf32>
    %90 = arith.select %88, %85, %89 : vector<18x16x128xi1>, vector<18x16x128xf32>
    %91 = vector.extract_strided_slice %18 {offsets = [0, 0], sizes = [288, 1], strides = [1, 1]} : vector<320x1xi1> to vector<288x1xi1>
    %92 = vector.extract_strided_slice %20 {offsets = [0, 0], sizes = [288, 1], strides = [1, 1]} : vector<320x1xi1> to vector<288x1xi1>
    %93 = vector.shape_cast %90 : vector<18x16x128xf32> to vector<288x128xf32>
    %c1_i32_31 = arith.constant 1 : i32
    %94 = tpu.dynamic_rotate %93 by %c1_i32_31 dim 0 : vector<288x128xf32>, i32 -> vector<288x128xf32>
    %cst_32 = arith.constant 0.000000e+00 : f32
    %95 = vector.shape_cast %91 : vector<288x1xi1> to vector<288x1xi1>
    %96 = vector.broadcast %95 : vector<288x1xi1> to vector<288x128xi1>
    %97 = vector.broadcast %cst_32 : f32 to vector<288x128xf32>
    %98 = arith.select %96, %94, %97 : vector<288x128xi1>, vector<288x128xf32>
    %c287_i32 = arith.constant 287 : i32
    %99 = tpu.dynamic_rotate %93 by %c287_i32 dim 0 : vector<288x128xf32>, i32 -> vector<288x128xf32>
    %cst_33 = arith.constant 0.000000e+00 : f32
    %100 = vector.shape_cast %92 : vector<288x1xi1> to vector<288x1xi1>
    %101 = vector.broadcast %100 : vector<288x1xi1> to vector<288x128xi1>
    %102 = vector.broadcast %cst_33 : f32 to vector<288x128xf32>
    %103 = arith.select %101, %99, %102 : vector<288x128xi1>, vector<288x128xf32>
    %104 = arith.truncf %98 : vector<288x128xf32> to vector<288x128xbf16>
    %105 = arith.truncf %93 : vector<288x128xf32> to vector<288x128xbf16>
    %106 = arith.truncf %103 : vector<288x128xf32> to vector<288x128xbf16>
    %107 = tpu.concatenate %104, %105, %106 in 1 : vector<288x128xbf16>, vector<288x128xbf16>, vector<288x128xbf16> -> vector<288x384xbf16>
    %c0_34 = arith.constant 0 : index
    %c0_35 = arith.constant 0 : index
    %108 = vector.load %arg8[%c0_34, %c0_35] : memref<384x384xbf16, #tpu.memory_space<vmem>>, vector<384x384xbf16>
    %cst_36 = arith.constant dense<0.000000e+00> : vector<288x384xf32>
    %109 = tpu.matmul %107, %108, %cst_36 {dimension_numbers = #tpu.dot_dimension_numbers<[1], [0], [0], [1], [0, 0, 1, 1], [], []>} : vector<288x384xbf16>, vector<384x384xbf16>, vector<288x384xf32> -> vector<288x384xf32>
    %110 = vector.shape_cast %109 : vector<288x384xf32> to vector<18x16x384xf32>
    %111 = vector.extract_strided_slice %110 {offsets = [0, 0, 0], sizes = [18, 16, 128], strides = [1, 1, 1]} : vector<18x16x384xf32> to vector<18x16x128xf32>
    %112 = vector.extract_strided_slice %110 {offsets = [0, 0, 128], sizes = [18, 16, 128], strides = [1, 1, 1]} : vector<18x16x384xf32> to vector<18x16x128xf32>
    %113 = vector.extract_strided_slice %110 {offsets = [0, 0, 256], sizes = [18, 16, 128], strides = [1, 1, 1]} : vector<18x16x384xf32> to vector<18x16x128xf32>
    %114 = vector.extract_strided_slice %111 {offsets = [0, 0, 0], sizes = [16, 16, 128], strides = [1, 1, 1]} : vector<18x16x128xf32> to vector<16x16x128xf32>
    %115 = vector.extract_strided_slice %112 {offsets = [1, 0, 0], sizes = [16, 16, 128], strides = [1, 1, 1]} : vector<18x16x128xf32> to vector<16x16x128xf32>
    %116 = arith.addf %114, %115 : vector<16x16x128xf32>
    %117 = vector.extract_strided_slice %113 {offsets = [2, 0, 0], sizes = [16, 16, 128], strides = [1, 1, 1]} : vector<18x16x128xf32> to vector<16x16x128xf32>
    %118 = arith.addf %116, %117 : vector<16x16x128xf32>
    %c0_37 = arith.constant 0 : index
    %c0_38 = arith.constant 0 : index
    %c0_39 = arith.constant 0 : index
    %119 = vector.load %arg9[%c0_37, %c0_38, %c0_39] : memref<1x1x128xf32, #tpu.memory_space<vmem>>, vector<1x1x128xf32>
    %120 = vector.broadcast %119 : vector<1x1x128xf32> to vector<16x16x128xf32>
    %121 = arith.addf %118, %120 : vector<16x16x128xf32>
    %cst_40 = arith.constant 0.000000e+00 : f32
    %122 = vector.broadcast %cst_40 : f32 to vector<16x16x128xf32>
    %123 = arith.maximumf %121, %122 : vector<16x16x128xf32>
    %c0_41 = arith.constant 0 : index
    %c0_42 = arith.constant 0 : index
    %c0_43 = arith.constant 0 : index
    %c0_44 = arith.constant 0 : index
    %124 = vector.load %arg10[%c0_41, %c0_42, %c0_43, %c0_44] : memref<1x16x16x128xf32, #tpu.memory_space<vmem>>, vector<1x16x16x128xf32>
    %125 = vector.shape_cast %124 : vector<1x16x16x128xf32> to vector<16x16x128xf32>
    %126 = vector.shape_cast %123 : vector<16x16x128xf32> to vector<1x16x16x128xf32>
    tpu.vector_store %arg10[%c0_41, %c0_42, %c0_43, %c0_44], %126 {strides = array<i32>} : memref<1x16x16x128xf32, #tpu.memory_space<vmem>>, vector<1x16x16x128xf32>,
    return
  }
  func.func @transform_0(%arg0: i32, %arg1: i32) -> (i32, i32, i32, i32) {
    %c0_i32 = arith.constant 0 : i32
    %c0_i32_0 = arith.constant 0 : i32
    %c0_i32_1 = arith.constant 0 : i32
    return %arg0, %arg1, %c0_i32, %c0_i32_0 : i32, i32, i32, i32
  }
  func.func @transform_1(%arg0: i32, %arg1: i32) -> (i32, i32, i32, i32) {
    %c1_i32 = arith.constant 1 : i32
    %0 = arith.addi %arg1, %c1_i32 : i32
    %c4_i32 = arith.constant 4 : i32
    %1 = arith.muli %0, %c4_i32 : i32
    %c0_i32 = arith.constant 0 : i32
    %c0_i32_0 = arith.constant 0 : i32
    %c0_i32_1 = arith.constant 0 : i32
    return %arg0, %1, %c0_i32, %c0_i32_0 : i32, i32, i32, i32
  }
  func.func @transform_2(%arg0: i32, %arg1: i32) -> (i32, i32) {
    %c0_i32 = arith.constant 0 : i32
    %c0_i32_0 = arith.constant 0 : i32
    %c0_i32_1 = arith.constant 0 : i32
    return %c0_i32, %c0_i32_0 : i32, i32
  }
  func.func @transform_3(%arg0: i32, %arg1: i32) -> (i32, i32, i32) {
    %c0_i32 = arith.constant 0 : i32
    %c0_i32_0 = arith.constant 0 : i32
    %c0_i32_1 = arith.constant 0 : i32
    %c0_i32_2 = arith.constant 0 : i32
    return %c0_i32, %c0_i32_0, %c0_i32_1 : i32, i32, i32
  }
  func.func @transform_4(%arg0: i32, %arg1: i32) -> (i32, i32, i32) {
    %c0_i32 = arith.constant 0 : i32
    %c0_i32_0 = arith.constant 0 : i32
    %c0_i32_1 = arith.constant 0 : i32
    %c0_i32_2 = arith.constant 0 : i32
    return %c0_i32, %c0_i32_0, %c0_i32_1 : i32, i32, i32
  }
  func.func @transform_5(%arg0: i32, %arg1: i32) -> (i32, i32, i32) {
    %c0_i32 = arith.constant 0 : i32
    %c0_i32_0 = arith.constant 0 : i32
    %c0_i32_1 = arith.constant 0 : i32
    %c0_i32_2 = arith.constant 0 : i32
    return %c0_i32, %c0_i32_0, %c0_i32_1 : i32, i32, i32
  }
  func.func @transform_6(%arg0: i32, %arg1: i32) -> (i32, i32) {
    %c0_i32 = arith.constant 0 : i32
    %c0_i32_0 = arith.constant 0 : i32
    %c0_i32_1 = arith.constant 0 : i32
    return %c0_i32, %c0_i32_0 : i32, i32
  }
  func.func @transform_7(%arg0: i32, %arg1: i32) -> (i32, i32, i32) {
    %c0_i32 = arith.constant 0 : i32
    %c0_i32_0 = arith.constant 0 : i32
    %c0_i32_1 = arith.constant 0 : i32
    %c0_i32_2 = arith.constant 0 : i32
    return %c0_i32, %c0_i32_0, %c0_i32_1 : i32, i32, i32
  }
  func.func @transform_8(%arg0: i32, %arg1: i32) -> (i32, i32, i32, i32) {
    %c0_i32 = arith.constant 0 : i32
    %c0_i32_0 = arith.constant 0 : i32
    %c0_i32_1 = arith.constant 0 : i32
    return %arg0, %arg1, %c0_i32, %c0_i32_0 : i32, i32, i32, i32
  }
}

</mosaic_0001>

<bundles_post_ra>
// kernel: tpu_custom_call.1
= control target key start
LH: loop header
LB: loop body
LE: loop exit
PB: predicated region body
PF: predicated region fallthrough
CT: control target
= control target key end

     0   :  { %s9992_s0 = inlined_call_operand.hbm [shape: bf16[2,20,16,128], index: 0, kind: input, shape index: {}]   ;;  %s9993_s1 = inlined_call_operand.hbm [shape: bf16[2,20,16,128], index: 1, kind: input, shape index: {}]   ;;  %s9994_s2 = inlined_call_operand.hbm [shape: bf16[384,384], index: 2, kind: input, shape index: {}]   ;;  %s9995_s3 = inlined_call_operand.vmem [shape: f32[1,1,128], index: 3, kind: input, shape index: {}]   ;;  %s9996_s4 = inlined_call_operand.vmem [shape: f32[1,1,128], index: 4, kind: input, shape index: {}]   ;;  %s9997_s5 = inlined_call_operand.vmem [shape: f32[1,1,128], index: 5, kind: input, shape index: {}]   ;;  %s9998_s6 = inlined_call_operand.hbm [shape: bf16[384,384], index: 6, kind: input, shape index: {}]   ;;  %s9999_s7 = inlined_call_operand.vmem [shape: f32[1,1,128], index: 7, kind: input, shape index: {}]   ;;  %s10000_s8 = inlined_call_operand.hbm [shape: f32[2,16,16,128], index: 8, kind: output, shape index: {}]  }
   0x1   :  { %10188 = sst [smem:[#allocation153_spill]] %s9992_s0 }
   0x2   :  { %10189 = sst [smem:[#allocation154_spill]] %s9994_s2 }
   0x3   :  { %10190 = sst [smem:[#allocation155_spill]] %s9998_s6 }
   0x4   :  { %13 = vsyncpa [#allocation3], 0 }
   0x5   :  { %15 = vsyncpa [#allocation3 + $0x1], 0 }
   0x6   :  { %16 = vsyncpa [#allocation6], 0 }
   0x7   :  { %18 = vsyncpa [#allocation6 + $0x1], 0 }
   0x8   :  { %19 = vsyncpa [#allocation9], 0 }
   0x9   :  { %20 = vsyncpa [#allocation4], 0 }
   0xa   :  { %22 = vsyncpa [#allocation4 + $0x1], 0  ;;  %s7422_s27 = smov 0   ;;  %s7424_s28 = smov 0  }
   0xb   :  { %s7426_s29 = smov 0   ;;  %s7428_s30 = smov 0  }
   0xc   :  { %s7430_s9 = smov 0   ;;  %s7432_s10 = smov 0  }
   0xd LB: > { %10191 = sst [smem:[#allocation16_spill]] %s7345_s27  ;;  %s7453_s11 = sadd.s32 4294967295, %s7365_s10   ;;  %s7365_s10 = sphi %s7432_s10, %s28_s10   ;;  %s7361_s9 = sphi %s7430_s9, %s10859_s9   ;;  %s7357_s30 = sphi %s7428_s30, %s10858_s30   ;;  %s7353_s29 = sphi %s7426_s29, %s10857_s29   ;;  %s7349_s28 = sphi %s7424_s28, %s10861_s28   ;;  %s7345_s27 = sphi %s7422_s27, %s10860_s27  }
   0xe   : > { %10192 = sst [smem:[#allocation17_spill]] %s7353_s29  ;;  %s6211_s12 = sadd.s32 4294967294, %s7365_s10  }
   0xf   : > { %10193 = sst [smem:[#allocation18_spill]] %s7361_s9  ;;  %p62_p0 = scmp.ne.s32.totalorder %s7349_s28, %s7345_s27 }
  0x10   : > { %p63_p1 = scmp.eq.s32.totalorder %s7453_s11, 0  ;;  %p246_p2 = scmp.eq.s32.totalorder %s7453_s11, 1 }
  0x11   : > { %p252_p3 = scmp.eq.s32.totalorder %s6211_s12, 1  ;;  %p6212_p5 = scmp.ge.s32.totalorder %s7365_s10, 1 }
  0x12   : > { %p7462_p4 = por %p63_p1, %p62_p0  ;;  %p259_p7 = scmp.lt.s32.totalorder %s7365_s10, 3 }
  0x13   : > { %p7467_p6 = por %p252_p3, %p62_p0  ;;  %s10197_s2 = sld [smem:[#allocation154_spill]] }
  0x14   : > { %p7475_p8 = pnand %p6212_p5, %p259_p7  ;;  %s7367_s19 = smov [#allocation7]  }
  0x15   : > { %s10195_s14 = scalar_select %p7467_p6, 1, 0 }
  0x16   : > { %p7062_p9 = pneg %p7475_p8  ;;  %s272_s20 = sshll.u32 %s7367_s19, 4  ;;  %s273_s20 = int_to_ptr.vmem [resolvable:$true] %s272_s20 }
  0x17   : > { %10196 = sst [smem:[#allocation19_spill]] %s10195_s14  ;;  %p6215_p11 = scmp.ge.s32.totalorder %s7365_s10, 2 }
  0x18   : > { %p7063_p10 = pnand %p7062_p9, %p63_p1  ;;  %s10199_s6 = sld [smem:[#allocation155_spill]] }
  0x19   : > { %s270_s17 = sshll.u32 %s10197_s2, 4  ;;  %s7368_s24 = smov 192   ;;  %s271_s17 = int_to_ptr.hbm [resolvable:$true] %s270_s17 }
  0x1a   : > { %s7369_s25 = smov 12   ;;  %s7370_s26 = smov [#allocation8]  }
  0x1b   : > { %7065 = dma.hbm_to_vmem [thread:$0]  (!%p7063_p10), %s271_s17, 9216, %s273_s20, [#allocation6], %s7368_s24, %s7368_s24, %s7369_s25  }
  0x1c   : > { %s295_s12 = sshll.u32 %s7370_s26, 4  ;;  %s40_s15 = sadd.s32 1, %s7361_s9  ;;  %s296_s12 = int_to_ptr.vmem [resolvable:$true] %s295_s12 }
  0x1d   : > { %s49_s16 = sadd.s32 1, %s7353_s29  ;;  %p42_p12 = scmp.ge.s32.totalorder %s40_s15, 2 }
  0x1e   : > { %s293_s23 = sshll.u32 %s10199_s6, 4  ;;  %p56_p13 = scmp.ne.s32.totalorder %s7353_s29, %s7349_s28  ;;  %s294_s23 = int_to_ptr.hbm [resolvable:$true] %s293_s23 }
  0x1f   : > { %7068 = dma.hbm_to_vmem [thread:$0]  (!%p7063_p10), %s294_s23, 9216, %s296_s12, [#allocation9], %s7368_s24, %s7368_s24, %s7369_s25  }
  0x20   : > { %p57_p0 = scmp.eq.s32.totalorder %s7365_s10, 0  ;;  %p7082_p3 = scmp.lt.s32.totalorder %s7365_s10, 2 }
  0x21   : > { %s10863_s15 = smov (%p42_p12, %s40_s15), 0  ;;  %p7501_p7 = por %p246_p2, %p56_p13 }
  0x22   : > { %10200 = sst [smem:[#allocation20_spill]] %s10863_s15  ;;  %p7495_p5 = por %p57_p0, %p56_p13 }
  0x23   : > { %s44_s20 = ssub.s32 %s7361_s9, %s10863_s15  ;;  %s312_s21 = sand.u32 1, %s7353_s29  }
  0x24   : > { %p47_p9 = scmp.eq.s32.totalorder %s44_s20, 0  ;;  %s6216_s22 = sshll.u32 %s312_s21, 7 }
  0x25   : > { %s7047_s23 = smul.u32 160, %s7361_s9  ;;  %s10204_s0 = sld [smem:[#allocation153_spill]] }
  0x26   : > { %s7510_s24 = scalar_select %p47_p9, %s7353_s29, %s49_s16  }
  0x27   : > { %s316_s6 = scalar_lea.vmem [#allocation2], %s6216_s22  ;;  %p7519_p2 = pnand %p7082_p3, %p7495_p5 }
  0x28   : > { %10203 = sst [smem:[#allocation21_spill]] %s7510_s24  ;;  %s336_s14 = sshll.u32 %s316_s6, 4  ;;  %s337_s14 = int_to_ptr.vmem [resolvable:$true] %s336_s14 }
  0x29   : > { %s346_s20 = sand.u32 1, %s7365_s10   ;;  %s313_s16 = scalar_lea.sflag [#allocation3], %s312_s21 }
  0x2a   : > { %s7371_s15 = smov 64   ;;  %s7372_s9 = smov 4  }
  0x2b   : > { %s331_s12 = scalar_lea.hbm %s10204_s0, %s7047_s23  ;;  %s6218_s25 = sshll.u32 %s312_s21, 5 }
  0x2c   : > { %s334_s2 = sshll.u32 %s331_s12, 4  ;;  %s6123_s6 = scalar_lea.hbm %s9993_s1, %s7047_s23  ;;  %s335_s2 = int_to_ptr.hbm [resolvable:$true] %s334_s2 }
  0x2d   : > { %7072 = dma.hbm_to_vmem [thread:$0]  (!%p7519_p2), %s335_s2, 2048, %s337_s14, %s313_s16, %s7371_s15, %s7371_s15, %s7372_s9  }
  0x2e   : > { %s6124_s12 = scalar_lea.hbm %s6123_s6, 128  ;;  %s350_s0 = scalar_lea.vmem [#allocation5], %s6218_s25 }
  0x2f   : > { %s361_s19 = sshll.u32 %s6124_s12, 4  ;;  %s363_s24 = sshll.u32 %s350_s0, 4  ;;  %s362_s19 = int_to_ptr.hbm [resolvable:$true] %s361_s19  ;;  %s364_s24 = int_to_ptr.vmem [resolvable:$true] %s363_s24 }
  0x30   : > { %s347_s29 = scalar_lea.sflag [#allocation6], %s346_s20  ;;  %375 = sbr.rel (%p7475_p8) target bundleno = 2047 (0x7ff), region = 52 }
  0x31   : > { %7075 = dma.hbm_to_vmem [thread:$0]  (!%p7519_p2), %s362_s19, 512, %s364_s24, %s347_s29, %s7371_s15, %s7371_s15, %s7372_s9  }
  0x35   : > { %s7534_s2 = sand.u32 1, %s7349_s28  }
  0x36   : > { %s6221_s14 = sshll.u32 %s7534_s2, 7  ;;  %s378_s21 = scalar_lea.sflag [#allocation3], %s7534_s2 }
  0x37   : > { %s7538_s23 = scalar_lea.vmem [#allocation2], %s6221_s14 }
  0x38   : > { %7324 = dma.done.wait (%p7462_p4), %s378_s21, 2048  }
  0x39   : > { %7326 = vsyncadd (%p7462_p4), %s378_s21, 4294965248  ;;  %s387_s0 = sand.u32 1, %s7453_s11   ;;  %s6222_s27 = sshll.u32 %s7534_s2, 5 }
  0x3a   : > { %s388_s29 = scalar_lea.sflag [#allocation6], %s387_s0  ;;  %s7546_s9 = scalar_lea.vmem [#allocation5], %s6222_s27 }
  0x3b   : > { %7328 = dma.done.wait (%p7462_p4), %s388_s29, 512  }
  0x3c   : > { %7330 = vsyncadd (%p7462_p4), %s388_s29, 4294966784 }
  0x3d   : > { %7332 = dma.done.wait (%p63_p1), [#allocation6], 9216  }
  0x3e   : > { %7334 = vsyncadd (%p63_p1), [#allocation6], 4294958080 }
  0x3f   : > { %7336 = dma.done.wait (%p63_p1), [#allocation9], 9216  }
  0x40   : > { %7338 = vsyncadd (%p63_p1), [#allocation9], 4294958080  ;;  %v6312_v0 = vld [vmem:[#allocation7 + $0xa8] sm:$0xf]  ;;  %v6829_v1 = vld [vmem:[#allocation7 + $0xb0] sm:$0xf0]  ;;  %v450_v10 = vlaneseq }
  0x41   : > { %v6408_v2 = vld [vmem:[#allocation7 + $0x168] sm:$0xf]  ;;  %v6313_v3 = vor.u32 %v6829_v1, %v6312_v0  ;;  %v6853_v4 = vld [vmem:[#allocation7 + $0x170] sm:$0xf0]  ;;  %v6300_v5 = vld [vmem:[#allocation7 + $0x90] sm:$0xf] }
  0x42   : > { %v6826_v6 = vld [vmem:[#allocation7 + $0x98] sm:$0xf0]  ;;  %v6409_v7 = vor.u32 %v6853_v4, %v6408_v2  ;;  %v6396_v8 = vld [vmem:[#allocation7 + $0x150] sm:$0xf]  ;;  %v6288_v13 = vld [vmem:[#allocation7 + $0x78] sm:$0xf] }
  0x43   : > { %v6850_v9 = vld [vmem:[#allocation7 + $0x158] sm:$0xf0]  ;;  %2782 = vmatpush.bf16.msra.mxu0 %v6313_v3  ;;  %v6301_v11 = vor.u32 %v6826_v6, %v6300_v5  ;;  %v6823_v14 = vld [vmem:[#allocation7 + $0x80] sm:$0xf0]  ;;  %v6384_v15 = vld [vmem:[#allocation7 + $0x138] sm:$0xf] }
  0x44   : > { %2887 = vmatpush.bf16.msra.mxu1 %v6409_v7  ;;  %v6397_v12 = vor.u32 %v6850_v9, %v6396_v8  ;;  %7031 = vmatpush.bf16.msra.mxu3 %v6409_v7  ;;  %v6847_v16 = vld [vmem:[#allocation7 + $0x140] sm:$0xf0]  ;;  %v7560_v17 = vshrl.u32 %v450_v10, 7  ;;  %v6289_v18 = vor.u32 %v6823_v14, %v6288_v13  ;;  %v6276_v20 = vld [vmem:[#allocation7 + $0x60] sm:$0xf]  ;;  %v10007_v35 = vmov 0.0  }
  0x45   : > { %v6385_v19 = vor.u32 %v6847_v16, %v6384_v15  ;;  %v6820_v21 = vld [vmem:[#allocation7 + $0x68] sm:$0xf0]  ;;  %v6372_v22 = vld [vmem:[#allocation7 + $0x120] sm:$0xf]  ;;  %v6264_v24 = vld [vmem:[#allocation7 + $0x48] sm:$0xf] }
  0x46   : > { %10206 = vst [vmem:[#allocation22_spill] sm:$0xff] %v7560_v17  ;;  %v6844_v23 = vld [vmem:[#allocation7 + $0x128] sm:$0xf0]  ;;  %v495_v25 = vand.u32 15, %v7560_v17  ;;  %v6277_v26 = vor.u32 %v6820_v21, %v6276_v20  ;;  %v6504_v27 = vld [vmem:[#allocation7 + $0x228] sm:$0xf] }
  0x47   : > { %2783 = vmatpush.bf16.msra.mxu0 %v6301_v11  ;;  %v6877_v28 = vld [vmem:[#allocation7 + $0x230] sm:$0xf0]  ;;  %v6373_v29 = vor.u32 %v6844_v23, %v6372_v22  ;;  %v6360_v32 = vld [vmem:[#allocation7 + $0x108] sm:$0xf]  ;;  %v7564_v36 = vrot.slane %v10007_v35, 7  ;;  %v453_v55 = vadd.s32 16, %v7560_v17 }
  0x48   : > { %2888 = vmatpush.bf16.msra.mxu1 %v6397_v12  ;;  %7032 = vmatpush.bf16.msra.mxu3 %v6397_v12  ;;  %v6817_v30 = vld [vmem:[#allocation7 + $0x50] sm:$0xf0]  ;;  %v6505_v31 = vor.u32 %v6877_v28, %v6504_v27  ;;  %v6252_v38 = vld [vmem:[#allocation7 + $0x30] sm:$0xf]  ;;  %v6814_v39 = vld [vmem:[#allocation7 + $0x38] sm:$0xf0] }
  0x49   : > { %v6841_v33 = vld [vmem:[#allocation7 + $0x110] sm:$0xf0]  ;;  %v6265_v34 = vor.u32 %v6817_v30, %v6264_v24  ;;  %10207 = vst [vmem:[#allocation23_spill] sm:$0xff] %v7564_v36  ;;  %vm971_vm0 = vcmp.ge.s32.totalorder %v495_v25, 1  ;;  %v6348_v40 = vld [vmem:[#allocation7 + $0xf0] sm:$0xf]  ;;  %v6253_v42 = vor.u32 %v6814_v39, %v6252_v38  ;;  %v1823_v50 = vpack.c.bf16 %v7564_v36, %v7564_v36 }
  0x4a   : > { %7039 = vmatpush.bf16.msra.mxu2 %v6505_v31  ;;  %v6361_v37 = vor.u32 %v6841_v33, %v6360_v32  ;;  %v6838_v41 = vld [vmem:[#allocation7 + $0xf8] sm:$0xf0]  ;;  %v1581_v43 = vsel %vm971_vm0, %v7564_v36, 0.0  ;;  %v6240_v45 = vld [vmem:[#allocation7 + $0x18] sm:$0xf]  ;;  %v7016_v56 = vld [vmem:[%s7538_s23 + $0x10] sm:$0xff]  }
  0x4b   : > { %2784 = vmatpush.bf16.msra.mxu0 %v6289_v18  ;;  %v6349_v44 = vor.u32 %v6838_v41, %v6348_v40  ;;  %v6811_v46 = vld [vmem:[#allocation7 + $0x20] sm:$0xf0]  ;;  %v6336_v47 = vld [vmem:[#allocation7 + $0xd8] sm:$0xf]  ;;  %v1822_v49 = vpack.c.bf16 %v1581_v43, %v1581_v43  ;;  %v6228_v53 = vld [vmem:[#allocation7] sm:$0xf]  ;;  %v7571_v60 = vunpack.c.l.b16 %v1823_v50  ;;  %v6954_v0 = vunpack.c.l.bf16 %v7016_v56 }
  0x4c   : > { %2889 = vmatpush.bf16.msra.mxu1 %v6385_v19  ;;  %7033 = vmatpush.bf16.msra.mxu3 %v6385_v19  ;;  %v6835_v48 = vld [vmem:[#allocation7 + $0xe0] sm:$0xf0]  ;;  %v6241_v51 = vor.u32 %v6811_v46, %v6240_v45  ;;  %v6808_v54 = vld [vmem:[#allocation7 + $0x8] sm:$0xf0]  ;;  %v6324_v57 = vld [vmem:[#allocation7 + $0xc0] sm:$0xf]  ;;  %v6955_v6 = vunpack.c.h.bf16 %v7016_v56 }
  0x4d   : > { %v6337_v52 = vor.u32 %v6835_v48, %v6336_v47  ;;  %v6832_v58 = vld [vmem:[#allocation7 + $0xc8] sm:$0xf0]  ;;  %v1982_v59 = vunpack.c.l.b16 %v1822_v49  ;;  %10208 = vst [vmem:[#allocation24_spill] sm:$0xff] %v7571_v60  ;;  %v6229_v61 = vor.u32 %v6808_v54, %v6228_v53  ;;  %v7374_v62 = vmov 0.0|0.0   ;;  %v7576_v1 = vld [vmem:[%s9995_s3] ss:$0 sm:$0xff] }
  0x4e   : > { %v2102_v63 = vunpack.c.l.b16 %v7374_v62  ;;  %v6325_v2 = vor.u32 %v6832_v58, %v6324_v57  ;;  %v509_v3 = vand.u32 15, %v453_v55  ;;  %v1205_v7 = vmul.f32 %v7576_v1, %v6954_v0  ;;  %v7587_v8 = vld [vmem:[%s9996_s4] ss:$0 sm:$0xff]  ;;  %v6492_v13 = vld [vmem:[#allocation7 + $0x210] sm:$0xf]  ;;  %v7017_v21 = vld [vmem:[%s7538_s23 + $0x18] sm:$0xff]  }
  0x4f   : > { %2785 = vmatpush.bf16.msra.mxu0 %v6277_v26  ;;  %v7579_v4 = vpack.c.b16 %v7571_v60, %v1982_v59  ;;  %v10211_v9 = vmov 0  ;;  %v1206_v11 = vmul.f32 %v7576_v1, %v6955_v6  ;;  %v6874_v14 = vld [vmem:[#allocation7 + $0x218] sm:$0xf0]  ;;  %v455_v18 = vadd.s32 32, %v7560_v17  ;;  %v7018_v46 = vld [vmem:[%s7538_s23 + $0x20] sm:$0xff]   ;;  %s6225_s21 = sshll.u32 %s7534_s2, 8 }
  0x50   : > { %2890 = vmatpush.bf16.msra.mxu1 %v6373_v29  ;;  %7034 = vmatpush.bf16.msra.mxu3 %v6373_v29  ;;  %v7581_v5 = vpack.c.b16 %v2102_v63, %v2102_v63  ;;  %vm7589_vm1 = vcmp.ge.s32.totalorder %v509_v3, 1  ;;  %v1240_v12 = vadd.f32 %v7587_v8, %v1205_v7  ;;  %v6493_v15 = vor.u32 %v6874_v14, %v6492_v13  ;;  %s6951_s0 = sshll.u32 %s7357_s30, 8  ;;  %s6059_s30 = scalar_lea.sflag [#allocation4], %s7534_s2 }
  0x51   : > { %10209 = vst [vmem:[#allocation25_spill] sm:$0xff] %v7579_v4  ;;  %v10212_v9 = vsel %vm7589_vm1, 4294967295, %v10211_v9  ;;  %v1583_v10 = vsel %vm7589_vm1, %v7564_v36, 0.0  ;;  %v1241_v19 = vadd.f32 %v7587_v8, %v1206_v11  ;;  %v523_v23 = vand.u32 15, %v455_v18  ;;  %s7291_s16 = scalar_lea.hbm %s10000_s8, 512 }
  0x52   : > { %10210 = vst [vmem:[#allocation26_spill] sm:$0xff] %v7581_v5  ;;  %v1824_v16 = vpack.c.bf16 %v1583_v10, %v1583_v10  ;;  %7040 = vmatpush.bf16.msra.mxu2 %v6493_v15  ;;  %v7602_v20 = vmax.f32 %v1240_v12, 0.0  ;;  %v6958_v26 = vunpack.c.l.bf16 %v7017_v21  ;;  %vm10036_vm2 = vcmp.lt.s32.totalorder %v7560_v17, 1 }
  0x53   : > { %2786 = vmatpush.bf16.msra.mxu0 %v6265_v34  ;;  %10213 = vst [vmem:[#allocation27_spill] sm:$0xff] %v10212_v9  ;;  %v7605_v24 = vmax.f32 %v1241_v19, 0.0  ;;  %vm7612_vm3 = vcmp.ge.s32.totalorder %v523_v23, 1  ;;  %v10215_v28 = vmov 0  ;;  %v457_v43 = vadd.s32 48, %v7560_v17 }
  0x54   : > { %2891 = vmatpush.bf16.msra.mxu1 %v6361_v37  ;;  %7035 = vmatpush.bf16.msra.mxu3 %v6361_v37  ;;  %v1984_v22 = vunpack.c.l.b16 %v1824_v16  ;;  %v1424_v25 = vrot.slane %v7602_v20, 7  ;;  %v10216_v28 = vsel %vm7612_vm3, 4294967295, %v10215_v28  ;;  %v1207_v32 = vmul.f32 %v7576_v1, %v6958_v26 }
  0x55   : > { %10217 = vst [vmem:[#allocation29_spill] sm:$0xff] %v10216_v28  ;;  %v1425_v29 = vrot.slane %v7605_v24, 7  ;;  %v1866_v41 = vpack.c.bf16 %v7602_v20, %v7602_v20  ;;  %v6962_v54 = vunpack.c.l.bf16 %v7018_v46  ;;  %v10220_v57 = vmov 0 }
  0x56   : > { %v7610_v27 = vpack.c.b16 %v7571_v60, %v1984_v22  ;;  %v1496_v30 = vsel %vm10036_vm2, %v7564_v36, %v1424_v25  ;;  %v1242_v38 = vadd.f32 %v7587_v8, %v1207_v32  ;;  %v459_v12 = vadd.s32 64, %v7560_v17 }
  0x57   : > { %2787 = vmatpush.bf16.msra.mxu0 %v6253_v42  ;;  %v1585_v33 = vsel %vm7612_vm3, %v1496_v30, 0.0  ;;  %v1495_v34 = vsel %vm10036_vm2, %v1424_v25, %v1425_v29  ;;  %v1867_v42 = vpack.c.bf16 %v7605_v24, %v7605_v24  ;;  %v2106_v49 = vunpack.c.l.b16 %v1866_v41 }
  0x58   : > { %2892 = vmatpush.bf16.msra.mxu1 %v6349_v44  ;;  %7036 = vmatpush.bf16.msra.mxu3 %v6349_v44  ;;  %10214 = vst [vmem:[#allocation28_spill] sm:$0xff] %v7610_v27  ;;  %v1826_v39 = vpack.c.bf16 %v1585_v33, %v1585_v33  ;;  %v1827_v40 = vpack.c.bf16 %v1495_v34, %v1495_v34  ;;  %v7635_v45 = vmax.f32 %v1242_v38, 0.0  ;;  %v551_v22 = vand.u32 15, %v459_v12 }
  0x59   : > { %v2107_v50 = vunpack.c.l.b16 %v1867_v42  ;;  %v1209_v62 = vmul.f32 %v7576_v1, %v6962_v54  ;;  %v6480_v42 = vld [vmem:[#allocation7 + $0x1f8] sm:$0xf]  ;;  %v10230_v12 = vmov 0  ;;  %vm10051_vm8 = vcmp.lt.s32.totalorder %v7560_v17, 7 }
  0x5a   : > { %v1986_v47 = vunpack.c.l.b16 %v1826_v39  ;;  %v1987_v48 = vunpack.c.l.b16 %v1827_v40  ;;  %v1426_v53 = vrot.slane %v7635_v45, 7  ;;  %v1868_v10 = vpack.c.bf16 %v7635_v45, %v7635_v45 }
  0x5b   : > { %2788 = vmatpush.bf16.msra.mxu0 %v6241_v51  ;;  %v537_v51 = vand.u32 15, %v457_v43  ;;  %v7643_v56 = vpack.c.b16 %v2107_v50, %v2106_v49  ;;  %v1244_v3 = vadd.f32 %v7587_v8, %v1209_v62  ;;  %vm7677_vm5 = vcmp.ge.s32.totalorder %v551_v22, 1  ;;  %v6871_v43 = vld [vmem:[#allocation7 + $0x200] sm:$0xf0]  ;;  %v7020_v50 = vld [vmem:[%s7538_s23 + $0x30] sm:$0xff]  }
  0x5c   : > { %2893 = vmatpush.bf16.msra.mxu1 %v6337_v52  ;;  %7037 = vmatpush.bf16.msra.mxu3 %v6337_v52  ;;  %v7641_v55 = vpack.c.b16 %v1987_v48, %v1986_v47  ;;  %v1494_v59 = vsel %vm10036_vm2, %v1425_v29, %v1426_v53  ;;  %v2108_v19 = vunpack.c.l.b16 %v1868_v10 }
  0x5d   : > { %10219 = vst [vmem:[#allocation31_spill] sm:$0xff] %v7643_v56  ;;  %vm7645_vm4 = vcmp.ge.s32.totalorder %v537_v51, 1  ;;  %v7667_v14 = vmax.f32 %v1244_v3, 0.0  ;;  %v461_v51 = vadd.s32 80, %v7560_v17 }
  0x5e   : > { %10218 = vst [vmem:[#allocation30_spill] sm:$0xff] %v7641_v55  ;;  %v10221_v57 = vsel %vm7645_vm4, 4294967295, %v10220_v57  ;;  %v1587_v63 = vsel %vm7645_vm4, %v1494_v59, 0.0 }
  0x5f   : > { %2789 = vmatpush.bf16.msra.mxu0 %v6229_v61  ;;  %10222 = vst [vmem:[#allocation32_spill] sm:$0xff] %v10221_v57  ;;  %v6963_v61 = vunpack.c.h.bf16 %v7018_v46  ;;  %v1828_v6 = vpack.c.bf16 %v1587_v63, %v1587_v63  ;;  %v1428_v25 = vrot.slane %v7667_v14, 7  ;;  %v1870_v48 = vpack.c.bf16 %v7667_v14, %v7667_v14 }
  0x60   : > { %2894 = vmatpush.bf16.msra.mxu1 %v6325_v2  ;;  %7038 = vmatpush.bf16.msra.mxu3 %v6325_v2 }
  0x61   : > { %v1210_v2 = vmul.f32 %v7576_v1, %v6963_v61  ;;  %v1988_v16 = vunpack.c.l.b16 %v1828_v6  ;;  %v2110_v62 = vunpack.c.l.b16 %v1870_v48  ;;  %v6971_v6 = vunpack.c.h.bf16 %v7020_v50 }
  0x62   : > { %2790 = vmatmul.bf16.vlgmr.msra.gmra.mxu0 %v7579_v4 }
  0x63   : > { %2992 = vmatpush.bf16.msrb.mxu0 %v6505_v31  ;;  %2895 = vmatmul.bf16.vlgmr.msra.gmra.mxu1 %v7581_v5  ;;  %v6959_v31 = vunpack.c.h.bf16 %v7017_v21  ;;  %v1245_v13 = vadd.f32 %v7587_v8, %v1210_v2 }
  0x65   : > { %v1208_v37 = vmul.f32 %v7576_v1, %v6959_v31  ;;  %v7670_v23 = vmax.f32 %v1245_v13, 0.0  ;;  %v10225_v31 = vmov 0 }
  0x66   : > { %v10226_v31 = vsel %vm7677_vm5, 4294967295, %v10225_v31 }
  0x67   : > { %2993 = vmatpush.bf16.msrb.mxu0 %v6493_v15  ;;  %v1243_v44 = vadd.f32 %v7587_v8, %v1208_v37  ;;  %v7019_v15 = vld [vmem:[%s7538_s23 + $0x28] sm:$0xff]   ;;  %10227 = vst [vmem:[#allocation35_spill] sm:$0xff] %v10226_v31  ;;  %v1429_v32 = vrot.slane %v7670_v23, 7  ;;  %v1871_v49 = vpack.c.bf16 %v7670_v23, %v7670_v23  ;;  %v7025_v31 = vld [vmem:[%s7538_s23 + $0x58] sm:$0xff]  }
  0x68   : > { %v6966_v26 = vunpack.c.l.bf16 %v7019_v15  ;;  %v6967_v34 = vunpack.c.h.bf16 %v7019_v15 }
  0x69   : > { %v7638_v52 = vmax.f32 %v1243_v44, 0.0  ;;  %v1491_v39 = vsel %vm10036_vm2, %v1428_v25, %v1429_v32  ;;  %v6481_v44 = vor.u32 %v6871_v43, %v6480_v42  ;;  %v2111_v63 = vunpack.c.l.b16 %v1871_v49 }
  0x6a   : > { %v1211_v37 = vmul.f32 %v7576_v1, %v6966_v26  ;;  %v1212_v40 = vmul.f32 %v7576_v1, %v6967_v34  ;;  %v1831_v47 = vpack.c.bf16 %v1491_v39, %v1491_v39  ;;  %v6868_v26 = vld [vmem:[#allocation7 + $0x1e8] sm:$0xf0]  ;;  %v6865_v34 = vld [vmem:[#allocation7 + $0x1d0] sm:$0xf0] }
  0x6b   : > { %v1427_v58 = vrot.slane %v7638_v52, 7  ;;  %v1869_v11 = vpack.c.bf16 %v7638_v52, %v7638_v52  ;;  %2994 = vmatpush.bf16.msrb.mxu0 %v6481_v44  ;;  %7041 = vmatpush.bf16.msra.mxu2 %v6481_v44 }
  0x6c   : > { %v1246_v41 = vadd.f32 %v7587_v8, %v1211_v37  ;;  %v1991_v61 = vunpack.c.l.b16 %v1831_v47  ;;  %v463_v37 = vadd.s32 96, %v7560_v17 }
  0x6d   : > { %v1493_v0 = vsel %vm10036_vm2, %v1426_v53, %v1427_v58  ;;  %v2109_v21 = vunpack.c.l.b16 %v1869_v11  ;;  %v1492_v33 = vsel %vm10036_vm2, %v1427_v58, %v1428_v25  ;;  %v1247_v53 = vadd.f32 %v7587_v8, %v1212_v40  ;;  %v6468_v25 = vld [vmem:[#allocation7 + $0x1e0] sm:$0xf] }
  0x6e   : > { %v1829_v7 = vpack.c.bf16 %v1493_v0, %v1493_v0  ;;  %v1589_v38 = vsel %vm7677_vm5, %v1492_v33, 0.0  ;;  %v7700_v54 = vmax.f32 %v1246_v41, 0.0  ;;  %v6970_v58 = vunpack.c.l.bf16 %v7020_v50 }
  0x6f   : > { %v7675_v30 = vpack.c.b16 %v2109_v21, %v2108_v19  ;;  %v1830_v46 = vpack.c.bf16 %v1589_v38, %v1589_v38  ;;  %v565_v0 = vand.u32 15, %v461_v51  ;;  %v7702_v2 = vmax.f32 %v1247_v53, 0.0 }
  0x70   : > { %v1989_v18 = vunpack.c.l.b16 %v1829_v7  ;;  %v1430_v3 = vrot.slane %v7700_v54, 7  ;;  %v1213_v7 = vmul.f32 %v7576_v1, %v6970_v58  ;;  %v7708_v11 = vpack.c.b16 %v2111_v63, %v2110_v62  ;;  %v7740_v62 = vld [vmem:[%s7538_s23 + $0x48] sm:$0xff]  }
  0x71   : > { %10224 = vst [vmem:[#allocation34_spill] sm:$0xff] %v7675_v30  ;;  %v1990_v59 = vunpack.c.l.b16 %v1830_v46  ;;  %vm7710_vm6 = vcmp.ge.s32.totalorder %v565_v0, 1  ;;  %v1431_v13 = vrot.slane %v7702_v2, 7  ;;  %v6469_v33 = vor.u32 %v6868_v26, %v6468_v25  ;;  %v7021_v46 = vld [vmem:[%s7538_s23 + $0x38] sm:$0xff]  }
  0x72   : > { %2795 = vmatmul.bf16.gmra.mxu0 %v7610_v27  ;;  %v7673_v29 = vpack.c.b16 %v1989_v18, %v1988_v16  ;;  %10229 = vst [vmem:[#allocation37_spill] sm:$0xff] %v7708_v11  ;;  %v10231_v12 = vsel %vm7710_vm6, 4294967295, %v10230_v12  ;;  %v1490_v15 = vsel %vm10036_vm2, %v1429_v32, %v1430_v3  ;;  %v1214_v16 = vmul.f32 %v7576_v1, %v6971_v6  ;;  %v6456_v32 = vld [vmem:[#allocation7 + $0x1c8] sm:$0xf] }
  0x73   : > { %2900 = vmatmul.bf16.gmra.mxu1 %v7581_v5  ;;  %v7706_v10 = vpack.c.b16 %v1991_v61, %v1990_v59  ;;  %10232 = vst [vmem:[#allocation38_spill] sm:$0xff] %v10231_v12  ;;  %v1248_v18 = vadd.f32 %v7587_v8, %v1213_v7  ;;  %v1591_v19 = vsel %vm7710_vm6, %v1490_v15, 0.0  ;;  %v1489_v21 = vsel %vm10036_vm2, %v1430_v3, %v1431_v13  ;;  %v7022_v61 = vld [vmem:[%s7538_s23 + $0x40] sm:$0xff]  }
  0x74   : > { %10223 = vst [vmem:[#allocation33_spill] sm:$0xff] %v7673_v29  ;;  %v1249_v22 = vadd.f32 %v7587_v8, %v1214_v16  ;;  %v1832_v39 = vpack.c.bf16 %v1591_v19, %v1591_v19  ;;  %v1833_v40 = vpack.c.bf16 %v1489_v21, %v1489_v21  ;;  %7042 = vmatpush.bf16.msra.mxu2 %v6469_v33  ;;  %v579_v47 = vand.u32 15, %v463_v37 }
  0x75   : > { %10228 = vst [vmem:[#allocation36_spill] sm:$0xff] %v7706_v10  ;;  %v7727_v38 = vmax.f32 %v1248_v18, 0.0  ;;  %v6457_v41 = vor.u32 %v6865_v34, %v6456_v32  ;;  %2995 = vmatpush.bf16.msrb.mxu0 %v6469_v33  ;;  %v1872_v42 = vpack.c.bf16 %v7700_v54, %v7700_v54  ;;  %v1873_v43 = vpack.c.bf16 %v7702_v2, %v7702_v2  ;;  %v6444_v32 = vld [vmem:[#allocation7 + $0x1b0] sm:$0xf]  ;;  %v6862_v33 = vld [vmem:[#allocation7 + $0x1b8] sm:$0xf0] }
  0x76   : > { %v7733_v44 = vmax.f32 %v1249_v22, 0.0  ;;  %v1992_v49 = vunpack.c.l.b16 %v1832_v39  ;;  %v1993_v50 = vunpack.c.l.b16 %v1833_v40  ;;  %v6974_v59 = vunpack.c.l.bf16 %v7021_v46 }
  0x77   : > { %v1432_v48 = vrot.slane %v7727_v38, 7  ;;  %v2112_v51 = vunpack.c.l.b16 %v1872_v42  ;;  %v2113_v53 = vunpack.c.l.b16 %v1873_v43  ;;  %vm7742_vm7 = vcmp.ge.s32.totalorder %v579_v47, 1  ;;  %v6432_v47 = vld [vmem:[#allocation7 + $0x198] sm:$0xf] }
  0x78   : > { %7043 = vmatpush.bf16.msra.mxu2 %v6457_v41  ;;  %v1433_v58 = vrot.slane %v7733_v44, 7  ;;  %v10233_v63 = vmov 0  ;;  %v7748_v3 = vpack.c.b16 %v1993_v50, %v1992_v49  ;;  %v6978_v6 = vunpack.c.l.bf16 %v7022_v61 }
  0x79   : > { %2996 = vmatpush.bf16.msrb.mxu0 %v6457_v41  ;;  %v10234_v63 = vsel %vm7742_vm7, 4294967295, %v10233_v63  ;;  %v1488_v0 = vsel %vm10036_vm2, %v1431_v13, %v1432_v48  ;;  %v6979_v7 = vunpack.c.h.bf16 %v7022_v61  ;;  %v6982_v15 = vunpack.c.l.bf16 %v7740_v62 }
  0x7a   : > { %10235 = vst [vmem:[#allocation39_spill] sm:$0xff] %v10234_v63  ;;  %v7751_v16 = vpack.c.b16 %v2113_v53, %v2112_v51  ;;  %v1487_v18 = vsel %vm10036_vm2, %v1432_v48, %v1433_v58  ;;  %v6975_v19 = vunpack.c.h.bf16 %v7021_v46  ;;  %v1215_v21 = vmul.f32 %v7576_v1, %v6974_v59  ;;  %v6859_v48 = vld [vmem:[#allocation7 + $0x1a0] sm:$0xf0] }
  0x7b   : > { %v1593_v22 = vsel %vm7742_vm7, %v1488_v0, 0.0  ;;  %v1217_v13 = vmul.f32 %v7576_v1, %v6978_v6  ;;  %v1218_v25 = vmul.f32 %v7576_v1, %v6979_v7  ;;  %v1219_v26 = vmul.f32 %v7576_v1, %v6982_v15  ;;  %v6420_v0 = vld [vmem:[#allocation7 + $0x180] sm:$0xf]  ;;  %v6856_v6 = vld [vmem:[#allocation7 + $0x188] sm:$0xf0] }
  0x7c   : > { %10236 = vst [vmem:[#allocation40_spill] sm:$0xff] %v7751_v16  ;;  %v6445_v34 = vor.u32 %v6862_v33, %v6444_v32  ;;  %v1834_v41 = vpack.c.bf16 %v1593_v22, %v1593_v22  ;;  %v1835_v42 = vpack.c.bf16 %v1487_v18, %v1487_v18  ;;  %v1216_v43 = vmul.f32 %v7576_v1, %v6975_v19 }
  0x7d   : > { %v1252_v37 = vadd.f32 %v7587_v8, %v1217_v13  ;;  %v1253_v39 = vadd.f32 %v7587_v8, %v1218_v25  ;;  %v1254_v40 = vadd.f32 %v7587_v8, %v1219_v26  ;;  %v1250_v46 = vadd.f32 %v7587_v8, %v1215_v21 }
  0x7e   : > { %7044 = vmatpush.bf16.msra.mxu2 %v6445_v34  ;;  %v6433_v49 = vor.u32 %v6859_v48, %v6432_v47  ;;  %v468_v50 = vadd.s32 136, %v7560_v17  ;;  %2997 = vmatpush.bf16.msrb.mxu0 %v6445_v34  ;;  %v1874_v59 = vpack.c.bf16 %v7727_v38, %v7727_v38  ;;  %v1875_v61 = vpack.c.bf16 %v7733_v44, %v7733_v44 }
  0x7f   : > { %v7771_v51 = vmax.f32 %v1252_v37, 0.0  ;;  %v7773_v53 = vmax.f32 %v1253_v39, 0.0  ;;  %v7779_v7 = vmax.f32 %v1254_v40, 0.0  ;;  %v465_v15 = vadd.s32 112, %v7560_v17 }
  0x80   : > { %v614_v18 = vand.u32 15, %v468_v50  ;;  %v1251_v22 = vadd.f32 %v7587_v8, %v1216_v43  ;;  %v7786_v13 = vmax.f32 %v1250_v46, 0.0  ;;  %v6421_v26 = vor.u32 %v6856_v6, %v6420_v0 }
  0x81   : > { %v10006_v19 = vrot.slane %v7771_v51, 1  ;;  %v1638_v21 = vrot.slane %v7773_v53, 1  ;;  %v1639_v25 = vrot.slane %v7779_v7, 1  ;;  %v10237_v32 = vmov 0 }
  0x82   : > { %2800 = vmatmul.bf16.gmra.mxu0 %v7641_v55  ;;  %7045 = vmatpush.bf16.msra.mxu2 %v6433_v49  ;;  %vm7789_vm9 = vcmp.lt.s32.totalorder %v614_v18, 15  ;;  %v1994_v34 = vunpack.c.l.b16 %v1834_v41  ;;  %v1995_v37 = vunpack.c.l.b16 %v1835_v42  ;;  %v2114_v43 = vunpack.c.l.b16 %v1874_v59 }
  0x83   : > { %2905 = vmatmul.bf16.gmra.mxu1 %v7643_v56  ;;  %v10238_v32 = vsel %vm7789_vm9, 4294967295, %v10237_v32  ;;  %v1684_v33 = vsel %vm10051_vm8, %v10006_v19, %v1638_v21  ;;  %2998 = vmatpush.bf16.msrb.mxu0 %v6433_v49  ;;  %v1683_v39 = vsel %vm10051_vm8, %v1638_v21, %v1639_v25  ;;  %v2115_v46 = vunpack.c.l.b16 %v1875_v61  ;;  %v7024_v49 = vld [vmem:[%s7538_s23 + $0x50] sm:$0xff]  }
  0x84   : > { %10239 = vst [vmem:[#allocation41_spill] sm:$0xff] %v10238_v32  ;;  %v1918_v40 = vpack.c.bf16 %v1684_v33, %v1684_v33  ;;  %v593_v47 = vand.u32 15, %v465_v15  ;;  %v1799_v48 = vsel %vm7789_vm9, %v1683_v39, 0.0  ;;  %v7801_v50 = vmax.f32 %v1251_v22, 0.0 }
  0x85   : > { %v1434_v0 = vrot.slane %v7786_v13, 7  ;;  %v1919_v6 = vpack.c.bf16 %v1799_v48, %v1799_v48  ;;  %v7805_v42 = vpack.c.b16 %v1995_v37, %v1994_v34  ;;  %v7807_v21 = vpack.c.b16 %v2115_v46, %v2114_v43 }
  0x86   : > { %v2238_v18 = vunpack.c.l.b16 %v1918_v40  ;;  %7046 = vmatpush.bf16.msra.mxu2 %v6421_v26  ;;  %v6983_v59 = vunpack.c.h.bf16 %v7740_v62  ;;  %v6986_v61 = vunpack.c.l.bf16 %v7024_v49  ;;  %vm7810_vm10 = vcmp.ge.s32.totalorder %v593_v47, 1 }
  0x87   : > { %2999 = vmatpush.bf16.msrb.mxu0 %v6421_v26  ;;  %v2239_v41 = vunpack.c.l.b16 %v1919_v6  ;;  %10240 = vst [vmem:[#allocation42_spill] sm:$0xff] %v7807_v21  ;;  %v10241_v15 = vmov 0  ;;  %v1435_v22 = vrot.slane %v7801_v50, 7  ;;  %v1486_v33 = vsel %vm10036_vm2, %v1433_v58, %v1434_v0 }
  0x88   : > { %v10242_v15 = vsel %vm7810_vm10, 4294967295, %v10241_v15  ;;  %v1220_v34 = vmul.f32 %v7576_v1, %v6983_v59  ;;  %v1221_v37 = vmul.f32 %v7576_v1, %v6986_v61  ;;  %v1595_v62 = vsel %vm7810_vm10, %v1486_v33, 0.0 }
  0x89   : > { %10243 = vst [vmem:[#allocation43_spill] sm:$0xff] %v10242_v15  ;;  %v7819_v26 = vpack.c.b16 %v2239_v41, %v2238_v18  ;;  %v1485_v58 = vsel %vm10036_vm2, %v1434_v0, %v1435_v22  ;;  %v470_v43 = vadd.s32 152, %v7560_v17  ;;  %v1836_v48 = vpack.c.bf16 %v1595_v62, %v1595_v62 }
  0x8a   : > { %v1255_v39 = vadd.f32 %v7587_v8, %v1220_v34  ;;  %v1256_v40 = vadd.f32 %v7587_v8, %v1221_v37  ;;  %v1837_v18 = vpack.c.bf16 %v1485_v58, %v1485_v58  ;;  %v1876_v41 = vpack.c.bf16 %v7786_v13, %v7786_v13 }
  0x8b   : > { %10244 = vst [vmem:[#allocation44_spill] sm:$0xff] %v7819_v26  ;;  %3040 = vmatmul.bf16.vlgmr.msra.gmra.mxu2 %v7819_v26  ;;  %v628_v6 = vand.u32 15, %v470_v43  ;;  %v1877_v33 = vpack.c.bf16 %v7801_v50, %v7801_v50  ;;  %v467_v0 = vadd.s32 128, %v7560_v17  ;;  %v10245_v34 = vmov 0 }
  0x8c   : > { %v7833_v46 = vmax.f32 %v1255_v39, 0.0  ;;  %v7835_v47 = vmax.f32 %v1256_v40, 0.0  ;;  %v1996_v58 = vunpack.c.l.b16 %v1836_v48  ;;  %v1997_v43 = vunpack.c.l.b16 %v1837_v18 }
  0x8d   : > { %vm7844_vm11 = vcmp.lt.s32.totalorder %v628_v6, 15  ;;  %v2116_v19 = vunpack.c.l.b16 %v1876_v41  ;;  %v2117_v32 = vunpack.c.l.b16 %v1877_v33  ;;  %v607_v15 = vand.u32 15, %v467_v0 }
  0x8e   : > { %v1640_v59 = vrot.slane %v7833_v46, 1  ;;  %v1641_v61 = vrot.slane %v7835_v47, 1  ;;  %v10246_v34 = vsel %vm7844_vm11, 4294967295, %v10245_v34  ;;  %v1436_v6 = vrot.slane %v7771_v51, 7 }
  0x8f   : > { %10247 = vst [vmem:[#allocation45_spill] sm:$0xff] %v10246_v34  ;;  %v7856_v57 = vpack.c.b16 %v1997_v43, %v1996_v58  ;;  %v7860_v34 = vpack.c.b16 %v2117_v32, %v2116_v19  ;;  %vm7862_vm12 = vcmp.ge.s32.totalorder %v607_v15, 1  ;;  %v10250_v48 = vmov 0 }
  0x90   : > { %v1681_v37 = vsel %vm10051_vm8, %v1640_v59, %v1641_v61  ;;  %v1682_v62 = vsel %vm10051_vm8, %v1639_v25, %v1640_v59  ;;  %v6987_v25 = vunpack.c.h.bf16 %v7024_v49  ;;  %v6990_v59 = vunpack.c.l.bf16 %v7025_v31 }
  0x91   : > { %v1801_v39 = vsel %vm7844_vm11, %v1681_v37, 0.0  ;;  %v1920_v40 = vpack.c.bf16 %v1682_v62, %v1682_v62  ;;  %10249 = vst [vmem:[#allocation47_spill] sm:$0xff] %v7860_v34  ;;  %v10251_v48 = vsel %vm7862_vm12, 4294967295, %v10250_v48  ;;  %v1437_v18 = vrot.slane %v7773_v53, 7 }
  0x92   : > { %2805 = vmatmul.bf16.gmra.mxu0 %v7673_v29  ;;  %v1921_v35 = vpack.c.bf16 %v1801_v39, %v1801_v39  ;;  %10252 = vst [vmem:[#allocation48_spill] sm:$0xff] %v10251_v48  ;;  %v1484_v41 = vsel %vm10036_vm2, %v1435_v22, %v1436_v6  ;;  %v1223_v33 = vmul.f32 %v7576_v1, %v6990_v59  ;;  %v472_v49 = vadd.s32 168, %v7560_v17 }
  0x93   : > { %2910 = vmatmul.bf16.gmra.mxu1 %v7675_v30  ;;  %v2240_v63 = vunpack.c.l.b16 %v1920_v40  ;;  %v1483_v32 = vsel %vm10036_vm2, %v1436_v6, %v1437_v18  ;;  %v1878_v39 = vpack.c.bf16 %v7771_v51, %v7771_v51  ;;  %v1879_v43 = vpack.c.bf16 %v7773_v53, %v7773_v53  ;;  %v7028_v30 = vld [vmem:[%s7538_s23 + $0x70] sm:$0xff]  }
  0x94   : > { %v2241_v12 = vunpack.c.l.b16 %v1921_v35  ;;  %v1222_v35 = vmul.f32 %v7576_v1, %v6987_v25  ;;  %v1258_v19 = vadd.f32 %v7587_v8, %v1223_v33  ;;  %v642_v37 = vand.u32 15, %v472_v49 }
  0x95   : > { %v1839_v62 = vpack.c.bf16 %v1483_v32, %v1483_v32  ;;  %v469_v6 = vadd.s32 144, %v7560_v17  ;;  %v10253_v25 = vmov 0  ;;  %v2118_v53 = vunpack.c.l.b16 %v1878_v39 }
  0x96   : > { %v7858_v28 = vpack.c.b16 %v2241_v12, %v2240_v63  ;;  %v1597_v12 = vsel %vm7862_vm12, %v1484_v41, 0.0  ;;  %v1257_v63 = vadd.f32 %v7587_v8, %v1222_v35  ;;  %v7883_v22 = vmax.f32 %v1258_v19, 0.0 }
  0x97   : > { %v1838_v0 = vpack.c.bf16 %v1597_v12, %v1597_v12  ;;  %vm7892_vm13 = vcmp.lt.s32.totalorder %v642_v37, 15  ;;  %v2119_v32 = vunpack.c.l.b16 %v1879_v43  ;;  %v621_v49 = vand.u32 15, %v469_v6 }
  0x98   : > { %10248 = vst [vmem:[#allocation46_spill] sm:$0xff] %v7858_v28  ;;  %v7881_v15 = vmax.f32 %v1257_v63, 0.0  ;;  %v1643_v58 = vrot.slane %v7883_v22, 1  ;;  %v10254_v25 = vsel %vm7892_vm13, 4294967295, %v10253_v25  ;;  %v1999_v63 = vunpack.c.l.b16 %v1839_v62 }
  0x99   : > { %10255 = vst [vmem:[#allocation49_spill] sm:$0xff] %v10254_v25  ;;  %v1998_v12 = vunpack.c.l.b16 %v1838_v0  ;;  %v1438_v37 = vrot.slane %v7779_v7, 7  ;;  %vm7910_vm14 = vcmp.ge.s32.totalorder %v621_v49, 1  ;;  %v10258_v0 = vmov 0 }
  0x9a   : > { %v1642_v40 = vrot.slane %v7881_v15, 1  ;;  %v10259_v0 = vsel %vm7910_vm14, 4294967295, %v10258_v0  ;;  %v1439_v62 = vrot.slane %v7833_v46, 7  ;;  %v1880_v49 = vpack.c.bf16 %v7779_v7, %v7779_v7 }
  0x9b   : > { %3045 = vmatmul.bf16.gmra.mxu2 %v7858_v28  ;;  %v7026_v28 = vld [vmem:[%s7538_s23 + $0x60] sm:$0xff]   ;;  %10260 = vst [vmem:[#allocation52_spill] sm:$0xff] %v10259_v0  ;;  %v1482_v39 = vsel %vm10036_vm2, %v1437_v18, %v1438_v37 }
  0x9c   : > { %v1679_v59 = vsel %vm10051_vm8, %v1642_v40, %v1643_v58  ;;  %v1680_v41 = vsel %vm10051_vm8, %v1641_v61, %v1642_v40  ;;  %v6994_v61 = vunpack.c.l.bf16 %v7026_v28  ;;  %v6991_v40 = vunpack.c.h.bf16 %v7025_v31 }
  0x9d   : > { %v1803_v35 = vsel %vm7892_vm13, %v1679_v59, 0.0  ;;  %v1922_v33 = vpack.c.bf16 %v1680_v41, %v1680_v41  ;;  %v7908_v59 = vpack.c.b16 %v2119_v32, %v2118_v53  ;;  %v6995_v31 = vunpack.c.h.bf16 %v7026_v28 }
  0x9e   : > { %v1923_v19 = vpack.c.bf16 %v1803_v35, %v1803_v35  ;;  %v1225_v6 = vmul.f32 %v7576_v1, %v6994_v61  ;;  %v1481_v18 = vsel %vm10036_vm2, %v1438_v37, %v1439_v62  ;;  %vm10400_vm13 = vcmp.lt.s32.totalorder %v7560_v17, 7 }
  0x9f   : > { %v2242_v48 = vunpack.c.l.b16 %v1922_v33  ;;  %10257 = vst [vmem:[#allocation51_spill] sm:$0xff] %v7908_v59  ;;  %v1226_v35 = vmul.f32 %v7576_v1, %v6995_v31  ;;  %v474_v33 = vadd.s32 184, %v7560_v17  ;;  %v1841_v32 = vpack.c.bf16 %v1481_v18, %v1481_v18 }
  0xa0   : > { %v2243_v9 = vunpack.c.l.b16 %v1923_v19  ;;  %v471_v31 = vadd.s32 160, %v7560_v17 }
  0xa1   : > { %v1261_v53 = vadd.f32 %v7587_v8, %v1226_v35  ;;  %v656_v19 = vand.u32 15, %v474_v33  ;;  %v2001_v33 = vunpack.c.l.b16 %v1841_v32 }
  0xa2   : > { %2810 = vmatmul.bf16.gmra.mxu0 %v7706_v10  ;;  %v7906_v26 = vpack.c.b16 %v2243_v9, %v2242_v48  ;;  %v1224_v9 = vmul.f32 %v7576_v1, %v6991_v40  ;;  %v1599_v48 = vsel %vm7910_vm14, %v1482_v39, 0.0  ;;  %v1881_v39 = vpack.c.bf16 %v7833_v46, %v7833_v46 }
  0xa3   : > { %2915 = vmatmul.bf16.gmra.mxu1 %v7708_v11  ;;  %vm7943_vm15 = vcmp.lt.s32.totalorder %v656_v19, 15 }
  0xa4   : > { %10256 = vst [vmem:[#allocation50_spill] sm:$0xff] %v7906_v26  ;;  %v1259_v41 = vadd.f32 %v7587_v8, %v1224_v9 }
  0xa6   : > { %v7932_v28 = vmax.f32 %v1259_v41, 0.0 }
  0xa8   : > { %v1644_v61 = vrot.slane %v7932_v28, 1 }
  0xab   : > { %3050 = vmatmul.bf16.gmra.mxu2 %v7906_v26 }
  0xb2   : > { %2815 = vmatmul.bf16.gmra.mxu0 %v7748_v3 }
  0xb3   : > { %2920 = vmatmul.bf16.gmra.mxu1 %v7751_v16 }
  0xc2   : > { %2820 = vmatmul.bf16.gmra.mxu0 %v7805_v42 }
  0xc3   : > { %2925 = vmatmul.bf16.gmra.mxu1 %v7807_v21 }
  0xd2   : > { %2825 = vmatmul.bf16.gmra.mxu0 %v7856_v57 }
  0xd3   : > { %2930 = vmatmul.bf16.gmra.mxu1 %v7860_v34  ;;  %v7904_v34 = vpack.c.b16 %v1999_v63, %v1998_v12  ;;  %v1840_v63 = vpack.c.bf16 %v1599_v48, %v1599_v48  ;;  %v1678_v48 = vsel %vm10051_vm8, %v1643_v58, %v1644_v61  ;;  %v635_v58 = vand.u32 15, %v471_v31 }
  0xd4   : > { %v1924_v18 = vpack.c.bf16 %v1678_v48, %v1678_v48  ;;  %v10267_v31 = vmov 0 }
  0xd5   : > { %v2000_v35 = vunpack.c.l.b16 %v1840_v63  ;;  %vm7972_vm0 = vcmp.ge.s32.totalorder %v635_v58, 1 }
  0xd6   : > { %v2244_v0 = vunpack.c.l.b16 %v1924_v18  ;;  %v10268_v31 = vsel %vm7972_vm0, 4294967295, %v10267_v31  ;;  %v476_v18 = vadd.s32 200, %v7560_v17 }
  0xd7   : > { %v7964_v16 = vpack.c.b16 %v2001_v33, %v2000_v35  ;;  %10269 = vst [vmem:[#allocation57_spill] sm:$0xff] %v10268_v31 }
  0xd8   : > { %v670_v33 = vand.u32 15, %v476_v18 }
  0xdf   : > { %v2791_v25 = vpop.f32.mrf.mxu0 }
  0xe0   : > { %v2896_v43 = vpop.f32.mrf.mxu1  ;;  %v1260_v25 = vadd.f32 %v7587_v8, %v1225_v6  ;;  %v10261_v6 = vmov 0 }
  0xe1   : > { %v7941_v43 = vmax.f32 %v1261_v53, 0.0  ;;  %v10262_v6 = vsel %vm7943_vm15, 4294967295, %v10261_v6  ;;  %v2120_v53 = vunpack.c.l.b16 %v1880_v49  ;;  %v1441_v49 = vrot.slane %v7881_v15, 7 }
  0xe2   : > { %2830 = vmatmul.bf16.gmra.mxu0 %v7904_v34  ;;  %v7930_v12 = vmax.f32 %v1260_v25, 0.0  ;;  %10263 = vst [vmem:[#allocation53_spill] sm:$0xff] %v10262_v6 }
  0xe3   : > { %2935 = vmatmul.bf16.gmra.mxu1 %v7908_v59  ;;  %v1887_v25 = vpack.c.bf16 %v7941_v43, %v7941_v43  ;;  %v7027_v59 = vld [vmem:[%s7538_s23 + $0x68] sm:$0xff]  }
  0xe4   : > { %v10025_v37 = vrot.slane %v7930_v12, 1  ;;  %v1886_v46 = vpack.c.bf16 %v7930_v12, %v7930_v12 }
  0xe6   : > { %v1677_v7 = vsel %vm10051_vm8, %v1644_v61, %v10025_v37  ;;  %v2127_v37 = vunpack.c.l.b16 %v1887_v25  ;;  %v1440_v61 = vrot.slane %v7835_v47, 7 }
  0xe7   : > { %v2793_v40 = vpop.f32.mrf.mxu0  ;;  %v1805_v41 = vsel %vm7943_vm15, %v1677_v7, 0.0  ;;  %v6998_v7 = vunpack.c.l.bf16 %v7027_v59 }
  0xe8   : > { %v2898_v9 = vpop.f32.mrf.mxu1  ;;  %v1925_v19 = vpack.c.bf16 %v1805_v41, %v1805_v41  ;;  %v2121_v40 = vunpack.c.l.b16 %v1881_v39  ;;  %v1479_v25 = vsel %vm10036_vm2, %v1440_v61, %v1441_v49 }
  0xe9   : > { %v2126_v9 = vunpack.c.l.b16 %v1886_v46  ;;  %v1227_v48 = vmul.f32 %v7576_v1, %v6998_v7  ;;  %v1883_v7 = vpack.c.bf16 %v7881_v15, %v7881_v15 }
  0xea   : > { %v2245_v26 = vunpack.c.l.b16 %v1925_v19  ;;  %v7968_v32 = vpack.c.b16 %v2121_v40, %v2120_v53  ;;  %v1646_v53 = vrot.slane %v7941_v43, 1  ;;  %v1843_v40 = vpack.c.bf16 %v1479_v25, %v1479_v25 }
  0xeb   : > { %v7962_v21 = vpack.c.b16 %v2127_v37, %v2126_v9  ;;  %v1480_v37 = vsel %vm10036_vm2, %v1439_v62, %v1440_v61  ;;  %v1262_v46 = vadd.f32 %v7587_v8, %v1227_v48  ;;  %v1882_v61 = vpack.c.bf16 %v7835_v47, %v7835_v47 }
  0xec   : > { %v7966_v6 = vpack.c.b16 %v2245_v26, %v2244_v0  ;;  %10266 = vst [vmem:[#allocation56_spill] sm:$0xff] %v7968_v32  ;;  %v6999_v0 = vunpack.c.h.bf16 %v7027_v59  ;;  %v1601_v41 = vsel %vm7972_vm0, %v1480_v37, 0.0  ;;  %vm8004_vm2 = vcmp.lt.s32.totalorder %v670_v33, 15  ;;  %vm10402_vm0 = vmmov %vm10400_vm13 }
  0xed   : > { %10264 = vst [vmem:[#allocation54_spill] sm:$0xff] %v7962_v21  ;;  %2955 = vmatmul.bf16.vlgmr.msra.gmra.mxu3 %v7962_v21  ;;  %v7991_v35 = vmax.f32 %v1262_v46, 0.0  ;;  %v1842_v19 = vpack.c.bf16 %v1601_v41, %v1601_v41  ;;  %v473_v48 = vadd.s32 176, %v7560_v17  ;;  %v10275_v47 = vrot.slane %v7930_v12, 1  ;;  %vm10410_vm11 = vmmov %vm10402_vm0 }
  0xee   : > { %10265 = vst [vmem:[#allocation55_spill] sm:$0xff] %v7966_v6  ;;  %3055 = vmatmul.bf16.gmra.mxu2 %v7966_v6  ;;  %v1228_v62 = vmul.f32 %v7576_v1, %v6999_v0  ;;  %v2003_v18 = vunpack.c.l.b16 %v1843_v40  ;;  %v2123_v31 = vunpack.c.l.b16 %v1883_v7  ;;  %vm10417_vm14 = vmmov %vm10402_vm0 }
  0xef   : > { %v2796_v63 = vpop.f32.mrf.mxu0  ;;  %v10037_v9 = vrot.slane %v7991_v35, 1  ;;  %v1676_v15 = vsel %vm10051_vm8, %v10275_v47, %v1646_v53  ;;  %v1888_v46 = vpack.c.bf16 %v7991_v35, %v7991_v35  ;;  %vm10425_vm9 = vmmov %vm10402_vm0 }
  0xf0   : > { %v2901_v39 = vpop.f32.mrf.mxu1  ;;  %v1263_v59 = vadd.f32 %v7587_v8, %v1228_v62  ;;  %v2002_v62 = vunpack.c.l.b16 %v1842_v19  ;;  %v10056_v19 = vrot.slane %v7932_v28, 7  ;;  %vm10431_vm12 = vmmov %vm10402_vm0 }
  0xf1   : > { %v7979_v26 = vadd.f32 %v2901_v39, %v2796_v63  ;;  %v10271_v39 = vmov 0  ;;  %v1675_v0 = vsel %vm10051_vm8, %v1646_v53, %v10037_v9  ;;  %v2122_v9 = vunpack.c.l.b16 %v1882_v61  ;;  %vm10438_vm10 = vmmov %vm10402_vm0 }
  0xf2   : > { %2835 = vmatmul.bf16.gmra.mxu0 %v7964_v16  ;;  %v8002_v63 = vmax.f32 %v1263_v59, 0.0  ;;  %v10272_v39 = vsel %vm8004_vm2, 4294967295, %v10271_v39  ;;  %v1807_v41 = vsel %vm8004_vm2, %v1675_v0, 0.0  ;;  %v1926_v59 = vpack.c.bf16 %v1676_v15, %v1676_v15 }
  0xf3   : > { %2940 = vmatmul.bf16.gmra.mxu1 %v7968_v32  ;;  %10273 = vst [vmem:[#allocation59_spill] sm:$0xff] %v10272_v39  ;;  %v1927_v33 = vpack.c.bf16 %v1807_v41, %v1807_v41  ;;  %v2128_v21 = vunpack.c.l.b16 %v1888_v46  ;;  %v649_v32 = vand.u32 15, %v473_v48  ;;  %v1442_v53 = vrot.slane %v7883_v22, 7 }
  0xf4   : > { %v1889_v25 = vpack.c.bf16 %v8002_v63, %v8002_v63  ;;  %v2246_v47 = vunpack.c.l.b16 %v1926_v59  ;;  %v8034_v61 = vpack.c.b16 %v2123_v31, %v2122_v9  ;;  %v10280_v15 = vmov 0 }
  0xf5   : > { %v2247_v11 = vunpack.c.l.b16 %v1927_v33  ;;  %vm8038_vm8 = vcmp.ge.s32.totalorder %v649_v32, 1  ;;  %vm10283_vm2 = vcmp.lt.s32.totalorder %v7560_v17, 1  ;;  %v1648_v41 = vrot.slane %v8002_v63, 1 }
  0xf6   : > { %v2129_v6 = vunpack.c.l.b16 %v1889_v25  ;;  %10279 = vst [vmem:[#allocation64_spill] sm:$0xff] %v8034_v61  ;;  %v10281_v15 = vsel %vm8038_vm8, 4294967295, %v10280_v15  ;;  %vm10285_vm15 = vmmov %vm10283_vm2  ;;  %v1884_v33 = vpack.c.bf16 %v7883_v22, %v7883_v22  ;;  %v475_v22 = vadd.s32 192, %v7560_v17 }
  0xf7   : > { %v7996_v58 = vpop.f32.mrf.mxu0  ;;  %v8032_v40 = vpack.c.b16 %v2247_v11, %v2246_v47  ;;  %10282 = vst [vmem:[#allocation65_spill] sm:$0xff] %v10281_v15  ;;  %v7003_v11 = vunpack.c.h.bf16 %v7028_v30  ;;  %v1477_v32 = vsel %vm10285_vm15, %v1442_v53, %v10056_v19  ;;  %v1885_v47 = vpack.c.bf16 %v7932_v28, %v7932_v28 }
  0xf8   : > { %10270 = vst [vmem:[#allocation58_spill] sm:$0xff] %v7996_v58  ;;  %v8008_v37 = vpop.f32.mrf.mxu1  ;;  %v8027_v56 = vpack.c.b16 %v2129_v6, %v2128_v21  ;;  %v8029_v58 = vpack.c.b16 %v2003_v18, %v2002_v62  ;;  %v1478_v21 = vsel %vm10283_vm2, %v1441_v49, %v1442_v53  ;;  %v1845_v59 = vpack.c.bf16 %v1477_v32, %v1477_v32 }
  0xf9   : > { %10274 = vst [vmem:[#allocation60_spill] sm:$0xff] %v8008_v37  ;;  %v7002_v37 = vunpack.c.l.bf16 %v7028_v30  ;;  %v1603_v9 = vsel %vm8038_vm8, %v1478_v21, 0.0  ;;  %v1230_v49 = vmul.f32 %v7576_v1, %v7003_v11  ;;  %v478_v30 = vadd.s32 216, %v7560_v17 }
  0xfa   : > { %10276 = vst [vmem:[#allocation61_spill] sm:$0xff] %v8027_v56  ;;  %v1844_v18 = vpack.c.bf16 %v1603_v9, %v1603_v9  ;;  %vm10290_vm15 = vcmp.lt.s32.totalorder %v7560_v17, 7  ;;  %v10292_v11 = vrot.slane %v7991_v35, 1  ;;  %v2125_v39 = vunpack.c.l.b16 %v1885_v47 }
  0xfb   : > { %10277 = vst [vmem:[#allocation62_spill] sm:$0xff] %v8029_v58  ;;  %v1229_v7 = vmul.f32 %v7576_v1, %v7002_v37  ;;  %v1265_v46 = vadd.f32 %v7587_v8, %v1230_v49  ;;  %v684_v25 = vand.u32 15, %v478_v30  ;;  %vm10293_vm8 = vmmov %vm10290_vm15 }
  0xfc   : > { %10278 = vst [vmem:[#allocation63_spill] sm:$0xff] %v8032_v40 }
  0xfd   : > { %2960 = vmatmul.bf16.gmra.mxu3 %v8027_v56  ;;  %v1264_v31 = vadd.f32 %v7587_v8, %v1229_v7  ;;  %vm8071_vm2 = vcmp.lt.s32.totalorder %v684_v25, 15  ;;  %v10287_v7 = vmov 0  ;;  %v2005_v25 = vunpack.c.l.b16 %v1845_v59 }
  0xfe   : > { %3060 = vmatmul.bf16.gmra.mxu2 %v8032_v40  ;;  %v10288_v7 = vsel %vm8071_vm2, 4294967295, %v10287_v7 }
  0xff   : > { %v2801_v0 = vpop.f32.mrf.mxu0  ;;  %v8057_v37 = vmax.f32 %v1264_v31, 0.0  ;;  %10289 = vst [vmem:[#allocation68_spill] sm:$0xff] %v10288_v7  ;;  %v1674_v31 = vsel %vm10293_vm8, %v10292_v11, %v1648_v41  ;;  %v1444_v11 = vrot.slane %v7930_v12, 7  ;;  %v10298_v12 = vmov 0 }
 0x100   : > { %v2906_v48 = vpop.f32.mrf.mxu1  ;;  %v1928_v30 = vpack.c.bf16 %v1674_v31, %v1674_v31  ;;  %v1445_v31 = vrot.slane %v7941_v43, 7 }
 0x101   : > { %v8044_v6 = vadd.f32 %v2906_v48, %v2801_v0  ;;  %v10055_v62 = vrot.slane %v8057_v37, 1  ;;  %v8069_v0 = vmax.f32 %v1265_v46, 0.0  ;;  %v1890_v9 = vpack.c.bf16 %v8057_v37, %v8057_v37 }
 0x102   : > { %2840 = vmatmul.bf16.gmra.mxu0 %v8029_v58  ;;  %v2004_v46 = vunpack.c.l.b16 %v1844_v18  ;;  %v2248_v40 = vunpack.c.l.b16 %v1928_v30 }
 0x103   : > { %10284 = vst [vmem:[#allocation66_spill] sm:$0xff] %v8044_v6  ;;  %2945 = vmatmul.bf16.gmra.mxu1 %v8034_v61  ;;  %v1673_v48 = vsel %vm10290_vm15, %v1648_v41, %v10055_v62  ;;  %v1891_v49 = vpack.c.bf16 %v8069_v0, %v8069_v0  ;;  %v2124_v62 = vunpack.c.l.b16 %v1884_v33  ;;  %v2130_v15 = vunpack.c.l.b16 %v1890_v9 }
 0x104   : > { %v1809_v32 = vsel %vm8071_vm2, %v1673_v48, 0.0  ;;  %v663_v41 = vand.u32 15, %v475_v22  ;;  %v7029_v48 = vld [vmem:[%s7538_s23 + $0x78] sm:$0xff]   ;;  %vm10302_vm15 = vcmp.lt.s32.totalorder %v7560_v17, 1  ;;  %s9837_s23 = scalar_lea.vmem [#allocation10], %s6225_s21 }
 0x105   : > { %v1929_v19 = vpack.c.bf16 %v1809_v32, %v1809_v32  ;;  %v2131_v56 = vunpack.c.l.b16 %v1891_v49  ;;  %v8101_v33 = vpack.c.b16 %v2125_v39, %v2124_v62  ;;  %v7007_v39 = vunpack.c.h.bf16 %v7029_v48  ;;  %vm10304_vm2 = vmmov %vm10302_vm15  ;;  %s6074_s11 = sshll.u32 %s9837_s23, 4  ;;  %s6075_s11 = int_to_ptr.vmem [resolvable:$true] %s6074_s11 }
 0x106   : > { %vm8105_vm8 = vcmp.ge.s32.totalorder %v663_v41, 1  ;;  %v1650_v49 = vrot.slane %v8069_v0, 1 }
 0x107   : > { %v8065_v53 = vpop.f32.mrf.mxu0  ;;  %v2249_v7 = vunpack.c.l.b16 %v1929_v19  ;;  %v8094_v61 = vpack.c.b16 %v2131_v56, %v2130_v15  ;;  %10297 = vst [vmem:[#allocation73_spill] sm:$0xff] %v8101_v33  ;;  %v10299_v12 = vsel %vm8105_vm8, 4294967295, %v10298_v12  ;;  %v10301_v56 = vrot.slane %v7932_v28, 7 }
 0x108   : > { %10286 = vst [vmem:[#allocation67_spill] sm:$0xff] %v8065_v53  ;;  %v8079_v21 = vpop.f32.mrf.mxu1  ;;  %v8096_v53 = vpack.c.b16 %v2005_v25, %v2004_v46  ;;  %v1475_v15 = vsel %vm10304_vm2, %v1444_v11, %v1445_v31  ;;  %v1232_v62 = vmul.f32 %v7576_v1, %v7007_v39 }
 0x109   : > { %10291 = vst [vmem:[#allocation69_spill] sm:$0xff] %v8079_v21  ;;  %v7006_v21 = vunpack.c.l.bf16 %v7029_v48  ;;  %v8099_v18 = vpack.c.b16 %v2249_v7, %v2248_v40  ;;  %v1476_v19 = vsel %vm10302_vm15, %v10301_v56, %v1444_v11  ;;  %v1847_v25 = vpack.c.bf16 %v1475_v15, %v1475_v15 }
 0x10a   : > { %10294 = vst [vmem:[#allocation70_spill] sm:$0xff] %v8094_v61  ;;  %v1605_v28 = vsel %vm8105_vm8, %v1476_v19, 0.0  ;;  %v1267_v32 = vadd.f32 %v7587_v8, %v1232_v62  ;;  %v10306_v48 = vmov 0  ;;  %vm10309_vm15 = vcmp.lt.s32.totalorder %v7560_v17, 7 }
 0x10b   : > { %10295 = vst [vmem:[#allocation71_spill] sm:$0xff] %v8096_v53  ;;  %v1231_v47 = vmul.f32 %v7576_v1, %v7006_v21  ;;  %v480_v21 = vadd.s32 232, %v7560_v17  ;;  %v1846_v46 = vpack.c.bf16 %v1605_v28, %v1605_v28  ;;  %vm10312_vm8 = vmmov %vm10309_vm15  ;;  %v2007_v28 = vunpack.c.l.b16 %v1847_v25  ;;  %v7148_v25 = vld [vmem:[%s9995_s3] ss:$0 sm:$0xff] }
 0x10c   : > { %10296 = vst [vmem:[#allocation72_spill] sm:$0xff] %v8099_v18  ;;  %v8132_v11 = vmax.f32 %v1267_v32, 0.0 }
 0x10d   : > { %2965 = vmatmul.bf16.gmra.mxu3 %v8094_v61  ;;  %10300 = vst [vmem:[#allocation74_spill] sm:$0xff] %v10299_v12  ;;  %v1266_v40 = vadd.f32 %v7587_v8, %v1231_v47  ;;  %v698_v9 = vand.u32 15, %v480_v21  ;;  %v477_v8 = vadd.s32 208, %v7560_v17  ;;  %v10311_v47 = vrot.slane %v8057_v37, 1 }
 0x10e   : > { %3065 = vmatmul.bf16.gmra.mxu2 %v8099_v18  ;;  %v1893_v39 = vpack.c.bf16 %v8132_v11, %v8132_v11  ;;  %v2006_v15 = vunpack.c.l.b16 %v1846_v46  ;;  %v1446_v61 = vrot.slane %v7991_v35, 7 }
 0x10f   : > { %v2806_v59 = vpop.f32.mrf.mxu0  ;;  %v8124_v7 = vmax.f32 %v1266_v40, 0.0  ;;  %vm8134_vm2 = vcmp.lt.s32.totalorder %v698_v9, 15  ;;  %v677_v12 = vand.u32 15, %v477_v8 }
 0x110   : > { %v2911_v22 = vpop.f32.mrf.mxu1  ;;  %v10307_v48 = vsel %vm8134_vm2, 4294967295, %v10306_v48  ;;  %v2133_v32 = vunpack.c.l.b16 %v1893_v39  ;;  %v8157_v18 = vpack.c.b16 %v2007_v28, %v2006_v15  ;;  %v7149_v39 = vld [vmem:[%s9996_s4] ss:$0 sm:$0xff] }
 0x111   : > { %v8113_v43 = vadd.f32 %v2911_v22, %v2806_v59  ;;  %v1651_v30 = vrot.slane %v8124_v7, 1  ;;  %10308 = vst [vmem:[#allocation77_spill] sm:$0xff] %v10307_v48  ;;  %v1672_v22 = vsel %vm10312_vm8, %v10311_v47, %v1650_v49  ;;  %v1892_v19 = vpack.c.bf16 %v8124_v7, %v8124_v7  ;;  %v7009_v47 = vld [vmem:[%s7546_s9] sm:$0xff]  }
 0x112   : > { %2845 = vmatmul.bf16.gmra.mxu0 %v8096_v53  ;;  %v1930_v40 = vpack.c.bf16 %v1672_v22, %v1672_v22  ;;  %10314 = vst [vmem:[#allocation80_spill] sm:$0xff] %v8157_v18  ;;  %vm8166_vm8 = vcmp.ge.s32.totalorder %v677_v12, 1  ;;  %v10316_v22 = vmov 0 }
 0x113   : > { %10303 = vst [vmem:[#allocation75_spill] sm:$0xff] %v8113_v43  ;;  %2950 = vmatmul.bf16.gmra.mxu1 %v8101_v33  ;;  %v1671_v1 = vsel %vm10309_vm15, %v1650_v49, %v1651_v30  ;;  %v2132_v21 = vunpack.c.l.b16 %v1892_v19  ;;  %v1447_v33 = vrot.slane %v8002_v63, 7  ;;  %v10317_v22 = vsel %vm8166_vm8, 4294967295, %v10316_v22 }
 0x114   : > { %v1811_v56 = vsel %vm8134_vm2, %v1671_v1, 0.0  ;;  %v2250_v9 = vunpack.c.l.b16 %v1930_v40  ;;  %v7010_v1 = vunpack.c.l.bf16 %v7009_v47  ;;  %10318 = vst [vmem:[#allocation82_spill] sm:$0xff] %v10317_v22  ;;  %vm10319_vm15 = vcmp.lt.s32.totalorder %v7560_v17, 1 }
 0x115   : > { %v1931_v62 = vpack.c.bf16 %v1811_v56, %v1811_v56  ;;  %v8155_v48 = vpack.c.b16 %v2133_v32, %v2132_v21  ;;  %v1474_v56 = vsel %vm10319_vm15, %v1445_v31, %v1446_v61  ;;  %v7011_v63 = vunpack.c.h.bf16 %v7009_v47  ;;  %vm10321_vm2 = vmmov %vm10319_vm15 }
 0x116   : > { %v1316_v8 = vmul.f32 %v7148_v25, %v7010_v1  ;;  %v1473_v12 = vsel %vm10321_vm2, %v1446_v61, %v1447_v33  ;;  %v1607_v15 = vsel %vm8166_vm8, %v1474_v56, 0.0  ;;  %v10323_v61 = vmov 0 }
 0x117   : > { %v8130_v41 = vpop.f32.mrf.mxu0  ;;  %v2251_v49 = vunpack.c.l.b16 %v1931_v62  ;;  %10313 = vst [vmem:[#allocation79_spill] sm:$0xff] %v8155_v48  ;;  %v1317_v28 = vmul.f32 %v7148_v25, %v7011_v63  ;;  %v482_v62 = vadd.s32 248, %v7560_v17  ;;  %v1848_v47 = vpack.c.bf16 %v1607_v15, %v1607_v15 }
 0x118   : > { %10305 = vst [vmem:[#allocation76_spill] sm:$0xff] %v8130_v41  ;;  %v8140_v59 = vpop.f32.mrf.mxu1  ;;  %v1324_v40 = vadd.f32 %v7149_v39, %v1316_v8  ;;  %v1849_v1 = vpack.c.bf16 %v1473_v12, %v1473_v12  ;;  %vm10326_vm15 = vcmp.lt.s32.totalorder %v7560_v17, 7  ;;  %v479_v63 = vadd.s32 224, %v7560_v17 }
 0x119   : > { %10310 = vst [vmem:[#allocation78_spill] sm:$0xff] %v8140_v59  ;;  %v8160_v59 = vpack.c.b16 %v2251_v49, %v2250_v9  ;;  %v1325_v21 = vadd.f32 %v7149_v39, %v1317_v28  ;;  %v712_v32 = vand.u32 15, %v482_v62  ;;  %v1652_v9 = vrot.slane %v8132_v11, 1  ;;  %vm10328_vm8 = vmmov %vm10326_vm15 }
 0x11a   : > { %v8183_v31 = vmax.f32 %v1324_v40, 0.0  ;;  %v1449_v43 = vrot.slane %v8069_v0, 7 }
 0x11b   : > { %10315 = vst [vmem:[#allocation81_spill] sm:$0xff] %v8160_v59  ;;  %v8190_v8 = vmax.f32 %v1325_v21, 0.0  ;;  %vm8192_vm2 = vcmp.lt.s32.totalorder %v712_v32, 15  ;;  %v1670_v40 = vsel %vm10328_vm8, %v1651_v30, %v1652_v9  ;;  %v2008_v21 = vunpack.c.l.b16 %v1848_v47 }
 0x11c   : > { %v1653_v49 = vrot.slane %v8183_v31, 1  ;;  %v10324_v61 = vsel %vm8192_vm2, 4294967295, %v10323_v61  ;;  %v1894_v15 = vpack.c.bf16 %v8183_v31, %v8183_v31  ;;  %v1932_v62 = vpack.c.bf16 %v1670_v40, %v1670_v40 }
 0x11d   : > { %2970 = vmatmul.bf16.gmra.mxu3 %v8155_v48  ;;  %10325 = vst [vmem:[#allocation85_spill] sm:$0xff] %v10324_v61  ;;  %v1895_v28 = vpack.c.bf16 %v8190_v8, %v8190_v8  ;;  %v2009_v32 = vunpack.c.l.b16 %v1849_v1 }
 0x11e   : > { %3070 = vmatmul.bf16.gmra.mxu2 %v8160_v59  ;;  %v2134_v48 = vunpack.c.l.b16 %v1894_v15  ;;  %v484_v15 = vadd.s32 264, %v7560_v17 }
 0x11f   : > { %v2811_v46 = vpop.f32.mrf.mxu0  ;;  %v2135_v59 = vunpack.c.l.b16 %v1895_v28  ;;  %v8213_v41 = vpack.c.b16 %v2009_v32, %v2008_v21 }
 0x120   : > { %v2916_v35 = vpop.f32.mrf.mxu1  ;;  %v726_v28 = vand.u32 15, %v484_v15 }
 0x121   : > { %v8172_v19 = vadd.f32 %v2916_v35, %v2811_v46  ;;  %v1669_v35 = vsel %vm10326_vm15, %v1652_v9, %v1653_v49  ;;  %v7030_v9 = vld [vmem:[%s7546_s9 + $0x8] sm:$0xff]   ;;  %v8211_v61 = vpack.c.b16 %v2135_v59, %v2134_v48  ;;  %10330 = vst [vmem:[#allocation88_spill] sm:$0xff] %v8213_v41  ;;  %vm10335_vm15 = vcmp.lt.s32.totalorder %v7560_v17, 1  ;;  %s6073_s9 = scalar_lea.hbm %s10000_s8, %s6951_s0 }
 0x122   : > { %2850 = vmatmul.bf16.gmra.mxu0 %v8157_v18  ;;  %v1813_v12 = vsel %vm8192_vm2, %v1669_v35, 0.0  ;;  %v7014_v35 = vunpack.c.l.bf16 %v7030_v9  ;;  %v7015_v59 = vunpack.c.h.bf16 %v7030_v9  ;;  %vm10336_vm2 = vmmov %vm10335_vm15  ;;  %s6076_s13 = sshll.u32 %s6073_s9, 4  ;;  %s6077_s13 = int_to_ptr.hbm [resolvable:$true] %s6076_s13 }
 0x123   : > { %10320 = vst [vmem:[#allocation83_spill] sm:$0xff] %v8172_v19  ;;  %v1933_v22 = vpack.c.bf16 %v1813_v12, %v1813_v12  ;;  %v1448_v19 = vrot.slane %v8057_v37, 7  ;;  %s7285_s18 = sshra.s32 %s6077_s13, 4  ;;  %s7286_s18 = int_to_ptr.hbm [resolvable:$true] %s7285_s18 }
 0x124   : > { %10329 = vst [vmem:[#allocation87_spill] sm:$0xff] %v8211_v61  ;;  %v1318_v1 = vmul.f32 %v7148_v25, %v7014_v35  ;;  %s7287_s15 = scalar_lea.hbm %s7286_s18, 256  ;;  %p7292_p10 = scmp.lt.s32.totalorder %s7286_s18, %s10000_s8 }
 0x125   : > { %v2253_v30 = vunpack.c.l.b16 %v1933_v22  ;;  %v1472_v37 = vsel %vm10335_vm15, %v1447_v33, %v1448_v19  ;;  %v1471_v22 = vsel %vm10336_vm2, %v1448_v19, %v1449_v43  ;;  %vm8242_vm2 = vcmp.lt.s32.totalorder %v726_v28, 15  ;;  %p7288_p1 = scmp.ne.s32.totalorder %s7286_s18, %s7287_s15  ;;  %p7293_p12 = scmp.lt.s32.totalorder %s7291_s16, %s7287_s15 }
 0x126   : > { %v1326_v0 = vadd.f32 %v7149_v39, %v1318_v1  ;;  %v10337_v19 = vmov 0  ;;  %vm10340_vm15 = vcmp.lt.s32.totalorder %v7560_v17, 7 }
 0x127   : > { %v8188_v46 = vpop.f32.mrf.mxu0  ;;  %v10338_v19 = vsel %vm8242_vm2, 4294967295, %v10337_v19  ;;  %p7289_p4 = pnand %p7288_p1, %p7501_p7  ;;  %p7294_p13 = por %p7293_p12, %p7292_p10 }
 0x128   : > { %10322 = vst [vmem:[#allocation84_spill] sm:$0xff] %v8188_v46  ;;  %v8198_v56 = vpop.f32.mrf.mxu1  ;;  %v691_v46 = vand.u32 15, %v479_v63  ;;  %v10332_v63 = vmov 0  ;;  %v8233_v12 = vmax.f32 %v1326_v0, 0.0 }
 0x129   : > { %10327 = vst [vmem:[#allocation86_spill] sm:$0xff] %v8198_v56  ;;  %v2252_v56 = vunpack.c.l.b16 %v1932_v62  ;;  %v1654_v62 = vrot.slane %v8190_v8, 1  ;;  %p7290_p8 = pneg %p7289_p4 }
 0x12a   : > { %vm8219_vm8 = vcmp.ge.s32.totalorder %v691_v46, 1  ;;  %v10086_v21 = vrot.slane %v8233_v12, 1  ;;  %10339 = vst [vmem:[#allocation91_spill] sm:$0xff] %v10338_v19 }
 0x12b   : > { %v8216_v6 = vpack.c.b16 %v2253_v30, %v2252_v56  ;;  %v10333_v63 = vsel %vm8219_vm8, 4294967295, %v10332_v63  ;;  %v1609_v46 = vsel %vm8219_vm8, %v1472_v37, 0.0  ;;  %v1319_v56 = vmul.f32 %v7148_v25, %v7015_v59  ;;  %vm10341_vm8 = vmmov %vm10340_vm15  ;;  %p7295_p0 = pnand %p7294_p13, %p7290_p8 }
 0x12c   : > { %10334 = vst [vmem:[#allocation90_spill] sm:$0xff] %v10333_v63  ;;  %v1850_v32 = vpack.c.bf16 %v1609_v46, %v1609_v46  ;;  %v1851_v30 = vpack.c.bf16 %v1471_v22, %v1471_v22  ;;  %v1667_v25 = vsel %vm10340_vm15, %v1654_v62, %v10086_v21  ;;  %v1668_v1 = vsel %vm10341_vm8, %v1653_v49, %v1654_v62 }
 0x12d   : > { %10331 = vst [vmem:[#allocation89_spill] sm:$0xff] %v8216_v6  ;;  %2975 = vmatmul.bf16.gmra.mxu3 %v8211_v61  ;;  %v1327_v33 = vadd.f32 %v7149_v39, %v1319_v56  ;;  %v1896_v37 = vpack.c.bf16 %v8233_v12, %v8233_v12  ;;  %v1934_v0 = vpack.c.bf16 %v1668_v1, %v1668_v1  ;;  %v1450_v63 = vrot.slane %v8124_v7, 7 }
 0x12e   : > { %3075 = vmatmul.bf16.gmra.mxu2 %v8216_v6  ;;  %v2010_v22 = vunpack.c.l.b16 %v1850_v32  ;;  %v2011_v46 = vunpack.c.l.b16 %v1851_v30  ;;  %v1451_v6 = vrot.slane %v8132_v11, 7  ;;  %v10345_v30 = vmov 0 }
 0x12f   : > { %v2816_v47 = vpop.f32.mrf.mxu0  ;;  %v8240_v35 = vmax.f32 %v1327_v33, 0.0  ;;  %v2136_v15 = vunpack.c.l.b16 %v1896_v37  ;;  %v2254_v28 = vunpack.c.l.b16 %v1934_v0  ;;  %vm10348_vm15 = vcmp.lt.s32.totalorder %v7560_v17, 1 }
 0x130   : > { %v2921_v40 = vpop.f32.mrf.mxu1  ;;  %v1470_v7 = vsel %vm10348_vm15, %v1449_v43, %v1450_v63  ;;  %v483_v43 = vadd.s32 256, %v7560_v17 }
 0x131   : > { %v8225_v48 = vadd.f32 %v2921_v40, %v2816_v47  ;;  %v481_v47 = vadd.s32 240, %v7560_v17  ;;  %v1815_v40 = vsel %vm8242_vm2, %v1667_v25, 0.0  ;;  %v1897_v59 = vpack.c.bf16 %v8240_v35, %v8240_v35  ;;  %vm10349_vm2 = vmmov %vm10348_vm15 }
 0x132   : > { %2855 = vmatmul.bf16.gmra.mxu0 %v8213_v41  ;;  %v1935_v56 = vpack.c.bf16 %v1815_v40, %v1815_v40  ;;  %v8264_v25 = vpack.c.b16 %v2011_v46, %v2010_v22  ;;  %v1469_v1 = vsel %vm10349_vm2, %v1450_v63, %v1451_v6  ;;  %v8284_v40 = vpop.f32.mrf.mxu2  ;;  %v719_v46 = vand.u32 15, %v483_v43  ;;  %v6828_v63 = vld [vmem:[#allocation7 + $0xac] sm:$0xf]  ;;  %v6302_v43 = vld [vmem:[#allocation7 + $0x9c] sm:$0xf0] }
 0x133   : > { %v2137_v33 = vunpack.c.l.b16 %v1897_v59  ;;  %v705_v21 = vand.u32 15, %v481_v47  ;;  %v1853_v37 = vpack.c.bf16 %v1469_v1, %v1469_v1 }
 0x134   : > { %v2255_v49 = vunpack.c.l.b16 %v1935_v56  ;;  %10343 = vst [vmem:[#allocation93_spill] sm:$0xff] %v8264_v25  ;;  %v1452_v56 = vrot.slane %v8183_v31, 7  ;;  %vm8298_vm2 = vcmp.ge.s32.totalorder %v719_v46, 1 }
 0x135   : > { %v8262_v62 = vpack.c.b16 %v2137_v33, %v2136_v15  ;;  %vm8270_vm8 = vcmp.ge.s32.totalorder %v705_v21, 1  ;;  %v2013_v22 = vunpack.c.l.b16 %v1853_v37  ;;  %v6314_v33 = vld [vmem:[#allocation7 + $0xb4] sm:$0xf0]  ;;  %v6825_v37 = vld [vmem:[#allocation7 + $0x94] sm:$0xf] }
 0x136   : > { %v8266_v19 = vpack.c.b16 %v2255_v49, %v2254_v28  ;;  %v10346_v30 = vsel %vm8270_vm8, 4294967295, %v10345_v30  ;;  %v1611_v11 = vsel %vm8270_vm8, %v1470_v7, 0.0  ;;  %v6317_v49 = vor.u32 %v6828_v63, %v6314_v33  ;;  %vm10356_vm8 = vmmov %vm10348_vm15  ;;  %v6822_v63 = vld [vmem:[#allocation7 + $0x7c] sm:$0xf]  ;;  %v6290_v33 = vld [vmem:[#allocation7 + $0x84] sm:$0xf0] }
 0x137   : > { %v8238_v9 = vpop.f32.mrf.mxu0  ;;  %10342 = vst [vmem:[#allocation92_spill] sm:$0xff] %v8262_v62  ;;  %v1852_v21 = vpack.c.bf16 %v1611_v11, %v1611_v11  ;;  %v1453_v7 = vrot.slane %v8190_v8, 7  ;;  %v10352_v11 = vmov 0  ;;  %v1468_v31 = vsel %vm10348_vm15, %v1451_v6, %v1452_v56 }
 0x138   : > { %v8250_v39 = vpop.f32.mrf.mxu1  ;;  %10344 = vst [vmem:[#allocation94_spill] sm:$0xff] %v8266_v19  ;;  %v10353_v11 = vsel %vm8298_vm2, 4294967295, %v10352_v11  ;;  %3097 = vmatpush.bf16.msrb.mxu3 %v6317_v49 }
 0x139   : > { %10347 = vst [vmem:[#allocation95_spill] sm:$0xff] %v10346_v30  ;;  %v1467_v8 = vsel %vm10356_vm8, %v1452_v56, %v1453_v7  ;;  %v6278_v56 = vld [vmem:[#allocation7 + $0x6c] sm:$0xf0] }
 0x13a   : > { %v8292_v15 = vpop.f32.mrf.mxu2  ;;  %10354 = vst [vmem:[#allocation98_spill] sm:$0xff] %v10353_v11  ;;  %v1855_v49 = vpack.c.bf16 %v1467_v8, %v1467_v8  ;;  %v6816_v8 = vld [vmem:[#allocation7 + $0x4c] sm:$0xf] }
 0x13b   : > { %10350 = vst [vmem:[#allocation96_spill] sm:$0xff] %v8292_v15 }
 0x13c   : > { %v2015_v11 = vunpack.c.l.b16 %v1855_v49 }
 0x13d   : > { %2980 = vmatmul.bf16.gmra.mxu3 %v8262_v62 }
 0x13e   : > { %3080 = vmatmul.bf16.gmra.mxu2 %v8266_v19 }
 0x13f   : > { %v2821_v61 = vpop.f32.mrf.mxu0 }
 0x140   : > { %v2926_v32 = vpop.f32.mrf.mxu1 }
 0x141   : > { %v8276_v47 = vadd.f32 %v2926_v32, %v2821_v61  ;;  %v2012_v61 = vunpack.c.l.b16 %v1852_v21 }
 0x142   : > { %2860 = vmatmul.bf16.gmra.mxu0 %v8264_v25  ;;  %v8311_v46 = vpop.f32.mrf.mxu2 }
 0x143   : > { %v8294_v28 = vpack.c.b16 %v2013_v22, %v2012_v61  ;;  %v6305_v61 = vor.u32 %v6825_v37, %v6302_v43  ;;  %v1613_v22 = vsel %vm8298_vm2, %v1468_v31, 0.0  ;;  %v485_v37 = vadd.s32 272, %v7560_v17  ;;  %v6819_v43 = vld [vmem:[#allocation7 + $0x64] sm:$0xf]  ;;  %vm10365_vm2 = vmmov %vm10348_vm15 }
 0x144   : > { %v1854_v6 = vpack.c.bf16 %v1613_v22, %v1613_v22  ;;  %v6281_v31 = vor.u32 %v6819_v43, %v6278_v56  ;;  %v6266_v22 = vld [vmem:[#allocation7 + $0x54] sm:$0xf0]  ;;  %v6813_v43 = vld [vmem:[#allocation7 + $0x34] sm:$0xf]  ;;  %v6254_v56 = vld [vmem:[#allocation7 + $0x3c] sm:$0xf0] }
 0x145   : > { %10351 = vst [vmem:[#allocation97_spill] sm:$0xff] %v8294_v28  ;;  %3098 = vmatpush.bf16.msrb.mxu3 %v6305_v61  ;;  %v733_v62 = vand.u32 15, %v485_v37  ;;  %v1454_v61 = vrot.slane %v8233_v12, 7 }
 0x146   : > { %v2014_v15 = vunpack.c.l.b16 %v1854_v6  ;;  %v10361_v6 = vmov 0 }
 0x147   : > { %v8286_v59 = vpop.f32.mrf.mxu0  ;;  %vm8325_vm8 = vcmp.ge.s32.totalorder %v733_v62, 1  ;;  %v1466_v49 = vsel %vm10348_vm15, %v1453_v7, %v1454_v61 }
 0x148   : > { %v8288_v0 = vpop.f32.mrf.mxu1  ;;  %v10362_v6 = vsel %vm8325_vm8, 4294967295, %v10361_v6  ;;  %v1615_v62 = vsel %vm8325_vm8, %v1466_v49, 0.0  ;;  %vm10392_vm8 = vcmp.lt.s32.totalorder %v7560_v17, 7 }
 0x149   : > { %10363 = vst [vmem:[#allocation104_spill] sm:$0xff] %v10362_v6  ;;  %v1856_v7 = vpack.c.bf16 %v1615_v62, %v1615_v62 }
 0x14a   : > { %v8319_v19 = vpop.f32.mrf.mxu2 }
 0x14b   : > { %10359 = vst [vmem:[#allocation102_spill] sm:$0xff] %v8319_v19 }
 0x14d   : > { %2985 = vmatmul.bf16.gmra.mxu3 %v7581_v5 }
 0x14f   : > { %v2826_v32 = vpop.f32.mrf.mxu0 }
 0x150   : > { %v2931_v1 = vpop.f32.mrf.mxu1 }
 0x151   : > { %v8304_v21 = vadd.f32 %v2931_v1, %v2826_v32  ;;  %v6293_v32 = vor.u32 %v6822_v63, %v6290_v33  ;;  %v8321_v63 = vpack.c.b16 %v2015_v11, %v2014_v15  ;;  %v6269_v33 = vor.u32 %v6816_v8, %v6266_v22  ;;  %v6810_v8 = vld [vmem:[#allocation7 + $0x1c] sm:$0xf]  ;;  %v6242_v22 = vld [vmem:[#allocation7 + $0x24] sm:$0xf0] }
 0x152   : > { %2865 = vmatmul.bf16.gmra.mxu0 %v8294_v28  ;;  %v6257_v15 = vor.u32 %v6813_v43, %v6254_v56  ;;  %v3051_v19 = vpop.f32.mrf.mxu2  ;;  %v6230_v43 = vld [vmem:[#allocation7 + $0xc] sm:$0xf0] }
 0x153   : > { %10355 = vst [vmem:[#allocation99_spill] sm:$0xff] %v8304_v21  ;;  %3099 = vmatpush.bf16.msrb.mxu3 %v6293_v32 }
 0x154   : > { %10360 = vst [vmem:[#allocation103_spill] sm:$0xff] %v8321_v63 }
 0x157   : > { %v8313_v1 = vpop.f32.mrf.mxu0  ;;  %3100 = vmatpush.bf16.msrb.mxu3 %v6281_v31 }
 0x158   : > { %10357 = vst [vmem:[#allocation100_spill] sm:$0xff] %v8313_v1  ;;  %v8315_v30 = vpop.f32.mrf.mxu1  ;;  %v1455_v1 = vrot.slane %v8240_v35, 7 }
 0x159   : > { %10358 = vst [vmem:[#allocation101_spill] sm:$0xff] %v8315_v30 }
 0x15a   : > { %v1465_v31 = vsel %vm10365_vm2, %v1454_v61, %v1455_v1  ;;  %v2016_v61 = vunpack.c.l.b16 %v1856_v7 }
 0x15b   : > { %3101 = vmatpush.bf16.msrb.mxu3 %v6269_v33  ;;  %v1857_v33 = vpack.c.bf16 %v1465_v31, %v1465_v31 }
 0x15d   : > { %2988 = vmatmul.bf16.gmra.mxu3 %v7581_v5  ;;  %v2017_v56 = vunpack.c.l.b16 %v1857_v33 }
 0x15f   : > { %v2831_v30 = vpop.f32.mrf.mxu0  ;;  %3102 = vmatpush.bf16.msrb.mxu3 %v6257_v15  ;;  %v8344_v15 = vpack.c.b16 %v2017_v56, %v2016_v61  ;;  %v489_v61 = vadd.s32 304, %v7560_v17 }
 0x160   : > { %v2936_v32 = vpop.f32.mrf.mxu1 }
 0x161   : > { %v2937_v37 = vadd.f32 %v2936_v32, %v2831_v30  ;;  %v6245_v30 = vor.u32 %v6810_v8, %v6242_v22  ;;  %10368 = vst [vmem:[#allocation108_spill] sm:$0xff] %v8344_v15  ;;  %v1464_v8 = vsel %vm10348_vm15, %v1455_v1, %v7564_v36 }
 0x162   : > { %2870 = vmatmul.bf16.gmra.mxu0 %v8321_v63 }
 0x163   : > { %v8333_v11 = vadd.f32 %v8284_v40, %v2937_v37  ;;  %v487_v40 = vadd.s32 288, %v7560_v17  ;;  %3103 = vmatpush.bf16.msrb.mxu3 %v6245_v30  ;;  %v6807_v37 = vld [vmem:[#allocation7 + $0x4] sm:$0xf]  ;;  %v8350_v30 = vpop.f32.mrf.mxu2 }
 0x164   : > { %v6233_v6 = vor.u32 %v6807_v37, %v6230_v43  ;;  %10369 = vst [vmem:[#allocation109_spill] sm:$0xff] %v8350_v30 }
 0x165   : > { %10364 = vst [vmem:[#allocation105_spill] sm:$0xff] %v8333_v11  ;;  %v747_v49 = vand.u32 15, %v487_v40 }
 0x167   : > { %v8339_v32 = vpop.f32.mrf.mxu0  ;;  %3104 = vmatpush.bf16.msrb.mxu3 %v6233_v6  ;;  %vm1007_vm2 = vcmp.ge.s32.totalorder %v747_v49, 1 }
 0x168   : > { %10366 = vst [vmem:[#allocation106_spill] sm:$0xff] %v8339_v32  ;;  %v8341_v21 = vpop.f32.mrf.mxu1  ;;  %v1617_v6 = vsel %vm1007_vm2, %v1464_v8, 0.0 }
 0x169   : > { %10367 = vst [vmem:[#allocation107_spill] sm:$0xff] %v8341_v21  ;;  %v1858_v40 = vpack.c.bf16 %v1617_v6, %v1617_v6  ;;  %v6852_v6 = vld [vmem:[#allocation7 + $0x16c] sm:$0xf] }
 0x16b   : > { %v2018_v56 = vunpack.c.l.b16 %v1858_v40 }
 0x16d   : > { %3105 = vmatmul.bf16.vlgmr.msrb.gmra.mxu3 %v7579_v4  ;;  %v1626_v4 = vrot.slane %v7605_v24, 1 }
 0x16f   : > { %v2836_v62 = vpop.f32.mrf.mxu0 }
 0x170   : > { %v2941_v31 = vpop.f32.mrf.mxu1  ;;  %v2956_v7 = vpop.f32.mrf.mxu3 }
 0x171   : > { %v2942_v22 = vadd.f32 %v2941_v31, %v2836_v62  ;;  %v3056_v1 = vpop.f32.mrf.mxu2  ;;  %v761_v62 = vand.u32 15, %v489_v61  ;;  %v8364_v31 = vpack.c.b16 %v7571_v60, %v2018_v56 }
 0x172   : > { %2875 = vmatmul.bf16.gmra.mxu0 %v8344_v15 }
 0x173   : > { %v8354_v33 = vadd.f32 %v8311_v46, %v2942_v22  ;;  %10373 = vst [vmem:[#allocation113_spill] sm:$0xff] %v8364_v31  ;;  %vm1009_vm2 = vcmp.ge.s32.totalorder %v761_v62, 1 }
 0x175   : > { %10370 = vst [vmem:[#allocation110_spill] sm:$0xff] %v8354_v33 }
 0x177   : > { %v8356_v37 = vpop.f32.mrf.mxu0 }
 0x178   : > { %10371 = vst [vmem:[#allocation111_spill] sm:$0xff] %v8356_v37  ;;  %v8358_v43 = vpop.f32.mrf.mxu1  ;;  %v8361_v49 = vpop.f32.mrf.mxu3  ;;  %v1619_v37 = vsel %vm1009_vm2, %v7564_v36, 0.0 }
 0x179   : > { %10372 = vst [vmem:[#allocation112_spill] sm:$0xff] %v8358_v43  ;;  %v6410_v43 = vld [vmem:[#allocation7 + $0x174] sm:$0xf0]  ;;  %v8373_v33 = vpop.f32.mrf.mxu2  ;;  %v1860_v56 = vpack.c.bf16 %v1619_v37, %v1619_v37 }
 0x17a   : > { %v6413_v61 = vor.u32 %v6852_v6, %v6410_v43  ;;  %10375 = vst [vmem:[#allocation115_spill] sm:$0xff] %v8373_v33  ;;  %v10379_v43 = vmov 0.0  }
 0x17b   : > { %v2020_v62 = vunpack.c.l.b16 %v1860_v56  ;;  %v8386_v6 = vrot.slane %v10379_v43, 1 }
 0x17c   : > { %3202 = vmatpush.bf16.msra.mxu0 %v6413_v61  ;;  %v10381_v61 = vmov 0 }
 0x17d   : > { %3108 = vmatmul.bf16.gmra.mxu3 %v7610_v27  ;;  %10380 = vst [vmem:[#allocation119_spill] sm:$0xff] %v8386_v6 }
 0x17f   : > { %v2841_v30 = vpop.f32.mrf.mxu0 }
 0x180   : > { %v2946_v46 = vpop.f32.mrf.mxu1  ;;  %v8368_v22 = vpop.f32.mrf.mxu3 }
 0x181   : > { %v2947_v8 = vadd.f32 %v2946_v46, %v2841_v30  ;;  %v452_v30 = vadd.s32 8, %v7560_v17  ;;  %v3061_v36 = vpop.f32.mrf.mxu2 }
 0x182   : > { %2880 = vmatmul.bf16.gmra.mxu0 %v8364_v31 }
 0x183   : > { %v8370_v40 = vadd.f32 %v3051_v19, %v2947_v8  ;;  %v502_v11 = vand.u32 15, %v452_v30  ;;  %v8383_v19 = vpack.c.b16 %v7571_v60, %v2020_v62  ;;  %v6849_v30 = vld [vmem:[#allocation7 + $0x154] sm:$0xf]  ;;  %v6398_v62 = vld [vmem:[#allocation7 + $0x15c] sm:$0xf0] }
 0x185   : > { %10374 = vst [vmem:[#allocation114_spill] sm:$0xff] %v8370_v40  ;;  %vm8389_vm15 = vcmp.lt.s32.totalorder %v502_v11, 15  ;;  %v1902_v11 = vpack.c.bf16 %v8386_v6, %v8386_v6 }
 0x186   : > { %10378 = vst [vmem:[#allocation118_spill] sm:$0xff] %v8383_v19  ;;  %v10382_v61 = vsel %vm8389_vm15, 4294967295, %v10381_v61  ;;  %v1783_v43 = vsel %vm8389_vm15, %v8386_v6, 0.0 }
 0x187   : > { %v8375_v21 = vpop.f32.mrf.mxu0  ;;  %10383 = vst [vmem:[#allocation120_spill] sm:$0xff] %v10382_v61  ;;  %v1625_v61 = vrot.slane %v7602_v20, 1 }
 0x188   : > { %10376 = vst [vmem:[#allocation116_spill] sm:$0xff] %v8375_v21  ;;  %v8377_v32 = vpop.f32.mrf.mxu1  ;;  %v8380_v46 = vpop.f32.mrf.mxu3  ;;  %v1903_v21 = vpack.c.bf16 %v1783_v43, %v1783_v43  ;;  %v10389_v43 = vmov 0 }
 0x189   : > { %10377 = vst [vmem:[#allocation117_spill] sm:$0xff] %v8377_v32  ;;  %v6401_v32 = vor.u32 %v6849_v30, %v6398_v62 }
 0x18b   : > { %3203 = vmatpush.bf16.msra.mxu0 %v6401_v32 }
 0x18d   : > { %3113 = vmatmul.bf16.gmra.mxu3 %v7641_v55  ;;  %v8408_v55 = vunpack.c.l.b16 %v1902_v11 }
 0x18f   : > { %v2846_v8 = vpop.f32.mrf.mxu0  ;;  %10387 = vst [vmem:[#allocation124_spill] sm:$0xff] %v8408_v55 }
 0x190   : > { %v2951_v37 = vpop.f32.mrf.mxu1  ;;  %v8394_v56 = vpop.f32.mrf.mxu3 }
 0x191   : > { %v2952_v33 = vadd.f32 %v2951_v37, %v2846_v8  ;;  %v454_v8 = vadd.s32 24, %v7560_v17  ;;  %v8406_v37 = vpop.f32.mrf.mxu2 }
 0x192   : > { %2883 = vmatmul.bf16.gmra.mxu0 %v8383_v19  ;;  %10386 = vst [vmem:[#allocation123_spill] sm:$0xff] %v8406_v37  ;;  %v1627_v19 = vrot.slane %v7635_v45, 1 }
 0x193   : > { %v8396_v60 = vadd.f32 %v3056_v1, %v2952_v33  ;;  %v2223_v33 = vunpack.c.l.b16 %v1903_v21  ;;  %v1697_v21 = vsel %vm10392_vm8, %v8386_v6, %v1625_v61 }
 0x195   : > { %10384 = vst [vmem:[#allocation121_spill] sm:$0xff] %v8396_v60  ;;  %v516_v60 = vand.u32 15, %v454_v8  ;;  %v8414_v32 = vpack.c.b16 %v2223_v33, %v8408_v55  ;;  %v6846_v8 = vld [vmem:[#allocation7 + $0x13c] sm:$0xf]  ;;  %v6386_v33 = vld [vmem:[#allocation7 + $0x144] sm:$0xf0] }
 0x197   : > { %v8403_v40 = vpop.f32.mrf.mxu0  ;;  %10388 = vst [vmem:[#allocation125_spill] sm:$0xff] %v8414_v32  ;;  %vm8417_vm2 = vcmp.lt.s32.totalorder %v516_v60, 15  ;;  %v6389_v60 = vor.u32 %v6846_v8, %v6386_v33  ;;  %v1695_v33 = vsel %vm10400_vm13, %v1626_v4, %v1627_v19 }
 0x198   : > { %10385 = vst [vmem:[#allocation122_spill] sm:$0xff] %v8403_v40  ;;  %v8410_v1 = vpop.f32.mrf.mxu3  ;;  %v10390_v43 = vsel %vm8417_vm2, 4294967295, %v10389_v43 }
 0x199   : > { %10391 = vst [vmem:[#allocation126_spill] sm:$0xff] %v10390_v43  ;;  %v3066_v37 = vpop.f32.mrf.mxu2  ;;  %3204 = vmatpush.bf16.msra.mxu0 %v6389_v60  ;;  %v6374_v60 = vld [vmem:[#allocation7 + $0x12c] sm:$0xf0] }
 0x19d   : > { %3118 = vmatmul.bf16.gmra.mxu3 %v7673_v29 }
 0x19f   : > { %v2851_v30 = vpop.f32.mrf.mxu0 }
 0x1a0   : > { %v2957_v62 = vadd.f32 %v2956_v7, %v2851_v30  ;;  %v8427_v20 = vpop.f32.mrf.mxu3  ;;  %v1785_v7 = vsel %vm8417_vm2, %v1697_v21, 0.0 }
 0x1a1   : > { %v1905_v30 = vpack.c.bf16 %v1785_v7, %v1785_v7  ;;  %v8439_v31 = vpop.f32.mrf.mxu2  ;;  %v6843_v7 = vld [vmem:[#allocation7 + $0x124] sm:$0xf] }
 0x1a2   : > { %v8424_v11 = vadd.f32 %v3061_v36, %v2957_v62  ;;  %3000 = vmatmul.bf16.vlgmr.msrb.gmra.mxu0 %v8414_v32  ;;  %v456_v36 = vadd.s32 40, %v7560_v17  ;;  %10395 = vst [vmem:[#allocation129_spill] sm:$0xff] %v8439_v31 }
 0x1a3   : > { %v2225_v62 = vunpack.c.l.b16 %v1905_v30  ;;  %v1696_v30 = vsel %vm10402_vm0, %v1625_v61, %v1626_v4  ;;  %v1628_v4 = vrot.slane %v7638_v52, 1  ;;  %v1629_v61 = vrot.slane %v7667_v14, 1  ;;  %v6840_v14 = vld [vmem:[#allocation7 + $0x10c] sm:$0xf] }
 0x1a4   : > { %10393 = vst [vmem:[#allocation127_spill] sm:$0xff] %v8424_v11  ;;  %v530_v27 = vand.u32 15, %v456_v36  ;;  %v1906_v36 = vpack.c.bf16 %v1696_v30, %v1696_v30 }
 0x1a5   : > { %v8442_v21 = vpack.c.b16 %v2225_v62, %v8408_v55  ;;  %v1693_v30 = vsel %vm10402_vm0, %v1628_v4, %v1629_v61 }
 0x1a6   : > { %vm8446_vm8 = vcmp.lt.s32.totalorder %v530_v27, 15  ;;  %v2226_v31 = vunpack.c.l.b16 %v1906_v36 }
 0x1a7   : > { %v2853_v40 = vpop.f32.mrf.mxu0  ;;  %10396 = vst [vmem:[#allocation130_spill] sm:$0xff] %v8442_v21  ;;  %v1787_v27 = vsel %vm8446_vm8, %v1695_v33, 0.0 }
 0x1a8   : > { %v8432_v29 = vadd.f32 %v8361_v49, %v2853_v40  ;;  %v8435_v11 = vpop.f32.mrf.mxu3  ;;  %v10397_v40 = vmov 0  ;;  %v1907_v62 = vpack.c.bf16 %v1787_v27, %v1787_v27 }
 0x1a9   : > { %v10398_v40 = vsel %vm8446_vm8, 4294967295, %v10397_v40  ;;  %v3071_v43 = vpop.f32.mrf.mxu2 }
 0x1aa   : > { %10394 = vst [vmem:[#allocation128_spill] sm:$0xff] %v8432_v29 }
 0x1ab   : > { %10399 = vst [vmem:[#allocation131_spill] sm:$0xff] %v10398_v40 }
 0x1ad   : > { %3123 = vmatmul.bf16.gmra.mxu3 %v7706_v10 }
 0x1af   : > { %v2856_v8 = vpop.f32.mrf.mxu0 }
 0x1b0   : > { %v2962_v49 = vadd.f32 %v8368_v22, %v2856_v8  ;;  %v8455_v45 = vpop.f32.mrf.mxu3  ;;  %v6377_v22 = vor.u32 %v6843_v7, %v6374_v60 }
 0x1b1   : > { %v8479_v27 = vpop.f32.mrf.mxu2 }
 0x1b2   : > { %v8452_v24 = vadd.f32 %v3066_v37, %v2962_v49  ;;  %3005 = vmatmul.bf16.gmra.mxu0 %v8442_v21  ;;  %v458_v49 = vadd.s32 56, %v7560_v17  ;;  %10408 = vst [vmem:[#allocation136_spill] sm:$0xff] %v8479_v27 }
 0x1b3   : > { %3205 = vmatpush.bf16.msra.mxu0 %v6377_v22 }
 0x1b4   : > { %10401 = vst [vmem:[#allocation132_spill] sm:$0xff] %v8452_v24  ;;  %v2227_v24 = vunpack.c.l.b16 %v1907_v62  ;;  %v544_v10 = vand.u32 15, %v458_v49 }
 0x1b6   : > { %v8469_v33 = vpack.c.b16 %v2227_v24, %v2226_v31  ;;  %vm8473_vm13 = vcmp.lt.s32.totalorder %v544_v10, 15  ;;  %v6362_v31 = vld [vmem:[#allocation7 + $0x114] sm:$0xf0]  ;;  %v1694_v24 = vsel %vm10410_vm11, %v1627_v19, %v1628_v4  ;;  %v1630_v19 = vrot.slane %v7670_v23, 1 }
 0x1b7   : > { %v2858_v8 = vpop.f32.mrf.mxu0  ;;  %v1789_v10 = vsel %vm8473_vm13, %v1693_v30, 0.0  ;;  %v1908_v36 = vpack.c.bf16 %v1694_v24, %v1694_v24  ;;  %v1631_v4 = vrot.slane %v7700_v54, 1 }
 0x1b8   : > { %v8462_v37 = vadd.f32 %v8380_v46, %v2858_v8  ;;  %v8465_v29 = vpop.f32.mrf.mxu3  ;;  %10404 = vst [vmem:[#allocation134_spill] sm:$0xff] %v8469_v33  ;;  %v10405_v46 = vmov 0  ;;  %v1909_v62 = vpack.c.bf16 %v1789_v10, %v1789_v10  ;;  %v1692_v23 = vsel %vm10417_vm14, %v1629_v61, %v1630_v19 }
 0x1b9   : > { %v10406_v46 = vsel %vm8473_vm13, 4294967295, %v10405_v46  ;;  %v3076_v40 = vpop.f32.mrf.mxu2  ;;  %v1691_v24 = vsel %vm10402_vm0, %v1630_v19, %v1631_v4 }
 0x1ba   : > { %10403 = vst [vmem:[#allocation133_spill] sm:$0xff] %v8462_v37 }
 0x1bb   : > { %10407 = vst [vmem:[#allocation135_spill] sm:$0xff] %v10406_v46 }
 0x1bd   : > { %3128 = vmatmul.bf16.gmra.mxu3 %v7748_v3 }
 0x1bf   : > { %v2861_v7 = vpop.f32.mrf.mxu0 }
 0x1c0   : > { %v2967_v60 = vadd.f32 %v8394_v56, %v2861_v7  ;;  %v2981_v52 = vpop.f32.mrf.mxu3  ;;  %v6365_v56 = vor.u32 %v6840_v14, %v6362_v31  ;;  %v2228_v7 = vunpack.c.l.b16 %v1908_v36  ;;  %v6350_v36 = vld [vmem:[#allocation7 + $0xfc] sm:$0xf0] }
 0x1c2   : > { %v8481_v22 = vadd.f32 %v3071_v43, %v2967_v60  ;;  %3010 = vmatmul.bf16.gmra.mxu0 %v8469_v33  ;;  %v460_v43 = vadd.s32 72, %v7560_v17  ;;  %v2229_v60 = vunpack.c.l.b16 %v1909_v62  ;;  %v8511_v62 = vpop.f32.mrf.mxu2 }
 0x1c3   : > { %3206 = vmatpush.bf16.msra.mxu0 %v6365_v56  ;;  %v6837_v56 = vld [vmem:[#allocation7 + $0xf4] sm:$0xf]  ;;  %10418 = vst [vmem:[#allocation142_spill] sm:$0xff] %v8511_v62  ;;  %v6818_v62 = vld [vmem:[#allocation7 + $0x58] sm:$0xf0] }
 0x1c4   : > { %10409 = vst [vmem:[#allocation137_spill] sm:$0xff] %v8481_v22  ;;  %v558_v27 = vand.u32 15, %v460_v43  ;;  %v8494_v30 = vpack.c.b16 %v2229_v60, %v2228_v7 }
 0x1c6   : > { %10412 = vst [vmem:[#allocation139_spill] sm:$0xff] %v8494_v30  ;;  %vm8498_vm11 = vcmp.lt.s32.totalorder %v558_v27, 15  ;;  %v6353_v27 = vor.u32 %v6837_v56, %v6350_v36 }
 0x1c7   : > { %v2863_v8 = vpop.f32.mrf.mxu0 }
 0x1c8   : > { %v8489_v49 = vadd.f32 %v8410_v1, %v2863_v8  ;;  %v2983_v52 = vpop.f32.mrf.mxu3  ;;  %v10413_v1 = vmov 0  ;;  %v1910_v8 = vpack.c.bf16 %v1692_v23, %v1692_v23  ;;  %3207 = vmatpush.bf16.msra.mxu0 %v6353_v27  ;;  %v10421_v23 = vmov 0 }
 0x1c9   : > { %v10414_v1 = vsel %vm8498_vm11, 4294967295, %v10413_v1 }
 0x1ca   : > { %10411 = vst [vmem:[#allocation138_spill] sm:$0xff] %v8489_v49  ;;  %v2230_v52 = vunpack.c.l.b16 %v1910_v8  ;;  %v10450_v49 = vld [vmem:[#allocation83_spill] sm:$0xff] }
 0x1cb   : > { %10415 = vst [vmem:[#allocation140_spill] sm:$0xff] %v10414_v1 }
 0x1cd   : > { %3133 = vmatmul.bf16.gmra.mxu3 %v7805_v42 }
 0x1cf   : > { %v2866_v14 = vpop.f32.mrf.mxu0 }
 0x1d0   : > { %v2972_v31 = vadd.f32 %v8427_v20, %v2866_v14  ;;  %v2986_v54 = vpop.f32.mrf.mxu3  ;;  %v1791_v20 = vsel %vm8498_vm11, %v1691_v24, 0.0  ;;  %v1632_v14 = vrot.slane %v7702_v2, 1 }
 0x1d1   : > { %v1911_v43 = vpack.c.bf16 %v1791_v20, %v1791_v20 }
 0x1d2   : > { %v8504_v10 = vadd.f32 %v3076_v40, %v2972_v31  ;;  %3015 = vmatmul.bf16.gmra.mxu0 %v8494_v30  ;;  %v462_v40 = vadd.s32 88, %v7560_v17  ;;  %v1633_v31 = vrot.slane %v7727_v38, 1  ;;  %v1690_v27 = vsel %vm10425_vm9, %v1631_v4, %v1632_v14 }
 0x1d3   : > { %v2231_v61 = vunpack.c.l.b16 %v1911_v43  ;;  %v6834_v43 = vld [vmem:[#allocation7 + $0xdc] sm:$0xf] }
 0x1d4   : > { %10416 = vst [vmem:[#allocation141_spill] sm:$0xff] %v8504_v10  ;;  %v572_v19 = vand.u32 15, %v462_v40  ;;  %v1689_v56 = vsel %vm10402_vm0, %v1632_v14, %v1633_v31  ;;  %v6338_v40 = vld [vmem:[#allocation7 + $0xe4] sm:$0xf0] }
 0x1d5   : > { %v8519_v54 = vpack.c.b16 %v2231_v61, %v2230_v52  ;;  %v6341_v52 = vor.u32 %v6834_v43, %v6338_v40  ;;  %v6506_v61 = vld [vmem:[#allocation7 + $0x234] sm:$0xf0]  ;;  %v6482_v14 = vld [vmem:[#allocation7 + $0x204] sm:$0xf0]  ;;  %v1634_v40 = vrot.slane %v7733_v44, 1 }
 0x1d6   : > { %vm8521_vm14 = vcmp.lt.s32.totalorder %v572_v19, 15  ;;  %v6867_v44 = vld [vmem:[#allocation7 + $0x1e4] sm:$0xf] }
 0x1d7   : > { %v2868_v7 = vpop.f32.mrf.mxu0  ;;  %10420 = vst [vmem:[#allocation144_spill] sm:$0xff] %v8519_v54  ;;  %v10422_v23 = vsel %vm8521_vm14, 4294967295, %v10421_v23  ;;  %v1793_v2 = vsel %vm8521_vm14, %v1689_v56, 0.0  ;;  %3208 = vmatpush.bf16.msra.mxu0 %v6341_v52 }
 0x1d8   : > { %v8515_v60 = vadd.f32 %v8435_v11, %v2868_v7  ;;  %v2987_v24 = vpop.f32.mrf.mxu3  ;;  %10423 = vst [vmem:[#allocation145_spill] sm:$0xff] %v10422_v23  ;;  %v3081_v11 = vpop.f32.mrf.mxu2  ;;  %v6876_v7 = vld [vmem:[#allocation7 + $0x22c] sm:$0xf]  ;;  %v1913_v1 = vpack.c.bf16 %v1793_v2, %v1793_v2  ;;  %v10129_v2 = vrot.slane %v7786_v13, 1 }
 0x1d9   : > { %v6509_v19 = vor.u32 %v6876_v7, %v6506_v61  ;;  %v1912_v24 = vpack.c.bf16 %v1690_v27, %v1690_v27  ;;  %v10428_v61 = vmov 0 }
 0x1da   : > { %10419 = vst [vmem:[#allocation143_spill] sm:$0xff] %v8515_v60  ;;  %v2233_v46 = vunpack.c.l.b16 %v1913_v1 }
 0x1db   : > { %3307 = vmatpush.bf16.msrb.mxu1 %v6509_v19  ;;  %v6470_v19 = vld [vmem:[#allocation7 + $0x1ec] sm:$0xf0] }
 0x1dd   : > { %3138 = vmatmul.bf16.gmra.mxu3 %v7856_v57 }
 0x1df   : > { %v2871_v36 = vpop.f32.mrf.mxu0 }
 0x1e0   : > { %v2977_v20 = vadd.f32 %v8455_v45, %v2871_v36  ;;  %v2989_v8 = vpop.f32.mrf.mxu3  ;;  %v464_v45 = vadd.s32 104, %v7560_v17  ;;  %v6873_v36 = vld [vmem:[#allocation7 + $0x214] sm:$0xf] }
 0x1e1   : > { %v2232_v8 = vunpack.c.l.b16 %v1912_v24  ;;  %v6473_v24 = vor.u32 %v6867_v44, %v6470_v19 }
 0x1e2   : > { %v8531_v38 = vadd.f32 %v3081_v11, %v2977_v20  ;;  %3020 = vmatmul.bf16.gmra.mxu0 %v8519_v54  ;;  %v6494_v11 = vld [vmem:[#allocation7 + $0x21c] sm:$0xf0]  ;;  %v6870_v20 = vld [vmem:[#allocation7 + $0x1fc] sm:$0xf]  ;;  %v586_v43 = vand.u32 15, %v464_v45 }
 0x1e3   : > { %v6497_v4 = vor.u32 %v6873_v36, %v6494_v11  ;;  %v6485_v7 = vor.u32 %v6870_v20, %v6482_v14  ;;  %v8542_v52 = vpack.c.b16 %v2233_v46, %v2232_v8  ;;  %v6326_v36 = vld [vmem:[#allocation7 + $0xcc] sm:$0xf0]  ;;  %v6864_v11 = vld [vmem:[#allocation7 + $0x1cc] sm:$0xf]  ;;  %v1688_v20 = vsel %vm10431_vm12, %v1633_v31, %v1634_v40  ;;  %v6458_v14 = vld [vmem:[#allocation7 + $0x1d4] sm:$0xf0] }
 0x1e4   : > { %10424 = vst [vmem:[#allocation146_spill] sm:$0xff] %v8531_v38  ;;  %vm8544_vm9 = vcmp.lt.s32.totalorder %v586_v43, 15  ;;  %v6320_v8 = vld [vmem:[#allocation7 + $0xb0] sm:$0xf]  ;;  %v6830_v43 = vld [vmem:[#allocation7 + $0xb8] sm:$0xf0] }
 0x1e5   : > { %3308 = vmatpush.bf16.msrb.mxu1 %v6497_v4  ;;  %10427 = vst [vmem:[#allocation148_spill] sm:$0xff] %v8542_v52  ;;  %v10429_v61 = vsel %vm8544_vm9, 4294967295, %v10428_v61  ;;  %v6858_v31 = vld [vmem:[#allocation7 + $0x19c] sm:$0xf] }
 0x1e6   : > { %10430 = vst [vmem:[#allocation149_spill] sm:$0xff] %v10429_v61 }
 0x1e7   : > { %v2873_v56 = vpop.f32.mrf.mxu0 }
 0x1e8   : > { %v8538_v23 = vadd.f32 %v8465_v29, %v2873_v56  ;;  %v2990_v27 = vpop.f32.mrf.mxu3  ;;  %v1687_v29 = vsel %vm10402_vm0, %v1634_v40, %v10129_v2  ;;  %v6831_v56 = vld [vmem:[#allocation7 + $0xc4] sm:$0xf]  ;;  %v6416_v2 = vld [vmem:[#allocation7 + $0x170] sm:$0xf]  ;;  %v6434_v40 = vld [vmem:[#allocation7 + $0x1a4] sm:$0xf0] }
 0x1e9   : > { %3309 = vmatpush.bf16.msrb.mxu1 %v6485_v7  ;;  %v1795_v46 = vsel %vm8544_vm9, %v1687_v29, 0.0  ;;  %v6329_v4 = vor.u32 %v6831_v56, %v6326_v36  ;;  %v6461_v27 = vor.u32 %v6864_v11, %v6458_v14  ;;  %v6321_v7 = vor.u32 %v6830_v43, %v6320_v8  ;;  %v6855_v43 = vld [vmem:[#allocation7 + $0x184] sm:$0xf] }
 0x1ea   : > { %10426 = vst [vmem:[#allocation147_spill] sm:$0xff] %v8538_v23  ;;  %v1915_v44 = vpack.c.bf16 %v1795_v46, %v1795_v46  ;;  %v466_v29 = vadd.s32 120, %v7560_v17  ;;  %v6854_v23 = vld [vmem:[#allocation7 + $0x178] sm:$0xf0] }
 0x1eb   : > { %3209 = vmatpush.bf16.msra.mxu0 %v6329_v4  ;;  %3412 = vmatpush.bf16.msrb.mxu2 %v6321_v7  ;;  %v6417_v56 = vor.u32 %v6854_v23, %v6416_v2  ;;  %v6437_v4 = vor.u32 %v6858_v31, %v6434_v40  ;;  %v10433_v7 = vmov 0  ;;  %v10436_v23 = vrot.slane %v7771_v51, 1  ;;  %v6308_v40 = vld [vmem:[#allocation7 + $0x98] sm:$0xf] }
 0x1ec   : > { %v2235_v38 = vunpack.c.l.b16 %v1915_v44  ;;  %v600_v46 = vand.u32 15, %v466_v29  ;;  %v10437_v44 = vrot.slane %v7786_v13, 1 }
 0x1ed   : > { %3143 = vmatmul.bf16.gmra.mxu3 %v7904_v34  ;;  %3310 = vmatpush.bf16.msrb.mxu1 %v6473_v24  ;;  %v6861_v24 = vld [vmem:[#allocation7 + $0x1b4] sm:$0xf] }
 0x1ee   : > { %3517 = vmatpush.bf16.msra.mxu3 %v6417_v56  ;;  %vm8563_vm12 = vcmp.lt.s32.totalorder %v600_v46, 15  ;;  %v6827_v56 = vld [vmem:[#allocation7 + $0xa0] sm:$0xf0] }
 0x1ef   : > { %v2876_v1 = vpop.f32.mrf.mxu0  ;;  %v10434_v7 = vsel %vm8563_vm12, 4294967295, %v10433_v7 }
 0x1f0   : > { %v3106_v45 = vpop.f32.mrf.mxu3  ;;  %v1914_v1 = vpack.c.bf16 %v1688_v20, %v1688_v20  ;;  %v1636_v20 = vrot.slane %v7801_v50, 1  ;;  %10435 = vst [vmem:[#allocation151_spill] sm:$0xff] %v10434_v7 }
 0x1f1   : > { %3311 = vmatpush.bf16.msrb.mxu1 %v6461_v27  ;;  %v6446_v45 = vld [vmem:[#allocation7 + $0x1bc] sm:$0xf0]  ;;  %v6422_v27 = vld [vmem:[#allocation7 + $0x18c] sm:$0xf0] }
 0x1f2   : > { %3025 = vmatmul.bf16.gmra.mxu0 %v8542_v52  ;;  %v6449_v61 = vor.u32 %v6861_v24, %v6446_v45  ;;  %v2234_v36 = vunpack.c.l.b16 %v1914_v1  ;;  %v1685_v2 = vsel %vm10402_vm0, %v1636_v20, %v10436_v23  ;;  %v6878_v1 = vld [vmem:[#allocation7 + $0x238] sm:$0xf0]  ;;  %v1686_v29 = vsel %vm10438_vm10, %v10437_v44, %v1636_v20  ;;  %v6824_v44 = vld [vmem:[#allocation7 + $0x88] sm:$0xf0] }
 0x1f3   : > { %v1916_v51 = vpack.c.bf16 %v1686_v29, %v1686_v29 }
 0x1f4   : > { %v8560_v14 = vpack.c.b16 %v2235_v38, %v2234_v36  ;;  %v6512_v38 = vld [vmem:[#allocation7 + $0x230] sm:$0xf]  ;;  %v6309_v36 = vor.u32 %v6827_v56, %v6308_v40 }
 0x1f5   : > { %3312 = vmatpush.bf16.msrb.mxu1 %v6449_v61  ;;  %v6425_v61 = vor.u32 %v6855_v43, %v6422_v27  ;;  %v6513_v24 = vor.u32 %v6878_v1, %v6512_v38  ;;  %v6296_v38 = vld [vmem:[#allocation7 + $0x80] sm:$0xf] }
 0x1f6   : > { %10432 = vst [vmem:[#allocation150_spill] sm:$0xff] %v8560_v14  ;;  %3413 = vmatpush.bf16.msrb.mxu2 %v6309_v36  ;;  %v6297_v29 = vor.u32 %v6824_v44, %v6296_v38 }
 0x1f7   : > { %v2878_v19 = vpop.f32.mrf.mxu0  ;;  %3622 = vmatpush.bf16.msrb.mxu0 %v6513_v24  ;;  %v6500_v24 = vld [vmem:[#allocation7 + $0x218] sm:$0xf] }
 0x1f8   : > { %v3107_v11 = vpop.f32.mrf.mxu3  ;;  %v1797_v19 = vsel %vm8563_vm12, %v1685_v2, 0.0  ;;  %vm10459_vm12 = vmmov %vm10402_vm0 }
 0x1f9   : > { %3313 = vmatpush.bf16.msrb.mxu1 %v6437_v4  ;;  %v1917_v45 = vpack.c.bf16 %v1797_v19, %v1797_v19  ;;  %v2236_v11 = vunpack.c.l.b16 %v1916_v51  ;;  %v6875_v51 = vld [vmem:[#allocation7 + $0x220] sm:$0xf0] }
 0x1fa   : > { %3414 = vmatpush.bf16.msrb.mxu2 %v6297_v29  ;;  %v10443_v29 = vld [vmem:[#allocation31_spill] sm:$0xff] }
 0x1fb   : > { %v2237_v4 = vunpack.c.l.b16 %v1917_v45  ;;  %v6501_v45 = vor.u32 %v6875_v51, %v6500_v24  ;;  %v10444_v24 = vld [vmem:[#allocation67_spill] sm:$0xff]  ;;  %v10445_v51 = vld [vmem:[#allocation69_spill] sm:$0xff] }
 0x1fd   : > { %3148 = vmatmul.bf16.gmra.mxu3 %v7964_v16  ;;  %3314 = vmatpush.bf16.msrb.mxu1 %v6425_v61  ;;  %v8579_v13 = vpack.c.b16 %v2237_v4, %v2236_v11  ;;  %v6404_v61 = vld [vmem:[#allocation7 + $0x158] sm:$0xf]  ;;  %v10440_v11 = vld [vmem:[#allocation58_spill] sm:$0xff]  ;;  %v10441_v4 = vld [vmem:[#allocation60_spill] sm:$0xff] }
 0x1fe   : > { %3623 = vmatpush.bf16.msrb.mxu0 %v6501_v45  ;;  %v2909_v45 = vadd.f32 %v10445_v51, %v10444_v24  ;;  %v6488_v24 = vld [vmem:[#allocation7 + $0x200] sm:$0xf]  ;;  %v6872_v51 = vld [vmem:[#allocation7 + $0x208] sm:$0xf0] }
 0x1ff   : > { %v2881_v8 = vpop.f32.mrf.mxu0  ;;  %10439 = vst [vmem:[#allocation152_spill] sm:$0xff] %v8579_v13 }
 0x200   : > { %v3109_v50 = vpop.f32.mrf.mxu3  ;;  %3315 = vmatmul.bf16.vlgmr.msrb.gmra.mxu1 %v8414_v32  ;;  %v6809_v32 = vld [vmem:[#allocation7 + $0x10] sm:$0xf0] }
 0x201   : > { %v6851_v50 = vld [vmem:[#allocation7 + $0x160] sm:$0xf0] }
 0x202   : > { %3030 = vmatmul.bf16.gmra.mxu0 %v8560_v14  ;;  %v6405_v1 = vor.u32 %v6851_v50, %v6404_v61  ;;  %v6821_v61 = vld [vmem:[#allocation7 + $0x70] sm:$0xf0] }
 0x204   : > { %3518 = vmatpush.bf16.msra.mxu3 %v6405_v1  ;;  %v10442_v1 = vld [vmem:[#allocation66_spill] sm:$0xff] }
 0x207   : > { %v2882_v31 = vpop.f32.mrf.mxu0 }
 0x208   : > { %v3111_v46 = vpop.f32.mrf.mxu3 }
 0x209   : > { %v2904_v46 = vadd.f32 %v10441_v4, %v10440_v11  ;;  %v6392_v4 = vld [vmem:[#allocation7 + $0x140] sm:$0xf] }
 0x20d   : > { %3153 = vmatmul.bf16.gmra.mxu3 %v8029_v58 }
 0x20f   : > { %v2884_v20 = vpop.f32.mrf.mxu0 }
 0x210   : > { %v8583_v8 = vpop.f32.mrf.mxu3  ;;  %3318 = vmatmul.bf16.gmra.mxu1 %v8442_v21  ;;  %v6368_v21 = vld [vmem:[#allocation7 + $0x110] sm:$0xf] }
 0x212   : > { %3035 = vmatmul.bf16.gmra.mxu0 %v8579_v13 }
 0x217   : > { %v2885_v43 = vpop.f32.mrf.mxu0 }
 0x218   : > { %v8586_v27 = vpop.f32.mrf.mxu3 }
 0x21d   : > { %3158 = vmatmul.bf16.gmra.mxu3 %v8096_v53 }
 0x21f   : > { %v3001_v23 = vpop.f32.mrf.mxu0 }
 0x220   : > { %v8590_v2 = vpop.f32.mrf.mxu3  ;;  %3323 = vmatmul.bf16.gmra.mxu1 %v8469_v33  ;;  %v6284_v23 = vld [vmem:[#allocation7 + $0x68] sm:$0xf] }
 0x221   : > { %v6285_v50 = vor.u32 %v6821_v61, %v6284_v23 }
 0x222   : > { %3210 = vmatmul.bf16.vlgmr.msra.gmra.mxu0 %v7581_v5 }
 0x223   : > { %3415 = vmatpush.bf16.msrb.mxu2 %v6285_v50  ;;  %v10446_v50 = vld [vmem:[#allocation75_spill] sm:$0xff] }
 0x227   : > { %v3003_v19 = vpop.f32.mrf.mxu0 }
 0x228   : > { %v8593_v31 = vpop.f32.mrf.mxu3 }
 0x22d   : > { %3163 = vmatmul.bf16.gmra.mxu3 %v8157_v18  ;;  %v6236_v18 = vld [vmem:[#allocation7 + $0x8] sm:$0xf] }
 0x22f   : > { %v3006_v40 = vpop.f32.mrf.mxu0 }
 0x230   : > { %v8597_v56 = vadd.f32 %v3006_v40, %v7979_v26  ;;  %v8600_v36 = vpop.f32.mrf.mxu3  ;;  %3328 = vmatmul.bf16.gmra.mxu1 %v8494_v30 }
 0x232   : > { %3213 = vmatmul.bf16.gmra.mxu0 %v7581_v5 }
 0x237   : > { %v3008_v20 = vpop.f32.mrf.mxu0 }
 0x238   : > { %v8605_v43 = vadd.f32 %v3008_v20, %v2904_v46  ;;  %v8607_v38 = vpop.f32.mrf.mxu3  ;;  %v6848_v46 = vld [vmem:[#allocation7 + $0x148] sm:$0xf0] }
 0x239   : > { %v6393_v20 = vor.u32 %v6848_v46, %v6392_v4  ;;  %v10448_v4 = vld [vmem:[#allocation76_spill] sm:$0xff]  ;;  %v10449_v46 = vld [vmem:[#allocation78_spill] sm:$0xff] }
 0x23b   : > { %3519 = vmatpush.bf16.msra.mxu3 %v6393_v20  ;;  %v2914_v20 = vadd.f32 %v10449_v46, %v10448_v4  ;;  %v6260_v4 = vld [vmem:[#allocation7 + $0x38] sm:$0xf]  ;;  %v6815_v46 = vld [vmem:[#allocation7 + $0x40] sm:$0xf0] }
 0x23d   : > { %3168 = vmatmul.bf16.gmra.mxu3 %v8213_v41  ;;  %v8678_v41 = vpop.f32.mrf.mxu1 }
 0x23e   : > { %10460 = vst [vmem:[#allocation60_spill] sm:$0xff] %v8678_v41 }
 0x23f   : > { %v3011_v26 = vpop.f32.mrf.mxu0 }
 0x240   : > { %v8611_v44 = vadd.f32 %v3011_v26, %v10442_v1  ;;  %v8614_v19 = vpop.f32.mrf.mxu3  ;;  %3333 = vmatmul.bf16.gmra.mxu1 %v8519_v54  ;;  %v10447_v1 = vld [vmem:[#allocation34_spill] sm:$0xff] }
 0x242   : > { %3218 = vmatmul.bf16.gmra.mxu0 %v10443_v29 }
 0x247   : > { %v3013_v40 = vpop.f32.mrf.mxu0 }
 0x248   : > { %v8619_v11 = vadd.f32 %v3013_v40, %v2909_v45  ;;  %v8621_v23 = vpop.f32.mrf.mxu3  ;;  %v6272_v45 = vld [vmem:[#allocation7 + $0x50] sm:$0xf]  ;;  %v6489_v40 = vor.u32 %v6872_v51, %v6488_v24  ;;  %v10451_v24 = vld [vmem:[#allocation37_spill] sm:$0xff] }
 0x249   : > { %v6273_v60 = vor.u32 %v6818_v62, %v6272_v45  ;;  %v10452_v51 = vld [vmem:[#allocation84_spill] sm:$0xff]  ;;  %v10453_v45 = vld [vmem:[#allocation86_spill] sm:$0xff] }
 0x24a   : > { %3624 = vmatpush.bf16.msrb.mxu0 %v6489_v40 }
 0x24b   : > { %3416 = vmatpush.bf16.msrb.mxu2 %v6273_v60  ;;  %v2919_v60 = vadd.f32 %v10453_v45, %v10452_v51  ;;  %v6380_v45 = vld [vmem:[#allocation7 + $0x128] sm:$0xf] }
 0x24d   : > { %3173 = vmatmul.bf16.gmra.mxu3 %v8264_v25 }
 0x24f   : > { %v3016_v61 = vpop.f32.mrf.mxu0 }
 0x250   : > { %v8625_v26 = vadd.f32 %v3016_v61, %v10446_v50  ;;  %v8628_v7 = vpop.f32.mrf.mxu3  ;;  %3338 = vmatmul.bf16.gmra.mxu1 %v8542_v52 }
 0x252   : > { %3223 = vmatmul.bf16.gmra.mxu0 %v10447_v1 }
 0x257   : > { %v3018_v10 = vpop.f32.mrf.mxu0 }
 0x258   : > { %v8633_v61 = vadd.f32 %v3018_v10, %v2914_v20  ;;  %v8635_v50 = vpop.f32.mrf.mxu3  ;;  %v6261_v20 = vor.u32 %v6815_v46, %v6260_v4  ;;  %v1656_v4 = vrot.slane %v8240_v35, 1  ;;  %v10455_v46 = vmov 0 }
 0x25a   : > { %3417 = vmatpush.bf16.msrb.mxu2 %v6261_v20  ;;  %v2924_v20 = vadd.f32 %v8250_v39, %v8238_v9 }
 0x25d   : > { %3178 = vmatmul.bf16.gmra.mxu3 %v8294_v28  ;;  %v10454_v28 = vld [vmem:[#allocation40_spill] sm:$0xff] }
 0x25f   : > { %v3021_v54 = vpop.f32.mrf.mxu0 }
 0x260   : > { %v8639_v22 = vadd.f32 %v3021_v54, %v10450_v49  ;;  %v8642_v62 = vpop.f32.mrf.mxu3  ;;  %3343 = vmatmul.bf16.gmra.mxu1 %v8560_v14  ;;  %v486_v14 = vadd.s32 280, %v7560_v17 }
 0x262   : > { %3228 = vmatmul.bf16.gmra.mxu0 %v10451_v24  ;;  %v740_v30 = vand.u32 15, %v486_v14 }
 0x264   : > { %vm8661_vm10 = vcmp.lt.s32.totalorder %v740_v30, 15 }
 0x265   : > { %v10456_v46 = vsel %vm8661_vm10, 4294967295, %v10455_v46 }
 0x266   : > { %10457 = vst [vmem:[#allocation58_spill] sm:$0xff] %v10456_v46 }
 0x267   : > { %v3023_v40 = vpop.f32.mrf.mxu0 }
 0x268   : > { %v8647_v10 = vadd.f32 %v3023_v40, %v2919_v60  ;;  %v8649_v52 = vpop.f32.mrf.mxu3  ;;  %v6845_v60 = vld [vmem:[#allocation7 + $0x130] sm:$0xf0] }
 0x269   : > { %v6381_v40 = vor.u32 %v6845_v60, %v6380_v45 }
 0x26b   : > { %3520 = vmatpush.bf16.msra.mxu3 %v6381_v40 }
 0x26d   : > { %3183 = vmatmul.bf16.gmra.mxu3 %v8321_v63  ;;  %v6869_v63 = vld [vmem:[#allocation7 + $0x1f0] sm:$0xf0] }
 0x26f   : > { %v3026_v49 = vpop.f32.mrf.mxu0 }
 0x270   : > { %v8653_v54 = vadd.f32 %v3026_v49, %v8225_v48  ;;  %v8657_v51 = vpop.f32.mrf.mxu3  ;;  %3348 = vmatmul.bf16.gmra.mxu1 %v8579_v13  ;;  %v1665_v48 = vsel %vm10402_vm0, %v1656_v4, %v8386_v6  ;;  %v10458_v49 = vrot.slane %v8233_v12, 1  ;;  %v6476_v13 = vld [vmem:[#allocation7 + $0x1e8] sm:$0xf] }
 0x271   : > { %v1817_v35 = vsel %vm8661_vm10, %v1665_v48, 0.0  ;;  %v6477_v25 = vor.u32 %v6869_v63, %v6476_v13  ;;  %v488_v48 = vadd.s32 296, %v7560_v17  ;;  %v10461_v63 = vld [vmem:[#allocation42_spill] sm:$0xff] }
 0x272   : > { %3233 = vmatmul.bf16.gmra.mxu0 %v10454_v28  ;;  %v1666_v14 = vsel %vm10459_vm12, %v10458_v49, %v1656_v4  ;;  %v1937_v60 = vpack.c.bf16 %v1817_v35, %v1817_v35  ;;  %v6248_v49 = vld [vmem:[#allocation7 + $0x20] sm:$0xf]  ;;  %v2929_v35 = vadd.f32 %v8288_v0, %v8286_v59  ;;  %v490_v0 = vadd.s32 312, %v7560_v17 }
 0x273   : > { %v1936_v30 = vpack.c.bf16 %v1666_v14, %v1666_v14  ;;  %3625 = vmatpush.bf16.msrb.mxu0 %v6477_v25  ;;  %v6812_v14 = vld [vmem:[#allocation7 + $0x28] sm:$0xf0] }
 0x274   : > { %v2257_v33 = vunpack.c.l.b16 %v1937_v60  ;;  %v6249_v25 = vor.u32 %v6812_v14, %v6248_v49  ;;  %v10463_v14 = vld [vmem:[#allocation113_spill] sm:$0xff] }
 0x275   : > { %v2256_v37 = vunpack.c.l.b16 %v1936_v30 }
 0x276   : > { %3418 = vmatpush.bf16.msrb.mxu2 %v6249_v25  ;;  %v10464_v25 = vld [vmem:[#allocation99_spill] sm:$0xff] }
 0x277   : > { %v3028_v45 = vpop.f32.mrf.mxu0  ;;  %v8682_v12 = vpack.c.b16 %v2257_v33, %v2256_v37  ;;  %v754_v37 = vand.u32 15, %v488_v48  ;;  %v10462_v33 = vld [vmem:[#allocation44_spill] sm:$0xff] }
 0x278   : > { %v8676_v40 = vadd.f32 %v3028_v45, %v2924_v20  ;;  %v8680_v9 = vpop.f32.mrf.mxu3 }
 0x279   : > { %3085 = vmatmul.bf16.gmra.mxu2 %v8682_v12  ;;  %vm1048_vm12 = vcmp.lt.s32.totalorder %v754_v37, 15  ;;  %v10465_v37 = vld [vmem:[#allocation47_spill] sm:$0xff] }
 0x27d   : > { %3188 = vmatmul.bf16.gmra.mxu3 %v8344_v15  ;;  %v3316_v20 = vpop.f32.mrf.mxu1 }
 0x27f   : > { %v3031_v39 = vpop.f32.mrf.mxu0 }
 0x280   : > { %v8687_v4 = vadd.f32 %v3031_v39, %v8276_v47  ;;  %v8691_v13 = vpop.f32.mrf.mxu3  ;;  %3353 = vmatmul.bf16.gmra.mxu1 %v10462_v33  ;;  %v1819_v47 = vsel %vm1048_vm12, %v8386_v6, 0.0 }
 0x281   : > { %v1939_v30 = vpack.c.bf16 %v1819_v47, %v1819_v47 }
 0x282   : > { %3238 = vmatmul.bf16.gmra.mxu0 %v10461_v63 }
 0x283   : > { %v2259_v39 = vunpack.c.l.b16 %v1939_v30  ;;  %v10467_v30 = vld [vmem:[#allocation46_spill] sm:$0xff] }
 0x285   : > { %v3317_v20 = vpop.f32.mrf.mxu1  ;;  %v8702_v49 = vpack.c.b16 %v2259_v39, %v8408_v55  ;;  %v10468_v39 = vld [vmem:[#allocation100_spill] sm:$0xff] }
 0x286   : > { %v10469_v20 = vld [vmem:[#allocation101_spill] sm:$0xff] }
 0x287   : > { %v3033_v45 = vpop.f32.mrf.mxu0  ;;  %v2934_v33 = vadd.f32 %v10469_v20, %v10468_v39  ;;  %v10471_v20 = vld [vmem:[#allocation118_spill] sm:$0xff] }
 0x288   : > { %v8697_v60 = vadd.f32 %v3033_v45, %v2929_v35  ;;  %v8699_v46 = vpop.f32.mrf.mxu3  ;;  %v768_v45 = vand.u32 15, %v490_v0 }
 0x289   : > { %3090 = vmatmul.bf16.gmra.mxu2 %v8702_v49 }
 0x28a   : > { %vm1050_vm0 = vcmp.lt.s32.totalorder %v768_v45, 15 }
 0x28b   : > { %v1821_v15 = vsel %vm1050_vm0, %v8386_v6, 0.0  ;;  %v6332_v6 = vld [vmem:[#allocation7 + $0xc8] sm:$0xf] }
 0x28d   : > { %3193 = vmatmul.bf16.gmra.mxu3 %v10463_v14  ;;  %v3319_v47 = vpop.f32.mrf.mxu1 }
 0x28e   : > { %v6237_v47 = vor.u32 %v6809_v32, %v6236_v18 }
 0x28f   : > { %v3036_v48 = vpop.f32.mrf.mxu0 }
 0x290   : > { %v8707_v59 = vadd.f32 %v3036_v48, %v10464_v25  ;;  %v8711_v35 = vpop.f32.mrf.mxu3  ;;  %3358 = vmatmul.bf16.gmra.mxu1 %v10467_v30  ;;  %v6842_v48 = vld [vmem:[#allocation7 + $0x118] sm:$0xf0]  ;;  %v1941_v25 = vpack.c.bf16 %v1821_v15, %v1821_v15  ;;  %3419 = vmatpush.bf16.msrb.mxu2 %v6237_v47  ;;  %v6356_v15 = vld [vmem:[#allocation7 + $0xf8] sm:$0xf]  ;;  %v6836_v47 = vld [vmem:[#allocation7 + $0xe8] sm:$0xf0] }
 0x291   : > { %10466 = vst [vmem:[#allocation66_spill] sm:$0xff] %v8711_v35  ;;  %v6369_v41 = vor.u32 %v6842_v48, %v6368_v21  ;;  %v6464_v48 = vld [vmem:[#allocation7 + $0x1d0] sm:$0xf] }
 0x292   : > { %3243 = vmatmul.bf16.gmra.mxu0 %v10465_v37  ;;  %v2261_v53 = vunpack.c.l.b16 %v1941_v25  ;;  %v6344_v25 = vld [vmem:[#allocation7 + $0xe0] sm:$0xf] }
 0x293   : > { %3521 = vmatpush.bf16.msra.mxu3 %v6369_v41 }
 0x294   : > { %v8722_v45 = vpack.c.b16 %v2261_v53, %v8408_v55  ;;  %v10474_v53 = vld [vmem:[#allocation50_spill] sm:$0xff]  ;;  %v6345_v55 = vor.u32 %v6836_v47, %v6344_v25  ;;  %v6696_v25 = vld [vmem:[#allocation8 + $0x168] sm:$0xf] }
 0x295   : > { %v3321_v30 = vpop.f32.mrf.mxu1 }
 0x296   : > { %v6866_v30 = vld [vmem:[#allocation7 + $0x1d8] sm:$0xf0] }
 0x297   : > { %v3038_v14 = vpop.f32.mrf.mxu0  ;;  %v6465_v41 = vor.u32 %v6866_v30, %v6464_v48 }
 0x298   : > { %v8717_v17 = vadd.f32 %v3038_v14, %v2934_v33  ;;  %v8719_v0 = vpop.f32.mrf.mxu3  ;;  %v6839_v33 = vld [vmem:[#allocation7 + $0x100] sm:$0xf0]  ;;  %v10472_v14 = vld [vmem:[#allocation51_spill] sm:$0xff] }
 0x299   : > { %10470 = vst [vmem:[#allocation31_spill] sm:$0xff] %v8719_v0  ;;  %3093 = vmatmul.bf16.gmra.mxu2 %v8722_v45  ;;  %v6357_v32 = vor.u32 %v6839_v33, %v6356_v15  ;;  %3626 = vmatpush.bf16.msrb.mxu0 %v6465_v41  ;;  %v10476_v15 = vld [vmem:[#allocation25_spill] sm:$0xff]  ;;  %v6925_v41 = vld [vmem:[#allocation8 + $0x170] sm:$0xf0] }
 0x29a   : > { %v6697_v47 = vor.u32 %v6925_v41, %v6696_v25 }
 0x29b   : > { %3522 = vmatpush.bf16.msra.mxu3 %v6357_v32  ;;  %v10477_v32 = vld [vmem:[#allocation56_spill] sm:$0xff] }
 0x29c   : > { %5134 = vmatpush.bf16.msra.mxu2 %v6697_v47 }
 0x29d   : > { %3198 = vmatmul.bf16.gmra.mxu3 %v10471_v20  ;;  %v3324_v18 = vpop.f32.mrf.mxu1  ;;  %v6833_v20 = vld [vmem:[#allocation7 + $0xd0] sm:$0xf0] }
 0x29f   : > { %v3211_v39 = vpop.f32.mrf.mxu0  ;;  %3523 = vmatpush.bf16.msra.mxu3 %v6345_v55  ;;  %v10479_v55 = vld [vmem:[#allocation55_spill] sm:$0xff] }
 0x2a0   : > { %v8727_v21 = vpop.f32.mrf.mxu3  ;;  %3363 = vmatmul.bf16.gmra.mxu1 %v10474_v53 }
 0x2a1   : > { %10473 = vst [vmem:[#allocation67_spill] sm:$0xff] %v8727_v21  ;;  %v6333_v21 = vor.u32 %v6833_v20, %v6332_v6  ;;  %v6600_v20 = vld [vmem:[#allocation8 + $0xa8] sm:$0xf] }
 0x2a2   : > { %3248 = vmatmul.bf16.gmra.mxu0 %v10472_v14 }
 0x2a3   : > { %3524 = vmatpush.bf16.msra.mxu3 %v6333_v21  ;;  %v6901_v21 = vld [vmem:[#allocation8 + $0xb0] sm:$0xf0] }
 0x2a5   : > { %v3326_v0 = vpop.f32.mrf.mxu1 }
 0x2a7   : > { %v3212_v39 = vpop.f32.mrf.mxu0 }
 0x2a8   : > { %v8730_v58 = vpop.f32.mrf.mxu3 }
 0x2a9   : > { %10475 = vst [vmem:[#allocation69_spill] sm:$0xff] %v8730_v58  ;;  %3420 = vmatmul.bf16.vlgmr.msrb.gmra.mxu2 %v10476_v15  ;;  %v10481_v15 = vld [vmem:[#allocation28_spill] sm:$0xff] }
 0x2ad   : > { %3525 = vmatmul.bf16.vlgmr.msra.gmra.mxu3 %v7581_v5  ;;  %v3329_v30 = vpop.f32.mrf.mxu1 }
 0x2af   : > { %v3214_v33 = vpop.f32.mrf.mxu0 }
 0x2b0   : > { %v8735_v48 = vpop.f32.mrf.mxu3  ;;  %3368 = vmatmul.bf16.gmra.mxu1 %v10479_v55  ;;  %v6601_v33 = vor.u32 %v6901_v21, %v6600_v20 }
 0x2b1   : > { %10478 = vst [vmem:[#allocation75_spill] sm:$0xff] %v8735_v48 }
 0x2b2   : > { %3253 = vmatmul.bf16.gmra.mxu0 %v10477_v32  ;;  %5039 = vmatpush.bf16.msra.mxu1 %v6601_v33  ;;  %v10482_v32 = vld [vmem:[#allocation64_spill] sm:$0xff] }
 0x2b5   : > { %v3331_v6 = vpop.f32.mrf.mxu1 }
 0x2b7   : > { %v3216_v39 = vpop.f32.mrf.mxu0 }
 0x2b8   : > { %v8738_v53 = vpop.f32.mrf.mxu3  ;;  %v10484_v39 = vld [vmem:[#allocation63_spill] sm:$0xff] }
 0x2b9   : > { %10480 = vst [vmem:[#allocation34_spill] sm:$0xff] %v8738_v53  ;;  %3423 = vmatmul.bf16.gmra.mxu2 %v10481_v15 }
 0x2bd   : > { %3528 = vmatmul.bf16.gmra.mxu3 %v7581_v5  ;;  %v3334_v41 = vpop.f32.mrf.mxu1 }
 0x2bf   : > { %v3219_v58 = vpop.f32.mrf.mxu0 }
 0x2c0   : > { %v3220_v48 = vadd.f32 %v3219_v58, %v8583_v8  ;;  %v8744_v25 = vpop.f32.mrf.mxu3  ;;  %3373 = vmatmul.bf16.gmra.mxu1 %v10484_v39  ;;  %v6452_v8 = vld [vmem:[#allocation7 + $0x1b8] sm:$0xf] }
 0x2c1   : > { %10483 = vst [vmem:[#allocation76_spill] sm:$0xff] %v8744_v25  ;;  %v10485_v25 = vld [vmem:[#allocation30_spill] sm:$0xff] }
 0x2c2   : > { %v3325_v35 = vadd.f32 %v3324_v18, %v3220_v48  ;;  %3258 = vmatmul.bf16.gmra.mxu0 %v10482_v32  ;;  %v6863_v18 = vld [vmem:[#allocation7 + $0x1c0] sm:$0xf0] }
 0x2c3   : > { %v6453_v48 = vor.u32 %v6863_v18, %v6452_v8 }
 0x2c4   : > { %v8747_v47 = vadd.f32 %v3325_v35, %v8597_v56 }
 0x2c5   : > { %v3336_v55 = vpop.f32.mrf.mxu1  ;;  %3627 = vmatpush.bf16.msrb.mxu0 %v6453_v48  ;;  %v10488_v48 = vld [vmem:[#allocation33_spill] sm:$0xff] }
 0x2c7   : > { %v3221_v20 = vpop.f32.mrf.mxu0 }
 0x2c8   : > { %v3222_v15 = vadd.f32 %v3221_v20, %v8586_v27  ;;  %v8751_v33 = vpop.f32.mrf.mxu3  ;;  %v10486_v27 = vld [vmem:[#allocation73_spill] sm:$0xff] }
 0x2c9   : > { %3426 = vmatmul.bf16.gmra.mxu2 %v10485_v25 }
 0x2ca   : > { %v3327_v21 = vadd.f32 %v3326_v0, %v3222_v15  ;;  %v10487_v15 = vld [vmem:[#allocation72_spill] sm:$0xff] }
 0x2cc   : > { %v8754_v58 = vadd.f32 %v3327_v21, %v8605_v43 }
 0x2cd   : > { %3531 = vmatmul.bf16.gmra.mxu3 %v10443_v29  ;;  %v3339_v20 = vpop.f32.mrf.mxu1 }
 0x2cf   : > { %v3224_v53 = vpop.f32.mrf.mxu0 }
 0x2d0   : > { %v3225_v56 = vadd.f32 %v3224_v53, %v8590_v2  ;;  %v8760_v0 = vpop.f32.mrf.mxu3  ;;  %3378 = vmatmul.bf16.gmra.mxu1 %v10487_v15  ;;  %v6684_v53 = vld [vmem:[#allocation8 + $0x150] sm:$0xf] }
 0x2d2   : > { %v3330_v35 = vadd.f32 %v3329_v30, %v3225_v56  ;;  %3263 = vmatmul.bf16.gmra.mxu0 %v10486_v27  ;;  %v6922_v30 = vld [vmem:[#allocation8 + $0x158] sm:$0xf0] }
 0x2d3   : > { %v6685_v56 = vor.u32 %v6922_v30, %v6684_v53 }
 0x2d4   : > { %v8763_v43 = vadd.f32 %v3330_v35, %v8611_v44 }
 0x2d5   : > { %v3341_v29 = vpop.f32.mrf.mxu1  ;;  %5135 = vmatpush.bf16.msra.mxu2 %v6685_v56  ;;  %v10491_v56 = vld [vmem:[#allocation36_spill] sm:$0xff] }
 0x2d7   : > { %v3226_v21 = vpop.f32.mrf.mxu0 }
 0x2d8   : > { %v3227_v25 = vadd.f32 %v3226_v21, %v8593_v31  ;;  %v8767_v18 = vpop.f32.mrf.mxu3  ;;  %v10489_v31 = vld [vmem:[#allocation54_spill] sm:$0xff] }
 0x2d9   : > { %3431 = vmatmul.bf16.gmra.mxu2 %v10488_v48  ;;  %v10490_v48 = vld [vmem:[#allocation81_spill] sm:$0xff] }
 0x2da   : > { %v3332_v8 = vadd.f32 %v3331_v6, %v3227_v25  ;;  %v6588_v25 = vld [vmem:[#allocation8 + $0x90] sm:$0xf] }
 0x2dc   : > { %v8770_v2 = vadd.f32 %v3332_v8, %v8619_v11  ;;  %v6898_v8 = vld [vmem:[#allocation8 + $0x98] sm:$0xf0] }
 0x2dd   : > { %3536 = vmatmul.bf16.gmra.mxu3 %v10447_v1  ;;  %v3344_v21 = vpop.f32.mrf.mxu1  ;;  %v6589_v15 = vor.u32 %v6898_v8, %v6588_v25  ;;  %v10492_v25 = vld [vmem:[#allocation61_spill] sm:$0xff]  ;;  %v6440_v8 = vld [vmem:[#allocation7 + $0x1a0] sm:$0xf] }
 0x2df   : > { %v3229_v39 = vpop.f32.mrf.mxu0  ;;  %5040 = vmatpush.bf16.msra.mxu1 %v6589_v15 }
 0x2e0   : > { %v3230_v44 = vadd.f32 %v3229_v39, %v8600_v36  ;;  %v8776_v6 = vpop.f32.mrf.mxu3  ;;  %3383 = vmatmul.bf16.gmra.mxu1 %v10490_v48 }
 0x2e2   : > { %v3335_v35 = vadd.f32 %v3334_v41, %v3230_v44  ;;  %3268 = vmatmul.bf16.gmra.mxu0 %v10489_v31 }
 0x2e4   : > { %v8779_v11 = vadd.f32 %v3335_v35, %v8625_v26 }
 0x2e5   : > { %v3346_v41 = vpop.f32.mrf.mxu1 }
 0x2e7   : > { %v3231_v53 = vpop.f32.mrf.mxu0 }
 0x2e8   : > { %v3232_v1 = vadd.f32 %v3231_v53, %v8607_v38  ;;  %v8783_v36 = vpop.f32.mrf.mxu3  ;;  %v6860_v53 = vld [vmem:[#allocation7 + $0x1a8] sm:$0xf0] }
 0x2e9   : > { %3436 = vmatmul.bf16.gmra.mxu2 %v10491_v56  ;;  %v8798_v56 = vpop.f32.mrf.mxu2 }
 0x2ea   : > { %v3337_v30 = vadd.f32 %v3336_v55, %v3232_v1  ;;  %v10493_v1 = vld [vmem:[#allocation89_spill] sm:$0xff] }
 0x2ec   : > { %v8786_v39 = vadd.f32 %v3337_v30, %v8633_v61  ;;  %v6441_v61 = vor.u32 %v6860_v53, %v6440_v8 }
 0x2ed   : > { %3541 = vmatmul.bf16.gmra.mxu3 %v10451_v24  ;;  %v3349_v38 = vpop.f32.mrf.mxu1 }
 0x2ee   : > { %3628 = vmatpush.bf16.msrb.mxu0 %v6441_v61  ;;  %v10495_v61 = vld [vmem:[#allocation70_spill] sm:$0xff] }
 0x2ef   : > { %v3234_v26 = vpop.f32.mrf.mxu0 }
 0x2f0   : > { %v3235_v44 = vadd.f32 %v3234_v26, %v8614_v19  ;;  %v8792_v15 = vpop.f32.mrf.mxu3  ;;  %3388 = vmatmul.bf16.gmra.mxu1 %v10493_v1 }
 0x2f2   : > { %v3340_v35 = vadd.f32 %v3339_v20, %v3235_v44  ;;  %3273 = vmatmul.bf16.gmra.mxu0 %v10492_v25 }
 0x2f4   : > { %v8795_v55 = vadd.f32 %v3340_v35, %v8639_v22 }
 0x2f5   : > { %v3351_v26 = vpop.f32.mrf.mxu1 }
 0x2f7   : > { %v3236_v30 = vpop.f32.mrf.mxu0 }
 0x2f8   : > { %v3237_v19 = vadd.f32 %v3236_v30, %v8621_v23  ;;  %v8801_v20 = vpop.f32.mrf.mxu3  ;;  %v6672_v30 = vld [vmem:[#allocation8 + $0x138] sm:$0xf] }
 0x2f9   : > { %3441 = vmatmul.bf16.gmra.mxu2 %v7748_v3 }
 0x2fa   : > { %v3342_v24 = vadd.f32 %v3341_v29, %v3237_v19  ;;  %v10497_v19 = vld [vmem:[#allocation94_spill] sm:$0xff] }
 0x2fc   : > { %v8804_v44 = vadd.f32 %v3342_v24, %v8647_v10  ;;  %v3086_v8 = vpop.f32.mrf.mxu2  ;;  %v6919_v10 = vld [vmem:[#allocation8 + $0x140] sm:$0xf0] }
 0x2fd   : > { %3546 = vmatmul.bf16.gmra.mxu3 %v10454_v28  ;;  %v3354_v23 = vpop.f32.mrf.mxu1  ;;  %v6673_v3 = vor.u32 %v6919_v10, %v6672_v30 }
 0x2fe   : > { %10494 = vst [vmem:[#allocation78_spill] sm:$0xff] %v8804_v44  ;;  %v6576_v44 = vld [vmem:[#allocation8 + $0x78] sm:$0xf] }
 0x2ff   : > { %v3239_v22 = vpop.f32.mrf.mxu0  ;;  %5136 = vmatpush.bf16.msra.mxu2 %v6673_v3 }
 0x300   : > { %v3240_v35 = vadd.f32 %v3239_v22, %v8628_v7  ;;  %v8810_v1 = vpop.f32.mrf.mxu3  ;;  %3393 = vmatmul.bf16.gmra.mxu1 %v10497_v19 }
 0x302   : > { %v3345_v53 = vadd.f32 %v3344_v21, %v3240_v35  ;;  %3278 = vmatmul.bf16.gmra.mxu0 %v10495_v61 }
 0x304   : > { %v8813_v29 = vadd.f32 %v3345_v53, %v8653_v54  ;;  %v3088_v7 = vpop.f32.mrf.mxu2  ;;  %v6895_v54 = vld [vmem:[#allocation8 + $0x80] sm:$0xf0] }
 0x305   : > { %v3356_v35 = vpop.f32.mrf.mxu1  ;;  %v6577_v53 = vor.u32 %v6895_v54, %v6576_v44 }
 0x306   : > { %10496 = vst [vmem:[#allocation83_spill] sm:$0xff] %v8813_v29 }
 0x307   : > { %v3241_v24 = vpop.f32.mrf.mxu0  ;;  %5041 = vmatpush.bf16.msra.mxu1 %v6577_v53 }
 0x308   : > { %v3242_v28 = vadd.f32 %v3241_v24, %v8635_v50  ;;  %v8817_v21 = vpop.f32.mrf.mxu3 }
 0x309   : > { %3446 = vmatmul.bf16.gmra.mxu2 %v7805_v42 }
 0x30a   : > { %v3347_v22 = vadd.f32 %v3346_v41, %v3242_v28  ;;  %v10498_v41 = vld [vmem:[#allocation79_spill] sm:$0xff] }
 0x30c   : > { %v8820_v8 = vadd.f32 %v3347_v22, %v8676_v40  ;;  %v3091_v50 = vpop.f32.mrf.mxu2 }
 0x30d   : > { %3551 = vmatmul.bf16.gmra.mxu3 %v10461_v63  ;;  %v3359_v24 = vpop.f32.mrf.mxu1  ;;  %v10499_v50 = vld [vmem:[#allocation87_spill] sm:$0xff] }
 0x30f   : > { %v3244_v29 = vpop.f32.mrf.mxu0 }
 0x310   : > { %v3245_v30 = vadd.f32 %v3244_v29, %v8642_v62  ;;  %v3194_v3 = vpop.f32.mrf.mxu3  ;;  %3398 = vmatmul.bf16.gmra.mxu1 %v8682_v12  ;;  %v6857_v29 = vld [vmem:[#allocation7 + $0x190] sm:$0xf0] }
 0x312   : > { %v3350_v10 = vadd.f32 %v3349_v38, %v3245_v30  ;;  %3283 = vmatmul.bf16.gmra.mxu0 %v10498_v41  ;;  %v6428_v38 = vld [vmem:[#allocation7 + $0x188] sm:$0xf] }
 0x313   : > { %v6429_v54 = vor.u32 %v6857_v29, %v6428_v38 }
 0x314   : > { %v8827_v40 = vadd.f32 %v3350_v10, %v8687_v4  ;;  %v3092_v28 = vpop.f32.mrf.mxu2 }
 0x315   : > { %v3361_v63 = vpop.f32.mrf.mxu1  ;;  %3629 = vmatpush.bf16.msrb.mxu0 %v6429_v54  ;;  %v10500_v54 = vld [vmem:[#allocation92_spill] sm:$0xff] }
 0x317   : > { %v3246_v44 = vpop.f32.mrf.mxu0 }
 0x318   : > { %v3247_v42 = vadd.f32 %v3246_v44, %v8649_v52  ;;  %v3196_v22 = vpop.f32.mrf.mxu3 }
 0x319   : > { %3451 = vmatmul.bf16.gmra.mxu2 %v7856_v57 }
 0x31a   : > { %v3352_v7 = vadd.f32 %v3351_v26, %v3247_v42 }
 0x31c   : > { %v8832_v62 = vadd.f32 %v3352_v7, %v8697_v60  ;;  %v3094_v30 = vpop.f32.mrf.mxu2  ;;  %v6916_v7 = vld [vmem:[#allocation8 + $0x128] sm:$0xf0] }
 0x31d   : > { %3556 = vmatmul.bf16.gmra.mxu3 %v10465_v37  ;;  %v3364_v10 = vpop.f32.mrf.mxu1  ;;  %v6564_v30 = vld [vmem:[#allocation8 + $0x60] sm:$0xf] }
 0x31f   : > { %v3249_v53 = vpop.f32.mrf.mxu0 }
 0x320   : > { %v3250_v4 = vadd.f32 %v3249_v53, %v8657_v51  ;;  %v3199_v26 = vpop.f32.mrf.mxu3  ;;  %3403 = vmatmul.bf16.gmra.mxu1 %v8702_v49 }
 0x322   : > { %v3355_v52 = vadd.f32 %v3354_v23, %v3250_v4  ;;  %3288 = vmatmul.bf16.gmra.mxu0 %v10499_v50  ;;  %v6660_v23 = vld [vmem:[#allocation8 + $0x120] sm:$0xf]  ;;  %v10501_v4 = vld [vmem:[#allocation105_spill] sm:$0xff] }
 0x323   : > { %v6661_v22 = vor.u32 %v6916_v7, %v6660_v23 }
 0x324   : > { %v8839_v60 = vadd.f32 %v3355_v52, %v8707_v59  ;;  %v3095_v44 = vpop.f32.mrf.mxu2  ;;  %v6892_v52 = vld [vmem:[#allocation8 + $0x68] sm:$0xf0] }
 0x325   : > { %v3366_v37 = vpop.f32.mrf.mxu1  ;;  %5137 = vmatpush.bf16.msra.mxu2 %v6661_v22  ;;  %v6565_v26 = vor.u32 %v6892_v52, %v6564_v30  ;;  %v10504_v44 = vld [vmem:[#allocation96_spill] sm:$0xff]  ;;  %v10507_v52 = vld [vmem:[#allocation110_spill] sm:$0xff] }
 0x327   : > { %v3251_v3 = vpop.f32.mrf.mxu0  ;;  %5042 = vmatpush.bf16.msra.mxu1 %v6565_v26 }
 0x328   : > { %v3252_v57 = vadd.f32 %v3251_v3, %v8680_v9  ;;  %v3200_v28 = vpop.f32.mrf.mxu3  ;;  %v10503_v3 = vld [vmem:[#allocation107_spill] sm:$0xff] }
 0x329   : > { %3456 = vmatmul.bf16.gmra.mxu2 %v7904_v34  ;;  %v10502_v34 = vld [vmem:[#allocation106_spill] sm:$0xff] }
 0x32a   : > { %v3357_v42 = vadd.f32 %v3356_v35, %v3252_v57 }
 0x32c   : > { %v8844_v51 = vadd.f32 %v3357_v42, %v8717_v17  ;;  %v3421_v29 = vpop.f32.mrf.mxu2 }
 0x32d   : > { %3561 = vmatmul.bf16.gmra.mxu3 %v10472_v14  ;;  %v3369_v35 = vpop.f32.mrf.mxu1  ;;  %v2939_v14 = vadd.f32 %v10503_v3, %v10502_v34  ;;  %v10506_v29 = vld [vmem:[#allocation66_spill] sm:$0xff]  ;;  %v10509_v34 = vld [vmem:[#allocation112_spill] sm:$0xff] }
 0x32f   : > { %v3254_v38 = vpop.f32.mrf.mxu0  ;;  %v3044_v42 = vadd.f32 %v10504_v44, %v2939_v14 }
 0x330   : > { %v3255_v59 = vadd.f32 %v3254_v38, %v8691_v13  ;;  %v3526_v53 = vpop.f32.mrf.mxu3  ;;  %3408 = vmatmul.bf16.gmra.mxu1 %v8722_v45 }
 0x332   : > { %v3360_v9 = vadd.f32 %v3359_v24, %v3255_v59  ;;  %3293 = vmatmul.bf16.gmra.mxu0 %v10500_v54  ;;  %v10505_v59 = vld [vmem:[#allocation56_spill] sm:$0xff] }
 0x334   : > { %v8851_v17 = vadd.f32 %v3360_v9, %v10501_v4  ;;  %v3422_v24 = vpop.f32.mrf.mxu2 }
 0x335   : > { %v3371_v23 = vpop.f32.mrf.mxu1  ;;  %v10511_v24 = vld [vmem:[#allocation102_spill] sm:$0xff] }
 0x337   : > { %v3256_v57 = vpop.f32.mrf.mxu0 }
 0x338   : > { %v3257_v13 = vadd.f32 %v3256_v57, %v8699_v46  ;;  %v3527_v7 = vpop.f32.mrf.mxu3  ;;  %v10510_v57 = vld [vmem:[#allocation31_spill] sm:$0xff] }
 0x339   : > { %3461 = vmatmul.bf16.gmra.mxu2 %v7964_v16 }
 0x33a   : > { %v3362_v28 = vadd.f32 %v3361_v63, %v3257_v13  ;;  %v10508_v63 = vld [vmem:[#allocation111_spill] sm:$0xff] }
 0x33b   : > { %v2944_v3 = vadd.f32 %v10509_v34, %v10508_v63  ;;  %v10515_v63 = vld [vmem:[#allocation114_spill] sm:$0xff] }
 0x33c   : > { %v8858_v22 = vadd.f32 %v3362_v28, %v3044_v42  ;;  %v3424_v53 = vpop.f32.mrf.mxu2 }
 0x33d   : > { %3566 = vmatmul.bf16.gmra.mxu3 %v10505_v59  ;;  %v3374_v46 = vpop.f32.mrf.mxu1  ;;  %v3049_v44 = vadd.f32 %v10511_v24, %v2944_v3  ;;  %v6913_v3 = vld [vmem:[#allocation8 + $0x110] sm:$0xf0] }
 0x33f   : > { %v3259_v38 = vpop.f32.mrf.mxu0 }
 0x340   : > { %v3260_v9 = vadd.f32 %v3259_v38, %v10506_v29  ;;  %v3529_v30 = vpop.f32.mrf.mxu3  ;;  %v10513_v38 = vld [vmem:[#allocation62_spill] sm:$0xff]  ;;  %v10514_v29 = vld [vmem:[#allocation67_spill] sm:$0xff] }
 0x342   : > { %v3365_v4 = vadd.f32 %v3364_v10, %v3260_v9  ;;  %3298 = vmatmul.bf16.gmra.mxu0 %v7581_v5 }
 0x344   : > { %v8865_v26 = vadd.f32 %v3365_v4, %v10507_v52  ;;  %v3425_v13 = vpop.f32.mrf.mxu2 }
 0x345   : > { %v3376_v28 = vpop.f32.mrf.mxu1 }
 0x347   : > { %v3261_v14 = vpop.f32.mrf.mxu0 }
 0x348   : > { %v3262_v16 = vadd.f32 %v3261_v14, %v10510_v57  ;;  %v3530_v7 = vpop.f32.mrf.mxu3  ;;  %v10517_v57 = vld [vmem:[#allocation116_spill] sm:$0xff] }
 0x349   : > { %3466 = vmatmul.bf16.gmra.mxu2 %v10513_v38  ;;  %v10520_v7 = vld [vmem:[#allocation109_spill] sm:$0xff] }
 0x34a   : > { %v3367_v42 = vadd.f32 %v3366_v37, %v3262_v16  ;;  %v6648_v37 = vld [vmem:[#allocation8 + $0x108] sm:$0xf]  ;;  %v10518_v16 = vld [vmem:[#allocation117_spill] sm:$0xff] }
 0x34b   : > { %v6649_v14 = vor.u32 %v6913_v3, %v6648_v37  ;;  %v2949_v13 = vadd.f32 %v10518_v16, %v10517_v57  ;;  %v10523_v3 = vld [vmem:[#allocation75_spill] sm:$0xff] }
 0x34c   : > { %v8871_v10 = vadd.f32 %v3367_v42, %v3049_v44  ;;  %v3427_v53 = vpop.f32.mrf.mxu2 }
 0x34d   : > { %3571 = vmatmul.bf16.gmra.mxu3 %v10482_v32  ;;  %v3379_v30 = vpop.f32.mrf.mxu1  ;;  %5138 = vmatpush.bf16.msra.mxu2 %v6649_v14  ;;  %v10519_v32 = vld [vmem:[#allocation69_spill] sm:$0xff]  ;;  %v6552_v53 = vld [vmem:[#allocation8 + $0x48] sm:$0xf] }
 0x34e   : > { %10512 = vst [vmem:[#allocation37_spill] sm:$0xff] %v8871_v10 }
 0x34f   : > { %v3264_v59 = vpop.f32.mrf.mxu0 }
 0x350   : > { %v3265_v9 = vadd.f32 %v3264_v59, %v10514_v29  ;;  %v3532_v52 = vpop.f32.mrf.mxu3 }
 0x352   : > { %v3370_v4 = vadd.f32 %v3369_v35, %v3265_v9  ;;  %3303 = vmatmul.bf16.gmra.mxu0 %v7581_v5  ;;  %v3054_v35 = vadd.f32 %v10520_v7, %v2949_v13  ;;  %v10527_v7 = vld [vmem:[#allocation122_spill] sm:$0xff] }
 0x354   : > { %v8878_v34 = vadd.f32 %v3370_v4, %v10515_v63  ;;  %v3429_v42 = vpop.f32.mrf.mxu2  ;;  %v6889_v4 = vld [vmem:[#allocation8 + $0x50] sm:$0xf0]  ;;  %v10522_v63 = vld [vmem:[#allocation71_spill] sm:$0xff] }
 0x355   : > { %v3381_v59 = vpop.f32.mrf.mxu1  ;;  %v6553_v52 = vor.u32 %v6889_v4, %v6552_v53  ;;  %v10529_v53 = vld [vmem:[#allocation34_spill] sm:$0xff] }
 0x356   : > { %10516 = vst [vmem:[#allocation84_spill] sm:$0xff] %v8878_v34  ;;  %v6686_v34 = vld [vmem:[#allocation8 + $0x15c] sm:$0xf0] }
 0x357   : > { %v3266_v24 = vpop.f32.mrf.mxu0  ;;  %5043 = vmatpush.bf16.msra.mxu1 %v6553_v52  ;;  %v10530_v52 = vld [vmem:[#allocation115_spill] sm:$0xff] }
 0x358   : > { %v3267_v44 = vadd.f32 %v3266_v24, %v10519_v32  ;;  %v3534_v29 = vpop.f32.mrf.mxu3  ;;  %v10524_v24 = vld [vmem:[#allocation125_spill] sm:$0xff] }
 0x359   : > { %3471 = vmatmul.bf16.gmra.mxu2 %v10522_v63  ;;  %v10525_v32 = vld [vmem:[#allocation121_spill] sm:$0xff] }
 0x35a   : > { %v3372_v38 = vadd.f32 %v3371_v23, %v3267_v44 }
 0x35c   : > { %v8884_v9 = vadd.f32 %v3372_v38, %v3054_v35  ;;  %v3432_v57 = vpop.f32.mrf.mxu2  ;;  %v10528_v35 = vld [vmem:[#allocation60_spill] sm:$0xff] }
 0x35d   : > { %3576 = vmatmul.bf16.gmra.mxu3 %v10486_v27  ;;  %v3384_v23 = vpop.f32.mrf.mxu1  ;;  %v2954_v38 = vadd.f32 %v10528_v35, %v10527_v7 }
 0x35e   : > { %10521 = vst [vmem:[#allocation86_spill] sm:$0xff] %v8884_v9 }
 0x35f   : > { %v3269_v37 = vpop.f32.mrf.mxu0  ;;  %v3059_v63 = vadd.f32 %v10530_v52, %v2954_v38 }
 0x360   : > { %v3270_v14 = vadd.f32 %v3269_v37, %v10523_v3  ;;  %v3537_v13 = vpop.f32.mrf.mxu3 }
 0x361   : > { %v8893_v42 = vadd.f32 %v3537_v13, %v3432_v57  ;;  %v10533_v13 = vld [vmem:[#allocation76_spill] sm:$0xff] }
 0x362   : > { %v3375_v16 = vadd.f32 %v3374_v46, %v3270_v14  ;;  %3630 = vmatmul.bf16.vlgmr.msrb.gmra.mxu0 %v10524_v24 }
 0x364   : > { %v8891_v44 = vadd.f32 %v3375_v16, %v10525_v32  ;;  %v3434_v27 = vpop.f32.mrf.mxu2  ;;  %v10532_v16 = vld [vmem:[#allocation80_spill] sm:$0xff] }
 0x365   : > { %v3386_v46 = vpop.f32.mrf.mxu1 }
 0x366   : > { %10526 = vst [vmem:[#allocation40_spill] sm:$0xff] %v8891_v44  ;;  %v6910_v44 = vld [vmem:[#allocation8 + $0xf8] sm:$0xf0] }
 0x367   : > { %v3271_v29 = vpop.f32.mrf.mxu0 }
 0x368   : > { %v3272_v4 = vadd.f32 %v3271_v29, %v10529_v53  ;;  %v3539_v3 = vpop.f32.mrf.mxu3  ;;  %v10534_v29 = vld [vmem:[#allocation130_spill] sm:$0xff] }
 0x369   : > { %v8899_v14 = vadd.f32 %v3539_v3, %v3434_v27  ;;  %3476 = vmatmul.bf16.gmra.mxu2 %v10532_v16  ;;  %v10537_v3 = vld [vmem:[#allocation128_spill] sm:$0xff]  ;;  %v10538_v16 = vld [vmem:[#allocation123_spill] sm:$0xff] }
 0x36a   : > { %v3377_v37 = vadd.f32 %v3376_v28, %v3272_v4  ;;  %v10535_v28 = vld [vmem:[#allocation127_spill] sm:$0xff] }
 0x36c   : > { %v8901_v24 = vadd.f32 %v3377_v37, %v3059_v63  ;;  %v3437_v7 = vpop.f32.mrf.mxu2 }
 0x36d   : > { %3581 = vmatmul.bf16.gmra.mxu3 %v10489_v31  ;;  %v3389_v53 = vpop.f32.mrf.mxu1  ;;  %v3064_v31 = vadd.f32 %v10538_v16, %v10537_v3  ;;  %v10542_v3 = vld [vmem:[#allocation132_spill] sm:$0xff] }
 0x36e   : > { %10531 = vst [vmem:[#allocation42_spill] sm:$0xff] %v8901_v24 }
 0x36f   : > { %v3274_v57 = vpop.f32.mrf.mxu0 }
 0x370   : > { %v3275_v32 = vadd.f32 %v3274_v57, %v10533_v13  ;;  %v3542_v38 = vpop.f32.mrf.mxu3 }
 0x371   : > { %v8910_v27 = vadd.f32 %v3542_v38, %v3437_v7 }
 0x372   : > { %v3380_v35 = vadd.f32 %v3379_v30, %v3275_v32  ;;  %3633 = vmatmul.bf16.gmra.mxu0 %v10534_v29  ;;  %v6636_v29 = vld [vmem:[#allocation8 + $0xf0] sm:$0xf] }
 0x373   : > { %v6637_v7 = vor.u32 %v6910_v44, %v6636_v29 }
 0x374   : > { %v8908_v4 = vadd.f32 %v3380_v35, %v10535_v28  ;;  %v3439_v37 = vpop.f32.mrf.mxu2  ;;  %v10540_v35 = vld [vmem:[#allocation88_spill] sm:$0xff] }
 0x375   : > { %v3391_v57 = vpop.f32.mrf.mxu1  ;;  %5139 = vmatpush.bf16.msra.mxu2 %v6637_v7  ;;  %v10545_v7 = vld [vmem:[#allocation129_spill] sm:$0xff] }
 0x376   : > { %10536 = vst [vmem:[#allocation99_spill] sm:$0xff] %v8908_v4 }
 0x377   : > { %v3276_v52 = vpop.f32.mrf.mxu0 }
 0x378   : > { %v3277_v63 = vadd.f32 %v3276_v52, %v8751_v33  ;;  %v3544_v13 = vpop.f32.mrf.mxu3 }
 0x379   : > { %v8915_v30 = vadd.f32 %v3544_v13, %v3439_v37  ;;  %3481 = vmatmul.bf16.gmra.mxu2 %v10540_v35  ;;  %v6886_v13 = vld [vmem:[#allocation8 + $0x38] sm:$0xf0] }
 0x37a   : > { %v3382_v24 = vadd.f32 %v3381_v59, %v3277_v63  ;;  %v10541_v59 = vld [vmem:[#allocation134_spill] sm:$0xff] }
 0x37c   : > { %v8917_v32 = vadd.f32 %v3382_v24, %v3064_v31  ;;  %v3442_v28 = vpop.f32.mrf.mxu2  ;;  %v6540_v31 = vld [vmem:[#allocation8 + $0x30] sm:$0xf] }
 0x37d   : > { %3586 = vmatmul.bf16.gmra.mxu3 %v10492_v25  ;;  %v3394_v63 = vpop.f32.mrf.mxu1  ;;  %v6541_v44 = vor.u32 %v6886_v13, %v6540_v31  ;;  %v10548_v13 = vld [vmem:[#allocation139_spill] sm:$0xff] }
 0x37e   : > { %10539 = vst [vmem:[#allocation47_spill] sm:$0xff] %v8917_v32 }
 0x37f   : > { %v3279_v38 = vpop.f32.mrf.mxu0  ;;  %5044 = vmatpush.bf16.msra.mxu1 %v6541_v44 }
 0x380   : > { %v3280_v33 = vadd.f32 %v3279_v38, %v8760_v0  ;;  %v3547_v37 = vpop.f32.mrf.mxu3  ;;  %v10544_v0 = vld [vmem:[#allocation133_spill] sm:$0xff] }
 0x381   : > { %v8926_v16 = vadd.f32 %v3547_v37, %v3442_v28  ;;  %v10547_v28 = vld [vmem:[#allocation93_spill] sm:$0xff] }
 0x382   : > { %v3385_v52 = vadd.f32 %v3384_v23, %v3280_v33  ;;  %3636 = vmatmul.bf16.gmra.mxu0 %v10541_v59  ;;  %v3069_v23 = vadd.f32 %v10545_v7, %v10544_v0 }
 0x384   : > { %v8924_v24 = vadd.f32 %v3385_v52, %v10542_v3  ;;  %v3444_v35 = vpop.f32.mrf.mxu2 }
 0x385   : > { %v3396_v33 = vpop.f32.mrf.mxu1 }
 0x386   : > { %10543 = vst [vmem:[#allocation100_spill] sm:$0xff] %v8924_v24  ;;  %v6931_v24 = vld [vmem:[#allocation8 + $0x1a0] sm:$0xf0] }
 0x387   : > { %v3281_v29 = vpop.f32.mrf.mxu0 }
 0x388   : > { %v3282_v25 = vadd.f32 %v3281_v29, %v8767_v18  ;;  %v3549_v59 = vpop.f32.mrf.mxu3 }
 0x389   : > { %v8931_v32 = vadd.f32 %v3549_v59, %v3444_v35  ;;  %3486 = vmatmul.bf16.gmra.mxu2 %v10547_v28  ;;  %v10552_v59 = vld [vmem:[#allocation136_spill] sm:$0xff] }
 0x38a   : > { %v3387_v38 = vadd.f32 %v3386_v46, %v3282_v25  ;;  %v10549_v46 = vld [vmem:[#allocation137_spill] sm:$0xff] }
 0x38c   : > { %v8933_v52 = vadd.f32 %v3387_v38, %v3069_v23  ;;  %v3447_v31 = vpop.f32.mrf.mxu2  ;;  %v10551_v38 = vld [vmem:[#allocation138_spill] sm:$0xff] }
 0x38d   : > { %3591 = vmatmul.bf16.gmra.mxu3 %v10495_v61  ;;  %v3399_v44 = vpop.f32.mrf.mxu1  ;;  %v3074_v61 = vadd.f32 %v10552_v59, %v10551_v38  ;;  %v6624_v38 = vld [vmem:[#allocation8 + $0xd8] sm:$0xf] }
 0x38e   : > { %10546 = vst [vmem:[#allocation101_spill] sm:$0xff] %v8933_v52 }
 0x38f   : > { %v3284_v37 = vpop.f32.mrf.mxu0 }
 0x390   : > { %v3285_v3 = vadd.f32 %v3284_v37, %v8776_v6  ;;  %v3552_v29 = vpop.f32.mrf.mxu3 }
 0x391   : > { %v8942_v35 = vadd.f32 %v3552_v29, %v3447_v31 }
 0x392   : > { %v3390_v18 = vadd.f32 %v3389_v53, %v3285_v3  ;;  %3641 = vmatmul.bf16.gmra.mxu0 %v10548_v13  ;;  %v10554_v13 = vld [vmem:[#allocation97_spill] sm:$0xff] }
 0x394   : > { %v8940_v25 = vadd.f32 %v3390_v18, %v10549_v46  ;;  %v3449_v23 = vpop.f32.mrf.mxu2  ;;  %v10555_v46 = vld [vmem:[#allocation144_spill] sm:$0xff] }
 0x395   : > { %v3401_v6 = vpop.f32.mrf.mxu1 }
 0x396   : > { %10550 = vst [vmem:[#allocation51_spill] sm:$0xff] %v8940_v25 }
 0x397   : > { %v3286_v0 = vpop.f32.mrf.mxu0 }
 0x398   : > { %v3287_v7 = vadd.f32 %v3286_v0, %v8783_v36  ;;  %v3554_v37 = vpop.f32.mrf.mxu3 }
 0x399   : > { %v8947_v53 = vadd.f32 %v3554_v37, %v3449_v23  ;;  %3491 = vmatmul.bf16.gmra.mxu2 %v10554_v13  ;;  %v6528_v13 = vld [vmem:[#allocation8 + $0x18] sm:$0xf] }
 0x39a   : > { %v3392_v28 = vadd.f32 %v3391_v57, %v3287_v7  ;;  %v6907_v57 = vld [vmem:[#allocation8 + $0xe0] sm:$0xf0] }
 0x39b   : > { %v6625_v23 = vor.u32 %v6907_v57, %v6624_v38 }
 0x39c   : > { %v8949_v3 = vadd.f32 %v3392_v28, %v3074_v61  ;;  %v3452_v29 = vpop.f32.mrf.mxu2  ;;  %v10556_v61 = vld [vmem:[#allocation141_spill] sm:$0xff] }
 0x39d   : > { %3596 = vmatmul.bf16.gmra.mxu3 %v10498_v41  ;;  %v3404_v7 = vpop.f32.mrf.mxu1  ;;  %5140 = vmatpush.bf16.msra.mxu2 %v6625_v23  ;;  %v6883_v41 = vld [vmem:[#allocation8 + $0x20] sm:$0xf0] }
 0x39e   : > { %10553 = vst [vmem:[#allocation28_spill] sm:$0xff] %v8949_v3 }
 0x39f   : > { %v3289_v18 = vpop.f32.mrf.mxu0 }
 0x3a0   : > { %v3290_v31 = vadd.f32 %v3289_v18, %v8792_v15  ;;  %v3557_v0 = vpop.f32.mrf.mxu3 }
 0x3a1   : > { %v8955_v59 = vadd.f32 %v3557_v0, %v3452_v29 }
 0x3a2   : > { %v3395_v36 = vadd.f32 %v3394_v63, %v3290_v31  ;;  %3646 = vmatmul.bf16.gmra.mxu0 %v10555_v46  ;;  %v6529_v63 = vor.u32 %v6883_v41, %v6528_v13  ;;  %v10558_v31 = vld [vmem:[#allocation143_spill] sm:$0xff]  ;;  %v10559_v46 = vld [vmem:[#allocation142_spill] sm:$0xff] }
 0x3a3   : > { %v3079_v3 = vadd.f32 %v10559_v46, %v10558_v31  ;;  %v10563_v41 = vld [vmem:[#allocation146_spill] sm:$0xff]  ;;  %v10567_v46 = vld [vmem:[#allocation108_spill] sm:$0xff] }
 0x3a4   : > { %v8958_v28 = vadd.f32 %v3395_v36, %v10556_v61  ;;  %v3454_v18 = vpop.f32.mrf.mxu2  ;;  %5045 = vmatpush.bf16.msra.mxu1 %v6529_v63  ;;  %v10561_v36 = vld [vmem:[#allocation103_spill] sm:$0xff]  ;;  %v10562_v61 = vld [vmem:[#allocation148_spill] sm:$0xff] }
 0x3a5   : > { %v3406_v29 = vpop.f32.mrf.mxu1 }
 0x3a6   : > { %10557 = vst [vmem:[#allocation64_spill] sm:$0xff] %v8958_v28 }
 0x3a7   : > { %v3291_v37 = vpop.f32.mrf.mxu0 }
 0x3a8   : > { %v3292_v15 = vadd.f32 %v3291_v37, %v8801_v20  ;;  %v3559_v52 = vpop.f32.mrf.mxu3 }
 0x3a9   : > { %v8963_v0 = vadd.f32 %v3559_v52, %v3454_v18  ;;  %3496 = vmatmul.bf16.gmra.mxu2 %v10561_v36  ;;  %v10565_v18 = vld [vmem:[#allocation147_spill] sm:$0xff] }
 0x3aa   : > { %v3397_v25 = vadd.f32 %v3396_v33, %v3292_v15 }
 0x3ac   : > { %v8965_v38 = vadd.f32 %v3397_v25, %v3079_v3  ;;  %v3457_v7 = vpop.f32.mrf.mxu2 }
 0x3ad   : > { %3601 = vmatmul.bf16.gmra.mxu3 %v10499_v50  ;;  %v3409_v33 = vpop.f32.mrf.mxu1  ;;  %v3084_v50 = vadd.f32 %v8798_v56, %v10565_v18  ;;  %v6904_v56 = vld [vmem:[#allocation8 + $0xc8] sm:$0xf0]  ;;  %v6516_v18 = vld [vmem:[#allocation8] sm:$0xf] }
 0x3ae   : > { %10560 = vst [vmem:[#allocation30_spill] sm:$0xff] %v8965_v38  ;;  %v10569_v33 = vld [vmem:[#allocation113_spill] sm:$0xff] }
 0x3af   : > { %v3294_v57 = vpop.f32.mrf.mxu0 }
 0x3b0   : > { %v3295_v20 = vadd.f32 %v3294_v57, %v8810_v1  ;;  %v3562_v37 = vpop.f32.mrf.mxu3  ;;  %v10568_v57 = vld [vmem:[#allocation150_spill] sm:$0xff] }
 0x3b1   : > { %v8971_v13 = vadd.f32 %v3562_v37, %v3457_v7 }
 0x3b2   : > { %v3400_v23 = vadd.f32 %v3399_v44, %v3295_v20  ;;  %3651 = vmatmul.bf16.gmra.mxu0 %v10562_v61 }
 0x3b4   : > { %v8974_v52 = vadd.f32 %v3400_v23, %v10563_v41  ;;  %v8977_v15 = vpop.f32.mrf.mxu2  ;;  %v6612_v23 = vld [vmem:[#allocation8 + $0xc0] sm:$0xf] }
 0x3b5   : > { %v3410_v44 = vpop.f32.mrf.mxu1  ;;  %v6613_v61 = vor.u32 %v6904_v56, %v6612_v23  ;;  %v6792_v23 = vld [vmem:[#allocation8 + $0x228] sm:$0xf]  ;;  %v6949_v56 = vld [vmem:[#allocation8 + $0x230] sm:$0xf0] }
 0x3b6   : > { %10564 = vst [vmem:[#allocation73_spill] sm:$0xff] %v8974_v52 }
 0x3b7   : > { %v3296_v25 = vpop.f32.mrf.mxu0  ;;  %5141 = vmatpush.bf16.msra.mxu2 %v6613_v61 }
 0x3b8   : > { %v3297_v3 = vadd.f32 %v3296_v25, %v8817_v21  ;;  %v8981_v63 = vpop.f32.mrf.mxu3  ;;  %v10570_v25 = vld [vmem:[#allocation152_spill] sm:$0xff] }
 0x3b9   : > { %3501 = vmatmul.bf16.gmra.mxu2 %v10567_v46 }
 0x3ba   : > { %v3402_v1 = vadd.f32 %v3401_v6, %v3297_v3 }
 0x3bc   : > { %v8983_v31 = vadd.f32 %v3402_v1, %v3084_v50  ;;  %v3462_v36 = vpop.f32.mrf.mxu2  ;;  %v6880_v50 = vld [vmem:[#allocation8 + $0x8] sm:$0xf0] }
 0x3bd   : > { %3606 = vmatmul.bf16.gmra.mxu3 %v10500_v54  ;;  %v6517_v44 = vor.u32 %v6880_v50, %v6516_v18  ;;  %v6946_v18 = vld [vmem:[#allocation8 + $0x218] sm:$0xf0] }
 0x3be   : > { %10566 = vst [vmem:[#allocation33_spill] sm:$0xff] %v8983_v31  ;;  %v6943_v31 = vld [vmem:[#allocation8 + $0x200] sm:$0xf0] }
 0x3bf   : > { %v3299_v29 = vpop.f32.mrf.mxu0  ;;  %5046 = vmatpush.bf16.msra.mxu1 %v6517_v44 }
 0x3c0   : > { %v3567_v21 = vpop.f32.mrf.mxu3 }
 0x3c1   : > { %v8988_v20 = vadd.f32 %v3567_v21, %v3462_v36  ;;  %v10571_v36 = vld [vmem:[#allocation25_spill] sm:$0xff]  ;;  %v10572_v21 = vld [vmem:[#allocation118_spill] sm:$0xff] }
 0x3c2   : > { %3656 = vmatmul.bf16.gmra.mxu0 %v10568_v57  ;;  %5047 = vmatmul.bf16.vlgmr.msra.gmra.mxu1 %v10571_v36 }
 0x3c4   : > { %v8990_v6 = vpop.f32.mrf.mxu2 }
 0x3c7   : > { %v3301_v7 = vpop.f32.mrf.mxu0 }
 0x3c8   : > { %v8992_v37 = vpop.f32.mrf.mxu3 }
 0x3c9   : > { %3506 = vmatmul.bf16.gmra.mxu2 %v10569_v33  ;;  %v6793_v33 = vor.u32 %v6949_v56, %v6792_v23  ;;  %v6756_v23 = vld [vmem:[#allocation8 + $0x1e0] sm:$0xf]  ;;  %v6940_v56 = vld [vmem:[#allocation8 + $0x1e8] sm:$0xf0] }
 0x3cb   : > { %5229 = vmatpush.bf16.msrb.mxu3 %v6793_v33  ;;  %v6757_v33 = vor.u32 %v6940_v56, %v6756_v23  ;;  %v6924_v56 = vld [vmem:[#allocation8 + $0x16c] sm:$0xf] }
 0x3cc   : > { %v3467_v54 = vpop.f32.mrf.mxu2 }
 0x3cd   : > { %3611 = vmatmul.bf16.gmra.mxu3 %v7581_v5 }
 0x3cf   : > { %v3304_v41 = vpop.f32.mrf.mxu0 }
 0x3d0   : > { %v3572_v3 = vpop.f32.mrf.mxu3  ;;  %v10573_v41 = vld [vmem:[#allocation44_spill] sm:$0xff] }
 0x3d1   : > { %v8997_v1 = vadd.f32 %v3572_v3, %v3467_v54  ;;  %v6780_v3 = vld [vmem:[#allocation8 + $0x210] sm:$0xf] }
 0x3d2   : > { %3661 = vmatmul.bf16.gmra.mxu0 %v10570_v25  ;;  %v6781_v50 = vor.u32 %v6946_v18, %v6780_v3  ;;  %v6937_v3 = vld [vmem:[#allocation8 + $0x1d0] sm:$0xf0]  ;;  %v10574_v18 = vld [vmem:[#allocation46_spill] sm:$0xff] }
 0x3d4   : > { %v8999_v29 = vpop.f32.mrf.mxu2  ;;  %5230 = vmatpush.bf16.msrb.mxu3 %v6781_v50  ;;  %v6732_v50 = vld [vmem:[#allocation8 + $0x1b0] sm:$0xf] }
 0x3d7   : > { %v3305_v46 = vpop.f32.mrf.mxu0 }
 0x3d8   : > { %v9002_v57 = vpop.f32.mrf.mxu3  ;;  %v6768_v46 = vld [vmem:[#allocation8 + $0x1f8] sm:$0xf] }
 0x3d9   : > { %3511 = vmatmul.bf16.gmra.mxu2 %v10572_v21 }
 0x3dc   : > { %v3472_v61 = vpop.f32.mrf.mxu2 }
 0x3dd   : > { %3616 = vmatmul.bf16.gmra.mxu3 %v7581_v5 }
 0x3df   : > { %v3631_v7 = vpop.f32.mrf.mxu0 }
 0x3e0   : > { %v3577_v54 = vpop.f32.mrf.mxu3  ;;  %v6769_v7 = vor.u32 %v6943_v31, %v6768_v46  ;;  %v6934_v31 = vld [vmem:[#allocation8 + $0x1b8] sm:$0xf0] }
 0x3e1   : > { %v9007_v25 = vadd.f32 %v3577_v54, %v3472_v61  ;;  %v6744_v54 = vld [vmem:[#allocation8 + $0x1c8] sm:$0xf]  ;;  %v6733_v46 = vor.u32 %v6934_v31, %v6732_v50  ;;  %v6602_v31 = vld [vmem:[#allocation8 + $0xb4] sm:$0xf0] }
 0x3e2   : > { %3666 = vmatmul.bf16.gmra.mxu0 %v10573_v41  ;;  %5231 = vmatpush.bf16.msrb.mxu3 %v6769_v7  ;;  %v6745_v38 = vor.u32 %v6937_v3, %v6744_v54  ;;  %v6928_v54 = vld [vmem:[#allocation8 + $0x188] sm:$0xf0] }
 0x3e4   : > { %v9009_v21 = vpop.f32.mrf.mxu2 }
 0x3e6   : > { %5232 = vmatpush.bf16.msrb.mxu3 %v6757_v33  ;;  %v6698_v33 = vld [vmem:[#allocation8 + $0x174] sm:$0xf0] }
 0x3e7   : > { %v3632_v44 = vpop.f32.mrf.mxu0 }
 0x3e8   : > { %v9011_v52 = vpop.f32.mrf.mxu3 }
 0x3e9   : > { %5142 = vmatmul.bf16.vlgmr.msra.gmra.mxu2 %v7581_v5  ;;  %v6720_v5 = vld [vmem:[#allocation8 + $0x198] sm:$0xf] }
 0x3ea   : > { %5233 = vmatpush.bf16.msrb.mxu3 %v6745_v38  ;;  %v6721_v4 = vor.u32 %v6931_v24, %v6720_v5  ;;  %v6708_v38 = vld [vmem:[#allocation8 + $0x180] sm:$0xf] }
 0x3eb   : > { %v6709_v3 = vor.u32 %v6928_v54, %v6708_v38  ;;  %v10582_v38 = vld [vmem:[#allocation55_spill] sm:$0xff] }
 0x3ec   : > { %v3477_v41 = vpop.f32.mrf.mxu2 }
 0x3ee   : > { %5234 = vmatpush.bf16.msrb.mxu3 %v6733_v46 }
 0x3ef   : > { %v3634_v61 = vpop.f32.mrf.mxu0 }
 0x3f0   : > { %v3582_v44 = vpop.f32.mrf.mxu3 }
 0x3f1   : > { %v9017_v23 = vadd.f32 %v3582_v44, %v3477_v41 }
 0x3f2   : > { %3671 = vmatmul.bf16.gmra.mxu0 %v10574_v18  ;;  %v6701_v18 = vor.u32 %v6924_v56, %v6698_v33  ;;  %5235 = vmatpush.bf16.msrb.mxu3 %v6721_v4  ;;  %v9032_v33 = vld [vmem:[%s9997_s5] ss:$0 sm:$0xff] }
 0x3f3   : > { %10576 = vst [vmem:[#allocation81_spill] sm:$0xff] %v9017_v23 }
 0x3f4   : > { %v9015_v7 = vpop.f32.mrf.mxu2  ;;  %5419 = vmatpush.bf16.msrb.mxu2 %v6701_v18 }
 0x3f5   : > { %10575 = vst [vmem:[#allocation54_spill] sm:$0xff] %v9015_v7  ;;  %v10578_v7 = vld [vmem:[#allocation50_spill] sm:$0xff] }
 0x3f6   : > { %5236 = vmatpush.bf16.msrb.mxu3 %v6709_v3 }
 0x3f7   : > { %v3635_v28 = vpop.f32.mrf.mxu0 }
 0x3f8   : > { %v9019_v61 = vpop.f32.mrf.mxu3  ;;  %v6900_v28 = vld [vmem:[#allocation8 + $0xac] sm:$0xf] }
 0x3f9   : > { %10577 = vst [vmem:[#allocation36_spill] sm:$0xff] %v9019_v61  ;;  %v6605_v46 = vor.u32 %v6900_v28, %v6602_v31  ;;  %v6921_v61 = vld [vmem:[#allocation8 + $0x154] sm:$0xf] }
 0x3fb   : > { %5324 = vmatpush.bf16.msrb.mxu1 %v6605_v46 }
 0x3fc   : > { %v3482_v9 = vpop.f32.mrf.mxu2 }
 0x3ff   : > { %v3637_v50 = vpop.f32.mrf.mxu0 }
 0x400   : > { %v3587_v41 = vpop.f32.mrf.mxu3 }
 0x401   : > { %v9022_v36 = vadd.f32 %v3587_v41, %v3482_v9 }
 0x402   : > { %3676 = vmatmul.bf16.gmra.mxu0 %v10578_v7 }
 0x403   : > { %10579 = vst [vmem:[#allocation61_spill] sm:$0xff] %v9022_v36 }
 0x404   : > { %v9024_v5 = vpop.f32.mrf.mxu2 }
 0x405   : > { %10580 = vst [vmem:[#allocation70_spill] sm:$0xff] %v9024_v5 }
 0x407   : > { %v3639_v44 = vpop.f32.mrf.mxu0 }
 0x408   : > { %v9026_v4 = vpop.f32.mrf.mxu3  ;;  %v10585_v44 = vld [vmem:[#allocation119_spill] sm:$0xff] }
 0x409   : > { %10581 = vst [vmem:[#allocation94_spill] sm:$0xff] %v9026_v4 }
 0x40c   : > { %v3487_v18 = vpop.f32.mrf.mxu2 }
 0x40f   : > { %v3642_v24 = vpop.f32.mrf.mxu0 }
 0x410   : > { %v3643_v56 = vadd.f32 %v3642_v24, %v8893_v42  ;;  %v3592_v54 = vpop.f32.mrf.mxu3  ;;  %v10586_v24 = vld [vmem:[#allocation22_spill] sm:$0xff] }
 0x411   : > { %v9040_v41 = vadd.f32 %v3592_v54, %v3487_v18  ;;  %vm10587_vm12 = vcmp.lt.s32.totalorder %v10586_v24, 7  ;;  %vm10591_vm0 = vcmp.lt.s32.totalorder %v10586_v24, 1  ;;  %v6927_v24 = vld [vmem:[#allocation8 + $0x184] sm:$0xf] }
 0x412   : > { %v3765_v7 = vadd.f32 %v8747_v47, %v3643_v56  ;;  %3681 = vmatmul.bf16.gmra.mxu0 %v10582_v38  ;;  %v10593_v38 = vld [vmem:[#allocation124_spill] sm:$0xff] }
 0x413   : > { %10584 = vst [vmem:[#allocation87_spill] sm:$0xff] %v9040_v41 }
 0x414   : > { %v3805_v9 = vadd.f32 %v9032_v33, %v3765_v7  ;;  %v9038_v42 = vpop.f32.mrf.mxu2 }
 0x415   : > { %10583 = vst [vmem:[#allocation79_spill] sm:$0xff] %v9038_v42 }
 0x416   : > { %v3841_v3 = vmax.f32 %v3805_v9, 0.0  ;;  %v10590_v9 = vld [vmem:[#allocation23_spill] sm:$0xff] }
 0x417   : > { %v3644_v50 = vpop.f32.mrf.mxu0 }
 0x418   : > { %v3913_v28 = vrot.slane %v3841_v3, 7  ;;  %v4021_v31 = vrot.slane %v3841_v3, 1  ;;  %v3645_v46 = vadd.f32 %v3644_v50, %v8899_v14  ;;  %v9046_v56 = vpop.f32.mrf.mxu3  ;;  %v4165_v36 = vpack.c.bf16 %v3841_v3, %v3841_v3 }
 0x419   : > { %10588 = vst [vmem:[#allocation92_spill] sm:$0xff] %v9046_v56 }
 0x41a   : > { %v4088_v4 = vsel %vm10587_vm12, %v10585_v44, %v4021_v31  ;;  %v3766_v47 = vadd.f32 %v8754_v58, %v3645_v46  ;;  %v3980_v5 = vsel %vm10591_vm0, %v10590_v9, %v3913_v28 }
 0x41b   : > { %v4092_v7 = vsel %vm8389_vm15, %v4088_v4, 0.0  ;;  %v3985_v41 = vsel %vm7589_vm1, %v3980_v5, 0.0  ;;  %v10595_v5 = vld [vmem:[#allocation63_spill] sm:$0xff]  ;;  %vm10596_vm1 = vmmov %vm10591_vm0 }
 0x41c   : > { %v3806_v14 = vadd.f32 %v9032_v33, %v3766_v47  ;;  %v4200_v50 = vpack.c.bf16 %v4092_v7, %v4092_v7  ;;  %v3492_v9 = vpop.f32.mrf.mxu2  ;;  %v4129_v47 = vpack.c.bf16 %v3985_v41, %v3985_v41  ;;  %v6689_v7 = vor.u32 %v6921_v61, %v6686_v34  ;;  %vm10597_vm15 = vmmov %vm10587_vm12 }
 0x41e   : > { %v3842_v18 = vmax.f32 %v3806_v14, 0.0  ;;  %v4488_v54 = vunpack.c.l.b16 %v4200_v50  ;;  %v6897_v14 = vld [vmem:[#allocation8 + $0x94] sm:$0xf]  ;;  %v6590_v50 = vld [vmem:[#allocation8 + $0x9c] sm:$0xf0]  ;;  %5420 = vmatpush.bf16.msrb.mxu2 %v6689_v7 }
 0x41f   : > { %v3647_v44 = vpop.f32.mrf.mxu0  ;;  %v6593_v34 = vor.u32 %v6897_v14, %v6590_v50 }
 0x420   : > { %v3914_v58 = vrot.slane %v3842_v18, 7  ;;  %v4022_v46 = vrot.slane %v3842_v18, 1  ;;  %v3648_v56 = vadd.f32 %v3647_v44, %v8910_v27  ;;  %v9058_v4 = vpack.c.b16 %v4488_v54, %v10593_v38  ;;  %v3597_v44 = vpop.f32.mrf.mxu3 }
 0x421   : > { %v4166_v23 = vpack.c.bf16 %v3842_v18, %v3842_v18  ;;  %v4381_v54 = vunpack.c.l.b16 %v4165_v36  ;;  %5325 = vmatpush.bf16.msrb.mxu1 %v6593_v34  ;;  %v9077_v7 = vadd.f32 %v3597_v44, %v3492_v9 }
 0x422   : > { %10594 = vst [vmem:[#allocation105_spill] sm:$0xff] %v9058_v4  ;;  %v3767_v42 = vadd.f32 %v8763_v43, %v3648_v56  ;;  %3686 = vmatmul.bf16.gmra.mxu0 %v10595_v5  ;;  %5237 = vmatmul.bf16.vlgmr.msrb.gmra.mxu3 %v9058_v4  ;;  %v3979_v27 = vsel %vm10596_vm1, %v3913_v28, %v3914_v58  ;;  %v4273_v43 = vunpack.c.l.b16 %v4129_v47 }
 0x423   : > { %v4087_v3 = vsel %vm10597_vm15, %v4021_v31, %v4022_v46  ;;  %v4382_v38 = vunpack.c.l.b16 %v4166_v23  ;;  %v4130_v18 = vpack.c.bf16 %v3979_v27, %v3979_v27  ;;  %vm10607_vm15 = vmmov %vm10591_vm0 }
 0x424   : > { %v3807_v61 = vadd.f32 %v9032_v33, %v3767_v42  ;;  %v9074_v23 = vpop.f32.mrf.mxu2  ;;  %v4201_v14 = vpack.c.bf16 %v4087_v3, %v4087_v3 }
 0x425   : > { %v9068_v41 = vpack.c.b16 %v4382_v38, %v4381_v54  ;;  %v4274_v56 = vunpack.c.l.b16 %v4130_v18 }
 0x426   : > { %v3843_v5 = vmax.f32 %v3807_v61, 0.0  ;;  %v4489_v9 = vunpack.c.l.b16 %v4201_v14 }
 0x427   : > { %10598 = vst [vmem:[#allocation106_spill] sm:$0xff] %v9068_v41  ;;  %5147 = vmatmul.bf16.gmra.mxu2 %v9068_v41  ;;  %v3649_v28 = vpop.f32.mrf.mxu0  ;;  %v9071_v4 = vpack.c.b16 %v4274_v56, %v4273_v43 }
 0x428   : > { %v3915_v31 = vrot.slane %v3843_v5, 7  ;;  %v4023_v10 = vrot.slane %v3843_v5, 1  ;;  %v3650_v36 = vadd.f32 %v3649_v28, %v8915_v30  ;;  %v9084_v42 = vpop.f32.mrf.mxu3 }
 0x429   : > { %5052 = vmatmul.bf16.gmra.mxu1 %v9071_v4 }
 0x42a   : > { %v3768_v38 = vadd.f32 %v8770_v2, %v3650_v36  ;;  %v4086_v47 = vsel %vm10587_vm12, %v4022_v46, %v4023_v10  ;;  %v3978_v50 = vsel %vm10591_vm0, %v3914_v58, %v3915_v31  ;;  %v4167_v46 = vpack.c.bf16 %v3843_v5, %v3843_v5 }
 0x42b   : > { %v4094_v30 = vsel %vm8417_vm2, %v4086_v47, 0.0  ;;  %v3987_v2 = vsel %vm7612_vm3, %v3978_v50, 0.0  ;;  %vm10603_vm2 = vmmov %vm10591_vm0 }
 0x42c   : > { %v3808_v54 = vadd.f32 %v9032_v33, %v3768_v38  ;;  %v4202_v18 = vpack.c.bf16 %v4094_v30, %v4094_v30  ;;  %v3497_v36 = vpop.f32.mrf.mxu2  ;;  %v4131_v47 = vpack.c.bf16 %v3987_v2, %v3987_v2  ;;  %v10602_v30 = vld [vmem:[#allocation72_spill] sm:$0xff]  ;;  %vm10604_vm3 = vmmov %vm10587_vm12 }
 0x42d   : > { %vm10606_vm1 = vmmov %vm10604_vm3 }
 0x42e   : > { %v3844_v34 = vmax.f32 %v3808_v54, 0.0  ;;  %v4490_v44 = vunpack.c.l.b16 %v4202_v18  ;;  %v4383_v54 = vunpack.c.l.b16 %v4167_v46  ;;  %vm10615_vm12 = vmmov %vm10606_vm1 }
 0x42f   : > { %v3652_v43 = vpop.f32.mrf.mxu0 }
 0x430   : > { %v3916_v3 = vrot.slane %v3844_v34, 7  ;;  %v4024_v56 = vrot.slane %v3844_v34, 1  ;;  %v3653_v58 = vadd.f32 %v3652_v43, %v8926_v16  ;;  %v9092_v28 = vpack.c.b16 %v4490_v44, %v4489_v9  ;;  %v3602_v50 = vpop.f32.mrf.mxu3 }
 0x431   : > { %v4168_v27 = vpack.c.bf16 %v3844_v34, %v3844_v34  ;;  %v4275_v44 = vunpack.c.l.b16 %v4131_v47  ;;  %v9111_v46 = vadd.f32 %v3602_v50, %v3497_v36 }
 0x432   : > { %10601 = vst [vmem:[#allocation107_spill] sm:$0xff] %v9092_v28  ;;  %v3769_v38 = vadd.f32 %v8779_v11, %v3653_v58  ;;  %3691 = vmatmul.bf16.gmra.mxu0 %v10602_v30  ;;  %5242 = vmatmul.bf16.gmra.mxu3 %v9092_v28  ;;  %v3977_v14 = vsel %vm10603_vm2, %v3915_v31, %v3916_v3  ;;  %v6918_v28 = vld [vmem:[#allocation8 + $0x13c] sm:$0xf]  ;;  %vm10624_vm2 = vmmov %vm10606_vm1 }
 0x433   : > { %v4085_v5 = vsel %vm10604_vm3, %v4023_v10, %v4024_v56  ;;  %v4384_v16 = vunpack.c.l.b16 %v4168_v27  ;;  %v4132_v18 = vpack.c.bf16 %v3977_v14, %v3977_v14  ;;  %vm10625_vm3 = vmmov %vm10591_vm0 }
 0x434   : > { %v3809_v9 = vadd.f32 %v9032_v33, %v3769_v38  ;;  %v9108_v30 = vpop.f32.mrf.mxu2  ;;  %v4203_v38 = vpack.c.bf16 %v4085_v5, %v4085_v5 }
 0x435   : > { %v9102_v34 = vpack.c.b16 %v4384_v16, %v4383_v54  ;;  %v4276_v11 = vunpack.c.l.b16 %v4132_v18  ;;  %v6674_v16 = vld [vmem:[#allocation8 + $0x144] sm:$0xf0] }
 0x436   : > { %v3845_v61 = vmax.f32 %v3809_v9, 0.0  ;;  %v4491_v36 = vunpack.c.l.b16 %v4203_v38 }
 0x437   : > { %10605 = vst [vmem:[#allocation96_spill] sm:$0xff] %v9102_v34  ;;  %5152 = vmatmul.bf16.gmra.mxu2 %v9102_v34  ;;  %v3654_v2 = vpop.f32.mrf.mxu0  ;;  %v9105_v43 = vpack.c.b16 %v4276_v11, %v4275_v44 }
 0x438   : > { %v3917_v31 = vrot.slane %v3845_v61, 7  ;;  %v4025_v58 = vrot.slane %v3845_v61, 1  ;;  %v3655_v10 = vadd.f32 %v3654_v2, %v8931_v32  ;;  %v9118_v54 = vpop.f32.mrf.mxu3 }
 0x439   : > { %5057 = vmatmul.bf16.gmra.mxu1 %v9105_v43 }
 0x43a   : > { %v3770_v27 = vadd.f32 %v8786_v39, %v3655_v10  ;;  %v4084_v47 = vsel %vm10606_vm1, %v4024_v56, %v4025_v58  ;;  %v3976_v14 = vsel %vm10607_vm15, %v3916_v3, %v3917_v31  ;;  %v4169_v56 = vpack.c.bf16 %v3845_v61, %v3845_v61  ;;  %vm10631_vm15 = vmmov %vm10591_vm0 }
 0x43b   : > { %v4096_v32 = vsel %vm8446_vm8, %v4084_v47, 0.0  ;;  %v3989_v39 = vsel %vm7645_vm4, %v3976_v14, 0.0  ;;  %vm10611_vm4 = vmmov %vm10591_vm0 }
 0x43c   : > { %v3810_v18 = vadd.f32 %v9032_v33, %v3770_v27  ;;  %v4204_v9 = vpack.c.bf16 %v4096_v32, %v4096_v32  ;;  %v3502_v47 = vpop.f32.mrf.mxu2  ;;  %v4133_v27 = vpack.c.bf16 %v3989_v39, %v3989_v39  ;;  %v6677_v32 = vor.u32 %v6918_v28, %v6674_v16  ;;  %vm10612_vm8 = vmmov %vm10606_vm1 }
 0x43e   : > { %v3846_v44 = vmax.f32 %v3810_v18, 0.0  ;;  %v4492_v50 = vunpack.c.l.b16 %v4204_v9  ;;  %v4385_v18 = vunpack.c.l.b16 %v4169_v56  ;;  %5421 = vmatpush.bf16.msrb.mxu2 %v6677_v32  ;;  %v6894_v56 = vld [vmem:[#allocation8 + $0x7c] sm:$0xf]  ;;  %v10614_v32 = vld [vmem:[#allocation78_spill] sm:$0xff] }
 0x43f   : > { %v3657_v2 = vpop.f32.mrf.mxu0 }
 0x440   : > { %v3918_v5 = vrot.slane %v3846_v44, 7  ;;  %v4026_v10 = vrot.slane %v3846_v44, 1  ;;  %v3658_v3 = vadd.f32 %v3657_v2, %v8942_v35  ;;  %v9126_v34 = vpack.c.b16 %v4492_v50, %v4491_v36  ;;  %v3607_v14 = vpop.f32.mrf.mxu3 }
 0x441   : > { %v4170_v41 = vpack.c.bf16 %v3846_v44, %v3846_v44  ;;  %v9145_v16 = vadd.f32 %v3607_v14, %v3502_v47 }
 0x442   : > { %10610 = vst [vmem:[#allocation56_spill] sm:$0xff] %v9126_v34  ;;  %v3771_v38 = vadd.f32 %v8795_v55, %v3658_v3  ;;  %3696 = vmatmul.bf16.gmra.mxu0 %v10490_v48  ;;  %5247 = vmatmul.bf16.gmra.mxu3 %v9126_v34  ;;  %v3975_v61 = vsel %vm10611_vm4, %v3917_v31, %v3918_v5  ;;  %v4277_v55 = vunpack.c.l.b16 %v4133_v27  ;;  %v10619_v34 = vld [vmem:[#allocation83_spill] sm:$0xff]  ;;  %vm10636_vm4 = vmmov %vm10606_vm1 }
 0x443   : > { %v4083_v35 = vsel %vm10612_vm8, %v4025_v58, %v4026_v10  ;;  %v4386_v9 = vunpack.c.l.b16 %v4170_v41  ;;  %v4134_v36 = vpack.c.bf16 %v3975_v61, %v3975_v61  ;;  %v6578_v41 = vld [vmem:[#allocation8 + $0x84] sm:$0xf0]  ;;  %vm10637_vm8 = vmmov %vm10591_vm0 }
 0x444   : > { %v3811_v44 = vadd.f32 %v9032_v33, %v3771_v38  ;;  %v9142_v3 = vpop.f32.mrf.mxu2  ;;  %v6581_v27 = vor.u32 %v6894_v56, %v6578_v41 }
 0x445   : > { %v9136_v28 = vpack.c.b16 %v4386_v9, %v4385_v18  ;;  %v4278_v50 = vunpack.c.l.b16 %v4134_v36  ;;  %v4205_v18 = vpack.c.bf16 %v4083_v35, %v4083_v35 }
 0x446   : > { %v3847_v48 = vmax.f32 %v3811_v44, 0.0  ;;  %5326 = vmatpush.bf16.msrb.mxu1 %v6581_v27 }
 0x447   : > { %10613 = vst [vmem:[#allocation66_spill] sm:$0xff] %v9136_v28  ;;  %5157 = vmatmul.bf16.gmra.mxu2 %v9136_v28  ;;  %v3659_v11 = vpop.f32.mrf.mxu0  ;;  %v9139_v39 = vpack.c.b16 %v4278_v50, %v4277_v55  ;;  %v4493_v50 = vunpack.c.l.b16 %v4205_v18 }
 0x448   : > { %v3919_v31 = vrot.slane %v3847_v48, 7  ;;  %v4027_v2 = vrot.slane %v3847_v48, 1  ;;  %v3660_v58 = vadd.f32 %v3659_v11, %v8947_v53  ;;  %v9152_v36 = vpop.f32.mrf.mxu3  ;;  %v4171_v35 = vpack.c.bf16 %v3847_v48, %v3847_v48 }
 0x449   : > { %5062 = vmatmul.bf16.gmra.mxu1 %v9139_v39 }
 0x44a   : > { %v3772_v38 = vadd.f32 %v10614_v32, %v3660_v58  ;;  %v4082_v61 = vsel %vm10615_vm12, %v4026_v10, %v4027_v2  ;;  %v3974_v9 = vsel %vm10591_vm0, %v3918_v5, %v3919_v31 }
 0x44b   : > { %v4098_v44 = vsel %vm8473_vm13, %v4082_v61, 0.0  ;;  %v3991_v56 = vsel %vm7677_vm5, %v3974_v9, 0.0  ;;  %vm10621_vm13 = vmmov %vm10591_vm0 }
 0x44c   : > { %v3812_v55 = vadd.f32 %v9032_v33, %v3772_v38  ;;  %v4206_v47 = vpack.c.bf16 %v4098_v44, %v4098_v44  ;;  %v3507_v53 = vpop.f32.mrf.mxu2  ;;  %v4135_v27 = vpack.c.bf16 %v3991_v56, %v3991_v56  ;;  %v10620_v44 = vld [vmem:[#allocation89_spill] sm:$0xff]  ;;  %vm10622_vm5 = vmmov %vm10606_vm1 }
 0x44e   : > { %v3848_v14 = vmax.f32 %v3812_v55, 0.0  ;;  %v4494_v11 = vunpack.c.l.b16 %v4206_v47  ;;  %v4387_v55 = vunpack.c.l.b16 %v4171_v35 }
 0x44f   : > { %v3662_v10 = vpop.f32.mrf.mxu0 }
 0x450   : > { %v3920_v41 = vrot.slane %v3848_v14, 7  ;;  %v4028_v32 = vrot.slane %v3848_v14, 1  ;;  %v3663_v5 = vadd.f32 %v3662_v10, %v8955_v59  ;;  %v9160_v28 = vpack.c.b16 %v4494_v11, %v4493_v50  ;;  %v3612_v9 = vpop.f32.mrf.mxu3 }
 0x451   : > { %v4172_v61 = vpack.c.bf16 %v3848_v14, %v3848_v14  ;;  %v4279_v11 = vunpack.c.l.b16 %v4135_v27  ;;  %v9179_v35 = vadd.f32 %v3612_v9, %v3507_v53 }
 0x452   : > { %10618 = vst [vmem:[#allocation110_spill] sm:$0xff] %v9160_v28  ;;  %v3773_v38 = vadd.f32 %v10619_v34, %v3663_v5  ;;  %3701 = vmatmul.bf16.gmra.mxu0 %v10620_v44  ;;  %5252 = vmatmul.bf16.gmra.mxu3 %v9160_v28  ;;  %v3973_v18 = vsel %vm10621_vm13, %v3919_v31, %v3920_v41 }
 0x453   : > { %v4081_v48 = vsel %vm10622_vm5, %v4027_v2, %v4028_v32  ;;  %v4388_v59 = vunpack.c.l.b16 %v4172_v61  ;;  %v4136_v47 = vpack.c.bf16 %v3973_v18, %v3973_v18  ;;  %vm10644_vm5 = vmmov %vm10625_vm3 }
 0x454   : > { %v3813_v50 = vadd.f32 %v9032_v33, %v3773_v38  ;;  %v9176_v44 = vpop.f32.mrf.mxu2  ;;  %v4207_v38 = vpack.c.bf16 %v4081_v48, %v4081_v48 }
 0x455   : > { %v9170_v14 = vpack.c.b16 %v4388_v59, %v4387_v55  ;;  %v4280_v34 = vunpack.c.l.b16 %v4136_v47 }
 0x456   : > { %v3849_v58 = vmax.f32 %v3813_v50, 0.0  ;;  %v4495_v53 = vunpack.c.l.b16 %v4207_v38 }
 0x457   : > { %10623 = vst [vmem:[#allocation111_spill] sm:$0xff] %v9170_v14  ;;  %5162 = vmatmul.bf16.gmra.mxu2 %v9170_v14  ;;  %v3664_v56 = vpop.f32.mrf.mxu0  ;;  %v9173_v10 = vpack.c.b16 %v4280_v34, %v4279_v11  ;;  %v6899_v34 = vld [vmem:[#allocation8 + $0xa0] sm:$0xf0] }
 0x458   : > { %v3921_v31 = vrot.slane %v3849_v58, 7  ;;  %v4029_v5 = vrot.slane %v3849_v58, 1  ;;  %v3665_v2 = vadd.f32 %v3664_v56, %v8963_v0  ;;  %v9186_v55 = vpop.f32.mrf.mxu3 }
 0x459   : > { %5067 = vmatmul.bf16.gmra.mxu1 %v9173_v10  ;;  %10626 = vst [vmem:[#allocation112_spill] sm:$0xff] %v9186_v55  ;;  %v6608_v55 = vld [vmem:[#allocation8 + $0xb0] sm:$0xf] }
 0x45a   : > { %v3774_v61 = vadd.f32 %v8820_v8, %v3665_v2  ;;  %v4080_v27 = vsel %vm10624_vm2, %v4028_v32, %v4029_v5  ;;  %v3972_v18 = vsel %vm10625_vm3, %v3920_v41, %v3921_v31  ;;  %v4173_v32 = vpack.c.bf16 %v3849_v58, %v3849_v58 }
 0x45b   : > { %v4100_v0 = vsel %vm8498_vm11, %v4080_v27, 0.0  ;;  %v3993_v8 = vsel %vm7710_vm6, %v3972_v18, 0.0  ;;  %vm10629_vm6 = vmmov %vm10591_vm0 }
 0x45c   : > { %v3814_v47 = vadd.f32 %v9032_v33, %v3774_v61  ;;  %v4208_v50 = vpack.c.bf16 %v4100_v0, %v4100_v0  ;;  %v3512_v28 = vpop.f32.mrf.mxu2  ;;  %v4137_v27 = vpack.c.bf16 %v3993_v8, %v3993_v8  ;;  %v6902_v61 = vld [vmem:[#allocation8 + $0xb8] sm:$0xf0]  ;;  %vm10630_vm11 = vmmov %vm10606_vm1  ;;  %v4389_v18 = vunpack.c.l.b16 %v4173_v32 }
 0x45e   : > { %v3850_v11 = vmax.f32 %v3814_v47, 0.0  ;;  %v4496_v9 = vunpack.c.l.b16 %v4208_v50  ;;  %v6609_v50 = vor.u32 %v6902_v61, %v6608_v55  ;;  %v6915_v61 = vld [vmem:[#allocation8 + $0x124] sm:$0xf] }
 0x45f   : > { %v3667_v56 = vpop.f32.mrf.mxu0 }
 0x460   : > { %v3922_v48 = vrot.slane %v3850_v11, 7  ;;  %v4030_v2 = vrot.slane %v3850_v11, 1  ;;  %v3668_v41 = vadd.f32 %v3667_v56, %v8971_v13  ;;  %v9194_v14 = vpack.c.b16 %v4496_v9, %v4495_v53  ;;  %v3617_v13 = vpop.f32.mrf.mxu3  ;;  %5609 = vmatpush.bf16.msra.mxu0 %v6609_v50 }
 0x461   : > { %v4174_v59 = vpack.c.bf16 %v3850_v11, %v3850_v11 }
 0x462   : > { %v3775_v0 = vadd.f32 %v8827_v40, %v3668_v41  ;;  %3706 = vmatmul.bf16.gmra.mxu0 %v10497_v19  ;;  %5257 = vmatmul.bf16.gmra.mxu3 %v9194_v14  ;;  %v3971_v58 = vsel %vm10629_vm6, %v3921_v31, %v3922_v48  ;;  %v4079_v38 = vsel %vm10630_vm11, %v4029_v5, %v4030_v2  ;;  %v4281_v40 = vunpack.c.l.b16 %v4137_v27  ;;  %v6596_v19 = vld [vmem:[#allocation8 + $0x98] sm:$0xf]  ;;  %vm10649_vm6 = vmmov %vm10644_vm5 }
 0x463   : > { %v4390_v47 = vunpack.c.l.b16 %v4174_v59  ;;  %v4138_v28 = vpack.c.bf16 %v3971_v58, %v3971_v58  ;;  %v3565_v31 = vadd.f32 %v8981_v63, %v8977_v15  ;;  %v6597_v56 = vor.u32 %v6899_v34, %v6596_v19  ;;  %v6584_v15 = vld [vmem:[#allocation8 + $0x80] sm:$0xf] }
 0x464   : > { %v3815_v11 = vadd.f32 %v9032_v33, %v3775_v0  ;;  %v6662_v0 = vld [vmem:[#allocation8 + $0x12c] sm:$0xf0]  ;;  %v3514_v27 = vpop.f32.mrf.mxu2  ;;  %v4209_v58 = vpack.c.bf16 %v4079_v38, %v4079_v38 }
 0x465   : > { %v9204_v53 = vpack.c.b16 %v4390_v47, %v4389_v18  ;;  %v4282_v9 = vunpack.c.l.b16 %v4138_v28  ;;  %v6665_v13 = vor.u32 %v6915_v61, %v6662_v0  ;;  %v6891_v18 = vld [vmem:[#allocation8 + $0x64] sm:$0xf]  ;;  %v6566_v47 = vld [vmem:[#allocation8 + $0x6c] sm:$0xf0]  ;;  %5610 = vmatpush.bf16.msra.mxu0 %v6597_v56 }
 0x466   : > { %v3851_v8 = vmax.f32 %v3815_v11, 0.0  ;;  %v6896_v11 = vld [vmem:[#allocation8 + $0x88] sm:$0xf0]  ;;  %v6569_v38 = vor.u32 %v6891_v18, %v6566_v47 }
 0x467   : > { %5167 = vmatmul.bf16.gmra.mxu2 %v9204_v53  ;;  %v3669_v5 = vpop.f32.mrf.mxu0  ;;  %v9209_v32 = vpack.c.b16 %v4282_v9, %v4281_v40  ;;  %v6585_v34 = vor.u32 %v6896_v11, %v6584_v15  ;;  %v6890_v11 = vld [vmem:[#allocation8 + $0x58] sm:$0xf0] }
 0x468   : > { %v3923_v55 = vrot.slane %v3851_v8, 7  ;;  %v4031_v41 = vrot.slane %v3851_v8, 1  ;;  %v3670_v59 = vadd.f32 %v3669_v5, %v3565_v31  ;;  %v3619_v40 = vpop.f32.mrf.mxu3  ;;  %5422 = vmatpush.bf16.msrb.mxu2 %v6665_v13  ;;  %v4497_v5 = vunpack.c.l.b16 %v4209_v58  ;;  %5327 = vmatpush.bf16.msrb.mxu1 %v6569_v38 }
 0x469   : > { %5072 = vmatmul.bf16.gmra.mxu1 %v9209_v32  ;;  %5611 = vmatpush.bf16.msra.mxu0 %v6585_v34  ;;  %v4175_v9 = vpack.c.bf16 %v3851_v8, %v3851_v8 }
 0x46a   : > { %v3776_v63 = vadd.f32 %v8832_v62, %v3670_v59  ;;  %v4078_v28 = vsel %vm10606_vm1, %v4030_v2, %v4031_v41  ;;  %v3970_v50 = vsel %vm10631_vm15, %v3922_v48, %v3923_v55  ;;  %v6572_v62 = vld [vmem:[#allocation8 + $0x68] sm:$0xf]  ;;  %v6893_v59 = vld [vmem:[#allocation8 + $0x70] sm:$0xf0]  ;;  %vm10653_vm15 = vmmov %vm10644_vm5 }
 0x46b   : > { %v4102_v19 = vsel %vm8521_vm14, %v4078_v28, 0.0  ;;  %v3995_v48 = vsel %vm7742_vm7, %v3970_v50, 0.0  ;;  %v6573_v27 = vor.u32 %v6893_v59, %v6572_v62  ;;  %vm10634_vm7 = vmmov %vm10591_vm0  ;;  %v6887_v59 = vld [vmem:[#allocation8 + $0x40] sm:$0xf0] }
 0x46c   : > { %v3816_v31 = vadd.f32 %v9032_v33, %v3776_v63  ;;  %v4210_v56 = vpack.c.bf16 %v4102_v19, %v4102_v19  ;;  %v4139_v58 = vpack.c.bf16 %v3995_v48, %v3995_v48  ;;  %v6560_v63 = vld [vmem:[#allocation8 + $0x50] sm:$0xf]  ;;  %vm10635_vm14 = vmmov %vm10606_vm1 }
 0x46d   : > { %5612 = vmatpush.bf16.msra.mxu0 %v6573_v27 }
 0x46e   : > { %v3852_v2 = vmax.f32 %v3816_v31, 0.0  ;;  %v4498_v61 = vunpack.c.l.b16 %v4210_v56  ;;  %v6561_v31 = vor.u32 %v6890_v11, %v6560_v63  ;;  %v4283_v62 = vunpack.c.l.b16 %v4139_v58  ;;  %v6536_v63 = vld [vmem:[#allocation8 + $0x20] sm:$0xf] }
 0x46f   : > { %v3672_v40 = vpop.f32.mrf.mxu0 }
 0x470   : > { %v3924_v28 = vrot.slane %v3852_v2, 7  ;;  %v4032_v13 = vrot.slane %v3852_v2, 1  ;;  %v3673_v18 = vadd.f32 %v3672_v40, %v8988_v20  ;;  %v9223_v47 = vpack.c.b16 %v4498_v61, %v4497_v5 }
 0x471   : > { %v4176_v15 = vpack.c.bf16 %v3852_v2, %v3852_v2  ;;  %v4391_v20 = vunpack.c.l.b16 %v4175_v9  ;;  %5613 = vmatpush.bf16.msra.mxu0 %v6561_v31  ;;  %v3570_v2 = vadd.f32 %v8992_v37, %v8990_v6  ;;  %v5048_v9 = vpop.f32.mrf.mxu1  ;;  %v6884_v6 = vld [vmem:[#allocation8 + $0x28] sm:$0xf0] }
 0x472   : > { %v3777_v19 = vadd.f32 %v8839_v60, %v3673_v18  ;;  %3711 = vmatmul.bf16.gmra.mxu0 %v8682_v12  ;;  %5262 = vmatmul.bf16.gmra.mxu3 %v9223_v47  ;;  %v3969_v8 = vsel %vm10634_vm7, %v3923_v55, %v3924_v28  ;;  %v4077_v50 = vsel %vm10635_vm14, %v4031_v41, %v4032_v13  ;;  %v6548_v12 = vld [vmem:[#allocation8 + $0x38] sm:$0xf]  ;;  %v5143_v18 = vpop.f32.mrf.mxu2 }
 0x473   : > { %v4392_v38 = vunpack.c.l.b16 %v4176_v15  ;;  %v4140_v34 = vpack.c.bf16 %v3969_v8, %v3969_v8  ;;  %v6549_v61 = vor.u32 %v6887_v59, %v6548_v12  ;;  %v4211_v15 = vpack.c.bf16 %v4077_v50, %v4077_v50 }
 0x474   : > { %v3817_v56 = vadd.f32 %v9032_v33, %v3777_v19  ;;  %v9241_v58 = vadd.f32 %v5143_v18, %v5048_v9 }
 0x475   : > { %v9233_v5 = vpack.c.b16 %v4392_v38, %v4391_v20  ;;  %v4284_v60 = vunpack.c.l.b16 %v4140_v34  ;;  %5614 = vmatpush.bf16.msra.mxu0 %v6549_v61  ;;  %v6537_v38 = vor.u32 %v6884_v6, %v6536_v63  ;;  %v4499_v31 = vunpack.c.l.b16 %v4211_v15 }
 0x476   : > { %v3853_v55 = vmax.f32 %v3817_v56, 0.0  ;;  %v6524_v56 = vld [vmem:[#allocation8 + $0x8] sm:$0xf] }
 0x477   : > { %5172 = vmatmul.bf16.gmra.mxu2 %v9233_v5  ;;  %v3674_v41 = vpop.f32.mrf.mxu0  ;;  %v9238_v0 = vpack.c.b16 %v4284_v60, %v4283_v62  ;;  %v6881_v62 = vld [vmem:[#allocation8 + $0x10] sm:$0xf0] }
 0x478   : > { %v3925_v48 = vrot.slane %v3853_v55, 7  ;;  %v4033_v27 = vrot.slane %v3853_v55, 1  ;;  %v3675_v40 = vadd.f32 %v3674_v41, %v3570_v2  ;;  %v4177_v61 = vpack.c.bf16 %v3853_v55, %v3853_v55 }
 0x479   : > { %5077 = vmatmul.bf16.gmra.mxu1 %v9238_v0  ;;  %5615 = vmatpush.bf16.msra.mxu0 %v6537_v38 }
 0x47a   : > { %v3778_v37 = vadd.f32 %v8844_v51, %v3675_v40  ;;  %v4076_v11 = vsel %vm10636_vm4, %v4032_v13, %v4033_v27  ;;  %v3968_v19 = vsel %vm10637_vm8, %v3924_v28, %v3925_v48  ;;  %v10639_v51 = vld [vmem:[#allocation43_spill] sm:$0xff]  ;;  %v6525_v13 = vor.u32 %v6881_v62, %v6524_v56  ;;  %v6650_v62 = vld [vmem:[#allocation8 + $0x114] sm:$0xf0]  ;;  %vm10663_vm4 = vmmov %vm10644_vm5 }
 0x47b   : > { %v4104_v20 = vsel %vm8544_vm9, %v4076_v11, 0.0  ;;  %vm10640_vm12 = vnez %v10639_v51  ;;  %vm10641_vm9 = vmmov %vm10591_vm0  ;;  %v6912_v56 = vld [vmem:[#allocation8 + $0x10c] sm:$0xf] }
 0x47c   : > { %v3818_v34 = vadd.f32 %v9032_v33, %v3778_v37  ;;  %v4212_v50 = vpack.c.bf16 %v4104_v20, %v4104_v20  ;;  %v3997_v59 = vsel %vm10640_vm12, %v3968_v19, 0.0  ;;  %vm10642_vm0 = vmmov %vm10606_vm1  ;;  %v4393_v37 = vunpack.c.l.b16 %v4177_v61 }
 0x47d   : > { %v4141_v63 = vpack.c.bf16 %v3997_v59, %v3997_v59  ;;  %5616 = vmatpush.bf16.msra.mxu0 %v6525_v13  ;;  %vm10643_vm13 = vmmov %vm10642_vm0  ;;  %v10645_v59 = vld [vmem:[#allocation151_spill] sm:$0xff] }
 0x47e   : > { %v3854_v60 = vmax.f32 %v3818_v34, 0.0  ;;  %v4500_v12 = vunpack.c.l.b16 %v4212_v50  ;;  %vm10646_vm2 = vnez %v10645_v59  ;;  %vm10650_vm11 = vmmov %vm10642_vm0 }
 0x47f   : > { %v3677_v2 = vpop.f32.mrf.mxu0  ;;  %v4285_v20 = vunpack.c.l.b16 %v4141_v63  ;;  %vm10652_vm1 = vmmov %vm10642_vm0 }
 0x480   : > { %v3926_v28 = vrot.slane %v3854_v60, 7  ;;  %v4034_v41 = vrot.slane %v3854_v60, 1  ;;  %v3678_v40 = vadd.f32 %v3677_v2, %v8997_v1  ;;  %v9254_v9 = vpack.c.b16 %v4500_v12, %v4499_v31  ;;  %vm10664_vm8 = vmmov %vm10642_vm0 }
 0x481   : > { %v4178_v18 = vpack.c.bf16 %v3854_v60, %v3854_v60  ;;  %v6653_v60 = vor.u32 %v6912_v56, %v6650_v62  ;;  %vm10669_vm12 = vmmov %vm10642_vm0 }
 0x482   : > { %v3779_v15 = vadd.f32 %v8851_v17, %v3678_v40  ;;  %3716 = vmatmul.bf16.gmra.mxu0 %v8702_v49  ;;  %5267 = vmatmul.bf16.gmra.mxu3 %v9254_v9  ;;  %v3967_v6 = vsel %vm10641_vm9, %v3925_v48, %v3926_v28  ;;  %v4075_v55 = vsel %vm10642_vm0, %v4033_v27, %v4034_v41  ;;  %vm10670_vm9 = vmmov %vm10663_vm4 }
 0x483   : > { %v4394_v11 = vunpack.c.l.b16 %v4178_v18  ;;  %v4142_v1 = vpack.c.bf16 %v3967_v6, %v3967_v6  ;;  %v3575_v49 = vadd.f32 %v9002_v57, %v8999_v29  ;;  %v4213_v29 = vpack.c.bf16 %v4075_v55, %v4075_v55  ;;  %5423 = vmatpush.bf16.msrb.mxu2 %v6653_v60 }
 0x484   : > { %v3819_v19 = vadd.f32 %v9032_v33, %v3779_v15  ;;  %v10647_v15 = vld [vmem:[#allocation48_spill] sm:$0xff] }
 0x485   : > { %v9264_v8 = vpack.c.b16 %v4394_v11, %v4393_v37  ;;  %v4286_v38 = vunpack.c.l.b16 %v4142_v1  ;;  %v4501_v18 = vunpack.c.l.b16 %v4213_v29  ;;  %vm10648_vm3 = vnez %v10647_v15  ;;  %v6888_v1 = vld [vmem:[#allocation8 + $0x4c] sm:$0xf] }
 0x486   : > { %v3855_v17 = vmax.f32 %v3819_v19, 0.0  ;;  %v6554_v19 = vld [vmem:[#allocation8 + $0x54] sm:$0xf0] }
 0x487   : > { %5177 = vmatmul.bf16.gmra.mxu2 %v9264_v8  ;;  %v3679_v34 = vpop.f32.mrf.mxu0  ;;  %v9269_v48 = vpack.c.b16 %v4286_v38, %v4285_v20 }
 0x488   : > { %v3927_v50 = vrot.slane %v3855_v17, 7  ;;  %v4035_v27 = vrot.slane %v3855_v17, 1  ;;  %v3680_v31 = vadd.f32 %v3679_v34, %v3575_v49  ;;  %v4179_v37 = vpack.c.bf16 %v3855_v17, %v3855_v17 }
 0x489   : > { %5082 = vmatmul.bf16.gmra.mxu1 %v9269_v48  ;;  %v6557_v49 = vor.u32 %v6888_v1, %v6554_v19  ;;  %v10657_v19 = vld [vmem:[#allocation52_spill] sm:$0xff] }
 0x48a   : > { %v3780_v12 = vadd.f32 %v8858_v22, %v3680_v31  ;;  %v4074_v51 = vsel %vm10643_vm13, %v4034_v41, %v4035_v27  ;;  %v3966_v57 = vsel %vm10644_vm5, %v3926_v28, %v3927_v50  ;;  %vm10658_vm14 = vnez %v10657_v19  ;;  %vm10678_vm5 = vmmov %vm10663_vm4 }
 0x48b   : > { %v4106_v13 = vsel %vm10646_vm2, %v4074_v51, 0.0  ;;  %v3999_v22 = vsel %vm10648_vm3, %v3966_v57, 0.0  ;;  %5328 = vmatpush.bf16.msrb.mxu1 %v6557_v49  ;;  %vm10679_vm2 = vmmov %vm10652_vm1 }
 0x48c   : > { %v3820_v2 = vadd.f32 %v9032_v33, %v3780_v12  ;;  %v4214_v61 = vpack.c.bf16 %v4106_v13, %v4106_v13  ;;  %v4143_v38 = vpack.c.bf16 %v3999_v22, %v3999_v22  ;;  %vm10684_vm3 = vmmov %vm10652_vm1 }
 0x48e   : > { %v3856_v40 = vmax.f32 %v3820_v2, 0.0  ;;  %v4502_v63 = vunpack.c.l.b16 %v4214_v61  ;;  %v4287_v51 = vunpack.c.l.b16 %v4143_v38  ;;  %v10651_v2 = vld [vmem:[#allocation37_spill] sm:$0xff] }
 0x48f   : > { %v3682_v6 = vpop.f32.mrf.mxu0 }
 0x490   : > { %v3928_v41 = vrot.slane %v3856_v40, 7  ;;  %v4036_v55 = vrot.slane %v3856_v40, 1  ;;  %v3683_v11 = vadd.f32 %v3682_v6, %v9007_v25  ;;  %v9283_v28 = vpack.c.b16 %v4502_v63, %v4501_v18 }
 0x491   : > { %v4180_v20 = vpack.c.bf16 %v3856_v40, %v3856_v40  ;;  %v4395_v25 = vunpack.c.l.b16 %v4179_v37  ;;  %v9309_v37 = vpop.f32.mrf.mxu1 }
 0x492   : > { %v3781_v34 = vadd.f32 %v8865_v26, %v3683_v11  ;;  %3721 = vmatmul.bf16.gmra.mxu0 %v8722_v45  ;;  %5272 = vmatmul.bf16.gmra.mxu3 %v9283_v28  ;;  %v3965_v17 = vsel %vm10649_vm6, %v3927_v50, %v3928_v41  ;;  %v4073_v31 = vsel %vm10650_vm11, %v4035_v27, %v4036_v55  ;;  %vm10685_vm6 = vmmov %vm10663_vm4 }
 0x493   : > { %v4396_v56 = vunpack.c.l.b16 %v4180_v20  ;;  %v4144_v62 = vpack.c.bf16 %v3965_v17, %v3965_v17  ;;  %v3580_v45 = vadd.f32 %v9011_v52, %v9009_v21  ;;  %v4215_v18 = vpack.c.bf16 %v4073_v31, %v4073_v31  ;;  %v10654_v21 = vld [vmem:[#allocation41_spill] sm:$0xff]  ;;  %10656 = vst [vmem:[#allocation31_spill] sm:$0xff] %v9309_v37 }
 0x494   : > { %v3821_v60 = vadd.f32 %v9032_v33, %v3781_v34  ;;  %vm10655_vm7 = vnez %v10654_v21  ;;  %v10659_v17 = vld [vmem:[#allocation81_spill] sm:$0xff] }
 0x495   : > { %v9293_v12 = vpack.c.b16 %v4396_v56, %v4395_v25  ;;  %v4288_v26 = vunpack.c.l.b16 %v4144_v62  ;;  %v4503_v11 = vunpack.c.l.b16 %v4215_v18  ;;  %v9316_v62 = vpop.f32.mrf.mxu2 }
 0x496   : > { %v3857_v29 = vmax.f32 %v3821_v60, 0.0  ;;  %10660 = vst [vmem:[#allocation102_spill] sm:$0xff] %v9316_v62  ;;  %v10661_v60 = vld [vmem:[#allocation84_spill] sm:$0xff]  ;;  %v10681_v62 = vld [vmem:[#allocation94_spill] sm:$0xff] }
 0x497   : > { %5182 = vmatmul.bf16.gmra.mxu2 %v9293_v12  ;;  %v3684_v50 = vpop.f32.mrf.mxu0  ;;  %v9298_v57 = vpack.c.b16 %v4288_v26, %v4287_v51  ;;  %v10662_v26 = vld [vmem:[#allocation25_spill] sm:$0xff] }
 0x498   : > { %v3929_v27 = vrot.slane %v3857_v29, 7  ;;  %v4037_v59 = vrot.slane %v3857_v29, 1  ;;  %v3685_v13 = vadd.f32 %v3684_v50, %v3580_v45 }
 0x499   : > { %5087 = vmatmul.bf16.gmra.mxu1 %v9298_v57 }
 0x49a   : > { %v3782_v61 = vadd.f32 %v10651_v2, %v3685_v13  ;;  %v4072_v40 = vsel %vm10652_vm1, %v4036_v55, %v4037_v59  ;;  %v3964_v52 = vsel %vm10653_vm15, %v3928_v41, %v3929_v27  ;;  %v4181_v55 = vpack.c.bf16 %v3857_v29, %v3857_v29  ;;  %vm10693_vm15 = vmmov %vm10663_vm4 }
 0x49b   : > { %v4108_v63 = vsel %vm10655_vm7, %v4072_v40, 0.0  ;;  %v4001_v20 = vsel %vm10658_vm14, %v3964_v52, 0.0  ;;  %vm10694_vm7 = vmmov %vm10679_vm2 }
 0x49c   : > { %v3822_v15 = vadd.f32 %v9032_v33, %v3782_v61  ;;  %v4216_v22 = vpack.c.bf16 %v4108_v63, %v4108_v63  ;;  %v4145_v56 = vpack.c.bf16 %v4001_v20, %v4001_v20  ;;  %v4397_v50 = vunpack.c.l.b16 %v4181_v55  ;;  %v10665_v63 = vld [vmem:[#allocation54_spill] sm:$0xff]  ;;  %vm10700_vm14 = vmmov %vm10679_vm2 }
 0x49d   : > { %v10668_v55 = vld [vmem:[#allocation86_spill] sm:$0xff] }
 0x49e   : > { %v3858_v6 = vmax.f32 %v3822_v15, 0.0  ;;  %v4504_v1 = vunpack.c.l.b16 %v4216_v22  ;;  %v4289_v52 = vunpack.c.l.b16 %v4145_v56  ;;  %v10666_v15 = vld [vmem:[#allocation36_spill] sm:$0xff] }
 0x49f   : > { %v3687_v38 = vpop.f32.mrf.mxu0  ;;  %v3585_v22 = vadd.f32 %v10666_v15, %v10665_v63  ;;  %v10674_v63 = vld [vmem:[#allocation57_spill] sm:$0xff] }
 0x4a0   : > { %v3930_v49 = vrot.slane %v3858_v6, 7  ;;  %v4038_v34 = vrot.slane %v3858_v6, 1  ;;  %v3688_v41 = vadd.f32 %v3687_v38, %v10659_v17  ;;  %v9314_v31 = vpack.c.b16 %v4504_v1, %v4503_v11 }
 0x4a1   : > { %v4182_v25 = vpack.c.bf16 %v3858_v6, %v3858_v6  ;;  %vm10675_vm13 = vnez %v10674_v63 }
 0x4a2   : > { %v3783_v51 = vadd.f32 %v10661_v60, %v3688_v41  ;;  %5277 = vmatmul.bf16.gmra.mxu3 %v9314_v31  ;;  %5617 = vmatmul.bf16.vlgmr.msra.gmra.mxu0 %v10662_v26  ;;  %v3963_v45 = vsel %vm10663_vm4, %v3929_v27, %v3930_v49  ;;  %v4071_v29 = vsel %vm10664_vm8, %v4037_v59, %v4038_v34 }
 0x4a3   : > { %v4398_v13 = vunpack.c.l.b16 %v4182_v25  ;;  %v4146_v2 = vpack.c.bf16 %v3963_v45, %v3963_v45  ;;  %v4217_v56 = vpack.c.bf16 %v4071_v29, %v4071_v29 }
 0x4a4   : > { %v3823_v61 = vadd.f32 %v9032_v33, %v3783_v51  ;;  %v10671_v51 = vld [vmem:[#allocation45_spill] sm:$0xff] }
 0x4a5   : > { %v5238_v40 = vpop.f32.mrf.mxu3  ;;  %v9326_v18 = vpack.c.b16 %v4398_v13, %v4397_v50  ;;  %v4290_v21 = vunpack.c.l.b16 %v4146_v2  ;;  %vm10672_vm0 = vnez %v10671_v51 }
 0x4a6   : > { %v3859_v6 = vmax.f32 %v3823_v61, 0.0  ;;  %v9331_v11 = vadd.f32 %v5238_v40, %v9241_v58  ;;  %v5053_v27 = vpop.f32.mrf.mxu1 }
 0x4a7   : > { %5187 = vmatmul.bf16.gmra.mxu2 %v9326_v18  ;;  %v3689_v59 = vpop.f32.mrf.mxu0  ;;  %v9334_v1 = vpack.c.b16 %v4290_v21, %v4289_v52  ;;  %v4505_v52 = vunpack.c.l.b16 %v4217_v56  ;;  %v10677_v56 = vld [vmem:[#allocation40_spill] sm:$0xff] }
 0x4a8   : > { %10667 = vst [vmem:[#allocation62_spill] sm:$0xff] %v9331_v11  ;;  %v3931_v19 = vrot.slane %v3859_v6, 7  ;;  %v4039_v20 = vrot.slane %v3859_v6, 1  ;;  %v3690_v38 = vadd.f32 %v3689_v59, %v3585_v22  ;;  %v4183_v15 = vpack.c.bf16 %v3859_v6, %v3859_v6 }
 0x4a9   : > { %5092 = vmatmul.bf16.gmra.mxu1 %v9334_v1 }
 0x4aa   : > { %v3784_v17 = vadd.f32 %v10668_v55, %v3690_v38  ;;  %v5148_v41 = vpop.f32.mrf.mxu2  ;;  %v4070_v25 = vsel %vm10669_vm12, %v4038_v34, %v4039_v20  ;;  %v3962_v58 = vsel %vm10670_vm9, %v3930_v49, %v3931_v19  ;;  %v6909_v55 = vld [vmem:[#allocation8 + $0xf4] sm:$0xf]  ;;  %vm10707_vm9 = vmmov %vm10663_vm4 }
 0x4ab   : > { %v5149_v60 = vadd.f32 %v5148_v41, %v5053_v27  ;;  %v4110_v45 = vsel %vm10672_vm0, %v4070_v25, 0.0  ;;  %v4003_v34 = vsel %vm10675_vm13, %v3962_v58, 0.0  ;;  %v10676_v27 = vld [vmem:[#allocation61_spill] sm:$0xff]  ;;  %vm10708_vm0 = vmmov %vm10679_vm2 }
 0x4ac   : > { %v3824_v50 = vadd.f32 %v9032_v33, %v3784_v17  ;;  %v4218_v13 = vpack.c.bf16 %v4110_v45, %v4110_v45  ;;  %v6638_v17 = vld [vmem:[#allocation8 + $0xfc] sm:$0xf0]  ;;  %v4147_v25 = vpack.c.bf16 %v4003_v34, %v4003_v34  ;;  %v6885_v45 = vld [vmem:[#allocation8 + $0x34] sm:$0xf]  ;;  %vm10711_vm13 = vmmov %vm10708_vm0 }
 0x4ad   : > { %v9345_v2 = vpop.f32.mrf.mxu3  ;;  %v6641_v51 = vor.u32 %v6909_v55, %v6638_v17 }
 0x4ae   : > { %10673 = vst [vmem:[#allocation67_spill] sm:$0xff] %v9345_v2  ;;  %v3860_v61 = vmax.f32 %v3824_v50, 0.0  ;;  %v5055_v40 = vpop.f32.mrf.mxu1  ;;  %v4506_v21 = vunpack.c.l.b16 %v4218_v13  ;;  %v6542_v50 = vld [vmem:[#allocation8 + $0x3c] sm:$0xf0]  ;;  %v4291_v55 = vunpack.c.l.b16 %v4147_v25 }
 0x4af   : > { %v3692_v29 = vpop.f32.mrf.mxu0  ;;  %5424 = vmatpush.bf16.msrb.mxu2 %v6641_v51  ;;  %v10683_v51 = vld [vmem:[#allocation42_spill] sm:$0xff] }
 0x4b0   : > { %v3932_v22 = vrot.slane %v3860_v61, 7  ;;  %v4040_v49 = vrot.slane %v3860_v61, 1  ;;  %v3693_v59 = vadd.f32 %v3692_v29, %v10676_v27  ;;  %v9350_v38 = vpack.c.b16 %v4506_v21, %v4505_v52 }
 0x4b1   : > { %v4184_v41 = vpack.c.bf16 %v3860_v61, %v3860_v61  ;;  %v4399_v21 = vunpack.c.l.b16 %v4183_v15  ;;  %v6545_v29 = vor.u32 %v6885_v45, %v6542_v50 }
 0x4b2   : > { %v3785_v13 = vadd.f32 %v10677_v56, %v3693_v59  ;;  %v5150_v2 = vpop.f32.mrf.mxu2  ;;  %5282 = vmatmul.bf16.gmra.mxu3 %v9350_v38  ;;  %5620 = vmatmul.bf16.gmra.mxu0 %v9071_v4  ;;  %v3961_v6 = vsel %vm10678_vm5, %v3931_v19, %v3932_v22  ;;  %v4069_v58 = vsel %vm10679_vm2, %v4039_v20, %v4040_v49  ;;  %v10680_v56 = vld [vmem:[#allocation70_spill] sm:$0xff]  ;;  %vm10712_vm5 = vmmov %vm10663_vm4 }
 0x4b3   : > { %v5151_v52 = vadd.f32 %v5150_v2, %v5055_v40  ;;  %v4400_v61 = vunpack.c.l.b16 %v4184_v41  ;;  %v4148_v63 = vpack.c.bf16 %v3961_v6, %v3961_v6  ;;  %v3590_v37 = vadd.f32 %v10681_v62, %v10680_v56  ;;  %5329 = vmatpush.bf16.msrb.mxu1 %v6545_v29  ;;  %v10686_v6 = vld [vmem:[#allocation49_spill] sm:$0xff] }
 0x4b4   : > { %v3825_v34 = vadd.f32 %v9032_v33, %v3785_v13  ;;  %v4219_v25 = vpack.c.bf16 %v4069_v58, %v4069_v58  ;;  %vm10687_vm11 = vnez %v10686_v6 }
 0x4b5   : > { %v5243_v27 = vpop.f32.mrf.mxu3  ;;  %v9360_v59 = vpack.c.b16 %v4400_v61, %v4399_v21  ;;  %v4292_v17 = vunpack.c.l.b16 %v4148_v63 }
 0x4b6   : > { %v3861_v19 = vmax.f32 %v3825_v34, 0.0  ;;  %v9364_v11 = vadd.f32 %v5243_v27, %v5149_v60  ;;  %v5058_v20 = vpop.f32.mrf.mxu1  ;;  %v4507_v34 = vunpack.c.l.b16 %v4219_v25 }
 0x4b7   : > { %5192 = vmatmul.bf16.gmra.mxu2 %v9360_v59  ;;  %v3694_v2 = vpop.f32.mrf.mxu0  ;;  %v9367_v40 = vpack.c.b16 %v4292_v17, %v4291_v55 }
 0x4b8   : > { %10682 = vst [vmem:[#allocation114_spill] sm:$0xff] %v9364_v11  ;;  %v3933_v33 = vrot.slane %v3861_v19, 7  ;;  %v4041_v15 = vrot.slane %v3861_v19, 1  ;;  %v3695_v41 = vadd.f32 %v3694_v2, %v3590_v37  ;;  %v9380_v37 = vld [vmem:[%s9997_s5] ss:$0 sm:$0xff] }
 0x4b9   : > { %5097 = vmatmul.bf16.gmra.mxu1 %v9367_v40 }
 0x4ba   : > { %v3786_v45 = vadd.f32 %v10683_v51, %v3695_v41  ;;  %v5153_v50 = vpop.f32.mrf.mxu2  ;;  %v4068_v62 = vsel %vm10684_vm3, %v4040_v49, %v4041_v15  ;;  %v3960_v60 = vsel %vm10685_vm6, %v3932_v22, %v3933_v33  ;;  %v10689_v22 = vld [vmem:[#allocation65_spill] sm:$0xff]  ;;  %v10691_v51 = vld [vmem:[#allocation87_spill] sm:$0xff]  ;;  %vm10719_vm6 = vmmov %vm10663_vm4 }
 0x4bb   : > { %v5154_v13 = vadd.f32 %v5153_v50, %v5058_v20  ;;  %v4112_v21 = vsel %vm10687_vm11, %v4068_v62, 0.0  ;;  %vm10690_vm1 = vnez %v10689_v22  ;;  %v4185_v20 = vpack.c.bf16 %v3861_v19, %v3861_v19  ;;  %vm10720_vm11 = vmmov %vm10708_vm0 }
 0x4bc   : > { %v3826_v58 = vadd.f32 %v9380_v37, %v3786_v45  ;;  %v4220_v61 = vpack.c.bf16 %v4112_v21, %v4112_v21  ;;  %v4005_v17 = vsel %vm10690_vm1, %v3960_v60, 0.0  ;;  %v10692_v21 = vld [vmem:[#allocation99_spill] sm:$0xff]  ;;  %vm10724_vm1 = vmmov %vm10708_vm0 }
 0x4bd   : > { %v5245_v63 = vpop.f32.mrf.mxu3  ;;  %v4149_v6 = vpack.c.bf16 %v4005_v17, %v4005_v17 }
 0x4be   : > { %v3862_v29 = vmax.f32 %v3826_v58, 0.0  ;;  %v9383_v27 = vadd.f32 %v5245_v63, %v5151_v52  ;;  %v5060_v49 = vpop.f32.mrf.mxu1  ;;  %v4508_v55 = vunpack.c.l.b16 %v4220_v61  ;;  %v4401_v61 = vunpack.c.l.b16 %v4185_v20 }
 0x4bf   : > { %v3697_v56 = vpop.f32.mrf.mxu0  ;;  %v4293_v17 = vunpack.c.l.b16 %v4149_v6  ;;  %v10699_v6 = vld [vmem:[#allocation47_spill] sm:$0xff] }
 0x4c0   : > { %10688 = vst [vmem:[#allocation116_spill] sm:$0xff] %v9383_v27  ;;  %v3934_v2 = vrot.slane %v3862_v29, 7  ;;  %v4042_v41 = vrot.slane %v3862_v29, 1  ;;  %v3698_v50 = vadd.f32 %v3697_v56, %v10691_v51  ;;  %v9388_v62 = vpack.c.b16 %v4508_v55, %v4507_v34  ;;  %v10696_v51 = vld [vmem:[#allocation79_spill] sm:$0xff] }
 0x4c1   : > { %v4186_v45 = vpack.c.bf16 %v3862_v29, %v3862_v29 }
 0x4c2   : > { %v3787_v25 = vadd.f32 %v10692_v21, %v3698_v50  ;;  %v5155_v58 = vpop.f32.mrf.mxu2  ;;  %5287 = vmatmul.bf16.gmra.mxu3 %v9388_v62  ;;  %5623 = vmatmul.bf16.gmra.mxu0 %v9105_v43  ;;  %v3959_v52 = vsel %vm10693_vm15, %v3933_v33, %v3934_v2  ;;  %v4067_v19 = vsel %vm10694_vm7, %v4041_v15, %v4042_v41  ;;  %v10697_v50 = vld [vmem:[#allocation92_spill] sm:$0xff]  ;;  %vm10725_vm15 = vmmov %vm10663_vm4 }
 0x4c3   : > { %v5156_v60 = vadd.f32 %v5155_v58, %v5060_v49  ;;  %v4402_v63 = vunpack.c.l.b16 %v4186_v45  ;;  %v4150_v34 = vpack.c.bf16 %v3959_v52, %v3959_v52  ;;  %v3595_v21 = vadd.f32 %v10697_v50, %v10696_v51 }
 0x4c4   : > { %v3827_v29 = vadd.f32 %v9380_v37, %v3787_v25  ;;  %v4221_v58 = vpack.c.bf16 %v4067_v19, %v4067_v19 }
 0x4c5   : > { %v5248_v55 = vpop.f32.mrf.mxu3  ;;  %v9398_v22 = vpack.c.b16 %v4402_v63, %v4401_v61  ;;  %v4294_v56 = vunpack.c.l.b16 %v4150_v34 }
 0x4c6   : > { %v3863_v27 = vmax.f32 %v3827_v29, 0.0  ;;  %v9402_v11 = vadd.f32 %v5248_v55, %v5154_v13  ;;  %v5063_v33 = vpop.f32.mrf.mxu1  ;;  %v10701_v29 = vld [vmem:[#allocation53_spill] sm:$0xff]  ;;  %v4509_v50 = vunpack.c.l.b16 %v4221_v58 }
 0x4c7   : > { %10695 = vst [vmem:[#allocation117_spill] sm:$0xff] %v9398_v22  ;;  %5197 = vmatmul.bf16.gmra.mxu2 %v9398_v22  ;;  %v3699_v15 = vpop.f32.mrf.mxu0  ;;  %v9405_v49 = vpack.c.b16 %v4294_v56, %v4293_v17  ;;  %vm10702_vm8 = vnez %v10701_v29  ;;  %v6626_v29 = vld [vmem:[#allocation8 + $0xe4] sm:$0xf0] }
 0x4c8   : > { %10698 = vst [vmem:[#allocation69_spill] sm:$0xff] %v9402_v11  ;;  %v3935_v20 = vrot.slane %v3863_v27, 7  ;;  %v4043_v45 = vrot.slane %v3863_v27, 1  ;;  %v3700_v25 = vadd.f32 %v3699_v15, %v3595_v21  ;;  %v4187_v22 = vpack.c.bf16 %v3863_v27, %v3863_v27 }
 0x4c9   : > { %5102 = vmatmul.bf16.gmra.mxu1 %v9405_v49 }
 0x4ca   : > { %v3788_v52 = vadd.f32 %v10699_v6, %v3700_v25  ;;  %v5158_v61 = vpop.f32.mrf.mxu2  ;;  %v4066_v63 = vsel %vm10700_vm14, %v4042_v41, %v4043_v45  ;;  %v3958_v13 = vsel %vm10663_vm4, %v3934_v2, %v3935_v20  ;;  %v10704_v6 = vld [vmem:[#allocation74_spill] sm:$0xff] }
 0x4cb   : > { %v5159_v34 = vadd.f32 %v5158_v61, %v5063_v33  ;;  %v4114_v55 = vsel %vm10702_vm8, %v4066_v63, 0.0  ;;  %vm10705_vm12 = vnez %v10704_v6  ;;  %vm10733_vm8 = vmmov %vm10708_vm0 }
 0x4cc   : > { %v3828_v17 = vadd.f32 %v9380_v37, %v3788_v52  ;;  %v4222_v56 = vpack.c.bf16 %v4114_v55, %v4114_v55  ;;  %v4007_v41 = vsel %vm10705_vm12, %v3958_v13, 0.0  ;;  %v6906_v52 = vld [vmem:[#allocation8 + $0xdc] sm:$0xf]  ;;  %v4403_v13 = vunpack.c.l.b16 %v4187_v22  ;;  %vm10737_vm12 = vmmov %vm10708_vm0 }
 0x4cd   : > { %v5250_v51 = vpop.f32.mrf.mxu3  ;;  %v4151_v58 = vpack.c.bf16 %v4007_v41, %v4007_v41 }
 0x4ce   : > { %v3864_v21 = vmax.f32 %v3828_v17, 0.0  ;;  %v9416_v19 = vadd.f32 %v5250_v51, %v5156_v60  ;;  %v5065_v15 = vpop.f32.mrf.mxu1  ;;  %v4510_v25 = vunpack.c.l.b16 %v4222_v56  ;;  %v6629_v17 = vor.u32 %v6906_v52, %v6626_v29  ;;  %v10706_v60 = vld [vmem:[#allocation100_spill] sm:$0xff] }
 0x4cf   : > { %v3702_v11 = vpop.f32.mrf.mxu0  ;;  %v4295_v41 = vunpack.c.l.b16 %v4151_v58  ;;  %v3600_v52 = vadd.f32 %v9084_v42, %v9074_v23 }
 0x4d0   : > { %10703 = vst [vmem:[#allocation109_spill] sm:$0xff] %v9416_v19  ;;  %v3936_v2 = vrot.slane %v3864_v21, 7  ;;  %v4044_v33 = vrot.slane %v3864_v21, 1  ;;  %v3703_v61 = vadd.f32 %v3702_v11, %v9077_v7  ;;  %v9421_v63 = vpack.c.b16 %v4510_v25, %v4509_v50  ;;  %5425 = vmatpush.bf16.msrb.mxu2 %v6629_v17  ;;  %v6882_v17 = vld [vmem:[#allocation8 + $0x1c] sm:$0xf] }
 0x4d1   : > { %v4188_v55 = vpack.c.bf16 %v3864_v21, %v3864_v21 }
 0x4d2   : > { %v3789_v51 = vadd.f32 %v10706_v60, %v3703_v61  ;;  %v5160_v19 = vpop.f32.mrf.mxu2  ;;  %5292 = vmatmul.bf16.gmra.mxu3 %v9421_v63  ;;  %5628 = vmatmul.bf16.gmra.mxu0 %v9139_v39  ;;  %v3957_v27 = vsel %vm10707_vm9, %v3935_v20, %v3936_v2  ;;  %v4065_v7 = vsel %vm10708_vm0, %v4043_v45, %v4044_v33  ;;  %vm10738_vm9 = vmmov %vm10663_vm4 }
 0x4d3   : > { %v5161_v11 = vadd.f32 %v5160_v19, %v5065_v15  ;;  %v4404_v56 = vunpack.c.l.b16 %v4188_v55  ;;  %v4152_v50 = vpack.c.bf16 %v3957_v27, %v3957_v27  ;;  %v4223_v58 = vpack.c.bf16 %v4065_v7, %v4065_v7 }
 0x4d4   : > { %v3829_v21 = vadd.f32 %v9380_v37, %v3789_v51  ;;  %v6530_v51 = vld [vmem:[#allocation8 + $0x24] sm:$0xf0] }
 0x4d5   : > { %v5253_v25 = vpop.f32.mrf.mxu3  ;;  %v9431_v6 = vpack.c.b16 %v4404_v56, %v4403_v13  ;;  %v4296_v61 = vunpack.c.l.b16 %v4152_v50  ;;  %v6533_v27 = vor.u32 %v6882_v17, %v6530_v51  ;;  %v10710_v13 = vld [vmem:[#allocation101_spill] sm:$0xff]  ;;  %v4511_v7 = vunpack.c.l.b16 %v4223_v58 }
 0x4d6   : > { %v3865_v29 = vmax.f32 %v3829_v21, 0.0  ;;  %v9435_v20 = vadd.f32 %v5253_v25, %v5159_v34  ;;  %v5068_v60 = vpop.f32.mrf.mxu1  ;;  %v10713_v21 = vld [vmem:[#allocation59_spill] sm:$0xff] }
 0x4d7   : > { %5202 = vmatmul.bf16.gmra.mxu2 %v9431_v6  ;;  %v3704_v22 = vpop.f32.mrf.mxu0  ;;  %v9438_v45 = vpack.c.b16 %v4296_v61, %v4295_v41  ;;  %vm10714_vm2 = vnez %v10713_v21  ;;  %5330 = vmatpush.bf16.msrb.mxu1 %v6533_v27 }
 0x4d8   : > { %10709 = vst [vmem:[#allocation71_spill] sm:$0xff] %v9435_v20  ;;  %v3937_v19 = vrot.slane %v3865_v29, 7  ;;  %v4045_v15 = vrot.slane %v3865_v29, 1  ;;  %v3705_v55 = vadd.f32 %v3704_v22, %v3600_v52 }
 0x4d9   : > { %5107 = vmatmul.bf16.gmra.mxu1 %v9438_v45 }
 0x4da   : > { %v3790_v23 = vadd.f32 %v10710_v13, %v3705_v55  ;;  %v5163_v42 = vpop.f32.mrf.mxu2  ;;  %v4064_v34 = vsel %vm10711_vm13, %v4044_v33, %v4045_v15  ;;  %v3956_v56 = vsel %vm10712_vm5, %v3936_v2, %v3937_v19  ;;  %v10716_v13 = vld [vmem:[#allocation82_spill] sm:$0xff]  ;;  %v4189_v2 = vpack.c.bf16 %v3865_v29, %v3865_v29  ;;  %vm10746_vm5 = vmmov %vm10663_vm4 }
 0x4db   : > { %v5164_v50 = vadd.f32 %v5163_v42, %v5068_v60  ;;  %v4116_v25 = vsel %vm10714_vm2, %v4064_v34, 0.0  ;;  %vm10717_vm3 = vnez %v10716_v13  ;;  %vm10747_vm2 = vmmov %vm10724_vm1 }
 0x4dc   : > { %v3830_v41 = vadd.f32 %v9380_v37, %v3790_v23  ;;  %v4224_v61 = vpack.c.bf16 %v4116_v25, %v4116_v25  ;;  %v4009_v33 = vsel %vm10717_vm3, %v3956_v56, 0.0  ;;  %v10718_v25 = vld [vmem:[#allocation51_spill] sm:$0xff]  ;;  %vm10752_vm3 = vmmov %vm10724_vm1 }
 0x4dd   : > { %v5255_v52 = vpop.f32.mrf.mxu3  ;;  %v4153_v21 = vpack.c.bf16 %v4009_v33, %v4009_v33  ;;  %v3605_v33 = vadd.f32 %v9118_v54, %v9108_v30 }
 0x4de   : > { %v3866_v22 = vmax.f32 %v3830_v41, 0.0  ;;  %v9449_v17 = vadd.f32 %v5255_v52, %v5161_v11  ;;  %v5070_v55 = vpop.f32.mrf.mxu1  ;;  %v4512_v51 = vunpack.c.l.b16 %v4224_v61  ;;  %v4405_v61 = vunpack.c.l.b16 %v4189_v2 }
 0x4df   : > { %v3707_v20 = vpop.f32.mrf.mxu0 }
 0x4e0   : > { %10715 = vst [vmem:[#allocation75_spill] sm:$0xff] %v9449_v17  ;;  %v3938_v60 = vrot.slane %v3866_v22, 7  ;;  %v4046_v42 = vrot.slane %v3866_v22, 1  ;;  %v3708_v34 = vadd.f32 %v3707_v20, %v9111_v46  ;;  %v9454_v27 = vpack.c.b16 %v4512_v51, %v4511_v7 }
 0x4e1   : > { %v4190_v23 = vpack.c.bf16 %v3866_v22, %v3866_v22  ;;  %v4297_v51 = vunpack.c.l.b16 %v4153_v21  ;;  %v10723_v21 = vld [vmem:[#allocation28_spill] sm:$0xff] }
 0x4e2   : > { %v3791_v58 = vadd.f32 %v10718_v25, %v3708_v34  ;;  %v5165_v41 = vpop.f32.mrf.mxu2  ;;  %5297 = vmatmul.bf16.gmra.mxu3 %v9454_v27  ;;  %5633 = vmatmul.bf16.gmra.mxu0 %v9173_v10  ;;  %v3955_v11 = vsel %vm10719_vm6, %v3937_v19, %v3938_v60  ;;  %v4063_v29 = vsel %vm10720_vm11, %v4045_v15, %v4046_v42  ;;  %vm10753_vm6 = vmmov %vm10663_vm4 }
 0x4e3   : > { %v5166_v56 = vadd.f32 %v5165_v41, %v5070_v55  ;;  %v4406_v46 = vunpack.c.l.b16 %v4190_v23  ;;  %v4154_v20 = vpack.c.bf16 %v3955_v11, %v3955_v11  ;;  %v4225_v41 = vpack.c.bf16 %v4063_v29, %v4063_v29 }
 0x4e4   : > { %v3831_v52 = vadd.f32 %v9380_v37, %v3791_v58 }
 0x4e5   : > { %v5258_v7 = vpop.f32.mrf.mxu3  ;;  %v9464_v22 = vpack.c.b16 %v4406_v46, %v4405_v61  ;;  %v4298_v13 = vunpack.c.l.b16 %v4154_v20  ;;  %v10726_v46 = vld [vmem:[#allocation68_spill] sm:$0xff] }
 0x4e6   : > { %v3867_v34 = vmax.f32 %v3831_v52, 0.0  ;;  %v9468_v25 = vadd.f32 %v5258_v7, %v5164_v50  ;;  %v5073_v19 = vpop.f32.mrf.mxu1  ;;  %vm10727_vm7 = vnez %v10726_v46 }
 0x4e7   : > { %10721 = vst [vmem:[#allocation125_spill] sm:$0xff] %v9464_v22  ;;  %5207 = vmatmul.bf16.gmra.mxu2 %v9464_v22  ;;  %v3709_v15 = vpop.f32.mrf.mxu0  ;;  %v9471_v55 = vpack.c.b16 %v4298_v13, %v4297_v51  ;;  %v4513_v13 = vunpack.c.l.b16 %v4225_v41 }
 0x4e8   : > { %10722 = vst [vmem:[#allocation121_spill] sm:$0xff] %v9468_v25  ;;  %v3939_v2 = vrot.slane %v3867_v34, 7  ;;  %v4047_v23 = vrot.slane %v3867_v34, 1  ;;  %v3710_v58 = vadd.f32 %v3709_v15, %v3605_v33  ;;  %v4191_v17 = vpack.c.bf16 %v3867_v34, %v3867_v34 }
 0x4e9   : > { %5112 = vmatmul.bf16.gmra.mxu1 %v9471_v55 }
 0x4ea   : > { %v3792_v11 = vadd.f32 %v10723_v21, %v3710_v58  ;;  %v5168_v61 = vpop.f32.mrf.mxu2  ;;  %v4062_v30 = vsel %vm10724_vm1, %v4046_v42, %v4047_v23  ;;  %v3954_v54 = vsel %vm10725_vm15, %v3938_v60, %v3939_v2  ;;  %v10729_v21 = vld [vmem:[#allocation90_spill] sm:$0xff]  ;;  %vm10760_vm15 = vmmov %vm10663_vm4 }
 0x4eb   : > { %v5169_v50 = vadd.f32 %v5168_v61, %v5073_v19  ;;  %v4118_v20 = vsel %vm10727_vm7, %v4062_v30, 0.0  ;;  %vm10730_vm14 = vnez %v10729_v21  ;;  %vm10762_vm7 = vmmov %vm10747_vm2 }
 0x4ec   : > { %v3832_v52 = vadd.f32 %v9380_v37, %v3792_v11  ;;  %v4226_v7 = vpack.c.bf16 %v4118_v20, %v4118_v20  ;;  %v4011_v42 = vsel %vm10730_vm14, %v3954_v54, 0.0  ;;  %v10732_v20 = vld [vmem:[#allocation64_spill] sm:$0xff]  ;;  %vm10763_vm14 = vmmov %vm10747_vm2 }
 0x4ed   : > { %v5260_v51 = vpop.f32.mrf.mxu3  ;;  %v4155_v46 = vpack.c.bf16 %v4011_v42, %v4011_v42 }
 0x4ee   : > { %v3868_v33 = vmax.f32 %v3832_v52, 0.0  ;;  %v9482_v29 = vadd.f32 %v5260_v51, %v5166_v56  ;;  %v5075_v15 = vpop.f32.mrf.mxu1  ;;  %v4514_v58 = vunpack.c.l.b16 %v4226_v7  ;;  %v4407_v7 = vunpack.c.l.b16 %v4191_v17  ;;  %v6903_v51 = vld [vmem:[#allocation8 + $0xc4] sm:$0xf] }
 0x4ef   : > { %v3712_v25 = vpop.f32.mrf.mxu0 }
 0x4f0   : > { %10728 = vst [vmem:[#allocation122_spill] sm:$0xff] %v9482_v29  ;;  %v3940_v60 = vrot.slane %v3868_v33, 7  ;;  %v4048_v19 = vrot.slane %v3868_v33, 1  ;;  %v3713_v61 = vadd.f32 %v3712_v25, %v9145_v16  ;;  %v9487_v30 = vpack.c.b16 %v4514_v58, %v4513_v13  ;;  %v6614_v13 = vld [vmem:[#allocation8 + $0xcc] sm:$0xf0] }
 0x4f1   : > { %v4192_v11 = vpack.c.bf16 %v3868_v33, %v3868_v33  ;;  %v6617_v58 = vor.u32 %v6903_v51, %v6614_v13 }
 0x4f2   : > { %10731 = vst [vmem:[#allocation60_spill] sm:$0xff] %v9487_v30  ;;  %v3793_v41 = vadd.f32 %v10732_v20, %v3713_v61  ;;  %v5170_v52 = vpop.f32.mrf.mxu2  ;;  %5302 = vmatmul.bf16.gmra.mxu3 %v9487_v30  ;;  %5638 = vmatmul.bf16.gmra.mxu0 %v9209_v32  ;;  %v3953_v56 = vsel %vm10663_vm4, %v3939_v2, %v3940_v60  ;;  %v4299_v61 = vunpack.c.l.b16 %v4155_v46 }
 0x4f3   : > { %v4061_v34 = vsel %vm10733_vm8, %v4047_v23, %v4048_v19  ;;  %v5171_v54 = vadd.f32 %v5170_v52, %v5075_v15  ;;  %v4408_v16 = vunpack.c.l.b16 %v4192_v11  ;;  %v4156_v25 = vpack.c.bf16 %v3953_v56, %v3953_v56  ;;  %5426 = vmatpush.bf16.msrb.mxu2 %v6617_v58  ;;  %v6879_v11 = vld [vmem:[#allocation8 + $0x4] sm:$0xf]  ;;  %vm10767_vm8 = vmmov %vm10746_vm5 }
 0x4f4   : > { %v3833_v33 = vadd.f32 %v9380_v37, %v3793_v41  ;;  %v3610_v2 = vadd.f32 %v9152_v36, %v9142_v3  ;;  %v6518_v41 = vld [vmem:[#allocation8 + $0xc] sm:$0xf0]  ;;  %v4227_v46 = vpack.c.bf16 %v4061_v34, %v4061_v34  ;;  %v10736_v3 = vld [vmem:[#allocation30_spill] sm:$0xff] }
 0x4f5   : > { %v5263_v21 = vpop.f32.mrf.mxu3  ;;  %v9497_v42 = vpack.c.b16 %v4408_v16, %v4407_v7  ;;  %v4300_v20 = vunpack.c.l.b16 %v4156_v25  ;;  %v6521_v16 = vor.u32 %v6879_v11, %v6518_v41 }
 0x4f6   : > { %v3869_v29 = vmax.f32 %v3833_v33, 0.0  ;;  %v9501_v30 = vadd.f32 %v5263_v21, %v5169_v50  ;;  %v5078_v23 = vpop.f32.mrf.mxu1  ;;  %v10739_v33 = vld [vmem:[#allocation77_spill] sm:$0xff]  ;;  %v4515_v34 = vunpack.c.l.b16 %v4227_v46 }
 0x4f7   : > { %10734 = vst [vmem:[#allocation34_spill] sm:$0xff] %v9497_v42  ;;  %5212 = vmatmul.bf16.gmra.mxu2 %v9497_v42  ;;  %v3714_v17 = vpop.f32.mrf.mxu0  ;;  %v9504_v15 = vpack.c.b16 %v4300_v20, %v4299_v61  ;;  %vm10740_vm0 = vnez %v10739_v33  ;;  %5331 = vmatpush.bf16.msrb.mxu1 %v6521_v16  ;;  %v6794_v46 = vld [vmem:[#allocation8 + $0x234] sm:$0xf0] }
 0x4f8   : > { %10735 = vst [vmem:[#allocation115_spill] sm:$0xff] %v9501_v30  ;;  %v3941_v52 = vrot.slane %v3869_v29, 7  ;;  %v4049_v56 = vrot.slane %v3869_v29, 1  ;;  %v3715_v7 = vadd.f32 %v3714_v17, %v3610_v2  ;;  %v6782_v30 = vld [vmem:[#allocation8 + $0x21c] sm:$0xf0] }
 0x4f9   : > { %5117 = vmatmul.bf16.gmra.mxu1 %v9504_v15 }
 0x4fa   : > { %v3794_v36 = vadd.f32 %v10736_v3, %v3715_v7  ;;  %v5173_v50 = vpop.f32.mrf.mxu2  ;;  %v4060_v25 = vsel %vm10737_vm12, %v4048_v19, %v4049_v56  ;;  %v3952_v51 = vsel %vm10738_vm9, %v3940_v60, %v3941_v52  ;;  %v10742_v7 = vld [vmem:[#allocation95_spill] sm:$0xff]  ;;  %v4193_v60 = vpack.c.bf16 %v3869_v29, %v3869_v29 }
 0x4fb   : > { %v5174_v13 = vadd.f32 %v5173_v50, %v5078_v23  ;;  %v4120_v58 = vsel %vm10740_vm0, %v4060_v25, 0.0  ;;  %vm10743_vm13 = vnez %v10742_v7 }
 0x4fc   : > { %v3834_v21 = vadd.f32 %v9380_v37, %v3794_v36  ;;  %v4228_v61 = vpack.c.bf16 %v4120_v58, %v4120_v58  ;;  %v4013_v19 = vsel %vm10743_vm13, %v3952_v51, 0.0  ;;  %v6948_v58 = vld [vmem:[#allocation8 + $0x22c] sm:$0xf] }
 0x4fd   : > { %v5265_v20 = vpop.f32.mrf.mxu3  ;;  %v4157_v33 = vpack.c.bf16 %v4013_v19, %v4013_v19  ;;  %v6797_v7 = vor.u32 %v6948_v58, %v6794_v46 }
 0x4fe   : > { %v3870_v2 = vmax.f32 %v3834_v21, 0.0  ;;  %v9515_v17 = vadd.f32 %v5265_v20, %v5171_v54  ;;  %v5080_v11 = vpop.f32.mrf.mxu1  ;;  %v4516_v41 = vunpack.c.l.b16 %v4228_v61  ;;  %v10745_v21 = vld [vmem:[#allocation73_spill] sm:$0xff]  ;;  %v4409_v61 = vunpack.c.l.b16 %v4193_v60 }
 0x4ff   : > { %v3717_v3 = vpop.f32.mrf.mxu0  ;;  %5514 = vmatpush.bf16.msra.mxu3 %v6797_v7 }
 0x500   : > { %10741 = vst [vmem:[#allocation80_spill] sm:$0xff] %v9515_v17  ;;  %v3942_v23 = vrot.slane %v3870_v2, 7  ;;  %v4050_v50 = vrot.slane %v3870_v2, 1  ;;  %v3718_v25 = vadd.f32 %v3717_v3, %v9179_v35  ;;  %v9520_v16 = vpack.c.b16 %v4516_v41, %v4515_v34  ;;  %v6945_v17 = vld [vmem:[#allocation8 + $0x214] sm:$0xf] }
 0x501   : > { %v4194_v36 = vpack.c.bf16 %v3870_v2, %v3870_v2 }
 0x502   : > { %10744 = vst [vmem:[#allocation76_spill] sm:$0xff] %v9520_v16  ;;  %v3795_v54 = vadd.f32 %v10745_v21, %v3718_v25  ;;  %v5175_v20 = vpop.f32.mrf.mxu2  ;;  %5307 = vmatmul.bf16.gmra.mxu3 %v9520_v16  ;;  %5643 = vmatmul.bf16.gmra.mxu0 %v9238_v0  ;;  %v3951_v29 = vsel %vm10746_vm5, %v3941_v52, %v3942_v23  ;;  %v4301_v25 = vunpack.c.l.b16 %v4157_v33  ;;  %v10749_v16 = vld [vmem:[#allocation112_spill] sm:$0xff] }
 0x503   : > { %v4059_v51 = vsel %vm10747_vm2, %v4049_v56, %v4050_v50  ;;  %v5176_v35 = vadd.f32 %v5175_v20, %v5080_v11  ;;  %v4410_v34 = vunpack.c.l.b16 %v4194_v36  ;;  %v4158_v2 = vpack.c.bf16 %v3951_v29, %v3951_v29  ;;  %v10751_v20 = vld [vmem:[#allocation33_spill] sm:$0xff] }
 0x504   : > { %v3835_v41 = vadd.f32 %v9380_v37, %v3795_v54  ;;  %v3615_v52 = vadd.f32 %v10749_v16, %v9176_v44  ;;  %v6785_v11 = vor.u32 %v6945_v17, %v6782_v30  ;;  %v4229_v54 = vpack.c.bf16 %v4059_v51, %v4059_v51  ;;  %v6942_v17 = vld [vmem:[#allocation8 + $0x1fc] sm:$0xf]  ;;  %v6770_v16 = vld [vmem:[#allocation8 + $0x204] sm:$0xf0] }
 0x505   : > { %v5268_v19 = vpop.f32.mrf.mxu3  ;;  %v9530_v3 = vpack.c.b16 %v4410_v34, %v4409_v61  ;;  %v4302_v21 = vunpack.c.l.b16 %v4158_v2  ;;  %v10754_v34 = vld [vmem:[#allocation85_spill] sm:$0xff] }
 0x506   : > { %v3871_v42 = vmax.f32 %v3835_v41, 0.0  ;;  %v9534_v22 = vadd.f32 %v5268_v19, %v5174_v13  ;;  %v5083_v56 = vpop.f32.mrf.mxu1  ;;  %5515 = vmatpush.bf16.msra.mxu3 %v6785_v11  ;;  %vm10755_vm11 = vnez %v10754_v34  ;;  %v6773_v41 = vor.u32 %v6942_v17, %v6770_v16 }
 0x507   : > { %10748 = vst [vmem:[#allocation130_spill] sm:$0xff] %v9530_v3  ;;  %5217 = vmatmul.bf16.gmra.mxu2 %v9530_v3  ;;  %v3719_v60 = vpop.f32.mrf.mxu0  ;;  %v9537_v36 = vpack.c.b16 %v4302_v21, %v4301_v25  ;;  %v4517_v25 = vunpack.c.l.b16 %v4229_v54 }
 0x508   : > { %10750 = vst [vmem:[#allocation127_spill] sm:$0xff] %v9534_v22  ;;  %v3943_v58 = vrot.slane %v3871_v42, 7  ;;  %v4051_v46 = vrot.slane %v3871_v42, 1  ;;  %v3720_v33 = vadd.f32 %v3719_v60, %v3615_v52  ;;  %v4195_v21 = vpack.c.bf16 %v3871_v42, %v3871_v42 }
 0x509   : > { %5122 = vmatmul.bf16.gmra.mxu1 %v9537_v36 }
 0x50a   : > { %v3796_v29 = vadd.f32 %v10751_v20, %v3720_v33  ;;  %v5178_v44 = vpop.f32.mrf.mxu2  ;;  %v4058_v13 = vsel %vm10752_vm3, %v4050_v50, %v4051_v46  ;;  %v3950_v30 = vsel %vm10753_vm6, %v3942_v23, %v3943_v58  ;;  %v10757_v23 = vld [vmem:[#allocation98_spill] sm:$0xff]  ;;  %5516 = vmatpush.bf16.msra.mxu3 %v6773_v41  ;;  %v6758_v20 = vld [vmem:[#allocation8 + $0x1ec] sm:$0xf0]  ;;  %v4411_v54 = vunpack.c.l.b16 %v4195_v21 }
 0x50b   : > { %v5179_v61 = vadd.f32 %v5178_v44, %v5083_v56  ;;  %v4122_v2 = vsel %vm10755_vm11, %v4058_v13, 0.0  ;;  %vm10758_vm1 = vnez %v10757_v23  ;;  %v6939_v56 = vld [vmem:[#allocation8 + $0x1e4] sm:$0xf] }
 0x50c   : > { %v3836_v7 = vadd.f32 %v9380_v37, %v3796_v29  ;;  %v4230_v51 = vpack.c.bf16 %v4122_v2, %v4122_v2  ;;  %v4015_v11 = vsel %vm10758_vm1, %v3950_v30, 0.0  ;;  %v6761_v13 = vor.u32 %v6939_v56, %v6758_v20  ;;  %v10761_v2 = vld [vmem:[#allocation119_spill] sm:$0xff] }
 0x50d   : > { %v5270_v19 = vpop.f32.mrf.mxu3  ;;  %v4159_v42 = vpack.c.bf16 %v4015_v11, %v4015_v11 }
 0x50e   : > { %v3872_v52 = vmax.f32 %v3836_v7, 0.0  ;;  %v9548_v60 = vadd.f32 %v5270_v19, %v5176_v35  ;;  %v5085_v50 = vpop.f32.mrf.mxu1  ;;  %v4518_v33 = vunpack.c.l.b16 %v4230_v51  ;;  %v6936_v51 = vld [vmem:[#allocation8 + $0x1cc] sm:$0xf]  ;;  %v6746_v19 = vld [vmem:[#allocation8 + $0x1d4] sm:$0xf0]  ;;  %5517 = vmatpush.bf16.msra.mxu3 %v6761_v13 }
 0x50f   : > { %v3722_v44 = vpop.f32.mrf.mxu0  ;;  %v4303_v20 = vunpack.c.l.b16 %v4159_v42  ;;  %v6800_v13 = vld [vmem:[#allocation8 + $0x230] sm:$0xf] }
 0x510   : > { %10756 = vst [vmem:[#allocation128_spill] sm:$0xff] %v9548_v60  ;;  %v3944_v17 = vrot.slane %v3872_v52, 7  ;;  %v4052_v16 = vrot.slane %v3872_v52, 1  ;;  %v9552_v37 = vpack.c.b16 %v4518_v33, %v4517_v25  ;;  %v4196_v29 = vpack.c.bf16 %v3872_v52, %v3872_v52  ;;  %v10764_v52 = vld [vmem:[#allocation91_spill] sm:$0xff] }
 0x511   : > { %vm10765_vm4 = vnez %v10764_v52  ;;  %v6749_v60 = vor.u32 %v6936_v51, %v6746_v19  ;;  %v6930_v19 = vld [vmem:[#allocation8 + $0x19c] sm:$0xf] }
 0x512   : > { %10759 = vst [vmem:[#allocation123_spill] sm:$0xff] %v9552_v37  ;;  %v5180_v34 = vpop.f32.mrf.mxu2  ;;  %5312 = vmatmul.bf16.gmra.mxu3 %v9552_v37  ;;  %5648 = vmatmul.bf16.gmra.mxu0 %v9269_v48  ;;  %v4412_v35 = vunpack.c.l.b16 %v4196_v29  ;;  %v3949_v30 = vsel %vm10760_vm15, %v3943_v58, %v3944_v17  ;;  %v4056_v41 = vsel %vm10762_vm7, %v4052_v16, %v10761_v2  ;;  %v6933_v37 = vld [vmem:[#allocation8 + $0x1b4] sm:$0xf] }
 0x513   : > { %v4057_v7 = vsel %vm10763_vm14, %v4051_v46, %v4052_v16  ;;  %v5181_v25 = vadd.f32 %v5180_v34, %v5085_v50  ;;  %v4160_v21 = vpack.c.bf16 %v3949_v30, %v3949_v30  ;;  %v4124_v33 = vsel %vm10765_vm4, %v4056_v41, 0.0  ;;  %v6734_v50 = vld [vmem:[#allocation8 + $0x1bc] sm:$0xf0]  ;;  %5518 = vmatpush.bf16.msra.mxu3 %v6749_v60  ;;  %v6926_v60 = vld [vmem:[#allocation8 + $0x178] sm:$0xf0] }
 0x514   : > { %v4231_v23 = vpack.c.bf16 %v4057_v7, %v4057_v7  ;;  %v9565_v11 = vpack.c.b16 %v4412_v35, %v4411_v54  ;;  %v4232_v56 = vpack.c.bf16 %v4124_v33, %v4124_v33  ;;  %v6950_v54 = vld [vmem:[#allocation8 + $0x238] sm:$0xf0]  ;;  %v6737_v35 = vor.u32 %v6933_v37, %v6734_v50  ;;  %v6704_v33 = vld [vmem:[#allocation8 + $0x170] sm:$0xf] }
 0x515   : > { %v5273_v58 = vpop.f32.mrf.mxu3  ;;  %v4304_v44 = vunpack.c.l.b16 %v4160_v21  ;;  %v6801_v42 = vor.u32 %v6950_v54, %v6800_v13  ;;  %v6722_v21 = vld [vmem:[#allocation8 + $0x1a4] sm:$0xf0] }
 0x516   : > { %v4519_v29 = vunpack.c.l.b16 %v4231_v23  ;;  %v9567_v22 = vadd.f32 %v5273_v58, %v5179_v61  ;;  %v5088_v46 = vpop.f32.mrf.mxu1  ;;  %v4520_v16 = vunpack.c.l.b16 %v4232_v56  ;;  %v10766_v61 = vld [vmem:[#allocation23_spill] sm:$0xff]  ;;  %v6725_v23 = vor.u32 %v6930_v19, %v6722_v21  ;;  %v10768_v56 = vld [vmem:[#allocation104_spill] sm:$0xff]  ;;  %v10771_v19 = vld [vmem:[#allocation26_spill] sm:$0xff] }
 0x517   : > { %5222 = vmatmul.bf16.gmra.mxu2 %v9565_v11  ;;  %v3724_v34 = vpop.f32.mrf.mxu0  ;;  %v9570_v30 = vpack.c.b16 %v4304_v44, %v4303_v20  ;;  %v3948_v7 = vsel %vm10767_vm8, %v3944_v17, %v10766_v61  ;;  %5519 = vmatpush.bf16.msra.mxu3 %v6737_v35  ;;  %vm10769_vm12 = vnez %v10768_v56  ;;  %v6705_v58 = vor.u32 %v6926_v60, %v6704_v33  ;;  %v6710_v17 = vld [vmem:[#allocation8 + $0x18c] sm:$0xf0] }
 0x518   : > { %v9572_v41 = vpack.c.b16 %v4520_v16, %v4519_v29  ;;  %5799 = vmatpush.bf16.msra.mxu2 %v6801_v42  ;;  %v4017_v37 = vsel %vm10769_vm12, %v3948_v7, 0.0  ;;  %v6713_v34 = vor.u32 %v6927_v24, %v6710_v17  ;;  %v10772_v33 = vld [vmem:[#allocation24_spill] sm:$0xff] }
 0x519   : > { %5127 = vmatmul.bf16.gmra.mxu1 %v9570_v30  ;;  %v4161_v50 = vpack.c.bf16 %v4017_v37, %v4017_v37 }
 0x51a   : > { %v5183_v51 = vpop.f32.mrf.mxu2  ;;  %5704 = vmatpush.bf16.msra.mxu1 %v6705_v58 }
 0x51b   : > { %v5184_v52 = vadd.f32 %v5183_v51, %v5088_v46  ;;  %5520 = vmatpush.bf16.msra.mxu3 %v6725_v23  ;;  %v4305_v54 = vunpack.c.l.b16 %v4161_v50 }
 0x51d   : > { %v5275_v20 = vpop.f32.mrf.mxu3  ;;  %v9591_v60 = vpack.c.b16 %v10772_v33, %v4305_v54 }
 0x51e   : > { %v9580_v44 = vadd.f32 %v5275_v20, %v5181_v25  ;;  %v5090_v29 = vpop.f32.mrf.mxu1  ;;  %v4126_v25 = vsel %vm8661_vm10, %v10761_v2, 0.0 }
 0x51f   : > { %v5618_v16 = vpop.f32.mrf.mxu0  ;;  %5521 = vmatpush.bf16.msra.mxu3 %v6713_v34  ;;  %v4234_v51 = vpack.c.bf16 %v4126_v25, %v4126_v25  ;;  %v6788_v25 = vld [vmem:[#allocation8 + $0x218] sm:$0xf] }
 0x521   : > { %v4522_v56 = vunpack.c.l.b16 %v4234_v51 }
 0x522   : > { %v5185_v46 = vpop.f32.mrf.mxu2  ;;  %5317 = vmatmul.bf16.gmra.mxu3 %v9572_v41  ;;  %5653 = vmatmul.bf16.gmra.mxu0 %v9298_v57 }
 0x523   : > { %v5186_v13 = vadd.f32 %v5185_v46, %v5090_v29  ;;  %v10773_v29 = vld [vmem:[#allocation124_spill] sm:$0xff] }
 0x525   : > { %v5278_v42 = vpop.f32.mrf.mxu3 }
 0x526   : > { %v9587_v61 = vadd.f32 %v5278_v42, %v5184_v52  ;;  %v5093_v7 = vpop.f32.mrf.mxu1  ;;  %v9597_v52 = vpack.c.b16 %v4522_v56, %v10773_v29  ;;  %v6947_v42 = vld [vmem:[#allocation8 + $0x220] sm:$0xf0] }
 0x527   : > { %5225 = vmatmul.bf16.gmra.mxu2 %v10771_v19  ;;  %v5619_v21 = vpop.f32.mrf.mxu0  ;;  %v6923_v56 = vld [vmem:[#allocation8 + $0x160] sm:$0xf0] }
 0x529   : > { %5130 = vmatmul.bf16.gmra.mxu1 %v9591_v60 }
 0x52a   : > { %v5188_v23 = vpop.f32.mrf.mxu2 }
 0x52b   : > { %v5189_v37 = vadd.f32 %v5188_v23, %v5093_v7  ;;  %v6789_v7 = vor.u32 %v6947_v42, %v6788_v25  ;;  %v6692_v23 = vld [vmem:[#allocation8 + $0x158] sm:$0xf] }
 0x52d   : > { %v5280_v58 = vpop.f32.mrf.mxu3  ;;  %5800 = vmatpush.bf16.msra.mxu2 %v6789_v7  ;;  %v10777_v7 = vld [vmem:[#allocation107_spill] sm:$0xff] }
 0x52e   : > { %v9594_v20 = vadd.f32 %v5280_v58, %v5186_v13  ;;  %v5095_v2 = vpop.f32.mrf.mxu1 }
 0x52f   : > { %v5621_v24 = vpop.f32.mrf.mxu0 }
 0x532   : > { %v5190_v17 = vpop.f32.mrf.mxu2  ;;  %5320 = vmatmul.bf16.gmra.mxu3 %v9597_v52  ;;  %5658 = vmatmul.bf16.gmra.mxu0 %v9334_v1 }
 0x533   : > { %v5191_v16 = vadd.f32 %v5190_v17, %v5095_v2  ;;  %v10774_v2 = vld [vmem:[#allocation105_spill] sm:$0xff] }
 0x535   : > { %v5283_v50 = vpop.f32.mrf.mxu3 }
 0x536   : > { %v9601_v34 = vadd.f32 %v5283_v50, %v5189_v37  ;;  %v5098_v46 = vpop.f32.mrf.mxu1  ;;  %v6693_v37 = vor.u32 %v6923_v56, %v6692_v23  ;;  %v10775_v50 = vld [vmem:[#allocation106_spill] sm:$0xff]  ;;  %v10779_v56 = vld [vmem:[#allocation96_spill] sm:$0xff] }
 0x537   : > { %5427 = vmatmul.bf16.vlgmr.msrb.gmra.mxu2 %v10771_v19  ;;  %v5622_v54 = vpop.f32.mrf.mxu0 }
 0x538   : > { %5705 = vmatpush.bf16.msra.mxu1 %v6693_v37 }
 0x539   : > { %5332 = vmatmul.bf16.vlgmr.msrb.gmra.mxu1 %v10662_v26 }
 0x53a   : > { %v5193_v13 = vpop.f32.mrf.mxu2 }
 0x53b   : > { %v5194_v35 = vadd.f32 %v5193_v13, %v5098_v46 }
 0x53d   : > { %v5285_v51 = vpop.f32.mrf.mxu3 }
 0x53e   : > { %v9605_v21 = vadd.f32 %v5285_v51, %v5191_v16  ;;  %v5100_v33 = vpop.f32.mrf.mxu1 }
 0x542   : > { %v5195_v58 = vpop.f32.mrf.mxu2  ;;  %5522 = vmatmul.bf16.vlgmr.msra.gmra.mxu3 %v10774_v2  ;;  %5663 = vmatmul.bf16.gmra.mxu0 %v9367_v40 }
 0x543   : > { %v5196_v26 = vadd.f32 %v5195_v58, %v5100_v33 }
 0x545   : > { %v5288_v29 = vpop.f32.mrf.mxu3 }
 0x546   : > { %v9609_v24 = vadd.f32 %v5288_v29, %v5194_v35  ;;  %v5103_v17 = vpop.f32.mrf.mxu1 }
 0x547   : > { %5430 = vmatmul.bf16.gmra.mxu2 %v10775_v50 }
 0x549   : > { %5335 = vmatmul.bf16.gmra.mxu1 %v9071_v4 }
 0x54a   : > { %v5198_v16 = vpop.f32.mrf.mxu2 }
 0x54b   : > { %v5199_v46 = vadd.f32 %v5198_v16, %v5103_v17  ;;  %v6776_v17 = vld [vmem:[#allocation8 + $0x200] sm:$0xf]  ;;  %v6944_v16 = vld [vmem:[#allocation8 + $0x208] sm:$0xf0] }
 0x54d   : > { %v5290_v54 = vpop.f32.mrf.mxu3 }
 0x54e   : > { %v9613_v13 = vadd.f32 %v5290_v54, %v5196_v26  ;;  %v5105_v25 = vpop.f32.mrf.mxu1  ;;  %v6777_v54 = vor.u32 %v6944_v16, %v6776_v17  ;;  %v9629_v17 = vpop.f32.mrf.mxu0 }
 0x54f   : > { %10784 = vst [vmem:[#allocation129_spill] sm:$0xff] %v9629_v17 }
 0x550   : > { %10776 = vst [vmem:[#allocation88_spill] sm:$0xff] %v9613_v13  ;;  %5801 = vmatpush.bf16.msra.mxu2 %v6777_v54 }
 0x552   : > { %v5200_v42 = vpop.f32.mrf.mxu2  ;;  %5525 = vmatmul.bf16.gmra.mxu3 %v10777_v7  ;;  %5668 = vmatmul.bf16.gmra.mxu0 %v9405_v49 }
 0x553   : > { %v5201_v51 = vadd.f32 %v5200_v42, %v5105_v25  ;;  %v10781_v25 = vld [vmem:[#allocation56_spill] sm:$0xff]  ;;  %v6680_v42 = vld [vmem:[#allocation8 + $0x140] sm:$0xf] }
 0x555   : > { %v5293_v33 = vpop.f32.mrf.mxu3 }
 0x556   : > { %v9617_v35 = vadd.f32 %v5293_v33, %v5199_v46  ;;  %v5108_v23 = vpop.f32.mrf.mxu1  ;;  %v6920_v33 = vld [vmem:[#allocation8 + $0x148] sm:$0xf0] }
 0x557   : > { %5435 = vmatmul.bf16.gmra.mxu2 %v10779_v56 }
 0x558   : > { %10778 = vst [vmem:[#allocation134_spill] sm:$0xff] %v9617_v35  ;;  %v6681_v35 = vor.u32 %v6920_v33, %v6680_v42 }
 0x559   : > { %5340 = vmatmul.bf16.gmra.mxu1 %v9105_v43 }
 0x55a   : > { %v5203_v4 = vpop.f32.mrf.mxu2  ;;  %5706 = vmatpush.bf16.msra.mxu1 %v6681_v35  ;;  %v9635_v35 = vpop.f32.mrf.mxu0 }
 0x55b   : > { %v5204_v37 = vadd.f32 %v5203_v4, %v5108_v23  ;;  %10787 = vst [vmem:[#allocation139_spill] sm:$0xff] %v9635_v35 }
 0x55d   : > { %v5295_v58 = vpop.f32.mrf.mxu3 }
 0x55e   : > { %v9621_v26 = vadd.f32 %v5295_v58, %v5201_v51  ;;  %v5110_v29 = vpop.f32.mrf.mxu1  ;;  %v10783_v51 = vld [vmem:[#allocation66_spill] sm:$0xff] }
 0x560   : > { %10780 = vst [vmem:[#allocation132_spill] sm:$0xff] %v9621_v26  ;;  %v10786_v26 = vld [vmem:[#allocation110_spill] sm:$0xff] }
 0x562   : > { %v5205_v13 = vpop.f32.mrf.mxu2  ;;  %5530 = vmatmul.bf16.gmra.mxu3 %v10781_v25  ;;  %5673 = vmatmul.bf16.gmra.mxu0 %v9438_v45 }
 0x563   : > { %v5206_v46 = vadd.f32 %v5205_v13, %v5110_v29 }
 0x565   : > { %v5298_v43 = vpop.f32.mrf.mxu3 }
 0x566   : > { %v9625_v56 = vadd.f32 %v5298_v43, %v5204_v37  ;;  %v5113_v23 = vpop.f32.mrf.mxu1  ;;  %v10789_v43 = vld [vmem:[#allocation111_spill] sm:$0xff] }
 0x567   : > { %5440 = vmatmul.bf16.gmra.mxu2 %v10783_v51 }
 0x568   : > { %10782 = vst [vmem:[#allocation133_spill] sm:$0xff] %v9625_v56 }
 0x569   : > { %5345 = vmatmul.bf16.gmra.mxu1 %v9139_v39 }
 0x56a   : > { %v5208_v4 = vpop.f32.mrf.mxu2 }
 0x56b   : > { %v5209_v58 = vadd.f32 %v5208_v4, %v5113_v23 }
 0x56d   : > { %v5300_v16 = vpop.f32.mrf.mxu3 }
 0x56e   : > { %v9631_v54 = vadd.f32 %v5300_v16, %v5206_v46  ;;  %v5115_v13 = vpop.f32.mrf.mxu1 }
 0x570   : > { %10785 = vst [vmem:[#allocation93_spill] sm:$0xff] %v9631_v54  ;;  %v9643_v54 = vpop.f32.mrf.mxu0 }
 0x571   : > { %10791 = vst [vmem:[#allocation136_spill] sm:$0xff] %v9643_v54 }
 0x572   : > { %v5210_v29 = vpop.f32.mrf.mxu2  ;;  %5535 = vmatmul.bf16.gmra.mxu3 %v10786_v26  ;;  %5678 = vmatmul.bf16.gmra.mxu0 %v9471_v55 }
 0x573   : > { %v5211_v37 = vadd.f32 %v5210_v29, %v5115_v13  ;;  %v6941_v13 = vld [vmem:[#allocation8 + $0x1f0] sm:$0xf0] }
 0x575   : > { %v5303_v42 = vpop.f32.mrf.mxu3 }
 0x576   : > { %v9637_v33 = vadd.f32 %v5303_v42, %v5209_v58  ;;  %v5118_v39 = vpop.f32.mrf.mxu1  ;;  %v6764_v58 = vld [vmem:[#allocation8 + $0x1e8] sm:$0xf] }
 0x577   : > { %5445 = vmatmul.bf16.gmra.mxu2 %v10789_v43  ;;  %v6765_v42 = vor.u32 %v6941_v13, %v6764_v58 }
 0x578   : > { %10788 = vst [vmem:[#allocation137_spill] sm:$0xff] %v9637_v33  ;;  %v9651_v54 = vpop.f32.mrf.mxu0 }
 0x579   : > { %5350 = vmatmul.bf16.gmra.mxu1 %v9173_v10  ;;  %5802 = vmatpush.bf16.msra.mxu2 %v6765_v42  ;;  %10792 = vst [vmem:[#allocation97_spill] sm:$0xff] %v9651_v54 }
 0x57a   : > { %v5213_v23 = vpop.f32.mrf.mxu2 }
 0x57b   : > { %v5214_v46 = vadd.f32 %v5213_v23, %v5118_v39  ;;  %v6917_v23 = vld [vmem:[#allocation8 + $0x130] sm:$0xf0] }
 0x57d   : > { %v5305_v4 = vpop.f32.mrf.mxu3 }
 0x57e   : > { %v9641_v16 = vadd.f32 %v5305_v4, %v5211_v37  ;;  %v5120_v17 = vpop.f32.mrf.mxu1  ;;  %v6668_v37 = vld [vmem:[#allocation8 + $0x128] sm:$0xf] }
 0x57f   : > { %v6669_v4 = vor.u32 %v6917_v23, %v6668_v37 }
 0x580   : > { %10790 = vst [vmem:[#allocation138_spill] sm:$0xff] %v9641_v16 }
 0x581   : > { %5707 = vmatpush.bf16.msra.mxu1 %v6669_v4 }
 0x582   : > { %v5215_v56 = vpop.f32.mrf.mxu2  ;;  %5540 = vmatmul.bf16.gmra.mxu3 %v9194_v14  ;;  %5683 = vmatmul.bf16.gmra.mxu0 %v9504_v15 }
 0x583   : > { %v5216_v29 = vadd.f32 %v5215_v56, %v5120_v17 }
 0x585   : > { %v5308_v35 = vpop.f32.mrf.mxu3 }
 0x586   : > { %v9647_v10 = vadd.f32 %v5308_v35, %v5214_v46  ;;  %v5123_v39 = vpop.f32.mrf.mxu1  ;;  %v9657_v46 = vpop.f32.mrf.mxu0 }
 0x587   : > { %5450 = vmatmul.bf16.gmra.mxu2 %v9204_v53  ;;  %10793 = vst [vmem:[#allocation144_spill] sm:$0xff] %v9657_v46 }
 0x589   : > { %5355 = vmatmul.bf16.gmra.mxu1 %v9209_v32 }
 0x58a   : > { %v5218_v16 = vpop.f32.mrf.mxu2 }
 0x58b   : > { %v5219_v33 = vadd.f32 %v5218_v16, %v5123_v39 }
 0x58d   : > { %v5310_v43 = vpop.f32.mrf.mxu3 }
 0x58e   : > { %v9653_v56 = vadd.f32 %v5310_v43, %v5216_v29  ;;  %v5125_v17 = vpop.f32.mrf.mxu1  ;;  %v9663_v29 = vpop.f32.mrf.mxu0 }
 0x58f   : > { %10794 = vst [vmem:[#allocation141_spill] sm:$0xff] %v9663_v29 }
 0x592   : > { %v5220_v58 = vpop.f32.mrf.mxu2  ;;  %5545 = vmatmul.bf16.gmra.mxu3 %v9223_v47  ;;  %5688 = vmatmul.bf16.gmra.mxu0 %v9537_v36 }
 0x593   : > { %v5221_v35 = vadd.f32 %v5220_v58, %v5125_v17  ;;  %v6752_v17 = vld [vmem:[#allocation8 + $0x1d0] sm:$0xf]  ;;  %v6938_v58 = vld [vmem:[#allocation8 + $0x1d8] sm:$0xf0] }
 0x595   : > { %v5313_v13 = vpop.f32.mrf.mxu3 }
 0x596   : > { %v9659_v42 = vadd.f32 %v5313_v13, %v5219_v33  ;;  %v5128_v32 = vpop.f32.mrf.mxu1  ;;  %v9670_v13 = vpop.f32.mrf.mxu0 }
 0x597   : > { %5455 = vmatmul.bf16.gmra.mxu2 %v9233_v5  ;;  %10795 = vst [vmem:[#allocation143_spill] sm:$0xff] %v9670_v13 }
 0x599   : > { %5360 = vmatmul.bf16.gmra.mxu1 %v9238_v0  ;;  %v6753_v0 = vor.u32 %v6938_v58, %v6752_v17 }
 0x59a   : > { %v5223_v16 = vpop.f32.mrf.mxu2 }
 0x59b   : > { %5803 = vmatpush.bf16.msra.mxu2 %v6753_v0  ;;  %v6914_v16 = vld [vmem:[#allocation8 + $0x118] sm:$0xf0] }
 0x59d   : > { %v5315_v43 = vpop.f32.mrf.mxu3 }
 0x59e   : > { %v9665_v39 = vadd.f32 %v5315_v43, %v5221_v35  ;;  %v5129_v37 = vpop.f32.mrf.mxu1  ;;  %v6656_v35 = vld [vmem:[#allocation8 + $0x110] sm:$0xf]  ;;  %v9673_v29 = vpop.f32.mrf.mxu0 }
 0x59f   : > { %v6657_v43 = vor.u32 %v6914_v16, %v6656_v35  ;;  %10796 = vst [vmem:[#allocation142_spill] sm:$0xff] %v9673_v29 }
 0x5a1   : > { %5708 = vmatpush.bf16.msra.mxu1 %v6657_v43 }
 0x5a2   : > { %v5224_v23 = vpop.f32.mrf.mxu2  ;;  %5550 = vmatmul.bf16.gmra.mxu3 %v9254_v9  ;;  %5693 = vmatmul.bf16.gmra.mxu0 %v9570_v30 }
 0x5a5   : > { %v5318_v4 = vpop.f32.mrf.mxu3 }
 0x5a6   : > { %v5131_v33 = vpop.f32.mrf.mxu1 }
 0x5a7   : > { %5460 = vmatmul.bf16.gmra.mxu2 %v9264_v8 }
 0x5a9   : > { %5365 = vmatmul.bf16.gmra.mxu1 %v9269_v48 }
 0x5aa   : > { %v5226_v32 = vpop.f32.mrf.mxu2 }
 0x5ad   : > { %v5319_v37 = vpop.f32.mrf.mxu3 }
 0x5ae   : > { %v5132_v23 = vpop.f32.mrf.mxu1  ;;  %v6740_v37 = vld [vmem:[#allocation8 + $0x1b8] sm:$0xf] }
 0x5b2   : > { %v5227_v4 = vpop.f32.mrf.mxu2  ;;  %5555 = vmatmul.bf16.gmra.mxu3 %v9283_v28  ;;  %5698 = vmatmul.bf16.gmra.mxu0 %v9591_v60 }
 0x5b5   : > { %v5321_v33 = vpop.f32.mrf.mxu3 }
 0x5b6   : > { %v5333_v13 = vpop.f32.mrf.mxu1 }
 0x5b7   : > { %5465 = vmatmul.bf16.gmra.mxu2 %v9293_v12  ;;  %v6935_v13 = vld [vmem:[#allocation8 + $0x1c0] sm:$0xf0] }
 0x5b8   : > { %v6741_v23 = vor.u32 %v6935_v13, %v6740_v37  ;;  %v10799_v13 = vld [vmem:[#allocation31_spill] sm:$0xff] }
 0x5b9   : > { %5370 = vmatmul.bf16.gmra.mxu1 %v9298_v57  ;;  %v6644_v57 = vld [vmem:[#allocation8 + $0xf8] sm:$0xf] }
 0x5ba   : > { %v5428_v48 = vpop.f32.mrf.mxu2  ;;  %5804 = vmatpush.bf16.msra.mxu2 %v6741_v23  ;;  %v10800_v23 = vld [vmem:[#allocation102_spill] sm:$0xff] }
 0x5bb   : > { %v6911_v48 = vld [vmem:[#allocation8 + $0x100] sm:$0xf0] }
 0x5bd   : > { %v5322_v17 = vpop.f32.mrf.mxu3 }
 0x5be   : > { %v5334_v58 = vpop.f32.mrf.mxu1  ;;  %v6645_v17 = vor.u32 %v6911_v48, %v6644_v57  ;;  %v10801_v48 = vld [vmem:[#allocation67_spill] sm:$0xff] }
 0x5c0   : > { %5709 = vmatpush.bf16.msra.mxu1 %v6645_v17 }
 0x5c2   : > { %v5429_v0 = vpop.f32.mrf.mxu2  ;;  %5560 = vmatmul.bf16.gmra.mxu3 %v9314_v31 }
 0x5c5   : > { %v5523_v32 = vpop.f32.mrf.mxu3 }
 0x5c6   : > { %v5336_v35 = vpop.f32.mrf.mxu1 }
 0x5c7   : > { %5470 = vmatmul.bf16.gmra.mxu2 %v9326_v18 }
 0x5c9   : > { %5375 = vmatmul.bf16.gmra.mxu1 %v9334_v1  ;;  %v10797_v1 = vld [vmem:[#allocation62_spill] sm:$0xff] }
 0x5ca   : > { %v5431_v16 = vpop.f32.mrf.mxu2 }
 0x5cb   : > { %v5432_v43 = vadd.f32 %v5431_v16, %v5336_v35 }
 0x5cd   : > { %v5524_v4 = vpop.f32.mrf.mxu3 }
 0x5ce   : > { %v5338_v33 = vpop.f32.mrf.mxu1  ;;  %v5146_v4 = vadd.f32 %v10800_v23, %v10799_v13 }
 0x5d0   : > { %v5241_v54 = vadd.f32 %v10801_v48, %v5146_v4 }
 0x5d2   : > { %v5433_v58 = vpop.f32.mrf.mxu2  ;;  %5565 = vmatmul.bf16.gmra.mxu3 %v9350_v38 }
 0x5d3   : > { %v5434_v0 = vadd.f32 %v5433_v58, %v5338_v33 }
 0x5d5   : > { %v5526_v32 = vpop.f32.mrf.mxu3 }
 0x5d6   : > { %v5527_v29 = vadd.f32 %v5526_v32, %v5432_v43  ;;  %v5341_v46 = vpop.f32.mrf.mxu1 }
 0x5d7   : > { %5475 = vmatmul.bf16.gmra.mxu2 %v9360_v59 }
 0x5d8   : > { %v9685_v35 = vadd.f32 %v5527_v29, %v10797_v1 }
 0x5d9   : > { %5380 = vmatmul.bf16.gmra.mxu1 %v9367_v40  ;;  %v10802_v40 = vld [vmem:[#allocation117_spill] sm:$0xff] }
 0x5da   : > { %10798 = vst [vmem:[#allocation103_spill] sm:$0xff] %v9685_v35  ;;  %v5436_v16 = vpop.f32.mrf.mxu2 }
 0x5db   : > { %v5437_v37 = vadd.f32 %v5436_v16, %v5341_v46  ;;  %v10803_v46 = vld [vmem:[#allocation114_spill] sm:$0xff] }
 0x5dd   : > { %v5528_v57 = vpop.f32.mrf.mxu3 }
 0x5de   : > { %v5529_v33 = vadd.f32 %v5528_v57, %v5434_v0  ;;  %v5343_v17 = vpop.f32.mrf.mxu1  ;;  %v10805_v57 = vld [vmem:[#allocation116_spill] sm:$0xff] }
 0x5e0   : > { %v9691_v58 = vadd.f32 %v5529_v33, %v5241_v54  ;;  %v6728_v33 = vld [vmem:[#allocation8 + $0x1a0] sm:$0xf] }
 0x5e2   : > { %v5438_v43 = vpop.f32.mrf.mxu2  ;;  %5570 = vmatmul.bf16.gmra.mxu3 %v9388_v62 }
 0x5e3   : > { %v5439_v32 = vadd.f32 %v5438_v43, %v5343_v17  ;;  %v6932_v17 = vld [vmem:[#allocation8 + $0x1a8] sm:$0xf0] }
 0x5e4   : > { %v6729_v43 = vor.u32 %v6932_v17, %v6728_v33  ;;  %v10808_v17 = vld [vmem:[#allocation109_spill] sm:$0xff] }
 0x5e5   : > { %v5531_v29 = vpop.f32.mrf.mxu3 }
 0x5e6   : > { %v5532_v1 = vadd.f32 %v5531_v29, %v5437_v37  ;;  %v5346_v35 = vpop.f32.mrf.mxu1  ;;  %5805 = vmatpush.bf16.msra.mxu2 %v6729_v43 }
 0x5e7   : > { %5480 = vmatmul.bf16.gmra.mxu2 %v10802_v40 }
 0x5e8   : > { %v9696_v16 = vadd.f32 %v5532_v1, %v10803_v46  ;;  %v6632_v1 = vld [vmem:[#allocation8 + $0xe0] sm:$0xf]  ;;  %v6908_v46 = vld [vmem:[#allocation8 + $0xe8] sm:$0xf0] }
 0x5e9   : > { %5385 = vmatmul.bf16.gmra.mxu1 %v9405_v49 }
 0x5ea   : > { %10804 = vst [vmem:[#allocation148_spill] sm:$0xff] %v9696_v16  ;;  %v5441_v13 = vpop.f32.mrf.mxu2  ;;  %v6633_v16 = vor.u32 %v6908_v46, %v6632_v1 }
 0x5eb   : > { %v5442_v23 = vadd.f32 %v5441_v13, %v5346_v35 }
 0x5ec   : > { %5710 = vmatpush.bf16.msra.mxu1 %v6633_v16 }
 0x5ed   : > { %v5533_v0 = vpop.f32.mrf.mxu3 }
 0x5ee   : > { %v5534_v4 = vadd.f32 %v5533_v0, %v5439_v32  ;;  %v5348_v54 = vpop.f32.mrf.mxu1  ;;  %v10806_v32 = vld [vmem:[#allocation69_spill] sm:$0xff] }
 0x5f0   : > { %v9700_v48 = vadd.f32 %v5534_v4, %v10805_v57 }
 0x5f2   : > { %v5443_v37 = vpop.f32.mrf.mxu2  ;;  %5575 = vmatmul.bf16.gmra.mxu3 %v9421_v63 }
 0x5f3   : > { %v5444_v29 = vadd.f32 %v5443_v37, %v5348_v54 }
 0x5f5   : > { %v5536_v49 = vpop.f32.mrf.mxu3 }
 0x5f6   : > { %v5537_v40 = vadd.f32 %v5536_v49, %v5442_v23  ;;  %v5351_v35 = vpop.f32.mrf.mxu1  ;;  %v10810_v49 = vld [vmem:[#allocation125_spill] sm:$0xff] }
 0x5f7   : > { %5485 = vmatmul.bf16.gmra.mxu2 %v9431_v6 }
 0x5f8   : > { %v9705_v13 = vadd.f32 %v5537_v40, %v10806_v32  ;;  %v10811_v40 = vld [vmem:[#allocation71_spill] sm:$0xff] }
 0x5f9   : > { %5390 = vmatmul.bf16.gmra.mxu1 %v9438_v45 }
 0x5fa   : > { %10807 = vst [vmem:[#allocation146_spill] sm:$0xff] %v9705_v13  ;;  %v5446_v0 = vpop.f32.mrf.mxu2 }
 0x5fb   : > { %v5447_v4 = vadd.f32 %v5446_v0, %v5351_v35 }
 0x5fd   : > { %v5538_v57 = vpop.f32.mrf.mxu3 }
 0x5fe   : > { %v5539_v33 = vadd.f32 %v5538_v57, %v5444_v29  ;;  %v5353_v54 = vpop.f32.mrf.mxu1 }
 0x600   : > { %v9709_v43 = vadd.f32 %v5539_v33, %v10808_v17  ;;  %v10812_v33 = vld [vmem:[#allocation75_spill] sm:$0xff] }
 0x602   : > { %10809 = vst [vmem:[#allocation147_spill] sm:$0xff] %v9709_v43  ;;  %v5448_v37 = vpop.f32.mrf.mxu2  ;;  %5580 = vmatmul.bf16.gmra.mxu3 %v9454_v27 }
 0x603   : > { %v5449_v23 = vadd.f32 %v5448_v37, %v5353_v54  ;;  %v10814_v54 = vld [vmem:[#allocation60_spill] sm:$0xff]  ;;  %v6716_v37 = vld [vmem:[#allocation8 + $0x188] sm:$0xf] }
 0x605   : > { %v5541_v16 = vpop.f32.mrf.mxu3 }
 0x606   : > { %v5542_v1 = vadd.f32 %v5541_v16, %v5447_v4  ;;  %v5356_v46 = vpop.f32.mrf.mxu1  ;;  %v6929_v16 = vld [vmem:[#allocation8 + $0x190] sm:$0xf0] }
 0x607   : > { %5490 = vmatmul.bf16.gmra.mxu2 %v10810_v49  ;;  %v6717_v49 = vor.u32 %v6929_v16, %v6716_v37  ;;  %v10818_v16 = vld [vmem:[#allocation122_spill] sm:$0xff] }
 0x608   : > { %v9714_v32 = vadd.f32 %v5542_v1, %v10811_v40 }
 0x609   : > { %5395 = vmatmul.bf16.gmra.mxu1 %v9471_v55  ;;  %5806 = vmatpush.bf16.msra.mxu2 %v6717_v49  ;;  %v10815_v55 = vld [vmem:[#allocation34_spill] sm:$0xff] }
 0x60a   : > { %v5451_v45 = vpop.f32.mrf.mxu2 }
 0x60b   : > { %v5452_v29 = vadd.f32 %v5451_v45, %v5356_v46  ;;  %v10816_v46 = vld [vmem:[#allocation121_spill] sm:$0xff] }
 0x60d   : > { %v5543_v35 = vpop.f32.mrf.mxu3 }
 0x60e   : > { %v5544_v0 = vadd.f32 %v5543_v35, %v5449_v23  ;;  %v5358_v57 = vpop.f32.mrf.mxu1  ;;  %v6620_v23 = vld [vmem:[#allocation8 + $0xc8] sm:$0xf]  ;;  %v6905_v35 = vld [vmem:[#allocation8 + $0xd0] sm:$0xf0] }
 0x610   : > { %v9718_v17 = vadd.f32 %v5544_v0, %v10812_v33  ;;  %v6621_v0 = vor.u32 %v6905_v35, %v6620_v23 }
 0x612   : > { %10813 = vst [vmem:[#allocation108_spill] sm:$0xff] %v9718_v17  ;;  %v5453_v43 = vpop.f32.mrf.mxu2  ;;  %5585 = vmatmul.bf16.gmra.mxu3 %v10814_v54  ;;  %5711 = vmatpush.bf16.msra.mxu1 %v6621_v0 }
 0x613   : > { %v5454_v4 = vadd.f32 %v5453_v43, %v5358_v57 }
 0x615   : > { %v5546_v13 = vpop.f32.mrf.mxu3 }
 0x616   : > { %v5547_v1 = vadd.f32 %v5546_v13, %v5452_v29  ;;  %v5361_v40 = vpop.f32.mrf.mxu1  ;;  %v10819_v29 = vld [vmem:[#allocation76_spill] sm:$0xff] }
 0x617   : > { %5495 = vmatmul.bf16.gmra.mxu2 %v10815_v55 }
 0x618   : > { %v9723_v45 = vadd.f32 %v5547_v1, %v10816_v46 }
 0x619   : > { %5400 = vmatmul.bf16.gmra.mxu1 %v9504_v15  ;;  %v10820_v15 = vld [vmem:[#allocation115_spill] sm:$0xff] }
 0x61a   : > { %10817 = vst [vmem:[#allocation150_spill] sm:$0xff] %v9723_v45  ;;  %v5456_v33 = vpop.f32.mrf.mxu2 }
 0x61b   : > { %v5457_v17 = vadd.f32 %v5456_v33, %v5361_v40 }
 0x61d   : > { %v5548_v43 = vpop.f32.mrf.mxu3 }
 0x61e   : > { %v5549_v57 = vadd.f32 %v5548_v43, %v5454_v4  ;;  %v5363_v37 = vpop.f32.mrf.mxu1  ;;  %v10821_v43 = vld [vmem:[#allocation80_spill] sm:$0xff] }
 0x620   : > { %v9727_v13 = vadd.f32 %v5549_v57, %v10818_v16 }
 0x622   : > { %v5458_v49 = vpop.f32.mrf.mxu2  ;;  %5590 = vmatmul.bf16.gmra.mxu3 %v10819_v29 }
 0x623   : > { %v5459_v55 = vadd.f32 %v5458_v49, %v5363_v37  ;;  %v10823_v37 = vld [vmem:[#allocation123_spill] sm:$0xff] }
 0x625   : > { %v5551_v1 = vpop.f32.mrf.mxu3 }
 0x626   : > { %v5552_v46 = vadd.f32 %v5551_v1, %v5457_v17  ;;  %v5366_v45 = vpop.f32.mrf.mxu1 }
 0x627   : > { %5500 = vmatmul.bf16.gmra.mxu2 %v9530_v3 }
 0x628   : > { %v9732_v23 = vadd.f32 %v5552_v46, %v10820_v15  ;;  %v10824_v46 = vld [vmem:[#allocation127_spill] sm:$0xff] }
 0x629   : > { %5405 = vmatmul.bf16.gmra.mxu1 %v9537_v36 }
 0x62a   : > { %v5461_v40 = vpop.f32.mrf.mxu2 }
 0x62b   : > { %v5462_v4 = vadd.f32 %v5461_v40, %v5366_v45 }
 0x62d   : > { %v5553_v35 = vpop.f32.mrf.mxu3 }
 0x62e   : > { %v5554_v0 = vadd.f32 %v5553_v35, %v5459_v55  ;;  %v5368_v33 = vpop.f32.mrf.mxu1 }
 0x630   : > { %v9736_v57 = vadd.f32 %v5554_v0, %v10821_v43  ;;  %v10825_v0 = vld [vmem:[#allocation128_spill] sm:$0xff] }
 0x632   : > { %10822 = vst [vmem:[#allocation113_spill] sm:$0xff] %v9736_v57  ;;  %v5463_v16 = vpop.f32.mrf.mxu2  ;;  %5595 = vmatmul.bf16.gmra.mxu3 %v10823_v37 }
 0x633   : > { %v5464_v17 = vadd.f32 %v5463_v16, %v5368_v33 }
 0x635   : > { %v5556_v49 = vpop.f32.mrf.mxu3 }
 0x636   : > { %v5557_v1 = vadd.f32 %v5556_v49, %v5462_v4  ;;  %v5371_v3 = vpop.f32.mrf.mxu1 }
 0x637   : > { %5505 = vmatmul.bf16.gmra.mxu2 %v9565_v11 }
 0x638   : > { %v9741_v15 = vadd.f32 %v5557_v1, %v10824_v46 }
 0x639   : > { %5410 = vmatmul.bf16.gmra.mxu1 %v9570_v30 }
 0x63a   : > { %v5466_v36 = vpop.f32.mrf.mxu2 }
 0x63b   : > { %v5467_v55 = vadd.f32 %v5466_v36, %v5371_v3 }
 0x63d   : > { %v5558_v45 = vpop.f32.mrf.mxu3 }
 0x63e   : > { %v5559_v40 = vadd.f32 %v5558_v45, %v5464_v17  ;;  %v5373_v35 = vpop.f32.mrf.mxu1 }
 0x640   : > { %v9745_v43 = vadd.f32 %v5559_v40, %v10825_v0 }
 0x642   : > { %v5468_v57 = vpop.f32.mrf.mxu2  ;;  %5600 = vmatmul.bf16.gmra.mxu3 %v9572_v41 }
 0x643   : > { %v5469_v4 = vadd.f32 %v5468_v57, %v5373_v35 }
 0x645   : > { %v5561_v33 = vpop.f32.mrf.mxu3 }
 0x646   : > { %v5562_v16 = vadd.f32 %v5561_v33, %v5467_v55  ;;  %v5376_v49 = vpop.f32.mrf.mxu1 }
 0x647   : > { %5510 = vmatmul.bf16.gmra.mxu2 %v10771_v19 }
 0x648   : > { %v9750_v1 = vadd.f32 %v5562_v16, %v9567_v22 }
 0x649   : > { %5415 = vmatmul.bf16.gmra.mxu1 %v9591_v60 }
 0x64a   : > { %v5471_v3 = vpop.f32.mrf.mxu2 }
 0x64b   : > { %v5472_v30 = vadd.f32 %v5471_v3, %v5376_v49 }
 0x64d   : > { %v5563_v17 = vpop.f32.mrf.mxu3 }
 0x64e   : > { %v5564_v46 = vadd.f32 %v5563_v17, %v5469_v4  ;;  %v5378_v36 = vpop.f32.mrf.mxu1 }
 0x650   : > { %v9754_v45 = vadd.f32 %v5564_v46, %v9580_v44 }
 0x652   : > { %v5473_v40 = vpop.f32.mrf.mxu2  ;;  %5605 = vmatmul.bf16.gmra.mxu3 %v9597_v52 }
 0x653   : > { %v5474_v57 = vadd.f32 %v5473_v40, %v5378_v36 }
 0x655   : > { %v5566_v55 = vpop.f32.mrf.mxu3 }
 0x656   : > { %v5567_v35 = vadd.f32 %v5566_v55, %v5472_v30  ;;  %v5381_v0 = vpop.f32.mrf.mxu1 }
 0x657   : > { %5807 = vmatmul.bf16.vlgmr.msra.gmra.mxu2 %v10774_v2 }
 0x658   : > { %v9759_v22 = vadd.f32 %v5567_v35, %v9587_v61 }
 0x659   : > { %5712 = vmatmul.bf16.vlgmr.msra.gmra.mxu1 %v10771_v19 }
 0x65a   : > { %v5476_v60 = vpop.f32.mrf.mxu2 }
 0x65b   : > { %v5477_v4 = vadd.f32 %v5476_v60, %v5381_v0 }
 0x65d   : > { %v5568_v33 = vpop.f32.mrf.mxu3 }
 0x65e   : > { %v5569_v16 = vadd.f32 %v5568_v33, %v5474_v57  ;;  %v5383_v44 = vpop.f32.mrf.mxu1 }
 0x660   : > { %v9763_v49 = vadd.f32 %v5569_v16, %v9594_v20 }
 0x662   : > { %v5478_v3 = vpop.f32.mrf.mxu2 }
 0x663   : > { %v5479_v17 = vadd.f32 %v5478_v3, %v5383_v44 }
 0x665   : > { %v5571_v46 = vpop.f32.mrf.mxu3 }
 0x666   : > { %v5572_v30 = vadd.f32 %v5571_v46, %v5477_v4  ;;  %v5386_v36 = vpop.f32.mrf.mxu1 }
 0x667   : > { %5810 = vmatmul.bf16.gmra.mxu2 %v10777_v7  ;;  %v10826_v7 = vld [vmem:[#allocation96_spill] sm:$0xff] }
 0x668   : > { %v9767_v61 = vadd.f32 %v5572_v30, %v9601_v34  ;;  %v10827_v30 = vld [vmem:[#allocation88_spill] sm:$0xff] }
 0x669   : > { %5715 = vmatmul.bf16.gmra.mxu1 %v10775_v50 }
 0x66a   : > { %v5481_v2 = vpop.f32.mrf.mxu2 }
 0x66b   : > { %v5482_v40 = vadd.f32 %v5481_v2, %v5386_v36 }
 0x66d   : > { %v5573_v55 = vpop.f32.mrf.mxu3 }
 0x66e   : > { %v5574_v57 = vadd.f32 %v5573_v55, %v5479_v17  ;;  %v5388_v35 = vpop.f32.mrf.mxu1 }
 0x670   : > { %v9771_v20 = vadd.f32 %v5574_v57, %v9605_v21 }
 0x672   : > { %v5483_v0 = vpop.f32.mrf.mxu2 }
 0x673   : > { %v5484_v60 = vadd.f32 %v5483_v0, %v5388_v35 }
 0x675   : > { %v5576_v33 = vpop.f32.mrf.mxu3 }
 0x676   : > { %v5577_v4 = vadd.f32 %v5576_v33, %v5482_v40  ;;  %v5391_v16 = vpop.f32.mrf.mxu1 }
 0x677   : > { %5813 = vmatmul.bf16.gmra.mxu2 %v10781_v25  ;;  %v10828_v25 = vld [vmem:[#allocation134_spill] sm:$0xff] }
 0x678   : > { %v9775_v34 = vadd.f32 %v5577_v4, %v9609_v24 }
 0x679   : > { %5718 = vmatmul.bf16.gmra.mxu1 %v10826_v7 }
 0x67a   : > { %v5486_v50 = vpop.f32.mrf.mxu2 }
 0x67b   : > { %v5487_v44 = vadd.f32 %v5486_v50, %v5391_v16  ;;  %v10829_v16 = vld [vmem:[#allocation132_spill] sm:$0xff] }
 0x67d   : > { %v5578_v3 = vpop.f32.mrf.mxu3 }
 0x67e   : > { %v5579_v17 = vadd.f32 %v5578_v3, %v5484_v60  ;;  %v5393_v46 = vpop.f32.mrf.mxu1 }
 0x680   : > { %v9779_v21 = vadd.f32 %v5579_v17, %v10827_v30 }
 0x682   : > { %v5488_v36 = vpop.f32.mrf.mxu2 }
 0x683   : > { %v5489_v2 = vadd.f32 %v5488_v36, %v5393_v46  ;;  %v10831_v36 = vld [vmem:[#allocation111_spill] sm:$0xff] }
 0x685   : > { %v5581_v55 = vpop.f32.mrf.mxu3 }
 0x686   : > { %v5582_v40 = vadd.f32 %v5581_v55, %v5487_v44  ;;  %v5396_v57 = vpop.f32.mrf.mxu1 }
 0x687   : > { %5818 = vmatmul.bf16.gmra.mxu2 %v10786_v26  ;;  %v10830_v26 = vld [vmem:[#allocation133_spill] sm:$0xff] }
 0x688   : > { %v9783_v24 = vadd.f32 %v5582_v40, %v10828_v25  ;;  %v10832_v25 = vld [vmem:[#allocation93_spill] sm:$0xff] }
 0x689   : > { %5723 = vmatmul.bf16.gmra.mxu1 %v10783_v51 }
 0x68a   : > { %v5491_v35 = vpop.f32.mrf.mxu2 }
 0x68b   : > { %v5492_v0 = vadd.f32 %v5491_v35, %v5396_v57 }
 0x68d   : > { %v5583_v33 = vpop.f32.mrf.mxu3 }
 0x68e   : > { %v5584_v60 = vadd.f32 %v5583_v33, %v5489_v2  ;;  %v5398_v4 = vpop.f32.mrf.mxu1 }
 0x690   : > { %v9787_v7 = vadd.f32 %v5584_v60, %v10829_v16 }
 0x692   : > { %v5493_v50 = vpop.f32.mrf.mxu2 }
 0x693   : > { %v5494_v3 = vadd.f32 %v5493_v50, %v5398_v4 }
 0x695   : > { %v5586_v17 = vpop.f32.mrf.mxu3 }
 0x696   : > { %v5587_v44 = vadd.f32 %v5586_v17, %v5492_v0  ;;  %v5401_v46 = vpop.f32.mrf.mxu1 }
 0x697   : > { %5823 = vmatmul.bf16.gmra.mxu2 %v9194_v14  ;;  %v10833_v14 = vld [vmem:[#allocation137_spill] sm:$0xff] }
 0x698   : > { %v9791_v30 = vadd.f32 %v5587_v44, %v10830_v26 }
 0x699   : > { %5728 = vmatmul.bf16.gmra.mxu1 %v10831_v36  ;;  %v10834_v36 = vld [vmem:[#allocation138_spill] sm:$0xff] }
 0x69a   : > { %v5496_v51 = vpop.f32.mrf.mxu2 }
 0x69b   : > { %v5497_v55 = vadd.f32 %v5496_v51, %v5401_v46 }
 0x69d   : > { %v5588_v40 = vpop.f32.mrf.mxu3 }
 0x69e   : > { %v5589_v2 = vadd.f32 %v5588_v40, %v5494_v3  ;;  %v5403_v57 = vpop.f32.mrf.mxu1 }
 0x6a0   : > { %v9795_v35 = vadd.f32 %v5589_v2, %v10832_v25 }
 0x6a2   : > { %v5498_v33 = vpop.f32.mrf.mxu2 }
 0x6a3   : > { %v5499_v60 = vadd.f32 %v5498_v33, %v5403_v57 }
 0x6a5   : > { %v5591_v4 = vpop.f32.mrf.mxu3 }
 0x6a6   : > { %v5592_v0 = vadd.f32 %v5591_v4, %v5497_v55  ;;  %v5406_v16 = vpop.f32.mrf.mxu1 }
 0x6a7   : > { %5828 = vmatmul.bf16.gmra.mxu2 %v9223_v47 }
 0x6a8   : > { %v9799_v50 = vadd.f32 %v5592_v0, %v10833_v14 }
 0x6a9   : > { %5733 = vmatmul.bf16.gmra.mxu1 %v9204_v53 }
 0x6aa   : > { %v5501_v17 = vpop.f32.mrf.mxu2 }
 0x6ab   : > { %v5502_v44 = vadd.f32 %v5501_v17, %v5406_v16 }
 0x6ad   : > { %v5593_v46 = vpop.f32.mrf.mxu3 }
 0x6ae   : > { %v5594_v3 = vadd.f32 %v5593_v46, %v5499_v60  ;;  %v5408_v26 = vpop.f32.mrf.mxu1 }
 0x6b0   : > { %v9803_v51 = vadd.f32 %v5594_v3, %v10834_v36 }
 0x6b2   : > { %v5503_v40 = vpop.f32.mrf.mxu2 }
 0x6b3   : > { %v5504_v2 = vadd.f32 %v5503_v40, %v5408_v26 }
 0x6b5   : > { %v5596_v57 = vpop.f32.mrf.mxu3 }
 0x6b6   : > { %v5597_v55 = vadd.f32 %v5596_v57, %v5502_v44  ;;  %v5411_v25 = vpop.f32.mrf.mxu1 }
 0x6b7   : > { %5833 = vmatmul.bf16.gmra.mxu2 %v9254_v9 }
 0x6b8   : > { %v9807_v47 = vadd.f32 %v5597_v55, %v9647_v10 }
 0x6b9   : > { %5738 = vmatmul.bf16.gmra.mxu1 %v9233_v5 }
 0x6ba   : > { %v5506_v53 = vpop.f32.mrf.mxu2 }
 0x6bb   : > { %v5507_v33 = vadd.f32 %v5506_v53, %v5411_v25 }
 0x6bd   : > { %v5598_v4 = vpop.f32.mrf.mxu3 }
 0x6be   : > { %v5599_v60 = vadd.f32 %v5598_v4, %v5504_v2  ;;  %v5413_v0 = vpop.f32.mrf.mxu1 }
 0x6c0   : > { %v9811_v16 = vadd.f32 %v5599_v60, %v9653_v56  ;;  %v10835_v60 = vld [vmem:[#allocation129_spill] sm:$0xff] }
 0x6c2   : > { %v5508_v14 = vpop.f32.mrf.mxu2 }
 0x6c3   : > { %v5509_v17 = vadd.f32 %v5508_v14, %v5413_v0  ;;  %v9831_v14 = vld [vmem:[%s9999_s7] ss:$0 sm:$0xff] }
 0x6c5   : > { %v5601_v46 = vpop.f32.mrf.mxu3 }
 0x6c6   : > { %v5602_v44 = vadd.f32 %v5601_v46, %v5507_v33  ;;  %v5416_v3 = vpop.f32.mrf.mxu1 }
 0x6c7   : > { %5838 = vmatmul.bf16.gmra.mxu2 %v9283_v28 }
 0x6c8   : > { %v9815_v9 = vadd.f32 %v5602_v44, %v9659_v42  ;;  %v10837_v44 = vld [vmem:[#allocation139_spill] sm:$0xff] }
 0x6c9   : > { %5743 = vmatmul.bf16.gmra.mxu1 %v9264_v8 }
 0x6ca   : > { %v5511_v5 = vpop.f32.mrf.mxu2 }
 0x6cd   : > { %v5603_v10 = vpop.f32.mrf.mxu3 }
 0x6ce   : > { %v5604_v26 = vadd.f32 %v5603_v10, %v5509_v17  ;;  %v5417_v36 = vpop.f32.mrf.mxu1 }
 0x6d0   : > { %v9819_v40 = vadd.f32 %v5604_v26, %v9665_v39 }
 0x6d2   : > { %v5512_v56 = vpop.f32.mrf.mxu2 }
 0x6d3   : > { %v10838_v56 = vld [vmem:[#allocation136_spill] sm:$0xff] }
 0x6d5   : > { %v5606_v2 = vpop.f32.mrf.mxu3 }
 0x6d6   : > { %v5713_v57 = vpop.f32.mrf.mxu1 }
 0x6d7   : > { %5843 = vmatmul.bf16.gmra.mxu2 %v9314_v31  ;;  %v5644_v57 = vpop.f32.mrf.mxu0 }
 0x6d9   : > { %5748 = vmatmul.bf16.gmra.mxu1 %v9293_v12 }
 0x6da   : > { %v5808_v28 = vpop.f32.mrf.mxu2 }
 0x6dd   : > { %v5607_v55 = vpop.f32.mrf.mxu3 }
 0x6de   : > { %v5714_v42 = vpop.f32.mrf.mxu1  ;;  %v10839_v55 = vld [vmem:[#allocation117_spill] sm:$0xff] }
 0x6e2   : > { %v5809_v25 = vpop.f32.mrf.mxu2 }
 0x6e6   : > { %v5716_v8 = vpop.f32.mrf.mxu1 }
 0x6e7   : > { %5848 = vmatmul.bf16.gmra.mxu2 %v9350_v38  ;;  %v10836_v38 = vld [vmem:[#allocation103_spill] sm:$0xff]  ;;  %v10840_v8 = vld [vmem:[#allocation148_spill] sm:$0xff] }
 0x6e9   : > { %5753 = vmatmul.bf16.gmra.mxu1 %v9326_v18 }
 0x6ea   : > { %v5811_v53 = vpop.f32.mrf.mxu2 }
 0x6ee   : > { %v5717_v39 = vpop.f32.mrf.mxu1 }
 0x6f2   : > { %v5812_v33 = vpop.f32.mrf.mxu2 }
 0x6f3   : > { %v10841_v33 = vld [vmem:[#allocation97_spill] sm:$0xff] }
 0x6f6   : > { %v5719_v4 = vpop.f32.mrf.mxu1 }
 0x6f7   : > { %v5720_v0 = vadd.f32 %v5719_v4, %v10835_v60  ;;  %5853 = vmatmul.bf16.gmra.mxu2 %v9388_v62 }
 0x6f9   : > { %5758 = vmatmul.bf16.gmra.mxu1 %v9360_v59 }
 0x6fa   : > { %v5814_v12 = vpop.f32.mrf.mxu2 }
 0x6fb   : > { %v5815_v31 = vadd.f32 %v5814_v12, %v5720_v0  ;;  %v5646_v0 = vpop.f32.mrf.mxu0 }
 0x6fd   : > { %v5926_v18 = vadd.f32 %v10836_v38, %v5815_v31 }
 0x6fe   : > { %v5721_v17 = vpop.f32.mrf.mxu1 }
 0x6ff   : > { %v5962_v46 = vadd.f32 %v9831_v14, %v5926_v18  ;;  %v5722_v3 = vadd.f32 %v5721_v17, %v10837_v44  ;;  %v10842_v17 = vld [vmem:[#allocation144_spill] sm:$0xff] }
 0x701   : > { %v5994_v5 = vmax.f32 %v5962_v46, 0.0 }
 0x702   : > { %v5816_v10 = vpop.f32.mrf.mxu2 }
 0x703   : > { %6026 = vst [vmem:[%s9837_s23] sm:$0xff] %v5994_v5  ;;  %v5817_v59 = vadd.f32 %v5816_v10, %v5722_v3  ;;  %v5649_v10 = vpop.f32.mrf.mxu0 }
 0x705   : > { %v5927_v62 = vadd.f32 %v9691_v58, %v5817_v59  ;;  %v10843_v59 = vld [vmem:[#allocation146_spill] sm:$0xff] }
 0x706   : > { %v5724_v26 = vpop.f32.mrf.mxu1 }
 0x707   : > { %v5963_v36 = vadd.f32 %v9831_v14, %v5927_v62  ;;  %v5725_v2 = vadd.f32 %v5724_v26, %v10838_v56  ;;  %5858 = vmatmul.bf16.gmra.mxu2 %v9421_v63 }
 0x709   : > { %v5995_v28 = vmax.f32 %v5963_v36, 0.0  ;;  %5763 = vmatmul.bf16.gmra.mxu1 %v10839_v55  ;;  %v10844_v36 = vld [vmem:[#allocation141_spill] sm:$0xff] }
 0x70a   : > { %v5819_v42 = vpop.f32.mrf.mxu2 }
 0x70b   : > { %6027 = vst [vmem:[%s9837_s23 + $0x8] sm:$0xff] %v5995_v28  ;;  %v5820_v25 = vadd.f32 %v5819_v42, %v5725_v2 }
 0x70d   : > { %v5928_v53 = vadd.f32 %v10840_v8, %v5820_v25  ;;  %v5651_v25 = vpop.f32.mrf.mxu0 }
 0x70e   : > { %v5726_v39 = vpop.f32.mrf.mxu1 }
 0x70f   : > { %v5964_v58 = vadd.f32 %v9831_v14, %v5928_v53  ;;  %v5727_v4 = vadd.f32 %v5726_v39, %v10841_v33  ;;  %v10846_v53 = vld [vmem:[#allocation143_spill] sm:$0xff]  ;;  %v10847_v33 = vld [vmem:[#allocation125_spill] sm:$0xff] }
 0x711   : > { %v5996_v60 = vmax.f32 %v5964_v58, 0.0 }
 0x712   : > { %v5821_v12 = vpop.f32.mrf.mxu2 }
 0x713   : > { %6028 = vst [vmem:[%s9837_s23 + $0x10] sm:$0xff] %v5996_v60  ;;  %v5822_v63 = vadd.f32 %v5821_v12, %v5727_v4 }
 0x715   : > { %v5929_v31 = vadd.f32 %v9700_v48, %v5822_v63 }
 0x716   : > { %v5729_v38 = vpop.f32.mrf.mxu1 }
 0x717   : > { %v5965_v18 = vadd.f32 %v9831_v14, %v5929_v31  ;;  %v5730_v46 = vadd.f32 %v5729_v38, %v10842_v17  ;;  %5863 = vmatmul.bf16.gmra.mxu2 %v9454_v27  ;;  %v10845_v27 = vld [vmem:[#allocation147_spill] sm:$0xff]  ;;  %v10848_v38 = vld [vmem:[#allocation142_spill] sm:$0xff]  ;;  %v5654_v17 = vpop.f32.mrf.mxu0 }
 0x719   : > { %v5997_v44 = vmax.f32 %v5965_v18, 0.0  ;;  %5768 = vmatmul.bf16.gmra.mxu1 %v9431_v6 }
 0x71a   : > { %v5824_v3 = vpop.f32.mrf.mxu2 }
 0x71b   : > { %6029 = vst [vmem:[%s9837_s23 + $0x18] sm:$0xff] %v5997_v44  ;;  %v5825_v5 = vadd.f32 %v5824_v3, %v5730_v46 }
 0x71d   : > { %v5930_v62 = vadd.f32 %v10843_v59, %v5825_v5 }
 0x71e   : > { %v5731_v26 = vpop.f32.mrf.mxu1 }
 0x71f   : > { %v5966_v48 = vadd.f32 %v9831_v14, %v5930_v62  ;;  %v5732_v56 = vadd.f32 %v5731_v26, %v10844_v36  ;;  %v5656_v36 = vpop.f32.mrf.mxu0 }
 0x721   : > { %v5998_v2 = vmax.f32 %v5966_v48, 0.0  ;;  %v10850_v48 = vld [vmem:[#allocation34_spill] sm:$0xff] }
 0x722   : > { %v5826_v28 = vpop.f32.mrf.mxu2 }
 0x723   : > { %6030 = vst [vmem:[%s9837_s23 + $0x20] sm:$0xff] %v5998_v2  ;;  %v5827_v55 = vadd.f32 %v5826_v28, %v5732_v56  ;;  %v10851_v28 = vld [vmem:[#allocation150_spill] sm:$0xff] }
 0x725   : > { %v5931_v42 = vadd.f32 %v10845_v27, %v5827_v55 }
 0x726   : > { %v5734_v6 = vpop.f32.mrf.mxu1 }
 0x727   : > { %v5967_v8 = vadd.f32 %v9831_v14, %v5931_v42  ;;  %v5735_v39 = vadd.f32 %v5734_v6, %v10846_v53  ;;  %5868 = vmatmul.bf16.gmra.mxu2 %v10814_v54  ;;  %v10849_v54 = vld [vmem:[#allocation108_spill] sm:$0xff] }
 0x729   : > { %v5999_v58 = vmax.f32 %v5967_v8, 0.0  ;;  %5773 = vmatmul.bf16.gmra.mxu1 %v10847_v33 }
 0x72a   : > { %v5829_v4 = vpop.f32.mrf.mxu2 }
 0x72b   : > { %6031 = vst [vmem:[%s9837_s23 + $0x28] sm:$0xff] %v5999_v58  ;;  %v5830_v60 = vadd.f32 %v5829_v4, %v5735_v39  ;;  %v5659_v39 = vpop.f32.mrf.mxu0 }
 0x72d   : > { %v5932_v12 = vadd.f32 %v9714_v32, %v5830_v60 }
 0x72e   : > { %v5736_v63 = vpop.f32.mrf.mxu1 }
 0x72f   : > { %v5968_v31 = vadd.f32 %v9831_v14, %v5932_v12  ;;  %v5737_v18 = vadd.f32 %v5736_v63, %v10848_v38  ;;  %v10852_v12 = vld [vmem:[#allocation130_spill] sm:$0xff] }
 0x731   : > { %v6000_v46 = vmax.f32 %v5968_v31, 0.0 }
 0x732   : > { %v5831_v44 = vpop.f32.mrf.mxu2 }
 0x733   : > { %6032 = vst [vmem:[%s9837_s23 + $0x30] sm:$0xff] %v6000_v46  ;;  %v5832_v3 = vadd.f32 %v5831_v44, %v5737_v18  ;;  %v5661_v38 = vpop.f32.mrf.mxu0 }
 0x735   : > { %v5933_v5 = vadd.f32 %v10849_v54, %v5832_v3  ;;  %v10853_v54 = vld [vmem:[#allocation113_spill] sm:$0xff] }
 0x736   : > { %v5739_v59 = vpop.f32.mrf.mxu1 }
 0x737   : > { %v5969_v62 = vadd.f32 %v9831_v14, %v5933_v5  ;;  %v5740_v26 = vadd.f32 %v5739_v59, %v5644_v57  ;;  %5873 = vmatmul.bf16.gmra.mxu2 %v10819_v29 }
 0x739   : > { %v6001_v32 = vmax.f32 %v5969_v62, 0.0  ;;  %5778 = vmatmul.bf16.gmra.mxu1 %v10850_v48 }
 0x73a   : > { %v5834_v56 = vpop.f32.mrf.mxu2 }
 0x73b   : > { %6033 = vst [vmem:[%s9837_s23 + $0x38] sm:$0xff] %v6001_v32  ;;  %v5835_v2 = vadd.f32 %v5834_v56, %v5740_v26 }
 0x73d   : > { %v5934_v55 = vadd.f32 %v10851_v28, %v5835_v2 }
 0x73e   : > { %v5741_v27 = vpop.f32.mrf.mxu1 }
 0x73f   : > { %v5970_v42 = vadd.f32 %v9831_v14, %v5934_v55  ;;  %v5742_v6 = vadd.f32 %v5741_v27, %v5646_v0 }
 0x741   : > { %v6002_v8 = vmax.f32 %v5970_v42, 0.0 }
 0x742   : > { %v5836_v53 = vpop.f32.mrf.mxu2 }
 0x743   : > { %6034 = vst [vmem:[%s9837_s23 + $0x40] sm:$0xff] %v6002_v8  ;;  %v5837_v57 = vadd.f32 %v5836_v53, %v5742_v6 }
 0x745   : > { %v5935_v29 = vadd.f32 %v9727_v13, %v5837_v57 }
 0x746   : > { %v5744_v58 = vpop.f32.mrf.mxu1 }
 0x747   : > { %v5971_v33 = vadd.f32 %v9831_v14, %v5935_v29  ;;  %v5745_v4 = vadd.f32 %v5744_v58, %v5649_v10  ;;  %5878 = vmatmul.bf16.gmra.mxu2 %v10823_v37 }
 0x749   : > { %v6003_v60 = vmax.f32 %v5971_v33, 0.0  ;;  %5783 = vmatmul.bf16.gmra.mxu1 %v10852_v12 }
 0x74a   : > { %v5839_v63 = vpop.f32.mrf.mxu2 }
 0x74b   : > { %6035 = vst [vmem:[%s9837_s23 + $0x48] sm:$0xff] %v6003_v60  ;;  %v5840_v0 = vadd.f32 %v5839_v63, %v5745_v4 }
 0x74d   : > { %v5936_v31 = vadd.f32 %v9732_v23, %v5840_v0  ;;  %v5664_v23 = vpop.f32.mrf.mxu0 }
 0x74e   : > { %v5746_v18 = vpop.f32.mrf.mxu1 }
 0x74f   : > { %v5972_v13 = vadd.f32 %v9831_v14, %v5936_v31  ;;  %v5747_v46 = vadd.f32 %v5746_v18, %v5651_v25 }
 0x751   : > { %v6004_v44 = vmax.f32 %v5972_v13, 0.0 }
 0x752   : > { %v5841_v3 = vpop.f32.mrf.mxu2 }
 0x753   : > { %6036 = vst [vmem:[%s9837_s23 + $0x50] sm:$0xff] %v6004_v44  ;;  %v5842_v10 = vadd.f32 %v5841_v3, %v5747_v46 }
 0x755   : > { %v5937_v37 = vadd.f32 %v10853_v54, %v5842_v10  ;;  %v5666_v27 = vpop.f32.mrf.mxu0 }
 0x756   : > { %v5749_v5 = vpop.f32.mrf.mxu1 }
 0x757   : > { %v5973_v59 = vadd.f32 %v9831_v14, %v5937_v37  ;;  %v5750_v62 = vadd.f32 %v5749_v5, %v5654_v17  ;;  %5883 = vmatmul.bf16.gmra.mxu2 %v9572_v41 }
 0x759   : > { %v6005_v26 = vmax.f32 %v5973_v59, 0.0  ;;  %5788 = vmatmul.bf16.gmra.mxu1 %v9565_v11 }
 0x75a   : > { %v5844_v32 = vpop.f32.mrf.mxu2 }
 0x75b   : > { %6037 = vst [vmem:[%s9837_s23 + $0x58] sm:$0xff] %v6005_v26  ;;  %v5845_v25 = vadd.f32 %v5844_v32, %v5750_v62 }
 0x75d   : > { %v5938_v48 = vadd.f32 %v9741_v15, %v5845_v25  ;;  %v5669_v57 = vpop.f32.mrf.mxu0 }
 0x75e   : > { %v5751_v56 = vpop.f32.mrf.mxu1 }
 0x75f   : > { %v5974_v2 = vadd.f32 %v9831_v14, %v5938_v48  ;;  %v5752_v28 = vadd.f32 %v5751_v56, %v5656_v36 }
 0x761   : > { %v6006_v55 = vmax.f32 %v5974_v2, 0.0 }
 0x762   : > { %v5846_v42 = vpop.f32.mrf.mxu2 }
 0x763   : > { %6038 = vst [vmem:[%s9837_s23 + $0x60] sm:$0xff] %v6006_v55  ;;  %v5847_v17 = vadd.f32 %v5846_v42, %v5752_v28 }
 0x765   : > { %v5939_v41 = vadd.f32 %v9745_v43, %v5847_v17  ;;  %v5671_v12 = vpop.f32.mrf.mxu0 }
 0x766   : > { %v5754_v6 = vpop.f32.mrf.mxu1 }
 0x767   : > { %v5975_v11 = vadd.f32 %v9831_v14, %v5939_v41  ;;  %v5755_v8 = vadd.f32 %v5754_v6, %v5659_v39  ;;  %5888 = vmatmul.bf16.gmra.mxu2 %v9597_v52 }
 0x769   : > { %v6007_v15 = vmax.f32 %v5975_v11, 0.0  ;;  %5793 = vmatmul.bf16.gmra.mxu1 %v10771_v19 }
 0x76a   : > { %v5849_v53 = vpop.f32.mrf.mxu2 }
 0x76b   : > { %6039 = vst [vmem:[%s9837_s23 + $0x68] sm:$0xff] %v6007_v15  ;;  %v5850_v36 = vadd.f32 %v5849_v53, %v5755_v8 }
 0x76d   : > { %v5940_v29 = vadd.f32 %v9750_v1, %v5850_v36  ;;  %v5674_v3 = vpop.f32.mrf.mxu0 }
 0x76e   : > { %v5756_v58 = vpop.f32.mrf.mxu1 }
 0x76f   : > { %v5976_v43 = vadd.f32 %v9831_v14, %v5940_v29  ;;  %v5757_v33 = vadd.f32 %v5756_v58, %v5661_v38 }
 0x771   : > { %v6008_v4 = vmax.f32 %v5976_v43, 0.0 }
 0x772   : > { %v5851_v60 = vpop.f32.mrf.mxu2 }
 0x773   : > { %6040 = vst [vmem:[%s9837_s23 + $0x70] sm:$0xff] %v6008_v4  ;;  %v5852_v39 = vadd.f32 %v5851_v60, %v5757_v33 }
 0x775   : > { %v5941_v52 = vadd.f32 %v9754_v45, %v5852_v39  ;;  %v5676_v26 = vpop.f32.mrf.mxu0 }
 0x776   : > { %v5759_v19 = vpop.f32.mrf.mxu1 }
 0x777   : > { %v5977_v63 = vadd.f32 %v9831_v14, %v5941_v52  ;;  %v5760_v0 = vadd.f32 %v5759_v19, %v5664_v23 }
 0x779   : > { %v6009_v31 = vmax.f32 %v5977_v63, 0.0 }
 0x77a   : > { %v5854_v18 = vpop.f32.mrf.mxu2 }
 0x77b   : > { %6041 = vst [vmem:[%s9837_s23 + $0x78] sm:$0xff] %v6009_v31  ;;  %v5855_v1 = vadd.f32 %v5854_v18, %v5760_v0 }
 0x77d   : > { %v5942_v13 = vadd.f32 %v9759_v22, %v5855_v1 }
 0x77e   : > { %v5761_v38 = vpop.f32.mrf.mxu1 }
 0x77f   : > { %v5978_v46 = vadd.f32 %v9831_v14, %v5942_v13  ;;  %v5762_v44 = vadd.f32 %v5761_v38, %v5666_v27  ;;  %v5679_v27 = vpop.f32.mrf.mxu0 }
 0x781   : > { %v6010_v10 = vmax.f32 %v5978_v46, 0.0 }
 0x782   : > { %v5856_v45 = vpop.f32.mrf.mxu2 }
 0x783   : > { %6042 = vst [vmem:[%s9837_s23 + $0x80] sm:$0xff] %v6010_v10  ;;  %v5857_v54 = vadd.f32 %v5856_v45, %v5762_v44 }
 0x785   : > { %v5943_v37 = vadd.f32 %v9763_v49, %v5857_v54 }
 0x786   : > { %v5764_v5 = vpop.f32.mrf.mxu1 }
 0x787   : > { %v5979_v59 = vadd.f32 %v9831_v14, %v5943_v37  ;;  %v5765_v62 = vadd.f32 %v5764_v5, %v5669_v57  ;;  %v5681_v53 = vpop.f32.mrf.mxu0 }
 0x789   : > { %v6011_v23 = vmax.f32 %v5979_v59, 0.0 }
 0x78a   : > { %v5859_v22 = vpop.f32.mrf.mxu2 }
 0x78b   : > { %6043 = vst [vmem:[%s9837_s23 + $0x88] sm:$0xff] %v6011_v23  ;;  %v5860_v32 = vadd.f32 %v5859_v22, %v5765_v62 }
 0x78d   : > { %v5944_v25 = vadd.f32 %v9767_v61, %v5860_v32 }
 0x78e   : > { %v5766_v48 = vpop.f32.mrf.mxu1 }
 0x78f   : > { %v5980_v56 = vadd.f32 %v9831_v14, %v5944_v25  ;;  %v5767_v2 = vadd.f32 %v5766_v48, %v5671_v12  ;;  %v5684_v52 = vpop.f32.mrf.mxu0 }
 0x791   : > { %v6012_v28 = vmax.f32 %v5980_v56, 0.0 }
 0x792   : > { %v5861_v55 = vpop.f32.mrf.mxu2 }
 0x793   : > { %6044 = vst [vmem:[%s9837_s23 + $0x90] sm:$0xff] %v6012_v28  ;;  %v5862_v49 = vadd.f32 %v5861_v55, %v5767_v2 }
 0x795   : > { %v5945_v42 = vadd.f32 %v9771_v20, %v5862_v49 }
 0x796   : > { %v5769_v17 = vpop.f32.mrf.mxu1 }
 0x797   : > { %v5981_v41 = vadd.f32 %v9831_v14, %v5945_v42  ;;  %v5770_v6 = vadd.f32 %v5769_v17, %v5674_v3  ;;  %v5686_v13 = vpop.f32.mrf.mxu0 }
 0x799   : > { %v6013_v11 = vmax.f32 %v5981_v41, 0.0 }
 0x79a   : > { %v5864_v8 = vpop.f32.mrf.mxu2 }
 0x79b   : > { %6045 = vst [vmem:[%s9837_s23 + $0x98] sm:$0xff] %v6013_v11  ;;  %v5865_v61 = vadd.f32 %v5864_v8, %v5770_v6 }
 0x79d   : > { %v5946_v15 = vadd.f32 %v9775_v34, %v5865_v61 }
 0x79e   : > { %v5771_v36 = vpop.f32.mrf.mxu1 }
 0x79f   : > { %v5982_v57 = vadd.f32 %v9831_v14, %v5946_v15  ;;  %v5772_v29 = vadd.f32 %v5771_v36, %v5676_v26  ;;  %v5689_v37 = vpop.f32.mrf.mxu0 }
 0x7a1   : > { %v6014_v58 = vmax.f32 %v5982_v57, 0.0 }
 0x7a2   : > { %v5866_v43 = vpop.f32.mrf.mxu2 }
 0x7a3   : > { %6046 = vst [vmem:[%s9837_s23 + $0xa0] sm:$0xff] %v6014_v58  ;;  %v5867_v20 = vadd.f32 %v5866_v43, %v5772_v29 }
 0x7a5   : > { %v5947_v33 = vadd.f32 %v9779_v21, %v5867_v20 }
 0x7a6   : > { %v5774_v4 = vpop.f32.mrf.mxu1 }
 0x7a7   : > { %v5983_v60 = vadd.f32 %v9831_v14, %v5947_v33  ;;  %v5775_v39 = vadd.f32 %v5774_v4, %v5679_v27  ;;  %v5691_v25 = vpop.f32.mrf.mxu0 }
 0x7a9   : > { %v6015_v12 = vmax.f32 %v5983_v60, 0.0 }
 0x7aa   : > { %v5869_v34 = vpop.f32.mrf.mxu2 }
 0x7ab   : > { %6047 = vst [vmem:[%s9837_s23 + $0xa8] sm:$0xff] %v6015_v12  ;;  %v5870_v19 = vadd.f32 %v5869_v34, %v5775_v39 }
 0x7ad   : > { %v5948_v63 = vadd.f32 %v9783_v24, %v5870_v19 }
 0x7ae   : > { %v5776_v0 = vpop.f32.mrf.mxu1 }
 0x7af   : > { %v5984_v31 = vadd.f32 %v9831_v14, %v5948_v63  ;;  %v5777_v18 = vadd.f32 %v5776_v0, %v5681_v53  ;;  %v5694_v41 = vpop.f32.mrf.mxu0 }
 0x7b1   : > { %v6016_v1 = vmax.f32 %v5984_v31, 0.0 }
 0x7b2   : > { %v5871_v21 = vpop.f32.mrf.mxu2 }
 0x7b3   : > { %6048 = vst [vmem:[%s9837_s23 + $0xb0] sm:$0xff] %v6016_v1  ;;  %v5872_v38 = vadd.f32 %v5871_v21, %v5777_v18 }
 0x7b5   : > { %v5949_v46 = vadd.f32 %v9787_v7, %v5872_v38 }
 0x7b6   : > { %v5779_v44 = vpop.f32.mrf.mxu1 }
 0x7b7   : > { %v5985_v3 = vadd.f32 %v9831_v14, %v5949_v46  ;;  %v5780_v10 = vadd.f32 %v5779_v44, %v5684_v52  ;;  %v5696_v57 = vpop.f32.mrf.mxu0 }
 0x7b9   : > { %v6017_v45 = vmax.f32 %v5985_v3, 0.0 }
 0x7ba   : > { %v5874_v54 = vpop.f32.mrf.mxu2 }
 0x7bb   : > { %6049 = vst [vmem:[%s9837_s23 + $0xb8] sm:$0xff] %v6017_v45  ;;  %v5875_v24 = vadd.f32 %v5874_v54, %v5780_v10 }
 0x7bd   : > { %v5950_v5 = vadd.f32 %v9791_v30, %v5875_v24 }
 0x7be   : > { %v5781_v59 = vpop.f32.mrf.mxu1 }
 0x7bf   : > { %v5986_v62 = vadd.f32 %v9831_v14, %v5950_v5  ;;  %v5782_v23 = vadd.f32 %v5781_v59, %v5686_v13  ;;  %v5699_v39 = vpop.f32.mrf.mxu0 }
 0x7c1   : > { %v6018_v26 = vmax.f32 %v5986_v62, 0.0 }
 0x7c2   : > { %v5876_v22 = vpop.f32.mrf.mxu2 }
 0x7c3   : > { %6050 = vst [vmem:[%s9837_s23 + $0xc0] sm:$0xff] %v6018_v26  ;;  %v5877_v7 = vadd.f32 %v5876_v22, %v5782_v23 }
 0x7c5   : > { %v5951_v32 = vadd.f32 %v9795_v35, %v5877_v7 }
 0x7c6   : > { %v5784_v48 = vpop.f32.mrf.mxu1 }
 0x7c7   : > { %v5987_v56 = vadd.f32 %v9831_v14, %v5951_v32  ;;  %v5785_v2 = vadd.f32 %v5784_v48, %v5689_v37  ;;  %v5701_v18 = vpop.f32.mrf.mxu0 }
 0x7c9   : > { %v6019_v28 = vmax.f32 %v5987_v56, 0.0 }
 0x7ca   : > { %v5879_v55 = vpop.f32.mrf.mxu2 }
 0x7cb   : > { %6051 = vst [vmem:[%s9837_s23 + $0xc8] sm:$0xff] %v6019_v28  ;;  %v5880_v30 = vadd.f32 %v5879_v55, %v5785_v2 }
 0x7cd   : > { %v5952_v49 = vadd.f32 %v9799_v50, %v5880_v30 }
 0x7ce   : > { %v5786_v27 = vpop.f32.mrf.mxu1 }
 0x7cf   : > { %v5988_v42 = vadd.f32 %v9831_v14, %v5952_v49  ;;  %v5787_v17 = vadd.f32 %v5786_v27, %v5691_v25 }
 0x7d1   : > { %v6020_v6 = vmax.f32 %v5988_v42, 0.0 }
 0x7d2   : > { %v5881_v35 = vpop.f32.mrf.mxu2 }
 0x7d3   : > { %6052 = vst [vmem:[%s9837_s23 + $0xd0] sm:$0xff] %v6020_v6  ;;  %v5882_v11 = vadd.f32 %v5881_v35, %v5787_v17 }
 0x7d5   : > { %v5953_v8 = vadd.f32 %v9803_v51, %v5882_v11 }
 0x7d6   : > { %v5789_v61 = vpop.f32.mrf.mxu1 }
 0x7d7   : > { %v5989_v15 = vadd.f32 %v9831_v14, %v5953_v8  ;;  %v5790_v53 = vadd.f32 %v5789_v61, %v5694_v41 }
 0x7d9   : > { %v6021_v36 = vmax.f32 %v5989_v15, 0.0 }
 0x7da   : > { %v5884_v50 = vpop.f32.mrf.mxu2 }
 0x7db   : > { %6053 = vst [vmem:[%s9837_s23 + $0xd8] sm:$0xff] %v6021_v36  ;;  %v5885_v29 = vadd.f32 %v5884_v50, %v5790_v53 }
 0x7dd   : > { %v5954_v58 = vadd.f32 %v9807_v47, %v5885_v29 }
 0x7de   : > { %v5791_v43 = vpop.f32.mrf.mxu1 }
 0x7df   : > { %v5990_v20 = vadd.f32 %v9831_v14, %v5954_v58  ;;  %v5792_v33 = vadd.f32 %v5791_v43, %v5696_v57 }
 0x7e1   : > { %v6022_v4 = vmax.f32 %v5990_v20, 0.0 }
 0x7e2   : > { %v5886_v60 = vpop.f32.mrf.mxu2 }
 0x7e3   : > { %6054 = vst [vmem:[%s9837_s23 + $0xe0] sm:$0xff] %v6022_v4  ;;  %v5887_v51 = vadd.f32 %v5886_v60, %v5792_v33 }
 0x7e5   : > { %v5955_v52 = vadd.f32 %v9811_v16, %v5887_v51 }
 0x7e6   : > { %v5794_v12 = vpop.f32.mrf.mxu1 }
 0x7e7   : > { %v5991_v34 = vadd.f32 %v9831_v14, %v5955_v52  ;;  %v5795_v19 = vadd.f32 %v5794_v12, %v5699_v39 }
 0x7e9   : > { %v6023_v63 = vmax.f32 %v5991_v34, 0.0 }
 0x7ea   : > { %v5889_v47 = vpop.f32.mrf.mxu2 }
 0x7eb   : > { %6055 = vst [vmem:[%s9837_s23 + $0xe8] sm:$0xff] %v6023_v63  ;;  %v5890_v0 = vadd.f32 %v5889_v47, %v5795_v19 }
 0x7ed   : > { %v5956_v31 = vadd.f32 %v9815_v9, %v5890_v0 }
 0x7ee   : > { %v5796_v1 = vpop.f32.mrf.mxu1 }
 0x7ef   : > { %v5992_v13 = vadd.f32 %v9831_v14, %v5956_v31  ;;  %v5797_v21 = vadd.f32 %v5796_v1, %v5701_v18 }
 0x7f1   : > { %v6024_v16 = vmax.f32 %v5992_v13, 0.0 }
 0x7f2   : > { %v5891_v38 = vpop.f32.mrf.mxu2 }
 0x7f3   : > { %6056 = vst [vmem:[%s9837_s23 + $0xf0] sm:$0xff] %v6024_v16  ;;  %v5892_v46 = vadd.f32 %v5891_v38, %v5797_v21 }
 0x7f5   : > { %v5957_v44 = vadd.f32 %v9819_v40, %v5892_v46 }
 0x7f7   : > { %v5993_v9 = vadd.f32 %v9831_v14, %v5957_v44 }
 0x7f9   : > { %v6025_v3 = vmax.f32 %v5993_v9, 0.0 }
 0x7fb   : > { %6057 = vst [vmem:[%s9837_s23 + $0xf8] sm:$0xff] %v6025_v3 }
 0x7fc   : > { %7298 = shalt.err (!%p7295_p0)
}
 0x7fd   : > { %s7375_s2 = smov 128   ;;  %s7376_s22 = smov 8  }
 0x7fe   : > { %7060 = dma.vmem_to_hbm [thread:$0]  (%p7501_p7), %s6075_s11, 4096, %s6077_s13, %s6059_s30, %s7375_s2, %s7375_s2, %s7376_s22  }
 0x7ff PF: > { %s10854_s6 = sld [smem:[#allocation16_spill]]  ;;  %p7077_p3 = pnand %p6215_p11, %p7467_p6 }
 0x801   : > { %p7078_p5 = pneg %p7077_p3 }
 0x805   : > { %s6091_s19 = sand.u32 1, %s10854_s6  }
 0x806   : > { %s6092_s14 = scalar_lea.sflag [#allocation4], %s6091_s19 }
 0x807   : > { %7340 = dma.done.wait (%p7078_p5), %s6092_s14, 4096  }
 0x808   : > { %7342 = vsyncadd (%p7078_p5), %s6092_s14, 4294963200  ;;  %s28_s10 = sadd.s32 1, %s7365_s10   ;;  %s10856_s21 = sld [smem:[#allocation17_spill]] }
 0x809   : > { %p25_p9 = scmp.ge.s32.totalorder %s28_s10, 4   ;;  %s10857_s29 = sld [smem:[#allocation21_spill]] }
 0x80a   : > { %s10858_s30 = sld [smem:[#allocation18_spill]]  ;;  %s10860_s27 = smov %s7349_s28 }
 0x80b   : > { %s10859_s9 = sld [smem:[#allocation20_spill]]  ;;  %27 = sbr.rel (!%p25_p9) target bundleno = 13 (0xd), region = 118 }
 0x80e   : > { %s10861_s28 = smov %s10856_s21 }
 0x810   :  { %6098 = vsyncpa [#allocation3], 1 }
 0x811   :  { %6100 = vsyncpa [#allocation3 + $0x1], 1 }
 0x812   :  { %6101 = vsyncpa [#allocation6], 1 }
 0x813   :  { %6103 = vsyncpa [#allocation6 + $0x1], 1 }
 0x814   :  { %6104 = vsyncpa [#allocation9], 1 }
 0x815   :  { %6105 = vsyncpa [#allocation4], 1 }
 0x816   :  { %6107 = vsyncpa [#allocation4 + $0x1], 1 }

</bundles_post_ra>
